<compile_context>
chip_gen: v6e
topology: v6e:2x2x1
jax: 0.10.0
libtpu: 0.0.40
codegen_flags: <defaults>
</compile_context>

<pallas_src>
import jax
import jax.numpy as jnp
import numpy as np
from jax.experimental import pallas as pl
from jax.experimental.pallas import tpu as pltpu


# ----------------------------- fused Pallas kernel ----------------------------

def _lenet_kernel(x_ref, m1_ref, b1_ref, m2_ref, b2_ref,
                  fw1_ref, fb1_ref, fw2_ref, fb2_ref, o_ref):
    # x_ref : (4, 7, bb, 28) bf16  -- x_ref[m, t, b, s] = image[b, 4*t + m, s]
    # m1_ref: (5, 28, 512)  bf16   -- conv1 banded weights, cols (dj, q, c) padded
    # m2_ref: (5, 256, 512) bf16   -- conv2 banded weights, cols (dj2, q2, d) padded
    # fw1_ref:(4, 256, 500) bf16   -- fc1 split by pooled row p2 (torch flatten absorbed)
    # fw2_ref:(500, 10) bf16; biases f32; o_ref: (bb, 10) f32
    bb = x_ref.shape[2]
    x = x_ref[...]                                       # (4, 7, bb, 28)

    # The 8 distinct input-row selections (u = 2*hh + di + kh in 0..7):
    # rows u, u+4, u+8, ... u+20 of the original image, contiguous after the
    # wrapper's mod-4 regroup.  Merging (6, bb) -> 6*bb keeps 8-aligned rows.
    xs = [x[u % 4, u // 4:u // 4 + 6].reshape(6 * bb, 28) for u in range(8)]

    # ---- conv1 + bias + ReLU fused with 2x2 max-pool -------------------------
    # hh = parity of the pooled row p (so conv2's row slices stay contiguous),
    # di = pool row offset (separate accumulators), dj = pool col offset
    # (128-aligned lane halves of the banded-weight output).
    pooled1 = []                                         # [p even, p odd] halves
    for hh in range(2):
        mx = None
        for di in range(2):
            acc = None
            for kh in range(5):
                t = jnp.dot(xs[2 * hh + di + kh], m1_ref[kh],
                            preferred_element_type=jnp.float32)
                acc = t if acc is None else acc + t
            mx = acc if mx is None else jnp.maximum(mx, acc)
        mx = jnp.maximum(mx[:, :256], mx[:, 256:])       # pool over dj
        pooled1.append(
            jnp.maximum(mx + b1_ref[...], 0.0).astype(jnp.bfloat16))
    # pooled1[hh]: (6*bb, 256), rows (t, b) <-> pooled row p = 2*t + hh,
    # cols q*20 + c (cols 240..255 are exact zeros).

    # ---- conv2 + bias + ReLU fused with 2x2 max-pool -------------------------
    mx = None
    for di in range(2):
        acc = None
        for kh in range(5):
            u = di + kh
            lhs = pooled1[u % 2][(u // 2) * bb:(u // 2 + 4) * bb, :]
            t = jnp.dot(lhs, m2_ref[kh], preferred_element_type=jnp.float32)
            acc = t if acc is None else acc + t
        mx = acc if mx is None else jnp.maximum(mx, acc)
    mx = jnp.maximum(mx[:, :256], mx[:, 256:])
    feat = jnp.maximum(mx + b2_ref[...], 0.0).astype(jnp.bfloat16)
    # feat: (4*bb, 256), rows (p2, b), cols q2*50 + d (cols 200..255 zero).

    # ---- fc1 + ReLU (split by pooled row p2 -> no relayout of feat) ----------
    h = None
    for p2 in range(4):
        t = jnp.dot(feat[p2 * bb:(p2 + 1) * bb, :], fw1_ref[p2],
                    preferred_element_type=jnp.float32)
        h = t if h is None else h + t
    h = jnp.maximum(h + fb1_ref[...], 0.0)               # (bb, 500) f32

    # ---- fc2 + log_softmax ----------------------------------------------------
    logits = jnp.dot(h.astype(jnp.bfloat16), fw2_ref[...],
                     preferred_element_type=jnp.float32) + fb2_ref[...]
    m = jnp.max(logits, axis=-1, keepdims=True)
    s = logits - m
    lse = jnp.log(jnp.sum(jnp.exp(s), axis=-1, keepdims=True))
    o_ref[...] = (s - lse).astype(o_ref.dtype)


# ----------------------------- tiling helpers ---------------------------------

def _chip_defaults():
    """Generation-aware batch-tile cap and VMEM limit."""
    try:
        kind = jax.devices()[0].device_kind.lower()
    except Exception:
        kind = ""
    if "v5" in kind or "v6" in kind:          # 128 MiB VMEM chips -> bigger tiles
        return 32, 64 * 1024 * 1024
    return 16, 32 * 1024 * 1024               # v7x (64 MiB / TC) and default


_CAP, _VMEM_LIMIT = _chip_defaults()


def _pick_bb(bp, cap):
    """bp is a multiple of 8.  Return a multiple-of-8 divisor of bp, <= cap,
    and <= bp//2 whenever possible so the grid has >=2 steps (v7x megacore)."""
    target = bp if bp < 16 else min(cap, bp // 2)
    target = max(8, (target // 8) * 8)
    for cand in range(target, 7, -8):
        if bp % cand == 0:
            return cand
    return 8


# ----------------------------- params -----------------------------------------

def init_params(key):
    ks = jax.random.split(key, 8)

    def rnd(k, shape, scale):
        return scale * jax.random.normal(k, shape, jnp.float32)

    return {
        "c1w": rnd(ks[0], (20, 1, 5, 5), 0.2),     # torch Conv2d OIHW
        "c1b": rnd(ks[1], (20,), 0.1),
        "c2w": rnd(ks[2], (50, 20, 5, 5), 0.05),
        "c2b": rnd(ks[3], (50,), 0.1),
        "f1w": rnd(ks[4], (500, 800), 0.03),       # torch Linear (out, in)
        "f1b": rnd(ks[5], (500,), 0.1),
        "f2w": rnd(ks[6], (10, 500), 0.05),
        "f2b": rnd(ks[7], (10,), 0.1),
    }


def prepare_params(p):
    """One-time conversion of torch-layout params into banded, lane-aligned
    GEMM weights.  All padding columns/rows are exact zeros."""
    c1w = np.asarray(p["c1w"], np.float32)       # (20, 1, 5, 5)
    c2w = np.asarray(p["c2w"], np.float32)       # (50, 20, 5, 5)
    f1w = np.asarray(p["f1w"], np.float32)       # (500, 800)
    f2w = np.asarray(p["f2w"], np.float32)       # (10, 500)
    c1b = np.asarray(p["c1b"], np.float32)
    c2b = np.asarray(p["c2b"], np.float32)

    # conv1: M1[kh, s, dj*256 + q*20 + c] = c1w[c,0,kh, s-(2q+dj)]  (banded)
    m1 = np.zeros((5, 28, 512), np.float32)
    for kh in range(5):
        for dj in range(2):
            for q in range(12):
                for kw in range(5):
                    s = 2 * q + dj + kw
                    c0 = dj * 256 + q * 20
                    m1[kh, s, c0:c0 + 20] = c1w[:, 0, kh, kw]

    # conv2: M2[kh, q*20 + c, dj2*256 + q2*50 + d] = c2w[d,c,kh, q-(2q2+dj2)]
    m2 = np.zeros((5, 256, 512), np.float32)
    for kh in range(5):
        for dj in range(2):
            for q2 in range(4):
                for kw in range(5):
                    q = 2 * q2 + dj + kw
                    c0 = dj * 256 + q2 * 50
                    m2[kh, q * 20:q * 20 + 20, c0:c0 + 50] = c2w[:, :, kh, kw].T

    # fc1: absorb torch's NCHW flatten (f = d*16 + p2*4 + q2) and our (q2, d)
    # feature column order; split by pooled row p2; pad rows 200->256.
    fw1 = f1w.reshape(500, 50, 4, 4)             # (n, d, p2, q2)
    fw1 = np.transpose(fw1, (2, 3, 1, 0))        # (p2, q2, d, n)
    fw1k = np.zeros((4, 256, 500), np.float32)
    fw1k[:, :200, :] = fw1.reshape(4, 200, 500)

    b1 = np.zeros((1, 256), np.float32)
    b1[0, :240] = np.tile(c1b, 12)               # cols (q, c)
    b2 = np.zeros((1, 256), np.float32)
    b2[0, :200] = np.tile(c2b, 4)                # cols (q2, d)

    return {
        "m1": jnp.asarray(m1, jnp.bfloat16),
        "b1": jnp.asarray(b1, jnp.float32),
        "m2": jnp.asarray(m2, jnp.bfloat16),
        "b2": jnp.asarray(b2, jnp.float32),
        "fw1": jnp.asarray(fw1k, jnp.bfloat16),
        "fb1": jnp.asarray(np.asarray(p["f1b"], np.float32).reshape(1, 500)),
        "fw2": jnp.asarray(f2w.T, jnp.bfloat16),
        "fb2": jnp.asarray(np.asarray(p["f2b"], np.float32).reshape(1, 10)),
    }


# ----------------------------- model forward -----------------------------------

@jax.jit
def basic_model_forward(x_nchw, kp):
    B = x_nchw.shape[0]
    Bp = ((B + 7) // 8) * 8                      # pad batch to a multiple of 8
    x = x_nchw.reshape(B, 28, 28)
    if Bp != B:
        x = jnp.pad(x, ((0, Bp - B), (0, 0), (0, 0)))

    # Regroup image rows by (row mod 4) and move batch next to the lane dim:
    # xprep[m, t, b, s] = x[b, 4*t + m, s].  This makes every in-kernel patch /
    # pool row selection a contiguous, 8-aligned slice (no in-kernel relayout).
    xprep = jnp.transpose(x.reshape(Bp, 7, 4, 28), (2, 1, 0, 3)).astype(jnp.bfloat16)

    bb = _pick_bb(Bp, _CAP)
    out = pl.pallas_call(
        _lenet_kernel,
        out_shape=jax.ShapeDtypeStruct((Bp, 10), jnp.float32),
        grid=(Bp // bb,),
        in_specs=[
            pl.BlockSpec((4, 7, bb, 28), lambda i: (0, 0, i, 0)),   # input block
            pl.BlockSpec((5, 28, 512), lambda i: (0, 0, 0)),        # conv1 weights
            pl.BlockSpec((1, 256), lambda i: (0, 0)),               # conv1 bias
            pl.BlockSpec((5, 256, 512), lambda i: (0, 0, 0)),       # conv2 weights
            pl.BlockSpec((1, 256), lambda i: (0, 0)),               # conv2 bias
            pl.BlockSpec((4, 256, 500), lambda i: (0, 0, 0)),       # fc1 weights
            pl.BlockSpec((1, 500), lambda i: (0, 0)),               # fc1 bias
            pl.BlockSpec((500, 10), lambda i: (0, 0)),              # fc2 weights
            pl.BlockSpec((1, 10), lambda i: (0, 0)),                # fc2 bias
        ],
        out_specs=pl.BlockSpec((bb, 10), lambda i: (i, 0)),
        compiler_params=pltpu.CompilerParams(
            dimension_semantics=("parallel",),
            vmem_limit_bytes=_VMEM_LIMIT),
    )(xprep, kp["m1"], kp["b1"], kp["m2"], kp["b2"],
      kp["fw1"], kp["fb1"], kp["fw2"], kp["fb2"])
    return out[:B]


# ----------------------------- pure-JAX reference -------------------------------

def ref_forward(x_nchw, p):
    dn = ("NCHW", "OIHW", "NCHW")
    y = jax.lax.conv_general_dilated(x_nchw, p["c1w"], (1, 1), "VALID",
                                     dimension_numbers=dn)
    y = jax.nn.relu(y + p["c1b"][None, :, None, None])
    y = jax.lax.reduce_window(y, -jnp.inf, jax.lax.max,
                              (1, 1, 2, 2), (1, 1, 2, 2), "VALID")
    y = jax.lax.conv_general_dilated(y, p["c2w"], (1, 1), "VALID",
                                     dimension_numbers=dn)
    y = jax.nn.relu(y + p["c2b"][None, :, None, None])
    y = jax.lax.reduce_window(y, -jnp.inf, jax.lax.max,
                              (1, 1, 2, 2), (1, 1, 2, 2), "VALID")
    y = y.reshape(y.shape[0], -1)
    y = jax.nn.relu(y @ p["f1w"].T + p["f1b"])
    y = y @ p["f2w"].T + p["f2b"]
    return jax.nn.log_softmax(y, axis=-1)


if __name__ == "__main__":
    key = jax.random.PRNGKey(0)
    pkey, xkey = jax.random.split(key)
    params = init_params(pkey)
    kp = prepare_params(params)                  # one-time, outside jit
    x = jax.random.normal(xkey, (2, 1, 28, 28), jnp.float32)

    out = jax.block_until_ready(basic_model_forward(x, kp))
    assert out.shape == (2, 10) and out.dtype == jnp.float32

    ref = np.asarray(ref_forward(x, params))
    # bf16 matmul operands with f32 accumulation -> bf16-appropriate tolerance.
    np.testing.assert_allclose(np.asarray(out), ref, atol=7.5e-2, rtol=7.5e-2)
    np.testing.assert_allclose(np.exp(np.asarray(out)).sum(axis=1),
                               np.ones(2), atol=1e-3)
    print("KERNEL_OK")
</pallas_src>

<mosaic_0001>
module attributes {stable_mosaic.version = 11 : i64} {
  func.func @_lenet_kernel(%arg0: i32, %arg1: memref<4x7x8x28xbf16, #tpu.memory_space<vmem>>, %arg2: memref<5x28x512xbf16, #tpu.memory_space<vmem>>, %arg3: memref<1x256xf32, #tpu.memory_space<vmem>>, %arg4: memref<5x256x512xbf16, #tpu.memory_space<vmem>>, %arg5: memref<1x256xf32, #tpu.memory_space<vmem>>, %arg6: memref<4x256x500xbf16, #tpu.memory_space<vmem>>, %arg7: memref<1x500xf32, #tpu.memory_space<vmem>>, %arg8: memref<500x10xbf16, #tpu.memory_space<vmem>>, %arg9: memref<1x10xf32, #tpu.memory_space<vmem>>, %arg10: memref<8x10xf32, #tpu.memory_space<vmem>>) attributes {dimension_semantics = [#tpu.dimension_semantics<parallel>], iteration_bounds = array<i64: 1>, scalar_prefetch = 0 : i64, scratch_operands = 0 : i64, tpu.core_type = #tpu.core_type<tc>, window_params = [{transform_indices = @transform_0, window_bounds = array<i64: 4, 7, 8, 28>}, {pipeline_mode = #tpu.pipeline_mode<synchronous>, transform_indices = @transform_1, window_bounds = array<i64: 5, 28, 512>}, {pipeline_mode = #tpu.pipeline_mode<synchronous>, transform_indices = @transform_2, window_bounds = array<i64: 1, 256>}, {pipeline_mode = #tpu.pipeline_mode<synchronous>, transform_indices = @transform_3, window_bounds = array<i64: 5, 256, 512>}, {pipeline_mode = #tpu.pipeline_mode<synchronous>, transform_indices = @transform_4, window_bounds = array<i64: 1, 256>}, {pipeline_mode = #tpu.pipeline_mode<synchronous>, transform_indices = @transform_5, window_bounds = array<i64: 4, 256, 500>}, {pipeline_mode = #tpu.pipeline_mode<synchronous>, transform_indices = @transform_6, window_bounds = array<i64: 1, 500>}, {pipeline_mode = #tpu.pipeline_mode<synchronous>, transform_indices = @transform_7, window_bounds = array<i64: 500, 10>}, {pipeline_mode = #tpu.pipeline_mode<synchronous>, transform_indices = @transform_8, window_bounds = array<i64: 1, 10>}, {transform_indices = @transform_9, window_bounds = array<i64: 8, 10>}]} {
    %c0 = arith.constant 0 : index
    %c0_0 = arith.constant 0 : index
    %c0_1 = arith.constant 0 : index
    %c0_2 = arith.constant 0 : index
    %0 = vector.load %arg1[%c0, %c0_0, %c0_1, %c0_2] : memref<4x7x8x28xbf16, #tpu.memory_space<vmem>>, vector<4x7x8x28xbf16>
    %1 = vector.extract_strided_slice %0 {offsets = [0, 0, 0, 0], sizes = [1, 6, 8, 28], strides = [1, 1, 1, 1]} : vector<4x7x8x28xbf16> to vector<1x6x8x28xbf16>
    %2 = vector.shape_cast %1 : vector<1x6x8x28xbf16> to vector<6x8x28xbf16>
    %3 = vector.shape_cast %2 : vector<6x8x28xbf16> to vector<48x28xbf16>
    %4 = vector.extract_strided_slice %0 {offsets = [1, 0, 0, 0], sizes = [1, 6, 8, 28], strides = [1, 1, 1, 1]} : vector<4x7x8x28xbf16> to vector<1x6x8x28xbf16>
    %5 = vector.shape_cast %4 : vector<1x6x8x28xbf16> to vector<6x8x28xbf16>
    %6 = vector.shape_cast %5 : vector<6x8x28xbf16> to vector<48x28xbf16>
    %7 = vector.extract_strided_slice %0 {offsets = [2, 0, 0, 0], sizes = [1, 6, 8, 28], strides = [1, 1, 1, 1]} : vector<4x7x8x28xbf16> to vector<1x6x8x28xbf16>
    %8 = vector.shape_cast %7 : vector<1x6x8x28xbf16> to vector<6x8x28xbf16>
    %9 = vector.shape_cast %8 : vector<6x8x28xbf16> to vector<48x28xbf16>
    %10 = vector.extract_strided_slice %0 {offsets = [3, 0, 0, 0], sizes = [1, 6, 8, 28], strides = [1, 1, 1, 1]} : vector<4x7x8x28xbf16> to vector<1x6x8x28xbf16>
    %11 = vector.shape_cast %10 : vector<1x6x8x28xbf16> to vector<6x8x28xbf16>
    %12 = vector.shape_cast %11 : vector<6x8x28xbf16> to vector<48x28xbf16>
    %13 = vector.extract_strided_slice %0 {offsets = [0, 1, 0, 0], sizes = [1, 6, 8, 28], strides = [1, 1, 1, 1]} : vector<4x7x8x28xbf16> to vector<1x6x8x28xbf16>
    %14 = vector.shape_cast %13 : vector<1x6x8x28xbf16> to vector<6x8x28xbf16>
    %15 = vector.shape_cast %14 : vector<6x8x28xbf16> to vector<48x28xbf16>
    %16 = vector.extract_strided_slice %0 {offsets = [1, 1, 0, 0], sizes = [1, 6, 8, 28], strides = [1, 1, 1, 1]} : vector<4x7x8x28xbf16> to vector<1x6x8x28xbf16>
    %17 = vector.shape_cast %16 : vector<1x6x8x28xbf16> to vector<6x8x28xbf16>
    %18 = vector.shape_cast %17 : vector<6x8x28xbf16> to vector<48x28xbf16>
    %19 = vector.extract_strided_slice %0 {offsets = [2, 1, 0, 0], sizes = [1, 6, 8, 28], strides = [1, 1, 1, 1]} : vector<4x7x8x28xbf16> to vector<1x6x8x28xbf16>
    %20 = vector.shape_cast %19 : vector<1x6x8x28xbf16> to vector<6x8x28xbf16>
    %21 = vector.shape_cast %20 : vector<6x8x28xbf16> to vector<48x28xbf16>
    %22 = vector.extract_strided_slice %0 {offsets = [3, 1, 0, 0], sizes = [1, 6, 8, 28], strides = [1, 1, 1, 1]} : vector<4x7x8x28xbf16> to vector<1x6x8x28xbf16>
    %23 = vector.shape_cast %22 : vector<1x6x8x28xbf16> to vector<6x8x28xbf16>
    %24 = vector.shape_cast %23 : vector<6x8x28xbf16> to vector<48x28xbf16>
    %c0_3 = arith.constant 0 : index
    %c0_4 = arith.constant 0 : index
    %c0_5 = arith.constant 0 : index
    %25 = vector.load %arg2[%c0_3, %c0_4, %c0_5] : memref<5x28x512xbf16, #tpu.memory_space<vmem>>, vector<1x28x512xbf16>
    %26 = vector.shape_cast %25 : vector<1x28x512xbf16> to vector<28x512xbf16>
    %cst = arith.constant dense<0.000000e+00> : vector<48x512xf32>
    %27 = tpu.matmul %3, %26, %cst {dimension_numbers = #tpu.dot_dimension_numbers<[1], [0], [0], [1], [0, 0, 1, 1], [], []>} : vector<48x28xbf16>, vector<28x512xbf16>, vector<48x512xf32> -> vector<48x512xf32>
    %c1 = arith.constant 1 : index
    %c0_6 = arith.constant 0 : index
    %c0_7 = arith.constant 0 : index
    %28 = vector.load %arg2[%c1, %c0_6, %c0_7] : memref<5x28x512xbf16, #tpu.memory_space<vmem>>, vector<1x28x512xbf16>
    %29 = vector.shape_cast %28 : vector<1x28x512xbf16> to vector<28x512xbf16>
    %cst_8 = arith.constant dense<0.000000e+00> : vector<48x512xf32>
    %30 = tpu.matmul %6, %29, %cst_8 {dimension_numbers = #tpu.dot_dimension_numbers<[1], [0], [0], [1], [0, 0, 1, 1], [], []>} : vector<48x28xbf16>, vector<28x512xbf16>, vector<48x512xf32> -> vector<48x512xf32>
    %31 = arith.addf %27, %30 : vector<48x512xf32>
    %c2 = arith.constant 2 : index
    %c0_9 = arith.constant 0 : index
    %c0_10 = arith.constant 0 : index
    %32 = vector.load %arg2[%c2, %c0_9, %c0_10] : memref<5x28x512xbf16, #tpu.memory_space<vmem>>, vector<1x28x512xbf16>
    %33 = vector.shape_cast %32 : vector<1x28x512xbf16> to vector<28x512xbf16>
    %cst_11 = arith.constant dense<0.000000e+00> : vector<48x512xf32>
    %34 = tpu.matmul %9, %33, %cst_11 {dimension_numbers = #tpu.dot_dimension_numbers<[1], [0], [0], [1], [0, 0, 1, 1], [], []>} : vector<48x28xbf16>, vector<28x512xbf16>, vector<48x512xf32> -> vector<48x512xf32>
    %35 = arith.addf %31, %34 : vector<48x512xf32>
    %c3 = arith.constant 3 : index
    %c0_12 = arith.constant 0 : index
    %c0_13 = arith.constant 0 : index
    %36 = vector.load %arg2[%c3, %c0_12, %c0_13] : memref<5x28x512xbf16, #tpu.memory_space<vmem>>, vector<1x28x512xbf16>
    %37 = vector.shape_cast %36 : vector<1x28x512xbf16> to vector<28x512xbf16>
    %cst_14 = arith.constant dense<0.000000e+00> : vector<48x512xf32>
    %38 = tpu.matmul %12, %37, %cst_14 {dimension_numbers = #tpu.dot_dimension_numbers<[1], [0], [0], [1], [0, 0, 1, 1], [], []>} : vector<48x28xbf16>, vector<28x512xbf16>, vector<48x512xf32> -> vector<48x512xf32>
    %39 = arith.addf %35, %38 : vector<48x512xf32>
    %c4 = arith.constant 4 : index
    %c0_15 = arith.constant 0 : index
    %c0_16 = arith.constant 0 : index
    %40 = vector.load %arg2[%c4, %c0_15, %c0_16] : memref<5x28x512xbf16, #tpu.memory_space<vmem>>, vector<1x28x512xbf16>
    %41 = vector.shape_cast %40 : vector<1x28x512xbf16> to vector<28x512xbf16>
    %cst_17 = arith.constant dense<0.000000e+00> : vector<48x512xf32>
    %42 = tpu.matmul %15, %41, %cst_17 {dimension_numbers = #tpu.dot_dimension_numbers<[1], [0], [0], [1], [0, 0, 1, 1], [], []>} : vector<48x28xbf16>, vector<28x512xbf16>, vector<48x512xf32> -> vector<48x512xf32>
    %43 = arith.addf %39, %42 : vector<48x512xf32>
    %c0_18 = arith.constant 0 : index
    %c0_19 = arith.constant 0 : index
    %c0_20 = arith.constant 0 : index
    %44 = vector.load %arg2[%c0_18, %c0_19, %c0_20] : memref<5x28x512xbf16, #tpu.memory_space<vmem>>, vector<1x28x512xbf16>
    %45 = vector.shape_cast %44 : vector<1x28x512xbf16> to vector<28x512xbf16>
    %cst_21 = arith.constant dense<0.000000e+00> : vector<48x512xf32>
    %46 = tpu.matmul %6, %45, %cst_21 {dimension_numbers = #tpu.dot_dimension_numbers<[1], [0], [0], [1], [0, 0, 1, 1], [], []>} : vector<48x28xbf16>, vector<28x512xbf16>, vector<48x512xf32> -> vector<48x512xf32>
    %c1_22 = arith.constant 1 : index
    %c0_23 = arith.constant 0 : index
    %c0_24 = arith.constant 0 : index
    %47 = vector.load %arg2[%c1_22, %c0_23, %c0_24] : memref<5x28x512xbf16, #tpu.memory_space<vmem>>, vector<1x28x512xbf16>
    %48 = vector.shape_cast %47 : vector<1x28x512xbf16> to vector<28x512xbf16>
    %cst_25 = arith.constant dense<0.000000e+00> : vector<48x512xf32>
    %49 = tpu.matmul %9, %48, %cst_25 {dimension_numbers = #tpu.dot_dimension_numbers<[1], [0], [0], [1], [0, 0, 1, 1], [], []>} : vector<48x28xbf16>, vector<28x512xbf16>, vector<48x512xf32> -> vector<48x512xf32>
    %50 = arith.addf %46, %49 : vector<48x512xf32>
    %c2_26 = arith.constant 2 : index
    %c0_27 = arith.constant 0 : index
    %c0_28 = arith.constant 0 : index
    %51 = vector.load %arg2[%c2_26, %c0_27, %c0_28] : memref<5x28x512xbf16, #tpu.memory_space<vmem>>, vector<1x28x512xbf16>
    %52 = vector.shape_cast %51 : vector<1x28x512xbf16> to vector<28x512xbf16>
    %cst_29 = arith.constant dense<0.000000e+00> : vector<48x512xf32>
    %53 = tpu.matmul %12, %52, %cst_29 {dimension_numbers = #tpu.dot_dimension_numbers<[1], [0], [0], [1], [0, 0, 1, 1], [], []>} : vector<48x28xbf16>, vector<28x512xbf16>, vector<48x512xf32> -> vector<48x512xf32>
    %54 = arith.addf %50, %53 : vector<48x512xf32>
    %c3_30 = arith.constant 3 : index
    %c0_31 = arith.constant 0 : index
    %c0_32 = arith.constant 0 : index
    %55 = vector.load %arg2[%c3_30, %c0_31, %c0_32] : memref<5x28x512xbf16, #tpu.memory_space<vmem>>, vector<1x28x512xbf16>
    %56 = vector.shape_cast %55 : vector<1x28x512xbf16> to vector<28x512xbf16>
    %cst_33 = arith.constant dense<0.000000e+00> : vector<48x512xf32>
    %57 = tpu.matmul %15, %56, %cst_33 {dimension_numbers = #tpu.dot_dimension_numbers<[1], [0], [0], [1], [0, 0, 1, 1], [], []>} : vector<48x28xbf16>, vector<28x512xbf16>, vector<48x512xf32> -> vector<48x512xf32>
    %58 = arith.addf %54, %57 : vector<48x512xf32>
    %c4_34 = arith.constant 4 : index
    %c0_35 = arith.constant 0 : index
    %c0_36 = arith.constant 0 : index
    %59 = vector.load %arg2[%c4_34, %c0_35, %c0_36] : memref<5x28x512xbf16, #tpu.memory_space<vmem>>, vector<1x28x512xbf16>
    %60 = vector.shape_cast %59 : vector<1x28x512xbf16> to vector<28x512xbf16>
    %cst_37 = arith.constant dense<0.000000e+00> : vector<48x512xf32>
    %61 = tpu.matmul %18, %60, %cst_37 {dimension_numbers = #tpu.dot_dimension_numbers<[1], [0], [0], [1], [0, 0, 1, 1], [], []>} : vector<48x28xbf16>, vector<28x512xbf16>, vector<48x512xf32> -> vector<48x512xf32>
    %62 = arith.addf %58, %61 : vector<48x512xf32>
    %63 = arith.maximumf %43, %62 : vector<48x512xf32>
    %64 = vector.extract_strided_slice %63 {offsets = [0, 0], sizes = [48, 256], strides = [1, 1]} : vector<48x512xf32> to vector<48x256xf32>
    %65 = vector.extract_strided_slice %63 {offsets = [0, 256], sizes = [48, 256], strides = [1, 1]} : vector<48x512xf32> to vector<48x256xf32>
    %66 = arith.maximumf %64, %65 : vector<48x256xf32>
    %c0_38 = arith.constant 0 : index
    %c0_39 = arith.constant 0 : index
    %67 = vector.load %arg3[%c0_38, %c0_39] : memref<1x256xf32, #tpu.memory_space<vmem>>, vector<1x256xf32>
    %68 = vector.broadcast %67 : vector<1x256xf32> to vector<48x256xf32>
    %69 = arith.addf %66, %68 : vector<48x256xf32>
    %cst_40 = arith.constant 0.000000e+00 : f32
    %70 = vector.broadcast %cst_40 : f32 to vector<48x256xf32>
    %71 = arith.maximumf %69, %70 : vector<48x256xf32>
    %72 = arith.truncf %71 : vector<48x256xf32> to vector<48x256xbf16>
    %c0_41 = arith.constant 0 : index
    %c0_42 = arith.constant 0 : index
    %c0_43 = arith.constant 0 : index
    %73 = vector.load %arg2[%c0_41, %c0_42, %c0_43] : memref<5x28x512xbf16, #tpu.memory_space<vmem>>, vector<1x28x512xbf16>
    %74 = vector.shape_cast %73 : vector<1x28x512xbf16> to vector<28x512xbf16>
    %cst_44 = arith.constant dense<0.000000e+00> : vector<48x512xf32>
    %75 = tpu.matmul %9, %74, %cst_44 {dimension_numbers = #tpu.dot_dimension_numbers<[1], [0], [0], [1], [0, 0, 1, 1], [], []>} : vector<48x28xbf16>, vector<28x512xbf16>, vector<48x512xf32> -> vector<48x512xf32>
    %c1_45 = arith.constant 1 : index
    %c0_46 = arith.constant 0 : index
    %c0_47 = arith.constant 0 : index
    %76 = vector.load %arg2[%c1_45, %c0_46, %c0_47] : memref<5x28x512xbf16, #tpu.memory_space<vmem>>, vector<1x28x512xbf16>
    %77 = vector.shape_cast %76 : vector<1x28x512xbf16> to vector<28x512xbf16>
    %cst_48 = arith.constant dense<0.000000e+00> : vector<48x512xf32>
    %78 = tpu.matmul %12, %77, %cst_48 {dimension_numbers = #tpu.dot_dimension_numbers<[1], [0], [0], [1], [0, 0, 1, 1], [], []>} : vector<48x28xbf16>, vector<28x512xbf16>, vector<48x512xf32> -> vector<48x512xf32>
    %79 = arith.addf %75, %78 : vector<48x512xf32>
    %c2_49 = arith.constant 2 : index
    %c0_50 = arith.constant 0 : index
    %c0_51 = arith.constant 0 : index
    %80 = vector.load %arg2[%c2_49, %c0_50, %c0_51] : memref<5x28x512xbf16, #tpu.memory_space<vmem>>, vector<1x28x512xbf16>
    %81 = vector.shape_cast %80 : vector<1x28x512xbf16> to vector<28x512xbf16>
    %cst_52 = arith.constant dense<0.000000e+00> : vector<48x512xf32>
    %82 = tpu.matmul %15, %81, %cst_52 {dimension_numbers = #tpu.dot_dimension_numbers<[1], [0], [0], [1], [0, 0, 1, 1], [], []>} : vector<48x28xbf16>, vector<28x512xbf16>, vector<48x512xf32> -> vector<48x512xf32>
    %83 = arith.addf %79, %82 : vector<48x512xf32>
    %c3_53 = arith.constant 3 : index
    %c0_54 = arith.constant 0 : index
    %c0_55 = arith.constant 0 : index
    %84 = vector.load %arg2[%c3_53, %c0_54, %c0_55] : memref<5x28x512xbf16, #tpu.memory_space<vmem>>, vector<1x28x512xbf16>
    %85 = vector.shape_cast %84 : vector<1x28x512xbf16> to vector<28x512xbf16>
    %cst_56 = arith.constant dense<0.000000e+00> : vector<48x512xf32>
    %86 = tpu.matmul %18, %85, %cst_56 {dimension_numbers = #tpu.dot_dimension_numbers<[1], [0], [0], [1], [0, 0, 1, 1], [], []>} : vector<48x28xbf16>, vector<28x512xbf16>, vector<48x512xf32> -> vector<48x512xf32>
    %87 = arith.addf %83, %86 : vector<48x512xf32>
    %c4_57 = arith.constant 4 : index
    %c0_58 = arith.constant 0 : index
    %c0_59 = arith.constant 0 : index
    %88 = vector.load %arg2[%c4_57, %c0_58, %c0_59] : memref<5x28x512xbf16, #tpu.memory_space<vmem>>, vector<1x28x512xbf16>
    %89 = vector.shape_cast %88 : vector<1x28x512xbf16> to vector<28x512xbf16>
    %cst_60 = arith.constant dense<0.000000e+00> : vector<48x512xf32>
    %90 = tpu.matmul %21, %89, %cst_60 {dimension_numbers = #tpu.dot_dimension_numbers<[1], [0], [0], [1], [0, 0, 1, 1], [], []>} : vector<48x28xbf16>, vector<28x512xbf16>, vector<48x512xf32> -> vector<48x512xf32>
    %91 = arith.addf %87, %90 : vector<48x512xf32>
    %c0_61 = arith.constant 0 : index
    %c0_62 = arith.constant 0 : index
    %c0_63 = arith.constant 0 : index
    %92 = vector.load %arg2[%c0_61, %c0_62, %c0_63] : memref<5x28x512xbf16, #tpu.memory_space<vmem>>, vector<1x28x512xbf16>
    %93 = vector.shape_cast %92 : vector<1x28x512xbf16> to vector<28x512xbf16>
    %cst_64 = arith.constant dense<0.000000e+00> : vector<48x512xf32>
    %94 = tpu.matmul %12, %93, %cst_64 {dimension_numbers = #tpu.dot_dimension_numbers<[1], [0], [0], [1], [0, 0, 1, 1], [], []>} : vector<48x28xbf16>, vector<28x512xbf16>, vector<48x512xf32> -> vector<48x512xf32>
    %c1_65 = arith.constant 1 : index
    %c0_66 = arith.constant 0 : index
    %c0_67 = arith.constant 0 : index
    %95 = vector.load %arg2[%c1_65, %c0_66, %c0_67] : memref<5x28x512xbf16, #tpu.memory_space<vmem>>, vector<1x28x512xbf16>
    %96 = vector.shape_cast %95 : vector<1x28x512xbf16> to vector<28x512xbf16>
    %cst_68 = arith.constant dense<0.000000e+00> : vector<48x512xf32>
    %97 = tpu.matmul %15, %96, %cst_68 {dimension_numbers = #tpu.dot_dimension_numbers<[1], [0], [0], [1], [0, 0, 1, 1], [], []>} : vector<48x28xbf16>, vector<28x512xbf16>, vector<48x512xf32> -> vector<48x512xf32>
    %98 = arith.addf %94, %97 : vector<48x512xf32>
    %c2_69 = arith.constant 2 : index
    %c0_70 = arith.constant 0 : index
    %c0_71 = arith.constant 0 : index
    %99 = vector.load %arg2[%c2_69, %c0_70, %c0_71] : memref<5x28x512xbf16, #tpu.memory_space<vmem>>, vector<1x28x512xbf16>
    %100 = vector.shape_cast %99 : vector<1x28x512xbf16> to vector<28x512xbf16>
    %cst_72 = arith.constant dense<0.000000e+00> : vector<48x512xf32>
    %101 = tpu.matmul %18, %100, %cst_72 {dimension_numbers = #tpu.dot_dimension_numbers<[1], [0], [0], [1], [0, 0, 1, 1], [], []>} : vector<48x28xbf16>, vector<28x512xbf16>, vector<48x512xf32> -> vector<48x512xf32>
    %102 = arith.addf %98, %101 : vector<48x512xf32>
    %c3_73 = arith.constant 3 : index
    %c0_74 = arith.constant 0 : index
    %c0_75 = arith.constant 0 : index
    %103 = vector.load %arg2[%c3_73, %c0_74, %c0_75] : memref<5x28x512xbf16, #tpu.memory_space<vmem>>, vector<1x28x512xbf16>
    %104 = vector.shape_cast %103 : vector<1x28x512xbf16> to vector<28x512xbf16>
    %cst_76 = arith.constant dense<0.000000e+00> : vector<48x512xf32>
    %105 = tpu.matmul %21, %104, %cst_76 {dimension_numbers = #tpu.dot_dimension_numbers<[1], [0], [0], [1], [0, 0, 1, 1], [], []>} : vector<48x28xbf16>, vector<28x512xbf16>, vector<48x512xf32> -> vector<48x512xf32>
    %106 = arith.addf %102, %105 : vector<48x512xf32>
    %c4_77 = arith.constant 4 : index
    %c0_78 = arith.constant 0 : index
    %c0_79 = arith.constant 0 : index
    %107 = vector.load %arg2[%c4_77, %c0_78, %c0_79] : memref<5x28x512xbf16, #tpu.memory_space<vmem>>, vector<1x28x512xbf16>
    %108 = vector.shape_cast %107 : vector<1x28x512xbf16> to vector<28x512xbf16>
    %cst_80 = arith.constant dense<0.000000e+00> : vector<48x512xf32>
    %109 = tpu.matmul %24, %108, %cst_80 {dimension_numbers = #tpu.dot_dimension_numbers<[1], [0], [0], [1], [0, 0, 1, 1], [], []>} : vector<48x28xbf16>, vector<28x512xbf16>, vector<48x512xf32> -> vector<48x512xf32>
    %110 = arith.addf %106, %109 : vector<48x512xf32>
    %111 = arith.maximumf %91, %110 : vector<48x512xf32>
    %112 = vector.extract_strided_slice %111 {offsets = [0, 0], sizes = [48, 256], strides = [1, 1]} : vector<48x512xf32> to vector<48x256xf32>
    %113 = vector.extract_strided_slice %111 {offsets = [0, 256], sizes = [48, 256], strides = [1, 1]} : vector<48x512xf32> to vector<48x256xf32>
    %114 = arith.maximumf %112, %113 : vector<48x256xf32>
    %c0_81 = arith.constant 0 : index
    %c0_82 = arith.constant 0 : index
    %115 = vector.load %arg3[%c0_81, %c0_82] : memref<1x256xf32, #tpu.memory_space<vmem>>, vector<1x256xf32>
    %116 = vector.broadcast %115 : vector<1x256xf32> to vector<48x256xf32>
    %117 = arith.addf %114, %116 : vector<48x256xf32>
    %cst_83 = arith.constant 0.000000e+00 : f32
    %118 = vector.broadcast %cst_83 : f32 to vector<48x256xf32>
    %119 = arith.maximumf %117, %118 : vector<48x256xf32>
    %120 = arith.truncf %119 : vector<48x256xf32> to vector<48x256xbf16>
    %121 = vector.extract_strided_slice %72 {offsets = [0, 0], sizes = [32, 256], strides = [1, 1]} : vector<48x256xbf16> to vector<32x256xbf16>
    %c0_84 = arith.constant 0 : index
    %c0_85 = arith.constant 0 : index
    %c0_86 = arith.constant 0 : index
    %122 = vector.load %arg4[%c0_84, %c0_85, %c0_86] : memref<5x256x512xbf16, #tpu.memory_space<vmem>>, vector<1x256x512xbf16>
    %123 = vector.shape_cast %122 : vector<1x256x512xbf16> to vector<256x512xbf16>
    %cst_87 = arith.constant dense<0.000000e+00> : vector<32x512xf32>
    %124 = tpu.matmul %121, %123, %cst_87 {dimension_numbers = #tpu.dot_dimension_numbers<[1], [0], [0], [1], [0, 0, 1, 1], [], []>} : vector<32x256xbf16>, vector<256x512xbf16>, vector<32x512xf32> -> vector<32x512xf32>
    %125 = vector.extract_strided_slice %120 {offsets = [0, 0], sizes = [32, 256], strides = [1, 1]} : vector<48x256xbf16> to vector<32x256xbf16>
    %c1_88 = arith.constant 1 : index
    %c0_89 = arith.constant 0 : index
    %c0_90 = arith.constant 0 : index
    %126 = vector.load %arg4[%c1_88, %c0_89, %c0_90] : memref<5x256x512xbf16, #tpu.memory_space<vmem>>, vector<1x256x512xbf16>
    %127 = vector.shape_cast %126 : vector<1x256x512xbf16> to vector<256x512xbf16>
    %cst_91 = arith.constant dense<0.000000e+00> : vector<32x512xf32>
    %128 = tpu.matmul %125, %127, %cst_91 {dimension_numbers = #tpu.dot_dimension_numbers<[1], [0], [0], [1], [0, 0, 1, 1], [], []>} : vector<32x256xbf16>, vector<256x512xbf16>, vector<32x512xf32> -> vector<32x512xf32>
    %129 = arith.addf %124, %128 : vector<32x512xf32>
    %130 = vector.extract_strided_slice %72 {offsets = [8, 0], sizes = [32, 256], strides = [1, 1]} : vector<48x256xbf16> to vector<32x256xbf16>
    %c2_92 = arith.constant 2 : index
    %c0_93 = arith.constant 0 : index
    %c0_94 = arith.constant 0 : index
    %131 = vector.load %arg4[%c2_92, %c0_93, %c0_94] : memref<5x256x512xbf16, #tpu.memory_space<vmem>>, vector<1x256x512xbf16>
    %132 = vector.shape_cast %131 : vector<1x256x512xbf16> to vector<256x512xbf16>
    %cst_95 = arith.constant dense<0.000000e+00> : vector<32x512xf32>
    %133 = tpu.matmul %130, %132, %cst_95 {dimension_numbers = #tpu.dot_dimension_numbers<[1], [0], [0], [1], [0, 0, 1, 1], [], []>} : vector<32x256xbf16>, vector<256x512xbf16>, vector<32x512xf32> -> vector<32x512xf32>
    %134 = arith.addf %129, %133 : vector<32x512xf32>
    %135 = vector.extract_strided_slice %120 {offsets = [8, 0], sizes = [32, 256], strides = [1, 1]} : vector<48x256xbf16> to vector<32x256xbf16>
    %c3_96 = arith.constant 3 : index
    %c0_97 = arith.constant 0 : index
    %c0_98 = arith.constant 0 : index
    %136 = vector.load %arg4[%c3_96, %c0_97, %c0_98] : memref<5x256x512xbf16, #tpu.memory_space<vmem>>, vector<1x256x512xbf16>
    %137 = vector.shape_cast %136 : vector<1x256x512xbf16> to vector<256x512xbf16>
    %cst_99 = arith.constant dense<0.000000e+00> : vector<32x512xf32>
    %138 = tpu.matmul %135, %137, %cst_99 {dimension_numbers = #tpu.dot_dimension_numbers<[1], [0], [0], [1], [0, 0, 1, 1], [], []>} : vector<32x256xbf16>, vector<256x512xbf16>, vector<32x512xf32> -> vector<32x512xf32>
    %139 = arith.addf %134, %138 : vector<32x512xf32>
    %140 = vector.extract_strided_slice %72 {offsets = [16, 0], sizes = [32, 256], strides = [1, 1]} : vector<48x256xbf16> to vector<32x256xbf16>
    %c4_100 = arith.constant 4 : index
    %c0_101 = arith.constant 0 : index
    %c0_102 = arith.constant 0 : index
    %141 = vector.load %arg4[%c4_100, %c0_101, %c0_102] : memref<5x256x512xbf16, #tpu.memory_space<vmem>>, vector<1x256x512xbf16>
    %142 = vector.shape_cast %141 : vector<1x256x512xbf16> to vector<256x512xbf16>
    %cst_103 = arith.constant dense<0.000000e+00> : vector<32x512xf32>
    %143 = tpu.matmul %140, %142, %cst_103 {dimension_numbers = #tpu.dot_dimension_numbers<[1], [0], [0], [1], [0, 0, 1, 1], [], []>} : vector<32x256xbf16>, vector<256x512xbf16>, vector<32x512xf32> -> vector<32x512xf32>
    %144 = arith.addf %139, %143 : vector<32x512xf32>
    %145 = vector.extract_strided_slice %120 {offsets = [0, 0], sizes = [32, 256], strides = [1, 1]} : vector<48x256xbf16> to vector<32x256xbf16>
    %c0_104 = arith.constant 0 : index
    %c0_105 = arith.constant 0 : index
    %c0_106 = arith.constant 0 : index
    %146 = vector.load %arg4[%c0_104, %c0_105, %c0_106] : memref<5x256x512xbf16, #tpu.memory_space<vmem>>, vector<1x256x512xbf16>
    %147 = vector.shape_cast %146 : vector<1x256x512xbf16> to vector<256x512xbf16>
    %cst_107 = arith.constant dense<0.000000e+00> : vector<32x512xf32>
    %148 = tpu.matmul %145, %147, %cst_107 {dimension_numbers = #tpu.dot_dimension_numbers<[1], [0], [0], [1], [0, 0, 1, 1], [], []>} : vector<32x256xbf16>, vector<256x512xbf16>, vector<32x512xf32> -> vector<32x512xf32>
    %149 = vector.extract_strided_slice %72 {offsets = [8, 0], sizes = [32, 256], strides = [1, 1]} : vector<48x256xbf16> to vector<32x256xbf16>
    %c1_108 = arith.constant 1 : index
    %c0_109 = arith.constant 0 : index
    %c0_110 = arith.constant 0 : index
    %150 = vector.load %arg4[%c1_108, %c0_109, %c0_110] : memref<5x256x512xbf16, #tpu.memory_space<vmem>>, vector<1x256x512xbf16>
    %151 = vector.shape_cast %150 : vector<1x256x512xbf16> to vector<256x512xbf16>
    %cst_111 = arith.constant dense<0.000000e+00> : vector<32x512xf32>
    %152 = tpu.matmul %149, %151, %cst_111 {dimension_numbers = #tpu.dot_dimension_numbers<[1], [0], [0], [1], [0, 0, 1, 1], [], []>} : vector<32x256xbf16>, vector<256x512xbf16>, vector<32x512xf32> -> vector<32x512xf32>
    %153 = arith.addf %148, %152 : vector<32x512xf32>
    %154 = vector.extract_strided_slice %120 {offsets = [8, 0], sizes = [32, 256], strides = [1, 1]} : vector<48x256xbf16> to vector<32x256xbf16>
    %c2_112 = arith.constant 2 : index
    %c0_113 = arith.constant 0 : index
    %c0_114 = arith.constant 0 : index
    %155 = vector.load %arg4[%c2_112, %c0_113, %c0_114] : memref<5x256x512xbf16, #tpu.memory_space<vmem>>, vector<1x256x512xbf16>
    %156 = vector.shape_cast %155 : vector<1x256x512xbf16> to vector<256x512xbf16>
    %cst_115 = arith.constant dense<0.000000e+00> : vector<32x512xf32>
    %157 = tpu.matmul %154, %156, %cst_115 {dimension_numbers = #tpu.dot_dimension_numbers<[1], [0], [0], [1], [0, 0, 1, 1], [], []>} : vector<32x256xbf16>, vector<256x512xbf16>, vector<32x512xf32> -> vector<32x512xf32>
    %158 = arith.addf %153, %157 : vector<32x512xf32>
    %159 = vector.extract_strided_slice %72 {offsets = [16, 0], sizes = [32, 256], strides = [1, 1]} : vector<48x256xbf16> to vector<32x256xbf16>
    %c3_116 = arith.constant 3 : index
    %c0_117 = arith.constant 0 : index
    %c0_118 = arith.constant 0 : index
    %160 = vector.load %arg4[%c3_116, %c0_117, %c0_118] : memref<5x256x512xbf16, #tpu.memory_space<vmem>>, vector<1x256x512xbf16>
    %161 = vector.shape_cast %160 : vector<1x256x512xbf16> to vector<256x512xbf16>
    %cst_119 = arith.constant dense<0.000000e+00> : vector<32x512xf32>
    %162 = tpu.matmul %159, %161, %cst_119 {dimension_numbers = #tpu.dot_dimension_numbers<[1], [0], [0], [1], [0, 0, 1, 1], [], []>} : vector<32x256xbf16>, vector<256x512xbf16>, vector<32x512xf32> -> vector<32x512xf32>
    %163 = arith.addf %158, %162 : vector<32x512xf32>
    %164 = vector.extract_strided_slice %120 {offsets = [16, 0], sizes = [32, 256], strides = [1, 1]} : vector<48x256xbf16> to vector<32x256xbf16>
    %c4_120 = arith.constant 4 : index
    %c0_121 = arith.constant 0 : index
    %c0_122 = arith.constant 0 : index
    %165 = vector.load %arg4[%c4_120, %c0_121, %c0_122] : memref<5x256x512xbf16, #tpu.memory_space<vmem>>, vector<1x256x512xbf16>
    %166 = vector.shape_cast %165 : vector<1x256x512xbf16> to vector<256x512xbf16>
    %cst_123 = arith.constant dense<0.000000e+00> : vector<32x512xf32>
    %167 = tpu.matmul %164, %166, %cst_123 {dimension_numbers = #tpu.dot_dimension_numbers<[1], [0], [0], [1], [0, 0, 1, 1], [], []>} : vector<32x256xbf16>, vector<256x512xbf16>, vector<32x512xf32> -> vector<32x512xf32>
    %168 = arith.addf %163, %167 : vector<32x512xf32>
    %169 = arith.maximumf %144, %168 : vector<32x512xf32>
    %170 = vector.extract_strided_slice %169 {offsets = [0, 0], sizes = [32, 256], strides = [1, 1]} : vector<32x512xf32> to vector<32x256xf32>
    %171 = vector.extract_strided_slice %169 {offsets = [0, 256], sizes = [32, 256], strides = [1, 1]} : vector<32x512xf32> to vector<32x256xf32>
    %172 = arith.maximumf %170, %171 : vector<32x256xf32>
    %c0_124 = arith.constant 0 : index
    %c0_125 = arith.constant 0 : index
    %173 = vector.load %arg5[%c0_124, %c0_125] : memref<1x256xf32, #tpu.memory_space<vmem>>, vector<1x256xf32>
    %174 = vector.broadcast %173 : vector<1x256xf32> to vector<32x256xf32>
    %175 = arith.addf %172, %174 : vector<32x256xf32>
    %cst_126 = arith.constant 0.000000e+00 : f32
    %176 = vector.broadcast %cst_126 : f32 to vector<32x256xf32>
    %177 = arith.maximumf %175, %176 : vector<32x256xf32>
    %178 = arith.truncf %177 : vector<32x256xf32> to vector<32x256xbf16>
    %179 = vector.extract_strided_slice %178 {offsets = [0, 0], sizes = [8, 256], strides = [1, 1]} : vector<32x256xbf16> to vector<8x256xbf16>
    %c0_127 = arith.constant 0 : index
    %c0_128 = arith.constant 0 : index
    %c0_129 = arith.constant 0 : index
    %180 = vector.load %arg6[%c0_127, %c0_128, %c0_129] : memref<4x256x500xbf16, #tpu.memory_space<vmem>>, vector<1x256x500xbf16>
    %181 = vector.shape_cast %180 : vector<1x256x500xbf16> to vector<256x500xbf16>
    %cst_130 = arith.constant dense<0.000000e+00> : vector<8x500xf32>
    %182 = tpu.matmul %179, %181, %cst_130 {dimension_numbers = #tpu.dot_dimension_numbers<[1], [0], [0], [1], [0, 0, 1, 1], [], []>} : vector<8x256xbf16>, vector<256x500xbf16>, vector<8x500xf32> -> vector<8x500xf32>
    %183 = vector.extract_strided_slice %178 {offsets = [8, 0], sizes = [8, 256], strides = [1, 1]} : vector<32x256xbf16> to vector<8x256xbf16>
    %c1_131 = arith.constant 1 : index
    %c0_132 = arith.constant 0 : index
    %c0_133 = arith.constant 0 : index
    %184 = vector.load %arg6[%c1_131, %c0_132, %c0_133] : memref<4x256x500xbf16, #tpu.memory_space<vmem>>, vector<1x256x500xbf16>
    %185 = vector.shape_cast %184 : vector<1x256x500xbf16> to vector<256x500xbf16>
    %cst_134 = arith.constant dense<0.000000e+00> : vector<8x500xf32>
    %186 = tpu.matmul %183, %185, %cst_134 {dimension_numbers = #tpu.dot_dimension_numbers<[1], [0], [0], [1], [0, 0, 1, 1], [], []>} : vector<8x256xbf16>, vector<256x500xbf16>, vector<8x500xf32> -> vector<8x500xf32>
    %187 = arith.addf %182, %186 : vector<8x500xf32>
    %188 = vector.extract_strided_slice %178 {offsets = [16, 0], sizes = [8, 256], strides = [1, 1]} : vector<32x256xbf16> to vector<8x256xbf16>
    %c2_135 = arith.constant 2 : index
    %c0_136 = arith.constant 0 : index
    %c0_137 = arith.constant 0 : index
    %189 = vector.load %arg6[%c2_135, %c0_136, %c0_137] : memref<4x256x500xbf16, #tpu.memory_space<vmem>>, vector<1x256x500xbf16>
    %190 = vector.shape_cast %189 : vector<1x256x500xbf16> to vector<256x500xbf16>
    %cst_138 = arith.constant dense<0.000000e+00> : vector<8x500xf32>
    %191 = tpu.matmul %188, %190, %cst_138 {dimension_numbers = #tpu.dot_dimension_numbers<[1], [0], [0], [1], [0, 0, 1, 1], [], []>} : vector<8x256xbf16>, vector<256x500xbf16>, vector<8x500xf32> -> vector<8x500xf32>
    %192 = arith.addf %187, %191 : vector<8x500xf32>
    %193 = vector.extract_strided_slice %178 {offsets = [24, 0], sizes = [8, 256], strides = [1, 1]} : vector<32x256xbf16> to vector<8x256xbf16>
    %c3_139 = arith.constant 3 : index
    %c0_140 = arith.constant 0 : index
    %c0_141 = arith.constant 0 : index
    %194 = vector.load %arg6[%c3_139, %c0_140, %c0_141] : memref<4x256x500xbf16, #tpu.memory_space<vmem>>, vector<1x256x500xbf16>
    %195 = vector.shape_cast %194 : vector<1x256x500xbf16> to vector<256x500xbf16>
    %cst_142 = arith.constant dense<0.000000e+00> : vector<8x500xf32>
    %196 = tpu.matmul %193, %195, %cst_142 {dimension_numbers = #tpu.dot_dimension_numbers<[1], [0], [0], [1], [0, 0, 1, 1], [], []>} : vector<8x256xbf16>, vector<256x500xbf16>, vector<8x500xf32> -> vector<8x500xf32>
    %197 = arith.addf %192, %196 : vector<8x500xf32>
    %c0_143 = arith.constant 0 : index
    %c0_144 = arith.constant 0 : index
    %198 = vector.load %arg7[%c0_143, %c0_144] : memref<1x500xf32, #tpu.memory_space<vmem>>, vector<1x500xf32>
    %199 = vector.broadcast %198 : vector<1x500xf32> to vector<8x500xf32>
    %200 = arith.addf %197, %199 : vector<8x500xf32>
    %cst_145 = arith.constant 0.000000e+00 : f32
    %201 = vector.broadcast %cst_145 : f32 to vector<8x500xf32>
    %202 = arith.maximumf %200, %201 : vector<8x500xf32>
    %203 = arith.truncf %202 : vector<8x500xf32> to vector<8x500xbf16>
    %c0_146 = arith.constant 0 : index
    %c0_147 = arith.constant 0 : index
    %204 = vector.load %arg8[%c0_146, %c0_147] : memref<500x10xbf16, #tpu.memory_space<vmem>>, vector<500x10xbf16>
    %cst_148 = arith.constant dense<0.000000e+00> : vector<8x10xf32>
    %205 = tpu.matmul %203, %204, %cst_148 {dimension_numbers = #tpu.dot_dimension_numbers<[1], [0], [0], [1], [0, 0, 1, 1], [], []>} : vector<8x500xbf16>, vector<500x10xbf16>, vector<8x10xf32> -> vector<8x10xf32>
    %c0_149 = arith.constant 0 : index
    %c0_150 = arith.constant 0 : index
    %206 = vector.load %arg9[%c0_149, %c0_150] : memref<1x10xf32, #tpu.memory_space<vmem>>, vector<1x10xf32>
    %207 = vector.broadcast %206 : vector<1x10xf32> to vector<8x10xf32>
    %208 = arith.addf %205, %207 : vector<8x10xf32>
    %cst_151 = arith.constant dense<0xFF800000> : vector<8xf32>
    %209 = vector.multi_reduction <maximumf>, %208, %cst_151 [1] : vector<8x10xf32> to vector<8xf32>
    %210 = vector.shape_cast %209 : vector<8xf32> to vector<8x1xf32>
    %211 = vector.broadcast %210 : vector<8x1xf32> to vector<8x10xf32>
    %212 = arith.subf %208, %211 : vector<8x10xf32>
    %213 = math.exp %212 : vector<8x10xf32>
    %cst_152 = arith.constant dense<0.000000e+00> : vector<8xf32>
    %214 = vector.multi_reduction <add>, %213, %cst_152 [1] : vector<8x10xf32> to vector<8xf32>
    %215 = vector.shape_cast %214 : vector<8xf32> to vector<8x1xf32>
    %216 = math.log %215 : vector<8x1xf32>
    %217 = vector.broadcast %216 : vector<8x1xf32> to vector<8x10xf32>
    %218 = arith.subf %212, %217 : vector<8x10xf32>
    %c0_153 = arith.constant 0 : index
    %c0_154 = arith.constant 0 : index
    %219 = vector.load %arg10[%c0_153, %c0_154] : memref<8x10xf32, #tpu.memory_space<vmem>>, vector<8x10xf32>
    tpu.vector_store %arg10[%c0_153, %c0_154], %218 {strides = array<i32>} : memref<8x10xf32, #tpu.memory_space<vmem>>, vector<8x10xf32>,
    return
  }
  func.func @transform_0(%arg0: i32) -> (i32, i32, i32, i32) {
    %c0_i32 = arith.constant 0 : i32
    %c0_i32_0 = arith.constant 0 : i32
    %c0_i32_1 = arith.constant 0 : i32
    %c0_i32_2 = arith.constant 0 : i32
    return %c0_i32, %c0_i32_0, %arg0, %c0_i32_1 : i32, i32, i32, i32
  }
  func.func @transform_1(%arg0: i32) -> (i32, i32, i32) {
    %c0_i32 = arith.constant 0 : i32
    %c0_i32_0 = arith.constant 0 : i32
    %c0_i32_1 = arith.constant 0 : i32
    %c0_i32_2 = arith.constant 0 : i32
    return %c0_i32, %c0_i32_0, %c0_i32_1 : i32, i32, i32
  }
  func.func @transform_2(%arg0: i32) -> (i32, i32) {
    %c0_i32 = arith.constant 0 : i32
    %c0_i32_0 = arith.constant 0 : i32
    %c0_i32_1 = arith.constant 0 : i32
    return %c0_i32, %c0_i32_0 : i32, i32
  }
  func.func @transform_3(%arg0: i32) -> (i32, i32, i32) {
    %c0_i32 = arith.constant 0 : i32
    %c0_i32_0 = arith.constant 0 : i32
    %c0_i32_1 = arith.constant 0 : i32
    %c0_i32_2 = arith.constant 0 : i32
    return %c0_i32, %c0_i32_0, %c0_i32_1 : i32, i32, i32
  }
  func.func @transform_4(%arg0: i32) -> (i32, i32) {
    %c0_i32 = arith.constant 0 : i32
    %c0_i32_0 = arith.constant 0 : i32
    %c0_i32_1 = arith.constant 0 : i32
    return %c0_i32, %c0_i32_0 : i32, i32
  }
  func.func @transform_5(%arg0: i32) -> (i32, i32, i32) {
    %c0_i32 = arith.constant 0 : i32
    %c0_i32_0 = arith.constant 0 : i32
    %c0_i32_1 = arith.constant 0 : i32
    %c0_i32_2 = arith.constant 0 : i32
    return %c0_i32, %c0_i32_0, %c0_i32_1 : i32, i32, i32
  }
  func.func @transform_6(%arg0: i32) -> (i32, i32) {
    %c0_i32 = arith.constant 0 : i32
    %c0_i32_0 = arith.constant 0 : i32
    %c0_i32_1 = arith.constant 0 : i32
    return %c0_i32, %c0_i32_0 : i32, i32
  }
  func.func @transform_7(%arg0: i32) -> (i32, i32) {
    %c0_i32 = arith.constant 0 : i32
    %c0_i32_0 = arith.constant 0 : i32
    %c0_i32_1 = arith.constant 0 : i32
    return %c0_i32, %c0_i32_0 : i32, i32
  }
  func.func @transform_8(%arg0: i32) -> (i32, i32) {
    %c0_i32 = arith.constant 0 : i32
    %c0_i32_0 = arith.constant 0 : i32
    %c0_i32_1 = arith.constant 0 : i32
    return %c0_i32, %c0_i32_0 : i32, i32
  }
  func.func @transform_9(%arg0: i32) -> (i32, i32) {
    %c0_i32 = arith.constant 0 : i32
    %c0_i32_0 = arith.constant 0 : i32
    return %arg0, %c0_i32 : i32, i32
  }
}

</mosaic_0001>

<bundles_post_ra>
// kernel: basic_model_forward.1
= control target key start
LH: loop header
LB: loop body
LE: loop exit
PB: predicated region body
PF: predicated region fallthrough
CT: control target
= control target key end

     0   :  { %vm139_vm0 = vcmask 1045504   ;;  %v17135_v1 = vmov 0   ;;  %vm129_vm1 = vcmask 228352   ;;  %vm4503_vm2 = vcmask 1043456   ;;  %s17125_s1 = inlined_call_operand.vmem [shape: bf16[5,28,512], index: 1, kind: input, shape index: {}]   ;;  %s17126_s0 = inlined_call_operand.vmem [shape: bf16[4,7,8,28], index: 0, kind: input, shape index: {}]   ;;  %s17127_s2 = inlined_call_operand.vmem [shape: f32[1,256], index: 2, kind: input, shape index: {}]   ;;  %s17128_s3 = inlined_call_operand.vmem [shape: bf16[5,256,512], index: 3, kind: input, shape index: {}]   ;;  %s17129_s5 = inlined_call_operand.vmem [shape: bf16[4,256,500], index: 5, kind: input, shape index: {}]   ;;  %s17130_s4 = inlined_call_operand.vmem [shape: f32[1,256], index: 4, kind: input, shape index: {}]   ;;  %s17131_s7 = inlined_call_operand.vmem [shape: bf16[500,10], index: 7, kind: input, shape index: {}]   ;;  %s17132_s6 = inlined_call_operand.vmem [shape: f32[1,500], index: 6, kind: input, shape index: {}]   ;;  %s17133_s8 = inlined_call_operand.vmem [shape: f32[1,10], index: 8, kind: input, shape index: {}]   ;;  %s17134_s9 = inlined_call_operand.vmem [shape: f32[8,10], index: 9, kind: output, shape index: {}]  }
   0x1   :  { %v11667_v0 = vld [vmem:[%s17125_s1 + $0x64] ss:$16 sps:$4 sm:$0x3f]   ;;  %184 = vmatprep.mubr.bf16.mxu0 %v17135_v1  ;;  %247 = vmatprep.mubr.bf16.mxu1 %v17135_v1  ;;  %v11674_v2 = vld [vmem:[%s17125_s1 + $0x6c] ss:$16 sps:$4 sm:$0x3f]  }
   0x2   :  { %8933 = vmatprep.subr.msk.bf16.mxu0 %vm139_vm0, %v11667_v0  ;;  %v10278_v3 = vld [vmem:[%s17125_s1 + $0x60] ss:$16 sps:$4 sm:$0x3f]   ;;  %v10279_v4 = vld [vmem:[%s17125_s1 + $0x68] ss:$16 sps:$4 sm:$0x3f]   ;;  %8937 = vmatprep.subr.msk.bf16.mxu1 %vm139_vm0, %v11674_v2 }
   0x3   :  { %v11689_v5 = vld [vmem:[%s17125_s1 + $0x44] ss:$16 sps:$4 sm:$0xff]   ;;  %v11692_v6 = vsel %vm139_vm0, %v10278_v3, 0  ;;  %v11695_v7 = vsel %vm139_vm0, %v10279_v4, 0  ;;  %v11700_v8 = vld [vmem:[%s17125_s1 + $0x4c] ss:$16 sps:$4 sm:$0xff]  }
   0x4   :  { %17190 = vst [vmem:[#allocation2_spill] sm:$0xff] %v11692_v6  ;;  %17191 = vst [vmem:[#allocation3_spill] sm:$0xff] %v11695_v7  ;;  %165 = vmatpush1.bf16.msra.mxu0 %v11692_v6  ;;  %228 = vmatpush1.bf16.msra.mxu1 %v11695_v7  ;;  %v11707_v9 = vld [vmem:[%s17125_s1 + $0x40] ss:$16 sps:$4 sm:$0xff]   ;;  %v11712_v10 = vld [vmem:[%s17125_s1 + $0x48] ss:$16 sps:$4 sm:$0xff]  }
   0x5   :  { %v40_v11 = vld [vmem:[%s17126_s0 + $0x1c] sm:$0xf]  ;;  %166 = vmatprep.subr.bf16.mxu0 %v11689_v5  ;;  %229 = vmatprep.subr.bf16.mxu1 %v11700_v8  ;;  %v41_v12 = vld [vmem:[%s17126_s0 + $0x20] sm:$0xf]  ;;  %v42_v18 = vld [vmem:[%s17126_s0 + $0x24] sm:$0xf] }
   0x6   :  { %v11725_v13 = vld [vmem:[%s17125_s1 + $0x24] ss:$16 sps:$4 sm:$0x3f]   ;;  %v11727_v14 = vcombine.low %v40_v11, %v41_v12  ;;  %v11732_v15 = vld [vmem:[%s17125_s1 + $0x2c] ss:$16 sps:$4 sm:$0x3f]   ;;  %v11752_v20 = vcombine.low %v41_v12, %v42_v18 }
   0x7   :  { %v10291_v16 = vld [vmem:[%s17125_s1 + $0x20] ss:$16 sps:$4 sm:$0x3f]   ;;  %v10292_v17 = vld [vmem:[%s17125_s1 + $0x28] ss:$16 sps:$4 sm:$0x3f]  }
   0x8   :  { %167 = vmatpush1.bf16.msra.mxu0 %v11707_v9  ;;  %230 = vmatpush1.bf16.msra.mxu1 %v11712_v10  ;;  %v11750_v19 = vsel %vm139_vm0, %v10291_v16, 0  ;;  %v11757_v21 = vld [vmem:[%s17125_s1 + $0x4] ss:$16 sps:$4 sm:$0xff]   ;;  %v11760_v22 = vsel %vm139_vm0, %v10292_v17, 0  ;;  %v11765_v23 = vld [vmem:[%s17125_s1 + $0xc] ss:$16 sps:$4 sm:$0xff]  }
   0x9   :  { %8952 = vmatprep.subr.msk.bf16.mxu0 %vm139_vm0, %v11725_v13  ;;  %8956 = vmatprep.subr.msk.bf16.mxu1 %vm139_vm0, %v11732_v15  ;;  %v43_v24 = vld [vmem:[%s17126_s0 + $0x28] sm:$0xf]  ;;  %v44_v25 = vld [vmem:[%s17126_s0 + $0x2c] sm:$0xf]  ;;  %v11782_v26 = vld [vmem:[%s17125_s1] ss:$16 sps:$4 sm:$0xff]  }
   0xa   :  { %v11787_v27 = vld [vmem:[%s17125_s1 + $0x8] ss:$16 sps:$4 sm:$0xff]   ;;  %v11789_v28 = vcombine.low %v43_v24, %v44_v25  ;;  %v11798_v29 = vld [vmem:[%s17125_s1 + $0xa4] ss:$16 sps:$4 sm:$0x3f]   ;;  %v11800_v30 = vcombine.low %v42_v18, %v43_v24  ;;  %vm8812_vm3 = vcmask 1041408  }
   0xb   :  { %8934 = vmatmul.mubr.msk.bf16.vlgmr.msra.gmra.mxu0 %vm129_vm1, %v11727_v14  ;;  %8938 = vmatmul.mubr.msk.bf16.vlgmr.msra.gmra.mxu1 %vm129_vm1, %v11727_v14  ;;  %v11805_v31 = vld [vmem:[%s17125_s1 + $0xac] ss:$16 sps:$4 sm:$0x3f]   ;;  %v34_v32 = vld [vmem:[%s17126_s0 + $0x4] sm:$0xf]  ;;  %vm8808_vm4 = vcmask 949248  }
   0xc   :  { %363 = vmatpush1.bf16.msra.mxu0 %v11750_v19  ;;  %426 = vmatpush1.bf16.msra.mxu1 %v11760_v22  ;;  %v35_v33 = vld [vmem:[%s17126_s0 + $0x8] sm:$0xf]  ;;  %v36_v35 = vld [vmem:[%s17126_s0 + $0xc] sm:$0xf]  ;;  %v37_v36 = vld [vmem:[%s17126_s0 + $0x10] sm:$0xf] }
   0xd   :  { %194 = vmatprep.mubr.bf16.mxu0 %v17135_v1  ;;  %257 = vmatprep.mubr.bf16.mxu1 %v17135_v1  ;;  %v11819_v34 = vcombine.low %v34_v32, %v35_v33  ;;  %v11836_v37 = vld [vmem:[%s17126_s0 + $0x30] sm:$0xf]  ;;  %v11838_v38 = vcombine.low %v36_v35, %v37_v36  ;;  %v48_v40 = vld [vmem:[%s17126_s0 + $0x3c] sm:$0xf]  ;;  %v49_v41 = vld [vmem:[%s17126_s0 + $0x40] sm:$0xf]  ;;  %v8942_v55 = vcombine.low %v35_v33, %v36_v35 }
   0xe   :  { %364 = vmatprep.subr.bf16.mxu0 %v11757_v21  ;;  %427 = vmatprep.subr.bf16.mxu1 %v11765_v23  ;;  %v11841_v39 = vcombine.low %v44_v25, %v11836_v37  ;;  %v11849_v42 = vcombine.low %v48_v40, %v49_v41  ;;  %v33_v43 = vld [vmem:[%s17126_s0] sm:$0xf]  ;;  %v10310_v45 = vld [vmem:[%s17125_s1 + $0xa8] ss:$16 sps:$4 sm:$0x3f]   ;;  %vm8896_vm5 = vcmask 80896  }
   0xf   :  { %17192 = vst [vmem:[#allocation4_spill] sm:$0xff] %v11819_v34  ;;  %17193 = vst [vmem:[#allocation5_spill] sm:$0xff] %v11838_v38  ;;  %v10309_v44 = vld [vmem:[%s17125_s1 + $0xa0] ss:$16 sps:$4 sm:$0x3f]   ;;  %v8941_v46 = vcombine.low %v33_v43, %v34_v32  ;;  %v11870_v48 = vsel %vm139_vm0, %v10310_v45, 0 }
  0x10   :  { %365 = vmatpush1.bf16.msra.mxu0 %v11782_v26  ;;  %428 = vmatpush1.bf16.msra.mxu1 %v11787_v27  ;;  %17194 = vst [vmem:[#allocation6_spill] sm:$0xff] %v11849_v42  ;;  %v11867_v47 = vsel %vm139_vm0, %v10309_v44, 0  ;;  %v11875_v49 = vld [vmem:[%s17125_s1 + $0x84] ss:$16 sps:$4 sm:$0xff]   ;;  %v11880_v50 = vld [vmem:[%s17125_s1 + $0x8c] ss:$16 sps:$4 sm:$0xff]  }
  0x11   :  { %8979 = vmatprep.subr.msk.bf16.mxu0 %vm139_vm0, %v11798_v29  ;;  %8983 = vmatprep.subr.msk.bf16.mxu1 %vm139_vm0, %v11805_v31  ;;  %v11889_v51 = vld [vmem:[%s17125_s1 + $0x80] ss:$16 sps:$4 sm:$0xff]   ;;  %v11894_v52 = vld [vmem:[%s17125_s1 + $0x88] ss:$16 sps:$4 sm:$0xff]   ;;  %v11923_v56 = vld [vmem:[%s17126_s0 + $0x14] sm:$0xf] }
  0x12   :  { %v11901_v53 = vld [vmem:[%s17125_s1 + $0xe4] ss:$16 sps:$4 sm:$0x3f]   ;;  %v11906_v54 = vld [vmem:[%s17125_s1 + $0xec] ss:$16 sps:$4 sm:$0x3f]   ;;  %v8943_v57 = vcombine.low %v37_v36, %v11923_v56 }
  0x13   :  { %8935 = vmatmul.mubr.msk.bf16.gmra.mxu0 %vm129_vm1, %v11800_v30  ;;  %8939 = vmatmul.mubr.msk.bf16.gmra.mxu1 %vm129_vm1, %v11800_v30  ;;  %v47_v58 = vld [vmem:[%s17126_s0 + $0x38] sm:$0xf]  ;;  %v10327_v59 = vld [vmem:[%s17125_s1 + $0xe0] ss:$16 sps:$4 sm:$0x3f]  }
  0x14   :  { %204 = vmatprep.mubr.bf16.mxu0 %v17135_v1  ;;  %267 = vmatprep.mubr.bf16.mxu1 %v17135_v1  ;;  %v10328_v60 = vld [vmem:[%s17125_s1 + $0xe8] ss:$16 sps:$4 sm:$0x3f]   ;;  %v11939_v61 = vcombine.low %v47_v58, %v48_v40  ;;  %v11942_v62 = vsel %vm139_vm0, %v10327_v59, 0  ;;  %v11950_v3 = vld [vmem:[%s17125_s1 + $0xc4] ss:$16 sps:$4 sm:$0xff]  }
  0x15   :  { %17195 = vst [vmem:[#allocation7_spill] sm:$0xff] %v11942_v62  ;;  %v11945_v63 = vsel %vm139_vm0, %v10328_v60, 0  ;;  %17197 = vst [vmem:[#allocation9_spill] sm:$0xff] %v11950_v3  ;;  %v11955_v4 = vld [vmem:[%s17125_s1 + $0xcc] ss:$16 sps:$4 sm:$0xff]  }
  0x16   :  { %17196 = vst [vmem:[#allocation8_spill] sm:$0xff] %v11945_v63  ;;  %17198 = vst [vmem:[#allocation10_spill] sm:$0xff] %v11955_v4  ;;  %v50_v11 = vld [vmem:[%s17126_s0 + $0x44] sm:$0xf]  ;;  %v11969_v12 = vld [vmem:[%s17125_s1 + $0xc0] ss:$16 sps:$4 sm:$0xff]  }
  0x17   :  { %17199 = vst [vmem:[#allocation11_spill] sm:$0xff] %v11969_v12  ;;  %v11974_v16 = vld [vmem:[%s17125_s1 + $0xc8] ss:$16 sps:$4 sm:$0xff]   ;;  %v11981_v17 = vld [vmem:[%s17125_s1 + $0x124] ss:$16 sps:$4 sm:$0x3f]   ;;  %v11990_v24 = vcombine.low %v49_v41, %v50_v11 }
  0x18   :  { %17200 = vst [vmem:[#allocation12_spill] sm:$0xff] %v11974_v16  ;;  %17201 = vst [vmem:[#allocation13_spill] sm:$0xff] %v11981_v17  ;;  %v11986_v18 = vld [vmem:[%s17125_s1 + $0x12c] ss:$16 sps:$4 sm:$0x3f]  }
  0x19   :  { %17202 = vst [vmem:[#allocation14_spill] sm:$0xff] %v11986_v18  ;;  %17203 = vst [vmem:[#allocation15_spill] sm:$0xff] %v11990_v24  ;;  %v12007_v25 = vld [vmem:[%s17126_s0 + $0x48] sm:$0xf]  ;;  %v52_v32 = vld [vmem:[%s17126_s0 + $0x4c] sm:$0xf] }
  0x1a   :  { %17204 = vst [vmem:[#allocation16_spill] sm:$0xff] %v12007_v25  ;;  %v12013_v33 = vcombine.low %v12007_v25, %v52_v32  ;;  %v54_v35 = vld [vmem:[%s17126_s0 + $0x54] sm:$0xf]  ;;  %v55_v36 = vld [vmem:[%s17126_s0 + $0x58] sm:$0xf]  ;;  %v17213_v25 = vmov 0  }
  0x1b   :  { %8936 = vmatmul.mubr.msk.bf16.gmra.mxu0 %vm129_vm1, %v11841_v39  ;;  %8940 = vmatmul.mubr.msk.bf16.gmra.mxu1 %vm129_vm1, %v11841_v39  ;;  %v10343_v40 = vld [vmem:[%s17125_s1 + $0x120] ss:$16 sps:$4 sm:$0x3f]   ;;  %v10344_v41 = vld [vmem:[%s17125_s1 + $0x128] ss:$16 sps:$4 sm:$0x3f]   ;;  %v12033_v43 = vcombine.low %v54_v35, %v55_v36 }
  0x1c   :  { %382 = vmatprep.mubr.bf16.mxu0 %v17135_v1  ;;  %445 = vmatprep.mubr.bf16.mxu1 %v17135_v1  ;;  %17205 = vst [vmem:[#allocation17_spill] sm:$0xff] %v12013_v33  ;;  %v12036_v44 = vsel %vm139_vm0, %v10343_v40, 0  ;;  %v12039_v45 = vsel %vm139_vm0, %v10344_v41, 0  ;;  %v57_v58 = vld [vmem:[%s17126_s0 + $0x60] sm:$0xf] }
  0x1d   :  { %17206 = vst [vmem:[#allocation18_spill] sm:$0xff] %v12036_v44  ;;  %17207 = vst [vmem:[#allocation19_spill] sm:$0xff] %v12039_v45  ;;  %v12066_v59 = vld [vmem:[%s17125_s1 + $0x100] ss:$16 sps:$4 sm:$0xff]   ;;  %v12071_v60 = vld [vmem:[%s17125_s1 + $0x108] ss:$16 sps:$4 sm:$0xff]  }
  0x1e   :  { %17210 = vst [vmem:[#allocation22_spill] sm:$0xff] %v12066_v59  ;;  %17211 = vst [vmem:[#allocation23_spill] sm:$0xff] %v12071_v60  ;;  %v58_v32 = vld [vmem:[%s17126_s0 + $0x64] sm:$0xf]  ;;  %v59_v35 = vld [vmem:[%s17126_s0 + $0x68] sm:$0xf] }
  0x1f   :  { %v12097_v36 = vcombine.low %v58_v32, %v59_v35  ;;  %v39_v40 = vld [vmem:[%s17126_s0 + $0x18] sm:$0xf] }
  0x20   :  { %v12131_v41 = vcombine.low %v11923_v56, %v39_v40 }
  0x22   :  { %17212 = vst [vmem:[#allocation24_spill] sm:$0xff] %v12131_v41 }
  0x23   :  { %8953 = vmatmul.mubr.msk.bf16.vlgmr.msra.gmra.mxu0 %vm129_vm1, %v8941_v46  ;;  %8957 = vmatmul.mubr.msk.bf16.vlgmr.msra.gmra.mxu1 %vm129_vm1, %v8941_v46  ;;  %v12044_v46 = vld [vmem:[%s17125_s1 + $0x104] ss:$16 sps:$4 sm:$0xff]  }
  0x24   :  { %570 = vmatpush1.bf16.msra.mxu0 %v11867_v47  ;;  %633 = vmatpush1.bf16.msra.mxu1 %v11870_v48  ;;  %17208 = vst [vmem:[#allocation20_spill] sm:$0xff] %v12044_v46 }
  0x25   :  { %392 = vmatprep.mubr.bf16.mxu0 %v17135_v1  ;;  %455 = vmatprep.mubr.bf16.mxu1 %v17135_v1 }
  0x26   :  { %571 = vmatprep.subr.bf16.mxu0 %v11875_v49  ;;  %634 = vmatprep.subr.bf16.mxu1 %v11880_v50 }
  0x28   :  { %572 = vmatpush1.bf16.msra.mxu0 %v11889_v51  ;;  %635 = vmatpush1.bf16.msra.mxu1 %v11894_v52 }
  0x29   :  { %9006 = vmatprep.subr.msk.bf16.mxu0 %vm139_vm0, %v11901_v53  ;;  %9010 = vmatprep.subr.msk.bf16.mxu1 %vm139_vm0, %v11906_v54 }
  0x2b   :  { %8954 = vmatmul.mubr.msk.bf16.gmra.mxu0 %vm129_vm1, %v8942_v55  ;;  %8958 = vmatmul.mubr.msk.bf16.gmra.mxu1 %vm129_vm1, %v8942_v55  ;;  %v12049_v55 = vld [vmem:[%s17125_s1 + $0x10c] ss:$16 sps:$4 sm:$0xff]  }
  0x2c   :  { %402 = vmatprep.mubr.bf16.mxu0 %v17135_v1  ;;  %465 = vmatprep.mubr.bf16.mxu1 %v17135_v1  ;;  %17209 = vst [vmem:[#allocation21_spill] sm:$0xff] %v12049_v55 }
  0x33   :  { %8955 = vmatmul.mubr.msk.bf16.gmra.mxu0 %vm129_vm1, %v8943_v57  ;;  %8959 = vmatmul.mubr.msk.bf16.gmra.mxu1 %vm129_vm1, %v8943_v57  ;;  %v56_v57 = vld [vmem:[%s17126_s0 + $0x5c] sm:$0xf] }
  0x34   :  { %589 = vmatprep.mubr.bf16.mxu0 %v17135_v1  ;;  %652 = vmatprep.mubr.bf16.mxu1 %v17135_v1  ;;  %v12077_v11 = vcombine.low %v56_v57, %v57_v58 }
  0x3b   :  { %8980 = vmatmul.mubr.msk.bf16.vlgmr.msra.gmra.mxu0 %vm129_vm1, %v11939_v61  ;;  %8984 = vmatmul.mubr.msk.bf16.vlgmr.msra.gmra.mxu1 %vm129_vm1, %v11939_v61 }
  0x3c   :  { %801 = vmatpush1.bf16.msra.mxu0 %v11942_v62  ;;  %864 = vmatpush1.bf16.msra.mxu1 %v11945_v63 }
  0x3d   :  { %599 = vmatprep.mubr.bf16.mxu0 %v17135_v1  ;;  %662 = vmatprep.mubr.bf16.mxu1 %v17135_v1 }
  0x3e   :  { %802 = vmatprep.subr.bf16.mxu0 %v11950_v3  ;;  %865 = vmatprep.subr.bf16.mxu1 %v11955_v4 }
  0x40   :  { %803 = vmatpush1.bf16.msra.mxu0 %v11969_v12  ;;  %866 = vmatpush1.bf16.msra.mxu1 %v11974_v16 }
  0x41   :  { %9033 = vmatprep.subr.msk.bf16.mxu0 %vm139_vm0, %v11981_v17  ;;  %9037 = vmatprep.subr.msk.bf16.mxu1 %vm139_vm0, %v11986_v18 }
  0x43   :  { %8981 = vmatmul.mubr.msk.bf16.gmra.mxu0 %vm129_vm1, %v11990_v24  ;;  %8985 = vmatmul.mubr.msk.bf16.gmra.mxu1 %vm129_vm1, %v11990_v24 }
  0x44   :  { %609 = vmatprep.mubr.bf16.mxu0 %v17135_v1  ;;  %672 = vmatprep.mubr.bf16.mxu1 %v17135_v1 }
  0x4b   :  { %8982 = vmatmul.mubr.msk.bf16.gmra.mxu0 %vm129_vm1, %v12013_v33  ;;  %8986 = vmatmul.mubr.msk.bf16.gmra.mxu1 %vm129_vm1, %v12013_v33 }
  0x4c   :  { %820 = vmatprep.mubr.bf16.mxu0 %v17135_v1  ;;  %883 = vmatprep.mubr.bf16.mxu1 %v17135_v1 }
  0x53   :  { %9007 = vmatmul.mubr.msk.bf16.vlgmr.msra.gmra.mxu0 %vm129_vm1, %v12033_v43  ;;  %9011 = vmatmul.mubr.msk.bf16.vlgmr.msra.gmra.mxu1 %vm129_vm1, %v12033_v43 }
  0x54   :  { %1022 = vmatpush1.bf16.msra.mxu0 %v12036_v44  ;;  %1085 = vmatpush1.bf16.msra.mxu1 %v12039_v45 }
  0x55   :  { %830 = vmatprep.mubr.bf16.mxu0 %v17135_v1  ;;  %893 = vmatprep.mubr.bf16.mxu1 %v17135_v1 }
  0x56   :  { %1023 = vmatprep.subr.bf16.mxu0 %v12044_v46  ;;  %1086 = vmatprep.subr.bf16.mxu1 %v12049_v55 }
  0x58   :  { %1024 = vmatpush1.bf16.msra.mxu0 %v12066_v59  ;;  %1087 = vmatpush1.bf16.msra.mxu1 %v12071_v60 }
  0x59   :  { %9041 = vmatprep.subr.msk.bf16.mxu0 %vm139_vm0, %v11667_v0  ;;  %9045 = vmatprep.subr.msk.bf16.mxu1 %vm139_vm0, %v11674_v2 }
  0x5b   :  { %9008 = vmatmul.mubr.msk.bf16.gmra.mxu0 %vm129_vm1, %v12077_v11  ;;  %9012 = vmatmul.mubr.msk.bf16.gmra.mxu1 %vm129_vm1, %v12077_v11 }
  0x5c   :  { %840 = vmatprep.mubr.bf16.mxu0 %v17135_v1  ;;  %903 = vmatprep.mubr.bf16.mxu1 %v17135_v1 }
  0x63   :  { %9009 = vmatmul.mubr.msk.bf16.gmra.mxu0 %vm129_vm1, %v12097_v36  ;;  %9013 = vmatmul.mubr.msk.bf16.gmra.mxu1 %vm129_vm1, %v12097_v36 }
  0x64   :  { %1041 = vmatprep.mubr.bf16.mxu0 %v17135_v1  ;;  %1104 = vmatprep.mubr.bf16.mxu1 %v17135_v1 }
  0x6b   :  { %9034 = vmatmul.mubr.msk.bf16.vlgmr.msra.gmra.mxu0 %vm129_vm1, %v11819_v34  ;;  %9038 = vmatmul.mubr.msk.bf16.vlgmr.msra.gmra.mxu1 %vm129_vm1, %v11819_v34 }
  0x6c   :  { %1172 = vmatpush1.bf16.msra.mxu0 %v11692_v6  ;;  %1235 = vmatpush1.bf16.msra.mxu1 %v11695_v7 }
  0x6d   :  { %1051 = vmatprep.mubr.bf16.mxu0 %v17135_v1  ;;  %1114 = vmatprep.mubr.bf16.mxu1 %v17135_v1 }
  0x6e   :  { %1173 = vmatprep.subr.bf16.mxu0 %v11689_v5  ;;  %1236 = vmatprep.subr.bf16.mxu1 %v11700_v8 }
  0x70   :  { %1174 = vmatpush1.bf16.msra.mxu0 %v11707_v9  ;;  %1237 = vmatpush1.bf16.msra.mxu1 %v11712_v10 }
  0x71   :  { %9049 = vmatprep.subr.msk.bf16.mxu0 %vm139_vm0, %v11725_v13  ;;  %9053 = vmatprep.subr.msk.bf16.mxu1 %vm139_vm0, %v11732_v15 }
  0x73   :  { %9035 = vmatmul.mubr.msk.bf16.gmra.mxu0 %vm129_vm1, %v11838_v38  ;;  %9039 = vmatmul.mubr.msk.bf16.gmra.mxu1 %vm129_vm1, %v11838_v38 }
  0x74   :  { %1061 = vmatprep.mubr.bf16.mxu0 %v17135_v1  ;;  %1124 = vmatprep.mubr.bf16.mxu1 %v17135_v1 }
  0x7b   :  { %9036 = vmatmul.mubr.msk.bf16.gmra.mxu0 %vm129_vm1, %v12131_v41  ;;  %9040 = vmatmul.mubr.msk.bf16.gmra.mxu1 %vm129_vm1, %v12131_v41 }
  0x7c   :  { %1191 = vmatprep.mubr.bf16.mxu0 %v17135_v1  ;;  %1254 = vmatprep.mubr.bf16.mxu1 %v17135_v1 }
  0x83   :  { %9042 = vmatmul.mubr.msk.bf16.vlgmr.msra.gmra.mxu0 %vm129_vm1, %v11939_v61  ;;  %9046 = vmatmul.mubr.msk.bf16.vlgmr.msra.gmra.mxu1 %vm129_vm1, %v11939_v61 }
  0x84   :  { %1298 = vmatpush1.bf16.msra.mxu0 %v11750_v19  ;;  %1361 = vmatpush1.bf16.msra.mxu1 %v11760_v22 }
  0x85   :  { %1201 = vmatprep.mubr.bf16.mxu0 %v17135_v1  ;;  %1264 = vmatprep.mubr.bf16.mxu1 %v17135_v1 }
  0x86   :  { %1299 = vmatprep.subr.bf16.mxu0 %v11757_v21  ;;  %1362 = vmatprep.subr.bf16.mxu1 %v11765_v23 }
  0x88   :  { %1300 = vmatpush1.bf16.msra.mxu0 %v11782_v26  ;;  %1363 = vmatpush1.bf16.msra.mxu1 %v11787_v27 }
  0x89   :  { %9057 = vmatprep.subr.msk.bf16.mxu0 %vm139_vm0, %v11798_v29  ;;  %9061 = vmatprep.subr.msk.bf16.mxu1 %vm139_vm0, %v11805_v31 }
  0x8b   :  { %9043 = vmatmul.mubr.msk.bf16.gmra.mxu0 %vm129_vm1, %v11990_v24  ;;  %9047 = vmatmul.mubr.msk.bf16.gmra.mxu1 %vm129_vm1, %v11990_v24 }
  0x8c   :  { %1211 = vmatprep.mubr.bf16.mxu0 %v17135_v1  ;;  %1274 = vmatprep.mubr.bf16.mxu1 %v17135_v1 }
  0x93   :  { %9044 = vmatmul.mubr.msk.bf16.gmra.mxu0 %vm129_vm1, %v12013_v33  ;;  %9048 = vmatmul.mubr.msk.bf16.gmra.mxu1 %vm129_vm1, %v12013_v33 }
  0x94   :  { %1317 = vmatprep.mubr.bf16.mxu0 %v17135_v1  ;;  %1380 = vmatprep.mubr.bf16.mxu1 %v17135_v1 }
  0x9b   :  { %9050 = vmatmul.mubr.msk.bf16.vlgmr.msra.gmra.mxu0 %vm129_vm1, %v11727_v14  ;;  %9054 = vmatmul.mubr.msk.bf16.vlgmr.msra.gmra.mxu1 %vm129_vm1, %v11727_v14 }
  0x9c   :  { %1424 = vmatpush1.bf16.msra.mxu0 %v11867_v47  ;;  %1487 = vmatpush1.bf16.msra.mxu1 %v11870_v48 }
  0x9d   :  { %1327 = vmatprep.mubr.bf16.mxu0 %v17135_v1  ;;  %1390 = vmatprep.mubr.bf16.mxu1 %v17135_v1 }
  0x9e   :  { %1425 = vmatprep.subr.bf16.mxu0 %v11875_v49  ;;  %1488 = vmatprep.subr.bf16.mxu1 %v11880_v50 }
  0xa0   :  { %1426 = vmatpush1.bf16.msra.mxu0 %v11889_v51  ;;  %1489 = vmatpush1.bf16.msra.mxu1 %v11894_v52 }
  0xa1   :  { %9065 = vmatprep.subr.msk.bf16.mxu0 %vm139_vm0, %v11901_v53  ;;  %9069 = vmatprep.subr.msk.bf16.mxu1 %vm139_vm0, %v11906_v54 }
  0xa3   :  { %9051 = vmatmul.mubr.msk.bf16.gmra.mxu0 %vm129_vm1, %v11800_v30  ;;  %9055 = vmatmul.mubr.msk.bf16.gmra.mxu1 %vm129_vm1, %v11800_v30 }
  0xa4   :  { %1337 = vmatprep.mubr.bf16.mxu0 %v17135_v1  ;;  %1400 = vmatprep.mubr.bf16.mxu1 %v17135_v1 }
  0xab   :  { %9052 = vmatmul.mubr.msk.bf16.gmra.mxu0 %vm129_vm1, %v11841_v39  ;;  %9056 = vmatmul.mubr.msk.bf16.gmra.mxu1 %vm129_vm1, %v11841_v39 }
  0xac   :  { %1443 = vmatprep.mubr.bf16.mxu0 %v17135_v1  ;;  %1506 = vmatprep.mubr.bf16.mxu1 %v17135_v1 }
  0xb3   :  { %9058 = vmatmul.mubr.msk.bf16.vlgmr.msra.gmra.mxu0 %vm129_vm1, %v12033_v43  ;;  %9062 = vmatmul.mubr.msk.bf16.vlgmr.msra.gmra.mxu1 %vm129_vm1, %v12033_v43 }
  0xb4   :  { %1574 = vmatpush1.bf16.msra.mxu0 %v11942_v62  ;;  %1637 = vmatpush1.bf16.msra.mxu1 %v11945_v63 }
  0xb5   :  { %1453 = vmatprep.mubr.bf16.mxu0 %v17135_v1  ;;  %1516 = vmatprep.mubr.bf16.mxu1 %v17135_v1 }
  0xb6   :  { %1575 = vmatprep.subr.bf16.mxu0 %v11950_v3  ;;  %1638 = vmatprep.subr.bf16.mxu1 %v11955_v4 }
  0xb8   :  { %1576 = vmatpush1.bf16.msra.mxu0 %v11969_v12  ;;  %1639 = vmatpush1.bf16.msra.mxu1 %v11974_v16 }
  0xb9   :  { %9076 = vmatprep.subr.msk.bf16.mxu0 %vm139_vm0, %v11981_v17  ;;  %9080 = vmatprep.subr.msk.bf16.mxu1 %vm139_vm0, %v11986_v18 }
  0xbb   :  { %9059 = vmatmul.mubr.msk.bf16.gmra.mxu0 %vm129_vm1, %v12077_v11  ;;  %9063 = vmatmul.mubr.msk.bf16.gmra.mxu1 %vm129_vm1, %v12077_v11 }
  0xbc   :  { %1463 = vmatprep.mubr.bf16.mxu0 %v17135_v1  ;;  %1526 = vmatprep.mubr.bf16.mxu1 %v17135_v1 }
  0xc3   :  { %9060 = vmatmul.mubr.msk.bf16.gmra.mxu0 %vm129_vm1, %v12097_v36  ;;  %9064 = vmatmul.mubr.msk.bf16.gmra.mxu1 %vm129_vm1, %v12097_v36 }
  0xc4   :  { %1593 = vmatprep.mubr.bf16.mxu0 %v17135_v1  ;;  %1656 = vmatprep.mubr.bf16.mxu1 %v17135_v1 }
  0xcb   :  { %v186_v14 = vpop.f32.mrf.mxu0  ;;  %v249_v30 = vpop.f32.mrf.mxu1  ;;  %9066 = vmatmul.mubr.msk.bf16.vlgmr.msra.gmra.mxu0 %vm129_vm1, %v11819_v34  ;;  %9070 = vmatmul.mubr.msk.bf16.vlgmr.msra.gmra.mxu1 %vm129_vm1, %v11819_v34 }
  0xcc   :  { %1738 = vmatpush1.bf16.msra.mxu0 %v12036_v44  ;;  %1801 = vmatpush1.bf16.msra.mxu1 %v12039_v45 }
  0xcd   :  { %v188_v39 = vpop.f32.mrf.mxu0  ;;  %v251_v56 = vpop.f32.mrf.mxu1  ;;  %1603 = vmatprep.mubr.bf16.mxu0 %v17135_v1  ;;  %1666 = vmatprep.mubr.bf16.mxu1 %v17135_v1 }
  0xce   :  { %1739 = vmatprep.subr.bf16.mxu0 %v12044_v46  ;;  %1802 = vmatprep.subr.bf16.mxu1 %v12049_v55 }
  0xcf   :  { %v190_v57 = vpop.f32.mrf.mxu0  ;;  %v253_v58 = vpop.f32.mrf.mxu1 }
  0xd0   :  { %1740 = vmatpush1.bf16.msra.mxu0 %v12066_v59  ;;  %1803 = vmatpush1.bf16.msra.mxu1 %v12071_v60 }
  0xd1   :  { %v192_v32 = vpop.f32.mrf.mxu0  ;;  %v255_v35 = vpop.f32.mrf.mxu1  ;;  %9084 = vmatprep.subr.msk.bf16.mxu0 %vm139_vm0, %v11667_v0  ;;  %9088 = vmatprep.subr.msk.bf16.mxu1 %vm139_vm0, %v11674_v2 }
  0xd3   :  { %v196_v40 = vpop.f32.mrf.mxu0  ;;  %v259_v1 = vpop.f32.mrf.mxu1  ;;  %9067 = vmatmul.mubr.msk.bf16.gmra.mxu0 %vm129_vm1, %v11838_v38  ;;  %9071 = vmatmul.mubr.msk.bf16.gmra.mxu1 %vm129_vm1, %v11838_v38 }
  0xd4   :  { %1613 = vmatprep.mubr.bf16.mxu0 %v17213_v25  ;;  %1676 = vmatprep.mubr.bf16.mxu1 %v17213_v25 }
  0xd5   :  { %v198_v42 = vpop.f32.mrf.mxu0  ;;  %v261_v60 = vpop.f32.mrf.mxu1 }
  0xd7   :  { %v200_v59 = vpop.f32.mrf.mxu0  ;;  %v263_v55 = vpop.f32.mrf.mxu1 }
  0xd9   :  { %v202_v0 = vpop.f32.mrf.mxu0  ;;  %v265_v46 = vpop.f32.mrf.mxu1 }
  0xdb   :  { %v12245_v45 = vpop.f32.mrf.mxu0  ;;  %v12247_v2 = vpop.f32.mrf.mxu1  ;;  %9068 = vmatmul.mubr.msk.bf16.gmra.mxu0 %vm129_vm1, %v12131_v41  ;;  %9072 = vmatmul.mubr.msk.bf16.gmra.mxu1 %vm129_vm1, %v12131_v41 }
  0xdc   :  { %1757 = vmatprep.mubr.bf16.mxu0 %v17213_v25  ;;  %1820 = vmatprep.mubr.bf16.mxu1 %v17213_v25 }
  0xdd   :  { %v12255_v44 = vpop.f32.mrf.mxu0  ;;  %v12257_v38 = vpop.f32.mrf.mxu1 }
  0xdf   :  { %v12259_v18 = vpop.f32.mrf.mxu0  ;;  %v12261_v17 = vpop.f32.mrf.mxu1 }
  0xe1   :  { %v12263_v16 = vpop.f32.mrf.mxu0  ;;  %v12265_v12 = vpop.f32.mrf.mxu1 }
  0xe3   :  { %v384_v4 = vpop.f32.mrf.mxu0  ;;  %v447_v3 = vpop.f32.mrf.mxu1  ;;  %9077 = vmatmul.mubr.msk.bf16.vlgmr.msra.gmra.mxu0 %vm129_vm1, %v11752_v20  ;;  %9081 = vmatmul.mubr.msk.bf16.vlgmr.msra.gmra.mxu1 %vm129_vm1, %v11752_v20 }
  0xe4   :  { %v12271_v41 = vadd.f32 %v384_v4, %v186_v14  ;;  %v12273_v63 = vadd.f32 %v447_v3, %v249_v30  ;;  %1966 = vmatpush1.bf16.msra.mxu0 %v11692_v6  ;;  %2029 = vmatpush1.bf16.msra.mxu1 %v11695_v7 }
  0xe5   :  { %v386_v62 = vpop.f32.mrf.mxu0  ;;  %v449_v34 = vpop.f32.mrf.mxu1  ;;  %1767 = vmatprep.mubr.bf16.mxu0 %v17213_v25  ;;  %1830 = vmatprep.mubr.bf16.mxu1 %v17213_v25 }
  0xe6   :  { %v12279_v33 = vadd.f32 %v386_v62, %v188_v39  ;;  %v12281_v24 = vadd.f32 %v449_v34, %v251_v56  ;;  %1967 = vmatprep.subr.bf16.mxu0 %v11689_v5  ;;  %2030 = vmatprep.subr.bf16.mxu1 %v11700_v8 }
  0xe7   :  { %v388_v3 = vpop.f32.mrf.mxu0  ;;  %v451_v4 = vpop.f32.mrf.mxu1 }
  0xe8   :  { %v12285_v14 = vadd.f32 %v388_v3, %v190_v57  ;;  %v12287_v30 = vadd.f32 %v451_v4, %v253_v58  ;;  %1968 = vmatpush1.bf16.msra.mxu0 %v11707_v9  ;;  %2031 = vmatpush1.bf16.msra.mxu1 %v11712_v10  ;;  %v46_v9 = vld [vmem:[%s17126_s0 + $0x34] sm:$0xf] }
  0xe9   :  { %v390_v7 = vpop.f32.mrf.mxu0  ;;  %v453_v6 = vpop.f32.mrf.mxu1  ;;  %9092 = vmatprep.subr.msk.bf16.mxu0 %vm139_vm0, %v11725_v13  ;;  %9096 = vmatprep.subr.msk.bf16.mxu1 %vm139_vm0, %v11732_v15  ;;  %v12317_v56 = vcombine.low %v11836_v37, %v46_v9 }
  0xea   :  { %v12295_v5 = vadd.f32 %v390_v7, %v192_v32  ;;  %v12297_v8 = vadd.f32 %v453_v6, %v255_v35 }
  0xeb   :  { %v394_v34 = vpop.f32.mrf.mxu0  ;;  %v457_v62 = vpop.f32.mrf.mxu1  ;;  %9078 = vmatmul.mubr.msk.bf16.gmra.mxu0 %vm129_vm1, %v11789_v28  ;;  %9082 = vmatmul.mubr.msk.bf16.gmra.mxu1 %vm129_vm1, %v11789_v28  ;;  %17214 = vst [vmem:[#allocation25_spill] sm:$0xff] %v12317_v56 }
  0xec   :  { %v12306_v10 = vadd.f32 %v394_v34, %v196_v40  ;;  %v12308_v13 = vadd.f32 %v457_v62, %v259_v1  ;;  %1777 = vmatprep.mubr.bf16.mxu0 %v17213_v25  ;;  %1840 = vmatprep.mubr.bf16.mxu1 %v17213_v25 }
  0xed   :  { %v396_v6 = vpop.f32.mrf.mxu0  ;;  %v459_v7 = vpop.f32.mrf.mxu1 }
  0xee   :  { %v12312_v15 = vadd.f32 %v396_v6, %v198_v42  ;;  %v12314_v39 = vadd.f32 %v459_v7, %v261_v60 }
  0xef   :  { %v398_v57 = vpop.f32.mrf.mxu0  ;;  %v461_v58 = vpop.f32.mrf.mxu1 }
  0xf0   :  { %v12319_v32 = vadd.f32 %v398_v57, %v200_v59  ;;  %v12321_v35 = vadd.f32 %v461_v58, %v263_v55 }
  0xf1   :  { %v400_v1 = vpop.f32.mrf.mxu0  ;;  %v463_v40 = vpop.f32.mrf.mxu1 }
  0xf2   :  { %v12323_v3 = vadd.f32 %v400_v1, %v202_v0  ;;  %v12325_v4 = vadd.f32 %v463_v40, %v265_v46 }
  0xf3   :  { %v404_v34 = vpop.f32.mrf.mxu0  ;;  %v467_v42 = vpop.f32.mrf.mxu1  ;;  %9079 = vmatmul.mubr.msk.bf16.gmra.mxu0 %vm129_vm1, %v12317_v56  ;;  %9083 = vmatmul.mubr.msk.bf16.gmra.mxu1 %vm129_vm1, %v12317_v56 }
  0xf4   :  { %v12332_v37 = vadd.f32 %v404_v34, %v12245_v45  ;;  %v12335_v55 = vadd.f32 %v467_v42, %v12247_v2  ;;  %1985 = vmatprep.mubr.bf16.mxu0 %v17213_v25  ;;  %2048 = vmatprep.mubr.bf16.mxu1 %v17213_v25 }
  0xf5   :  { %v406_v46 = vpop.f32.mrf.mxu0  ;;  %v469_v59 = vpop.f32.mrf.mxu1 }
  0xf6   :  { %v12340_v60 = vadd.f32 %v406_v46, %v12255_v44  ;;  %v12343_v0 = vadd.f32 %v469_v59, %v12257_v38 }
  0xf7   :  { %v408_v62 = vpop.f32.mrf.mxu0  ;;  %v471_v9 = vpop.f32.mrf.mxu1 }
  0xf8   :  { %v12346_v45 = vadd.f32 %v408_v62, %v12259_v18  ;;  %v12349_v2 = vadd.f32 %v471_v9, %v12261_v17 }
  0xf9   :  { %v410_v6 = vpop.f32.mrf.mxu0  ;;  %v473_v7 = vpop.f32.mrf.mxu1 }
  0xfa   :  { %v12352_v57 = vadd.f32 %v410_v6, %v12263_v16  ;;  %v12355_v58 = vadd.f32 %v473_v7, %v12265_v12 }
  0xfb   :  { %v591_v44 = vpop.f32.mrf.mxu0  ;;  %v654_v1 = vpop.f32.mrf.mxu1  ;;  %9085 = vmatmul.mubr.msk.bf16.vlgmr.msra.gmra.mxu0 %vm129_vm1, %v12033_v43  ;;  %9089 = vmatmul.mubr.msk.bf16.vlgmr.msra.gmra.mxu1 %vm129_vm1, %v12033_v43 }
  0xfc   :  { %v12362_v38 = vadd.f32 %v591_v44, %v12271_v41  ;;  %v12365_v17 = vadd.f32 %v654_v1, %v12273_v63  ;;  %2092 = vmatpush1.bf16.msra.mxu0 %v11750_v19  ;;  %2155 = vmatpush1.bf16.msra.mxu1 %v11760_v22 }
  0xfd   :  { %v593_v12 = vpop.f32.mrf.mxu0  ;;  %v656_v16 = vpop.f32.mrf.mxu1  ;;  %1995 = vmatprep.mubr.bf16.mxu0 %v17213_v25  ;;  %2058 = vmatprep.mubr.bf16.mxu1 %v17213_v25 }
  0xfe   :  { %v12372_v18 = vadd.f32 %v593_v12, %v12279_v33  ;;  %v12375_v40 = vadd.f32 %v656_v16, %v12281_v24  ;;  %2093 = vmatprep.subr.bf16.mxu0 %v11757_v21  ;;  %2156 = vmatprep.subr.bf16.mxu1 %v11765_v23 }
  0xff   :  { %v595_v63 = vpop.f32.mrf.mxu0  ;;  %v658_v41 = vpop.f32.mrf.mxu1 }
 0x100   :  { %v12380_v34 = vadd.f32 %v595_v63, %v12285_v14  ;;  %v12383_v42 = vadd.f32 %v658_v41, %v12287_v30  ;;  %2094 = vmatpush1.bf16.msra.mxu0 %v11782_v26  ;;  %2157 = vmatpush1.bf16.msra.mxu1 %v11787_v27 }
 0x101   :  { %v597_v33 = vpop.f32.mrf.mxu0  ;;  %v660_v46 = vpop.f32.mrf.mxu1  ;;  %9100 = vmatprep.subr.msk.bf16.mxu0 %vm139_vm0, %v11798_v29  ;;  %9104 = vmatprep.subr.msk.bf16.mxu1 %vm139_vm0, %v11805_v31 }
 0x102   :  { %v12392_v21 = vadd.f32 %v597_v33, %v12295_v5  ;;  %v12395_v23 = vadd.f32 %v660_v46, %v12297_v8 }
 0x103   :  { %v601_v24 = vpop.f32.mrf.mxu0  ;;  %v664_v14 = vpop.f32.mrf.mxu1  ;;  %9086 = vmatmul.mubr.msk.bf16.gmra.mxu0 %vm129_vm1, %v12077_v11  ;;  %9090 = vmatmul.mubr.msk.bf16.gmra.mxu1 %vm129_vm1, %v12077_v11 }
 0x104   :  { %v12402_v26 = vadd.f32 %v601_v24, %v12306_v10  ;;  %v12405_v27 = vadd.f32 %v664_v14, %v12308_v13  ;;  %2005 = vmatprep.mubr.bf16.mxu0 %v17213_v25  ;;  %2068 = vmatprep.mubr.bf16.mxu1 %v17213_v25 }
 0x105   :  { %v603_v29 = vpop.f32.mrf.mxu0  ;;  %v666_v31 = vpop.f32.mrf.mxu1 }
 0x106   :  { %v12410_v30 = vadd.f32 %v603_v29, %v12312_v15  ;;  %v12413_v5 = vadd.f32 %v666_v31, %v12314_v39 }
 0x107   :  { %v605_v8 = vpop.f32.mrf.mxu0  ;;  %v668_v59 = vpop.f32.mrf.mxu1 }
 0x108   :  { %v12416_v10 = vadd.f32 %v605_v8, %v12319_v32  ;;  %v12419_v13 = vadd.f32 %v668_v59, %v12321_v35 }
 0x109   :  { %v607_v62 = vpop.f32.mrf.mxu0  ;;  %v670_v9 = vpop.f32.mrf.mxu1 }
 0x10a   :  { %v12422_v6 = vadd.f32 %v607_v62, %v12323_v3  ;;  %v12425_v7 = vadd.f32 %v670_v9, %v12325_v4 }
 0x10b   :  { %v611_v15 = vpop.f32.mrf.mxu0  ;;  %v674_v44 = vpop.f32.mrf.mxu1  ;;  %9087 = vmatmul.mubr.msk.bf16.gmra.mxu0 %vm129_vm1, %v12097_v36  ;;  %9091 = vmatmul.mubr.msk.bf16.gmra.mxu1 %vm129_vm1, %v12097_v36 }
 0x10c   :  { %v12432_v39 = vadd.f32 %v611_v15, %v12332_v37  ;;  %v12435_v32 = vadd.f32 %v674_v44, %v12335_v55  ;;  %2111 = vmatprep.mubr.bf16.mxu0 %v17213_v25  ;;  %2174 = vmatprep.mubr.bf16.mxu1 %v17213_v25 }
 0x10d   :  { %v613_v35 = vpop.f32.mrf.mxu0  ;;  %v676_v3 = vpop.f32.mrf.mxu1 }
 0x10e   :  { %v12440_v4 = vadd.f32 %v613_v35, %v12340_v60  ;;  %v12443_v1 = vadd.f32 %v676_v3, %v12343_v0 }
 0x10f   :  { %v615_v12 = vpop.f32.mrf.mxu0  ;;  %v678_v16 = vpop.f32.mrf.mxu1 }
 0x110   :  { %v12446_v37 = vadd.f32 %v615_v12, %v12346_v45  ;;  %v12449_v55 = vadd.f32 %v678_v16, %v12349_v2 }
 0x111   :  { %v617_v63 = vpop.f32.mrf.mxu0  ;;  %v680_v41 = vpop.f32.mrf.mxu1 }
 0x112   :  { %v12452_v33 = vadd.f32 %v617_v63, %v12352_v57  ;;  %v12455_v46 = vadd.f32 %v680_v41, %v12355_v58 }
 0x113   :  { %v822_v60 = vpop.f32.mrf.mxu0  ;;  %v885_v24 = vpop.f32.mrf.mxu1  ;;  %9093 = vmatmul.mubr.msk.bf16.vlgmr.msra.gmra.mxu0 %vm129_vm1, %v11939_v61  ;;  %9097 = vmatmul.mubr.msk.bf16.vlgmr.msra.gmra.mxu1 %vm129_vm1, %v11939_v61 }
 0x114   :  { %v12462_v0 = vadd.f32 %v822_v60, %v12362_v38  ;;  %v12465_v45 = vadd.f32 %v885_v24, %v12365_v17  ;;  %2218 = vmatpush1.bf16.msra.mxu0 %v11867_v47  ;;  %2281 = vmatpush1.bf16.msra.mxu1 %v11870_v48 }
 0x115   :  { %v824_v2 = vpop.f32.mrf.mxu0  ;;  %v887_v57 = vpop.f32.mrf.mxu1  ;;  %2121 = vmatprep.mubr.bf16.mxu0 %v17213_v25  ;;  %2184 = vmatprep.mubr.bf16.mxu1 %v17213_v25 }
 0x116   :  { %v12472_v58 = vadd.f32 %v824_v2, %v12372_v18  ;;  %v12475_v61 = vadd.f32 %v887_v57, %v12375_v40  ;;  %2219 = vmatprep.subr.bf16.mxu0 %v11875_v49  ;;  %2282 = vmatprep.subr.bf16.mxu1 %v11880_v50 }
 0x117   :  { %v826_v38 = vpop.f32.mrf.mxu0  ;;  %v889_v17 = vpop.f32.mrf.mxu1 }
 0x118   :  { %v12480_v14 = vadd.f32 %v826_v38, %v12380_v34  ;;  %v12483_v29 = vadd.f32 %v889_v17, %v12383_v42  ;;  %2220 = vmatpush1.bf16.msra.mxu0 %v11889_v51  ;;  %2283 = vmatpush1.bf16.msra.mxu1 %v11894_v52  ;;  %v17215_v42 = vld [vmem:[#allocation15_spill] sm:$0xff] }
 0x119   :  { %v828_v18 = vpop.f32.mrf.mxu0  ;;  %v891_v31 = vpop.f32.mrf.mxu1  ;;  %9108 = vmatprep.subr.msk.bf16.mxu0 %vm139_vm0, %v11901_v53  ;;  %9112 = vmatprep.subr.msk.bf16.mxu1 %vm139_vm0, %v11906_v54  ;;  %v17218_v38 = vld [vmem:[#allocation7_spill] sm:$0xff] }
 0x11a   :  { %v12492_v49 = vadd.f32 %v828_v18, %v12392_v21  ;;  %v12495_v50 = vadd.f32 %v891_v31, %v12395_v23 }
 0x11b   :  { %v832_v40 = vpop.f32.mrf.mxu0  ;;  %v895_v34 = vpop.f32.mrf.mxu1  ;;  %9094 = vmatmul.mubr.msk.bf16.gmra.mxu0 %vm129_vm1, %v17215_v42  ;;  %9098 = vmatmul.mubr.msk.bf16.gmra.mxu1 %vm129_vm1, %v17215_v42 }
 0x11c   :  { %v12502_v51 = vadd.f32 %v832_v40, %v12402_v26  ;;  %v12505_v52 = vadd.f32 %v895_v34, %v12405_v27  ;;  %2131 = vmatprep.mubr.bf16.mxu0 %v17213_v25  ;;  %2194 = vmatprep.mubr.bf16.mxu1 %v17213_v25 }
 0x11d   :  { %v834_v53 = vpop.f32.mrf.mxu0  ;;  %v897_v54 = vpop.f32.mrf.mxu1 }
 0x11e   :  { %v12510_v21 = vadd.f32 %v834_v53, %v12410_v30  ;;  %v12513_v23 = vadd.f32 %v897_v54, %v12413_v5  ;;  %v17216_v5 = vld [vmem:[#allocation17_spill] sm:$0xff]  ;;  %v17222_v54 = vld [vmem:[#allocation11_spill] sm:$0xff] }
 0x11f   :  { %v836_v8 = vpop.f32.mrf.mxu0  ;;  %v899_v59 = vpop.f32.mrf.mxu1 }
 0x120   :  { %v12516_v26 = vadd.f32 %v836_v8, %v12416_v10  ;;  %v12519_v27 = vadd.f32 %v899_v59, %v12419_v13  ;;  %v17223_v8 = vld [vmem:[#allocation12_spill] sm:$0xff] }
 0x121   :  { %v838_v62 = vpop.f32.mrf.mxu0  ;;  %v901_v9 = vpop.f32.mrf.mxu1 }
 0x122   :  { %v12522_v15 = vadd.f32 %v838_v62, %v12422_v6  ;;  %v12525_v44 = vadd.f32 %v901_v9, %v12425_v7  ;;  %v17225_v62 = vld [vmem:[#allocation14_spill] sm:$0xff] }
 0x123   :  { %v842_v30 = vpop.f32.mrf.mxu0  ;;  %v905_v35 = vpop.f32.mrf.mxu1  ;;  %9095 = vmatmul.mubr.msk.bf16.gmra.mxu0 %vm129_vm1, %v17216_v5  ;;  %9099 = vmatmul.mubr.msk.bf16.gmra.mxu1 %vm129_vm1, %v17216_v5 }
 0x124   :  { %v12532_v10 = vadd.f32 %v842_v30, %v12432_v39  ;;  %v12535_v13 = vadd.f32 %v905_v35, %v12435_v32  ;;  %2237 = vmatprep.mubr.bf16.mxu0 %v17213_v25  ;;  %2300 = vmatprep.mubr.bf16.mxu1 %v17213_v25  ;;  %v17226_v35 = vld [vmem:[#allocation5_spill] sm:$0xff] }
 0x125   :  { %v844_v6 = vpop.f32.mrf.mxu0  ;;  %v907_v7 = vpop.f32.mrf.mxu1 }
 0x126   :  { %v12540_v3 = vadd.f32 %v844_v6, %v12440_v4  ;;  %v12543_v12 = vadd.f32 %v907_v7, %v12443_v1  ;;  %v17217_v1 = vld [vmem:[#allocation4_spill] sm:$0xff] }
 0x127   :  { %v846_v16 = vpop.f32.mrf.mxu0  ;;  %v909_v63 = vpop.f32.mrf.mxu1 }
 0x128   :  { %v12546_v39 = vadd.f32 %v846_v16, %v12446_v37  ;;  %v12549_v32 = vadd.f32 %v909_v63, %v12449_v55 }
 0x129   :  { %v848_v41 = vpop.f32.mrf.mxu0  ;;  %v911_v60 = vpop.f32.mrf.mxu1 }
 0x12a   :  { %v12552_v24 = vadd.f32 %v848_v41, %v12452_v33  ;;  %v12555_v2 = vadd.f32 %v911_v60, %v12455_v46  ;;  %v17219_v33 = vld [vmem:[#allocation8_spill] sm:$0xff] }
 0x12b   :  { %v1043_v4 = vpop.f32.mrf.mxu0  ;;  %v1106_v57 = vpop.f32.mrf.mxu1  ;;  %9101 = vmatmul.mubr.msk.bf16.vlgmr.msra.gmra.mxu0 %vm129_vm1, %v17217_v1  ;;  %9105 = vmatmul.mubr.msk.bf16.vlgmr.msra.gmra.mxu1 %vm129_vm1, %v17217_v1 }
 0x12c   :  { %v12562_v37 = vadd.f32 %v1043_v4, %v12462_v0  ;;  %v12565_v55 = vadd.f32 %v1106_v57, %v12465_v45  ;;  %2368 = vmatpush1.bf16.msra.mxu0 %v17218_v38  ;;  %2431 = vmatpush1.bf16.msra.mxu1 %v17219_v33  ;;  %v17220_v0 = vld [vmem:[#allocation9_spill] sm:$0xff]  ;;  %v17221_v45 = vld [vmem:[#allocation10_spill] sm:$0xff] }
 0x12d   :  { %v1045_v46 = vpop.f32.mrf.mxu0  ;;  %v1108_v17 = vpop.f32.mrf.mxu1  ;;  %2247 = vmatprep.mubr.bf16.mxu0 %v17213_v25  ;;  %2310 = vmatprep.mubr.bf16.mxu1 %v17213_v25 }
 0x12e   :  { %v12572_v18 = vadd.f32 %v1045_v46, %v12472_v58  ;;  %v12575_v31 = vadd.f32 %v1108_v17, %v12475_v61  ;;  %2369 = vmatprep.subr.bf16.mxu0 %v17220_v0  ;;  %2432 = vmatprep.subr.bf16.mxu1 %v17221_v45  ;;  %v17224_v61 = vld [vmem:[#allocation13_spill] sm:$0xff] }
 0x12f   :  { %v1047_v40 = vpop.f32.mrf.mxu0  ;;  %v1110_v34 = vpop.f32.mrf.mxu1 }
 0x130   :  { %v12580_v42 = vadd.f32 %v1047_v40, %v12480_v14  ;;  %v12583_v53 = vadd.f32 %v1110_v34, %v12483_v29  ;;  %2370 = vmatpush1.bf16.msra.mxu0 %v17222_v54  ;;  %2433 = vmatpush1.bf16.msra.mxu1 %v17223_v8 }
 0x131   :  { %v1049_v58 = vpop.f32.mrf.mxu0  ;;  %v1112_v59 = vpop.f32.mrf.mxu1  ;;  %9119 = vmatprep.subr.msk.bf16.mxu0 %vm139_vm0, %v17224_v61  ;;  %9123 = vmatprep.subr.msk.bf16.mxu1 %vm139_vm0, %v17225_v62 }
 0x132   :  { %v12592_v9 = vadd.f32 %v1049_v58, %v12492_v49  ;;  %v12595_v14 = vadd.f32 %v1112_v59, %v12495_v50 }
 0x133   :  { %v1053_v29 = vpop.f32.mrf.mxu0  ;;  %v1116_v30 = vpop.f32.mrf.mxu1  ;;  %9102 = vmatmul.mubr.msk.bf16.gmra.mxu0 %vm129_vm1, %v17226_v35  ;;  %9106 = vmatmul.mubr.msk.bf16.gmra.mxu1 %vm129_vm1, %v17226_v35 }
 0x134   :  { %v12602_v5 = vadd.f32 %v1053_v29, %v12502_v51  ;;  %v12605_v6 = vadd.f32 %v1116_v30, %v12505_v52  ;;  %2257 = vmatprep.mubr.bf16.mxu0 %v17213_v25  ;;  %2320 = vmatprep.mubr.bf16.mxu1 %v17213_v25 }
 0x135   :  { %v1055_v49 = vpop.f32.mrf.mxu0  ;;  %v1118_v50 = vpop.f32.mrf.mxu1 }
 0x136   :  { %v12610_v7 = vadd.f32 %v1055_v49, %v12510_v21  ;;  %v12613_v16 = vadd.f32 %v1118_v50, %v12513_v23  ;;  %v17231_v23 = vld [vmem:[#allocation24_spill] sm:$0xff]  ;;  %v17244_v49 = vld [vmem:[#allocation22_spill] sm:$0xff]  ;;  %v17245_v50 = vld [vmem:[#allocation23_spill] sm:$0xff] }
 0x137   :  { %v1057_v63 = vpop.f32.mrf.mxu0  ;;  %v1120_v41 = vpop.f32.mrf.mxu1 }
 0x138   :  { %v12616_v51 = vadd.f32 %v1057_v63, %v12516_v26  ;;  %v12619_v52 = vadd.f32 %v1120_v41, %v12519_v27 }
 0x139   :  { %v1059_v60 = vpop.f32.mrf.mxu0  ;;  %v1122_v4 = vpop.f32.mrf.mxu1 }
 0x13a   :  { %17227 = vst [vmem:[#allocation15_spill] sm:$0xff] %v12616_v51  ;;  %17228 = vst [vmem:[#allocation17_spill] sm:$0xff] %v12619_v52  ;;  %v12622_v57 = vadd.f32 %v1059_v60, %v12522_v15  ;;  %v12625_v46 = vadd.f32 %v1122_v4, %v12525_v44  ;;  %v11258_v60 = vld [vmem:[%s17125_s1 + $0x64] ss:$16 sps:$4 sm:$0x3f]  }
 0x13b   :  { %v1063_v21 = vpop.f32.mrf.mxu0  ;;  %v1126_v17 = vpop.f32.mrf.mxu1  ;;  %9103 = vmatmul.mubr.msk.bf16.gmra.mxu0 %vm129_vm1, %v17231_v23  ;;  %9107 = vmatmul.mubr.msk.bf16.gmra.mxu1 %vm129_vm1, %v17231_v23  ;;  %v11259_v4 = vld [vmem:[%s17125_s1 + $0x6c] ss:$16 sps:$4 sm:$0x3f]  }
 0x13c   :  { %17229 = vst [vmem:[#allocation4_spill] sm:$0xff] %v12622_v57  ;;  %17230 = vst [vmem:[#allocation7_spill] sm:$0xff] %v12625_v46  ;;  %v12632_v26 = vadd.f32 %v1063_v21, %v12532_v10  ;;  %v12635_v27 = vadd.f32 %v1126_v17, %v12535_v13  ;;  %2387 = vmatprep.mubr.bf16.mxu0 %v17213_v25  ;;  %2450 = vmatprep.mubr.bf16.mxu1 %v17213_v25 }
 0x13d   :  { %v1065_v15 = vpop.f32.mrf.mxu0  ;;  %v1128_v44 = vpop.f32.mrf.mxu1 }
 0x13e   :  { %17232 = vst [vmem:[#allocation8_spill] sm:$0xff] %v12632_v26  ;;  %17233 = vst [vmem:[#allocation9_spill] sm:$0xff] %v12635_v27  ;;  %v12640_v0 = vadd.f32 %v1065_v15, %v12540_v3  ;;  %v12643_v45 = vadd.f32 %v1128_v44, %v12543_v12  ;;  %v17240_v12 = vld [vmem:[#allocation18_spill] sm:$0xff]  ;;  %v17248_v27 = vld [vmem:[#allocation3_spill] sm:$0xff] }
 0x13f   :  { %v1067_v40 = vpop.f32.mrf.mxu0  ;;  %v1130_v34 = vpop.f32.mrf.mxu1 }
 0x140   :  { %17234 = vst [vmem:[#allocation10_spill] sm:$0xff] %v12640_v0  ;;  %17235 = vst [vmem:[#allocation11_spill] sm:$0xff] %v12643_v45  ;;  %v12646_v10 = vadd.f32 %v1067_v40, %v12546_v39  ;;  %v12649_v13 = vadd.f32 %v1130_v34, %v12549_v32  ;;  %v17241_v39 = vld [vmem:[#allocation19_spill] sm:$0xff]  ;;  %v17247_v0 = vld [vmem:[#allocation2_spill] sm:$0xff] }
 0x141   :  { %v1069_v54 = vpop.f32.mrf.mxu0  ;;  %v1132_v8 = vpop.f32.mrf.mxu1 }
 0x142   :  { %17236 = vst [vmem:[#allocation12_spill] sm:$0xff] %v12646_v10  ;;  %17237 = vst [vmem:[#allocation13_spill] sm:$0xff] %v12649_v13  ;;  %v12652_v58 = vadd.f32 %v1069_v54, %v12552_v24  ;;  %v12655_v59 = vadd.f32 %v1132_v8, %v12555_v2  ;;  %v17242_v24 = vld [vmem:[#allocation20_spill] sm:$0xff]  ;;  %v17243_v2 = vld [vmem:[#allocation21_spill] sm:$0xff] }
 0x143   :  { %v1193_v3 = vpop.f32.mrf.mxu0  ;;  %v1256_v61 = vpop.f32.mrf.mxu1  ;;  %9109 = vmatmul.mubr.msk.bf16.vlgmr.msra.gmra.mxu0 %vm129_vm1, %v11752_v20  ;;  %9113 = vmatmul.mubr.msk.bf16.vlgmr.msra.gmra.mxu1 %vm129_vm1, %v11752_v20  ;;  %v17246_v13 = vld [vmem:[#allocation6_spill] sm:$0xff] }
 0x144   :  { %17238 = vst [vmem:[#allocation14_spill] sm:$0xff] %v12652_v58  ;;  %17239 = vst [vmem:[#allocation5_spill] sm:$0xff] %v12655_v59  ;;  %2532 = vmatpush1.bf16.msra.mxu0 %v17240_v12  ;;  %2595 = vmatpush1.bf16.msra.mxu1 %v17241_v39 }
 0x145   :  { %v1195_v32 = vpop.f32.mrf.mxu0  ;;  %v1258_v62 = vpop.f32.mrf.mxu1  ;;  %2397 = vmatprep.mubr.bf16.mxu0 %v17213_v25  ;;  %2460 = vmatprep.mubr.bf16.mxu1 %v17213_v25 }
 0x146   :  { %2533 = vmatprep.subr.bf16.mxu0 %v17242_v24  ;;  %2596 = vmatprep.subr.bf16.mxu1 %v17243_v2 }
 0x147   :  { %v1197_v29 = vpop.f32.mrf.mxu0  ;;  %v1260_v30 = vpop.f32.mrf.mxu1 }
 0x148   :  { %2534 = vmatpush1.bf16.msra.mxu0 %v17244_v49  ;;  %2597 = vmatpush1.bf16.msra.mxu1 %v17245_v50 }
 0x149   :  { %v12669_v63 = vpop.f32.mrf.mxu0  ;;  %v12671_v41 = vpop.f32.mrf.mxu1  ;;  %9127 = vmatprep.subr.msk.bf16.mxu0 %vm139_vm0, %v11258_v60  ;;  %9131 = vmatprep.subr.msk.bf16.mxu1 %vm139_vm0, %v11259_v4 }
 0x14b   :  { %v12681_v21 = vpop.f32.mrf.mxu0  ;;  %v12683_v17 = vpop.f32.mrf.mxu1  ;;  %9110 = vmatmul.mubr.msk.bf16.gmra.mxu0 %vm129_vm1, %v11789_v28  ;;  %9114 = vmatmul.mubr.msk.bf16.gmra.mxu1 %vm129_vm1, %v11789_v28 }
 0x14c   :  { %2407 = vmatprep.mubr.bf16.mxu0 %v17213_v25  ;;  %2470 = vmatprep.mubr.bf16.mxu1 %v17213_v25 }
 0x14d   :  { %v12691_v15 = vpop.f32.mrf.mxu0  ;;  %v12693_v44 = vpop.f32.mrf.mxu1 }
 0x14f   :  { %v12695_v40 = vpop.f32.mrf.mxu0  ;;  %v12697_v34 = vpop.f32.mrf.mxu1 }
 0x151   :  { %v12699_v54 = vpop.f32.mrf.mxu0  ;;  %v12701_v8 = vpop.f32.mrf.mxu1 }
 0x153   :  { %v12703_v24 = vpop.f32.mrf.mxu0  ;;  %v12705_v2 = vpop.f32.mrf.mxu1  ;;  %9111 = vmatmul.mubr.msk.bf16.gmra.mxu0 %vm129_vm1, %v12317_v56  ;;  %9115 = vmatmul.mubr.msk.bf16.gmra.mxu1 %vm129_vm1, %v12317_v56 }
 0x154   :  { %2551 = vmatprep.mubr.bf16.mxu0 %v17213_v25  ;;  %2614 = vmatprep.mubr.bf16.mxu1 %v17213_v25 }
 0x155   :  { %v12713_v49 = vpop.f32.mrf.mxu0  ;;  %v12715_v50 = vpop.f32.mrf.mxu1 }
 0x157   :  { %v12717_v60 = vpop.f32.mrf.mxu0  ;;  %v12719_v4 = vpop.f32.mrf.mxu1 }
 0x159   :  { %v12721_v59 = vpop.f32.mrf.mxu0  ;;  %v12723_v39 = vpop.f32.mrf.mxu1 }
 0x15b   :  { %v1319_v12 = vpop.f32.mrf.mxu0  ;;  %v1382_v58 = vpop.f32.mrf.mxu1  ;;  %9120 = vmatmul.mubr.msk.bf16.vlgmr.msra.gmra.mxu0 %vm129_vm1, %v17246_v13  ;;  %9124 = vmatmul.mubr.msk.bf16.vlgmr.msra.gmra.mxu1 %vm129_vm1, %v17246_v13 }
 0x15c   :  { %v12729_v10 = vadd.f32 %v1319_v12, %v1193_v3  ;;  %v12731_v45 = vadd.f32 %v1382_v58, %v1256_v61  ;;  %2682 = vmatpush1.bf16.msra.mxu0 %v17247_v0  ;;  %2745 = vmatpush1.bf16.msra.mxu1 %v17248_v27  ;;  %v11260_v3 = vld [vmem:[%s17125_s1 + $0x44] ss:$16 sps:$4 sm:$0xff]   ;;  %v11261_v0 = vld [vmem:[%s17125_s1 + $0x4c] ss:$16 sps:$4 sm:$0xff]  }
 0x15d   :  { %v1321_v26 = vpop.f32.mrf.mxu0  ;;  %v1384_v46 = vpop.f32.mrf.mxu1  ;;  %2561 = vmatprep.mubr.bf16.mxu0 %v17213_v25  ;;  %2624 = vmatprep.mubr.bf16.mxu1 %v17213_v25  ;;  %v11262_v61 = vld [vmem:[%s17126_s0 + $0x44] sm:$0xf] }
 0x15e   :  { %v12737_v57 = vadd.f32 %v1321_v26, %v1195_v32  ;;  %v12739_v56 = vadd.f32 %v1384_v46, %v1258_v62  ;;  %2683 = vmatprep.subr.bf16.mxu0 %v11260_v3  ;;  %2746 = vmatprep.subr.bf16.mxu1 %v11261_v0  ;;  %v17249_v26 = vld [vmem:[#allocation16_spill] sm:$0xff]  ;;  %v11264_v3 = vld [vmem:[%s17125_s1 + $0x48] ss:$16 sps:$4 sm:$0xff]  }
 0x15f   :  { %v1323_v27 = vpop.f32.mrf.mxu0  ;;  %v1386_v58 = vpop.f32.mrf.mxu1  ;;  %v12751_v12 = vcombine.low %v11262_v61, %v17249_v26  ;;  %v11263_v62 = vld [vmem:[%s17125_s1 + $0x40] ss:$16 sps:$4 sm:$0xff]   ;;  %v11265_v61 = vld [vmem:[%s17125_s1 + $0x24] ss:$16 sps:$4 sm:$0x3f]  }
 0x160   :  { %v12753_v46 = vadd.f32 %v1323_v27, %v1197_v29  ;;  %v12755_v32 = vadd.f32 %v1386_v58, %v1260_v30  ;;  %2684 = vmatpush1.bf16.msra.mxu0 %v11263_v62  ;;  %2747 = vmatpush1.bf16.msra.mxu1 %v11264_v3  ;;  %v11266_v29 = vld [vmem:[%s17125_s1 + $0x2c] ss:$16 sps:$4 sm:$0x3f]  }
 0x161   :  { %17250 = vst [vmem:[#allocation24_spill] sm:$0xff] %v12751_v12  ;;  %v1325_v0 = vpop.f32.mrf.mxu0  ;;  %v1388_v13 = vpop.f32.mrf.mxu1  ;;  %9135 = vmatprep.subr.msk.bf16.mxu0 %vm139_vm0, %v11265_v61  ;;  %9139 = vmatprep.subr.msk.bf16.mxu1 %vm139_vm0, %v11266_v29 }
 0x162   :  { %v12772_v30 = vadd.f32 %v1325_v0, %v12669_v63  ;;  %v12775_v27 = vadd.f32 %v1388_v13, %v12671_v41  ;;  %v53_v13 = vld [vmem:[%s17126_s0 + $0x50] sm:$0xf] }
 0x163   :  { %v1329_v58 = vpop.f32.mrf.mxu0  ;;  %v1392_v26 = vpop.f32.mrf.mxu1  ;;  %9121 = vmatmul.mubr.msk.bf16.gmra.mxu0 %vm129_vm1, %v12751_v12  ;;  %9125 = vmatmul.mubr.msk.bf16.gmra.mxu1 %vm129_vm1, %v12751_v12 }
 0x164   :  { %v12782_v62 = vadd.f32 %v1329_v58, %v12681_v21  ;;  %v12785_v3 = vadd.f32 %v1392_v26, %v12683_v17  ;;  %2571 = vmatprep.mubr.bf16.mxu0 %v17213_v25  ;;  %2634 = vmatprep.mubr.bf16.mxu1 %v17213_v25  ;;  %v11267_v17 = vld [vmem:[%s17126_s0 + $0x4c] sm:$0xf] }
 0x165   :  { %v1331_v63 = vpop.f32.mrf.mxu0  ;;  %v1394_v41 = vpop.f32.mrf.mxu1  ;;  %v12801_v58 = vcombine.low %v11267_v17, %v53_v13 }
 0x166   :  { %v12793_v0 = vadd.f32 %v1331_v63, %v12691_v15  ;;  %v12796_v61 = vadd.f32 %v1394_v41, %v12693_v44 }
 0x167   :  { %v1333_v21 = vpop.f32.mrf.mxu0  ;;  %v1396_v29 = vpop.f32.mrf.mxu1 }
 0x168   :  { %v12804_v26 = vadd.f32 %v1333_v21, %v12695_v40  ;;  %v12807_v12 = vadd.f32 %v1396_v29, %v12697_v34 }
 0x169   :  { %v1335_v52 = vpop.f32.mrf.mxu0  ;;  %v1398_v15 = vpop.f32.mrf.mxu1 }
 0x16a   :  { %v12810_v63 = vadd.f32 %v1335_v52, %v12699_v54  ;;  %v12813_v44 = vadd.f32 %v1398_v15, %v12701_v8 }
 0x16b   :  { %v1339_v41 = vpop.f32.mrf.mxu0  ;;  %v1402_v51 = vpop.f32.mrf.mxu1  ;;  %9122 = vmatmul.mubr.msk.bf16.gmra.mxu0 %vm129_vm1, %v12801_v58  ;;  %9126 = vmatmul.mubr.msk.bf16.gmra.mxu1 %vm129_vm1, %v12801_v58 }
 0x16c   :  { %v12820_v40 = vadd.f32 %v1339_v41, %v12703_v24  ;;  %v12823_v34 = vadd.f32 %v1402_v51, %v12705_v2  ;;  %2701 = vmatprep.mubr.bf16.mxu0 %v17213_v25  ;;  %2764 = vmatprep.mubr.bf16.mxu1 %v17213_v25 }
 0x16d   :  { %v1341_v52 = vpop.f32.mrf.mxu0  ;;  %v1404_v54 = vpop.f32.mrf.mxu1 }
 0x16e   :  { %v12828_v8 = vadd.f32 %v1341_v52, %v12713_v49  ;;  %v12831_v13 = vadd.f32 %v1404_v54, %v12715_v50 }
 0x16f   :  { %v1343_v21 = vpop.f32.mrf.mxu0  ;;  %v1406_v29 = vpop.f32.mrf.mxu1 }
 0x170   :  { %v12834_v24 = vadd.f32 %v1343_v21, %v12717_v60  ;;  %v12837_v51 = vadd.f32 %v1406_v29, %v12719_v4  ;;  %v11271_v21 = vld [vmem:[%s17125_s1 + $0x8] ss:$16 sps:$4 sm:$0xff]  }
 0x171   :  { %v1345_v2 = vpop.f32.mrf.mxu0  ;;  %v1408_v17 = vpop.f32.mrf.mxu1 }
 0x172   :  { %v12840_v15 = vadd.f32 %v1345_v2, %v12721_v59  ;;  %v12843_v41 = vadd.f32 %v1408_v17, %v12723_v39 }
 0x173   :  { %v1445_v49 = vpop.f32.mrf.mxu0  ;;  %v1508_v52 = vpop.f32.mrf.mxu1  ;;  %9128 = vmatmul.mubr.msk.bf16.vlgmr.msra.gmra.mxu0 %vm129_vm1, %v17217_v1  ;;  %9132 = vmatmul.mubr.msk.bf16.vlgmr.msra.gmra.mxu1 %vm129_vm1, %v17217_v1 }
 0x174   :  { %v12850_v50 = vadd.f32 %v1445_v49, %v12729_v10  ;;  %v12853_v60 = vadd.f32 %v1508_v52, %v12731_v45  ;;  %2808 = vmatpush1.bf16.msra.mxu0 %v11750_v19  ;;  %2871 = vmatpush1.bf16.msra.mxu1 %v11760_v22  ;;  %v11268_v45 = vld [vmem:[%s17125_s1 + $0x4] ss:$16 sps:$4 sm:$0xff]   ;;  %v11269_v19 = vld [vmem:[%s17125_s1 + $0xc] ss:$16 sps:$4 sm:$0xff]  }
 0x175   :  { %v1447_v59 = vpop.f32.mrf.mxu0  ;;  %v1510_v39 = vpop.f32.mrf.mxu1  ;;  %2711 = vmatprep.mubr.bf16.mxu0 %v17213_v25  ;;  %2774 = vmatprep.mubr.bf16.mxu1 %v17213_v25 }
 0x176   :  { %v12860_v4 = vadd.f32 %v1447_v59, %v12737_v57  ;;  %v12863_v1 = vadd.f32 %v1510_v39, %v12739_v56  ;;  %2809 = vmatprep.subr.bf16.mxu0 %v11268_v45  ;;  %2872 = vmatprep.subr.bf16.mxu1 %v11269_v19  ;;  %v11270_v56 = vld [vmem:[%s17125_s1] ss:$16 sps:$4 sm:$0xff]  }
 0x177   :  { %v1449_v22 = vpop.f32.mrf.mxu0  ;;  %v1512_v10 = vpop.f32.mrf.mxu1 }
 0x178   :  { %v12872_v54 = vadd.f32 %v1449_v22, %v12753_v46  ;;  %v12875_v57 = vadd.f32 %v1512_v10, %v12755_v32  ;;  %2810 = vmatpush1.bf16.msra.mxu0 %v11270_v56  ;;  %2873 = vmatpush1.bf16.msra.mxu1 %v11271_v21  ;;  %v11272_v46 = vld [vmem:[%s17125_s1 + $0xa4] ss:$16 sps:$4 sm:$0x3f]   ;;  %v11273_v32 = vld [vmem:[%s17125_s1 + $0xac] ss:$16 sps:$4 sm:$0x3f]  }
 0x179   :  { %v1451_v29 = vpop.f32.mrf.mxu0  ;;  %v1514_v2 = vpop.f32.mrf.mxu1  ;;  %9143 = vmatprep.subr.msk.bf16.mxu0 %vm139_vm0, %v11272_v46  ;;  %9147 = vmatprep.subr.msk.bf16.mxu1 %vm139_vm0, %v11273_v32 }
 0x17a   :  { %v12892_v17 = vadd.f32 %v1451_v29, %v12772_v30  ;;  %v12895_v49 = vadd.f32 %v1514_v2, %v12775_v27 }
 0x17b   :  { %v1455_v52 = vpop.f32.mrf.mxu0  ;;  %v1518_v59 = vpop.f32.mrf.mxu1  ;;  %9129 = vmatmul.mubr.msk.bf16.gmra.mxu0 %vm129_vm1, %v17226_v35  ;;  %9133 = vmatmul.mubr.msk.bf16.gmra.mxu1 %vm129_vm1, %v17226_v35 }
 0x17c   :  { %v12902_v39 = vadd.f32 %v1455_v52, %v12782_v62  ;;  %v12905_v45 = vadd.f32 %v1518_v59, %v12785_v3  ;;  %2721 = vmatprep.mubr.bf16.mxu0 %v17213_v25  ;;  %2784 = vmatprep.mubr.bf16.mxu1 %v17213_v25 }
 0x17d   :  { %v1457_v30 = vpop.f32.mrf.mxu0  ;;  %v1520_v27 = vpop.f32.mrf.mxu1 }
 0x17e   :  { %v12910_v19 = vadd.f32 %v1457_v30, %v12793_v0  ;;  %v12913_v22 = vadd.f32 %v1520_v27, %v12796_v61 }
 0x17f   :  { %v1459_v10 = vpop.f32.mrf.mxu0  ;;  %v1522_v35 = vpop.f32.mrf.mxu1 }
 0x180   :  { %v12916_v62 = vadd.f32 %v1459_v10, %v12804_v26  ;;  %v12919_v3 = vadd.f32 %v1522_v35, %v12807_v12 }
 0x181   :  { %v1461_v56 = vpop.f32.mrf.mxu0  ;;  %v1524_v21 = vpop.f32.mrf.mxu1 }
 0x182   :  { %v12922_v29 = vadd.f32 %v1461_v56, %v12810_v63  ;;  %v12925_v2 = vadd.f32 %v1524_v21, %v12813_v44  ;;  %v11277_v21 = vld [vmem:[%s17125_s1 + $0x88] ss:$16 sps:$4 sm:$0xff]  }
 0x183   :  { %v1465_v0 = vpop.f32.mrf.mxu0  ;;  %v1528_v46 = vpop.f32.mrf.mxu1  ;;  %9130 = vmatmul.mubr.msk.bf16.gmra.mxu0 %vm129_vm1, %v17231_v23  ;;  %9134 = vmatmul.mubr.msk.bf16.gmra.mxu1 %vm129_vm1, %v17231_v23 }
 0x184   :  { %v12932_v61 = vadd.f32 %v1465_v0, %v12820_v40  ;;  %v12935_v12 = vadd.f32 %v1528_v46, %v12823_v34  ;;  %2827 = vmatprep.mubr.bf16.mxu0 %v17213_v25  ;;  %2890 = vmatprep.mubr.bf16.mxu1 %v17213_v25 }
 0x185   :  { %v1467_v26 = vpop.f32.mrf.mxu0  ;;  %v1530_v63 = vpop.f32.mrf.mxu1 }
 0x186   :  { %v12940_v44 = vadd.f32 %v1467_v26, %v12828_v8  ;;  %v12943_v32 = vadd.f32 %v1530_v63, %v12831_v13 }
 0x187   :  { %v1469_v52 = vpop.f32.mrf.mxu0  ;;  %v1532_v23 = vpop.f32.mrf.mxu1 }
 0x188   :  { %v12946_v40 = vadd.f32 %v1469_v52, %v12834_v24  ;;  %v12949_v34 = vadd.f32 %v1532_v23, %v12837_v51 }
 0x189   :  { %v1471_v59 = vpop.f32.mrf.mxu0  ;;  %v1534_v30 = vpop.f32.mrf.mxu1 }
 0x18a   :  { %v12952_v27 = vadd.f32 %v1471_v59, %v12840_v15  ;;  %v12955_v10 = vadd.f32 %v1534_v30, %v12843_v41 }
 0x18b   :  { %v1595_v8 = vpop.f32.mrf.mxu0  ;;  %v1658_v35 = vpop.f32.mrf.mxu1  ;;  %9136 = vmatmul.mubr.msk.bf16.vlgmr.msra.gmra.mxu0 %vm129_vm1, %v12033_v43  ;;  %9140 = vmatmul.mubr.msk.bf16.vlgmr.msra.gmra.mxu1 %vm129_vm1, %v12033_v43 }
 0x18c   :  { %v12962_v13 = vadd.f32 %v1595_v8, %v12850_v50  ;;  %v12965_v24 = vadd.f32 %v1658_v35, %v12853_v60  ;;  %2934 = vmatpush1.bf16.msra.mxu0 %v11867_v47  ;;  %2997 = vmatpush1.bf16.msra.mxu1 %v11870_v48  ;;  %v11274_v50 = vld [vmem:[%s17125_s1 + $0x84] ss:$16 sps:$4 sm:$0xff]   ;;  %v11275_v47 = vld [vmem:[%s17125_s1 + $0x8c] ss:$16 sps:$4 sm:$0xff]  }
 0x18d   :  { %v1597_v51 = vpop.f32.mrf.mxu0  ;;  %v1660_v15 = vpop.f32.mrf.mxu1  ;;  %2837 = vmatprep.mubr.bf16.mxu0 %v17213_v25  ;;  %2900 = vmatprep.mubr.bf16.mxu1 %v17213_v25 }
 0x18e   :  { %v12972_v41 = vadd.f32 %v1597_v51, %v12860_v4  ;;  %v12975_v43 = vadd.f32 %v1660_v15, %v12863_v1  ;;  %2935 = vmatprep.subr.bf16.mxu0 %v11274_v50  ;;  %2998 = vmatprep.subr.bf16.mxu1 %v11275_v47  ;;  %v11276_v1 = vld [vmem:[%s17125_s1 + $0x80] ss:$16 sps:$4 sm:$0xff]  }
 0x18f   :  { %v1599_v48 = vpop.f32.mrf.mxu0  ;;  %v1662_v60 = vpop.f32.mrf.mxu1 }
 0x190   :  { %v12984_v56 = vadd.f32 %v1599_v48, %v12872_v54  ;;  %v12987_v4 = vadd.f32 %v1662_v60, %v12875_v57  ;;  %2936 = vmatpush1.bf16.msra.mxu0 %v11276_v1  ;;  %2999 = vmatpush1.bf16.msra.mxu1 %v11277_v21  ;;  %v11278_v54 = vld [vmem:[%s17125_s1 + $0xe4] ss:$16 sps:$4 sm:$0x3f]   ;;  %v11279_v57 = vld [vmem:[%s17125_s1 + $0xec] ss:$16 sps:$4 sm:$0x3f]  }
 0x191   :  { %v1601_v0 = vpop.f32.mrf.mxu0  ;;  %v1664_v46 = vpop.f32.mrf.mxu1  ;;  %9151 = vmatprep.subr.msk.bf16.mxu0 %vm139_vm0, %v11278_v54  ;;  %9155 = vmatprep.subr.msk.bf16.mxu1 %vm139_vm0, %v11279_v57 }
 0x192   :  { %v13004_v26 = vadd.f32 %v1601_v0, %v12892_v17  ;;  %v13007_v63 = vadd.f32 %v1664_v46, %v12895_v49 }
 0x193   :  { %v1605_v52 = vpop.f32.mrf.mxu0  ;;  %v1668_v23 = vpop.f32.mrf.mxu1  ;;  %9137 = vmatmul.mubr.msk.bf16.gmra.mxu0 %vm129_vm1, %v12077_v11  ;;  %9141 = vmatmul.mubr.msk.bf16.gmra.mxu1 %vm129_vm1, %v12077_v11 }
 0x194   :  { %v13014_v59 = vadd.f32 %v1605_v52, %v12902_v39  ;;  %v13017_v30 = vadd.f32 %v1668_v23, %v12905_v45  ;;  %2847 = vmatprep.mubr.bf16.mxu0 %v17213_v25  ;;  %2910 = vmatprep.mubr.bf16.mxu1 %v17213_v25 }
 0x195   :  { %v1607_v17 = vpop.f32.mrf.mxu0  ;;  %v1670_v49 = vpop.f32.mrf.mxu1 }
 0x196   :  { %v13022_v8 = vadd.f32 %v1607_v17, %v12910_v19  ;;  %v13025_v35 = vadd.f32 %v1670_v49, %v12913_v22 }
 0x197   :  { %v1609_v51 = vpop.f32.mrf.mxu0  ;;  %v1672_v11 = vpop.f32.mrf.mxu1 }
 0x198   :  { %v13028_v39 = vadd.f32 %v1609_v51, %v12916_v62  ;;  %v13031_v45 = vadd.f32 %v1672_v11, %v12919_v3  ;;  %v11280_v51 = vld [vmem:[%s17125_s1 + $0xc4] ss:$16 sps:$4 sm:$0xff]  }
 0x199   :  { %v1611_v15 = vpop.f32.mrf.mxu0  ;;  %v1674_v50 = vpop.f32.mrf.mxu1 }
 0x19a   :  { %v13034_v47 = vadd.f32 %v1611_v15, %v12922_v29  ;;  %v13037_v48 = vadd.f32 %v1674_v50, %v12925_v2  ;;  %v1913_v2 = vlaneseq }
 0x19b   :  { %v1615_v19 = vpop.f32.mrf.mxu0  ;;  %v1678_v60 = vpop.f32.mrf.mxu1  ;;  %9138 = vmatmul.mubr.msk.bf16.gmra.mxu0 %vm129_vm1, %v12097_v36  ;;  %9142 = vmatmul.mubr.msk.bf16.gmra.mxu1 %vm129_vm1, %v12097_v36 }
 0x19c   :  { %v13044_v22 = vadd.f32 %v1615_v19, %v12932_v61  ;;  %v13047_v62 = vadd.f32 %v1678_v60, %v12935_v12  ;;  %2953 = vmatprep.mubr.bf16.mxu0 %v17213_v25  ;;  %3016 = vmatprep.mubr.bf16.mxu1 %v17213_v25  ;;  %v13063_v57 = vshrl.u32 %v1913_v2, 7 }
 0x19d   :  { %v1617_v3 = vpop.f32.mrf.mxu0  ;;  %v1680_v29 = vpop.f32.mrf.mxu1 }
 0x19e   :  { %v13052_v1 = vadd.f32 %v1617_v3, %v12940_v44  ;;  %v13055_v21 = vadd.f32 %v1680_v29, %v12943_v32  ;;  %17251 = vst [vmem:[#allocation20_spill] sm:$0xff] %v13063_v57  ;;  %v13085_v49 = vsub.s32 1, %v13063_v57 }
 0x19f   :  { %v1619_v36 = vpop.f32.mrf.mxu0  ;;  %v1682_v0 = vpop.f32.mrf.mxu1 }
 0x1a0   :  { %v13058_v61 = vadd.f32 %v1619_v36, %v12946_v40  ;;  %v13061_v12 = vadd.f32 %v1682_v0, %v12949_v34  ;;  %17253 = vst [vmem:[#allocation22_spill] sm:$0xff] %v13085_v49 }
 0x1a1   :  { %v1621_v46 = vpop.f32.mrf.mxu0  ;;  %v1684_v54 = vpop.f32.mrf.mxu1 }
 0x1a2   :  { %v13066_v52 = vadd.f32 %v1621_v46, %v12952_v27  ;;  %v13069_v44 = vadd.f32 %v1684_v54, %v12955_v10  ;;  %v13080_v27 = vsub.s32 0, %v13063_v57  ;;  %v11285_v46 = vld [vmem:[%s17125_s1 + $0x12c] ss:$16 sps:$4 sm:$0x3f]  }
 0x1a3   :  { %v1759_v32 = vpop.f32.mrf.mxu0  ;;  %v1822_v23 = vpop.f32.mrf.mxu1  ;;  %9144 = vmatmul.mubr.msk.bf16.vlgmr.msra.gmra.mxu0 %vm129_vm1, %v11752_v20  ;;  %9148 = vmatmul.mubr.msk.bf16.vlgmr.msra.gmra.mxu1 %vm129_vm1, %v11752_v20  ;;  %v10447_v57 = vld [vmem:[%s17128_s3 + $0x32c] ss:$16 sps:$4 sm:$0xff]  }
 0x1a4   :  { %v1851_v40 = vadd.f32 %v1759_v32, %v12962_v13  ;;  %v1853_v34 = vadd.f32 %v1822_v23, %v12965_v24  ;;  %3084 = vmatpush1.bf16.msra.mxu0 %v17218_v38  ;;  %3147 = vmatpush1.bf16.msra.mxu1 %v17219_v33  ;;  %17252 = vst [vmem:[#allocation21_spill] sm:$0xff] %v13080_v27  ;;  %v1911_v38 = vld [vmem:[%s17127_s2] sm:$0x3] }
 0x1a5   :  { %v1761_v10 = vpop.f32.mrf.mxu0  ;;  %v1824_v17 = vpop.f32.mrf.mxu1  ;;  %2963 = vmatprep.mubr.bf16.mxu0 %v17213_v25  ;;  %3026 = vmatprep.mubr.bf16.mxu1 %v17213_v25  ;;  %v13107_v60 = vrot.slane %v1911_v38, %v13080_v27  ;;  %v13111_v36 = vrot.slane %v1911_v38, %v13085_v49  ;;  %v10456_v49 = vld [vmem:[%s17128_s3 + $0xe4] ss:$16 sps:$4 sm:$0xff]   ;;  %v10459_v27 = vld [vmem:[%s17128_s3 + $0xec] ss:$16 sps:$4 sm:$0xff]  }
 0x1a6   :  { %v1875_v20 = vmax.f32 %v12562_v37, %v1851_v40  ;;  %v1877_v13 = vmax.f32 %v12565_v55, %v1853_v34  ;;  %v1852_v33 = vadd.f32 %v1761_v10, %v12972_v41  ;;  %v1854_v24 = vadd.f32 %v1824_v17, %v12975_v43  ;;  %3085 = vmatprep.subr.bf16.mxu0 %v11280_v51  ;;  %v11281_v37 = vld [vmem:[%s17125_s1 + $0xcc] ss:$16 sps:$4 sm:$0xff]   ;;  %v11282_v43 = vld [vmem:[%s17125_s1 + $0xc0] ss:$16 sps:$4 sm:$0xff]  }
 0x1a7   :  { %v1763_v11 = vpop.f32.mrf.mxu0  ;;  %v1826_v15 = vpop.f32.mrf.mxu1  ;;  %3148 = vmatprep.subr.bf16.mxu1 %v11281_v37  ;;  %17254 = vst [vmem:[#allocation23_spill] sm:$0xff] %v13107_v60  ;;  %17255 = vst [vmem:[#allocation2_spill] sm:$0xff] %v13111_v36 }
 0x1a8   :  { %v1899_v55 = vmax.f32 %v1875_v20, %v1877_v13  ;;  %v1876_v50 = vmax.f32 %v12572_v18, %v1852_v33  ;;  %v1878_v19 = vmax.f32 %v12575_v31, %v1854_v24  ;;  %v1855_v41 = vadd.f32 %v1763_v11, %v12984_v56  ;;  %3086 = vmatpush1.bf16.msra.mxu0 %v11282_v43  ;;  %v11283_v18 = vld [vmem:[%s17125_s1 + $0xc8] ss:$16 sps:$4 sm:$0xff]   ;;  %v11284_v31 = vld [vmem:[%s17125_s1 + $0x124] ss:$16 sps:$4 sm:$0x3f]  }
 0x1a9   :  { %v1857_v3 = vadd.f32 %v1826_v15, %v12987_v4  ;;  %v1765_v29 = vpop.f32.mrf.mxu0  ;;  %v1828_v2 = vpop.f32.mrf.mxu1  ;;  %3149 = vmatpush1.bf16.msra.mxu1 %v11283_v18  ;;  %9162 = vmatprep.subr.msk.bf16.mxu0 %vm139_vm0, %v11284_v31 }
 0x1aa   :  { %v1900_v56 = vmax.f32 %v1876_v50, %v1878_v19  ;;  %v1879_v0 = vmax.f32 %v12580_v42, %v1855_v41  ;;  %v1856_v4 = vadd.f32 %v1765_v29, %v13004_v26  ;;  %9166 = vmatprep.subr.msk.bf16.mxu1 %vm139_vm0, %v11285_v46  ;;  %v1858_v32 = vadd.f32 %v1828_v2, %v13007_v63  ;;  %v17256_v41 = vld [vmem:[#allocation15_spill] sm:$0xff] }
 0x1ab   :  { %v1881_v54 = vmax.f32 %v12583_v53, %v1857_v3  ;;  %v1769_v23 = vpop.f32.mrf.mxu0  ;;  %v1832_v40 = vpop.f32.mrf.mxu1  ;;  %9145 = vmatmul.mubr.msk.bf16.gmra.mxu0 %vm129_vm1, %v11789_v28  ;;  %9149 = vmatmul.mubr.msk.bf16.gmra.mxu1 %vm129_vm1, %v11789_v28  ;;  %v1923_v53 = vadd.f32 %v13107_v60, %v1899_v55 }
 0x1ac   :  { %v1880_v42 = vmax.f32 %v12592_v9, %v1856_v4  ;;  %v1859_v26 = vadd.f32 %v1769_v23, %v13014_v59  ;;  %v1861_v34 = vadd.f32 %v1832_v40, %v13017_v30  ;;  %2973 = vmatprep.mubr.bf16.mxu0 %v17213_v25  ;;  %3036 = vmatprep.mubr.bf16.mxu1 %v17213_v25  ;;  %v17260_v4 = vld [vmem:[#allocation4_spill] sm:$0xff] }
 0x1ad   :  { %v1901_v63 = vmax.f32 %v1879_v0, %v1881_v54  ;;  %v1882_v10 = vmax.f32 %v12595_v14, %v1858_v32  ;;  %v1771_v17 = vpop.f32.mrf.mxu0  ;;  %v1834_v20 = vpop.f32.mrf.mxu1  ;;  %v1924_v13 = vadd.f32 %v13111_v36, %v1900_v56  ;;  %v1935_v55 = vmax.f32 %v1923_v53, 0.0  ;;  %v17259_v56 = vld [vmem:[#allocation25_spill] sm:$0xff]  ;;  %v17261_v54 = vld [vmem:[#allocation7_spill] sm:$0xff] }
 0x1ae   :  { %v1883_v28 = vmax.f32 %v12602_v5, %v1859_v26  ;;  %v1885_v9 = vmax.f32 %v12605_v6, %v1861_v34  ;;  %v1860_v59 = vadd.f32 %v1771_v17, %v13022_v8  ;;  %v1862_v30 = vadd.f32 %v1834_v20, %v13025_v35  ;;  %v17263_v34 = vld [vmem:[#allocation8_spill] sm:$0xff] }
 0x1af   :  { %v1925_v38 = vadd.f32 %v13107_v60, %v1901_v63  ;;  %v1902_v33 = vmax.f32 %v1880_v42, %v1882_v10  ;;  %v1773_v24 = vpop.f32.mrf.mxu0  ;;  %v1836_v51 = vpop.f32.mrf.mxu1  ;;  %v1936_v29 = vmax.f32 %v1924_v13, 0.0  ;;  %v17264_v13 = vld [vmem:[#allocation9_spill] sm:$0xff] }
 0x1b0   :  { %v1903_v11 = vmax.f32 %v1883_v28, %v1885_v9  ;;  %v1884_v14 = vmax.f32 %v12610_v7, %v1860_v59  ;;  %v1886_v15 = vmax.f32 %v12613_v16, %v1862_v30  ;;  %v1863_v37 = vadd.f32 %v1773_v24, %v13028_v39  ;;  %v17258_v7 = vld [vmem:[#allocation17_spill] sm:$0xff] }
 0x1b1   :  { %v1937_v5 = vmax.f32 %v1925_v38, 0.0  ;;  %v1865_v6 = vadd.f32 %v1836_v51, %v13031_v45  ;;  %v1775_v50 = vpop.f32.mrf.mxu0  ;;  %v1838_v8 = vpop.f32.mrf.mxu1  ;;  %v1926_v35 = vadd.f32 %v13111_v36, %v1902_v33  ;;  %v17266_v38 = vld [vmem:[#allocation11_spill] sm:$0xff] }
 0x1b2   :  { %v1904_v19 = vmax.f32 %v1884_v14, %v1886_v15  ;;  %v1887_v43 = vmax.f32 %v17256_v41, %v1863_v37  ;;  %v1864_v3 = vadd.f32 %v1775_v50, %v13034_v47  ;;  %v1866_v39 = vadd.f32 %v1838_v8, %v13037_v48  ;;  %v17268_v50 = vld [vmem:[#allocation13_spill] sm:$0xff] }
 0x1b3   :  { %v13152_v2 = vpack.c.bf16 %v1937_v5, %v1935_v55  ;;  %v1889_v16 = vmax.f32 %v17258_v7, %v1865_v6  ;;  %v1779_v18 = vpop.f32.mrf.mxu0  ;;  %v1842_v31 = vpop.f32.mrf.mxu1  ;;  %9146 = vmatmul.mubr.msk.bf16.gmra.mxu0 %vm129_vm1, %v17259_v56  ;;  %9150 = vmatmul.mubr.msk.bf16.gmra.mxu1 %vm129_vm1, %v17259_v56  ;;  %v1938_v45 = vmax.f32 %v1926_v35, 0.0  ;;  %v1927_v0 = vadd.f32 %v13107_v60, %v1903_v11  ;;  %v17267_v5 = vld [vmem:[#allocation12_spill] sm:$0xff]  ;;  %v17275_v56 = vld [vmem:[#allocation5_spill] sm:$0xff] }
 0x1b4   :  { %v1888_v47 = vmax.f32 %v17260_v4, %v1864_v3  ;;  %v1867_v46 = vadd.f32 %v1779_v18, %v13044_v22  ;;  %3103 = vmatprep.mubr.bf16.mxu0 %v17213_v25  ;;  %3166 = vmatprep.mubr.bf16.mxu1 %v17213_v25  ;;  %v1890_v32 = vmax.f32 %v17261_v54, %v1866_v39  ;;  %v17272_v18 = vld [vmem:[#allocation18_spill] sm:$0xff] }
 0x1b5   :  { %17257 = vst [vmem:[#allocation3_spill] sm:$0xff] %v13152_v2  ;;  %v1905_v48 = vmax.f32 %v1887_v43, %v1889_v16  ;;  %v1869_v23 = vadd.f32 %v1842_v31, %v13047_v62  ;;  %v1781_v40 = vpop.f32.mrf.mxu0  ;;  %v1844_v42 = vpop.f32.mrf.mxu1  ;;  %v13167_v26 = vpack.c.bf16 %v1938_v45, %v1936_v29  ;;  %v1928_v22 = vadd.f32 %v13111_v36, %v1904_v19  ;;  %v17265_v62 = vld [vmem:[#allocation10_spill] sm:$0xff]  ;;  %v17273_v31 = vld [vmem:[#allocation19_spill] sm:$0xff] }
 0x1b6   :  { %v1891_v53 = vmax.f32 %v17263_v34, %v1867_v46  ;;  %v1868_v63 = vadd.f32 %v1781_v40, %v13052_v1  ;;  %v1870_v10 = vadd.f32 %v1844_v42, %v13055_v21  ;;  %v1906_v20 = vmax.f32 %v1888_v47, %v1890_v32  ;;  %v17270_v29 = vld [vmem:[#allocation6_spill] sm:$0xff] }
 0x1b7   :  { %17262 = vst [vmem:[#allocation16_spill] sm:$0xff] %v13167_v26  ;;  %v1929_v17 = vadd.f32 %v13107_v60, %v1905_v48  ;;  %v1893_v28 = vmax.f32 %v17264_v13, %v1869_v23  ;;  %v1783_v9 = vpop.f32.mrf.mxu0  ;;  %v1846_v59 = vpop.f32.mrf.mxu1  ;;  %v1939_v1 = vmax.f32 %v1927_v0, 0.0  ;;  %v1940_v19 = vmax.f32 %v1928_v22, 0.0  ;;  %v11286_v46 = vld [vmem:[%s17125_s1 + $0x104] ss:$16 sps:$4 sm:$0xff]  }
 0x1b8   :  { %v1892_v30 = vmax.f32 %v17265_v62, %v1868_v63  ;;  %v1894_v33 = vmax.f32 %v17266_v38, %v1870_v10  ;;  %v1871_v24 = vadd.f32 %v1783_v9, %v13058_v61  ;;  %v1873_v51 = vadd.f32 %v1846_v59, %v13061_v12  ;;  %v11287_v48 = vld [vmem:[%s17125_s1 + $0x10c] ss:$16 sps:$4 sm:$0xff]   ;;  %v11289_v63 = vld [vmem:[%s17125_s1 + $0x108] ss:$16 sps:$4 sm:$0xff]   ;;  %v17277_v62 = vld [vmem:[#allocation24_spill] sm:$0xff] }
 0x1b9   :  { %v1941_v11 = vmax.f32 %v1929_v17, 0.0  ;;  %v1930_v21 = vadd.f32 %v13111_v36, %v1906_v20  ;;  %v1907_v14 = vmax.f32 %v1891_v53, %v1893_v28  ;;  %v1785_v15 = vpop.f32.mrf.mxu0  ;;  %v1848_v37 = vpop.f32.mrf.mxu1  ;;  %v11288_v53 = vld [vmem:[%s17125_s1 + $0x100] ss:$16 sps:$4 sm:$0xff]  }
 0x1ba   :  { %v1908_v55 = vmax.f32 %v1892_v30, %v1894_v33  ;;  %v1895_v6 = vmax.f32 %v17267_v5, %v1871_v24  ;;  %v1897_v8 = vmax.f32 %v17268_v50, %v1873_v51  ;;  %v1872_v35 = vadd.f32 %v1785_v15, %v13066_v52  ;;  %v17271_v52 = vld [vmem:[#allocation14_spill] sm:$0xff]  ;;  %v11291_v50 = vld [vmem:[%s17126_s0 + $0x5c] sm:$0xf] }
 0x1bb   :  { %v13183_v41 = vpack.c.bf16 %v1941_v11, %v1939_v1  ;;  %v1942_v61 = vmax.f32 %v1930_v21, 0.0  ;;  %v1874_v12 = vadd.f32 %v1848_v37, %v13069_v44  ;;  %v13186_v43 = vpop.f32.mrf.mxu0  ;;  %v13188_v3 = vpop.f32.mrf.mxu1  ;;  %9152 = vmatmul.mubr.msk.bf16.vlgmr.msra.gmra.mxu0 %vm129_vm1, %v17270_v29  ;;  %9156 = vmatmul.mubr.msk.bf16.vlgmr.msra.gmra.mxu1 %vm129_vm1, %v17270_v29  ;;  %v1931_v7 = vadd.f32 %v13107_v60, %v1907_v14 }
 0x1bc   :  { %v1909_v16 = vmax.f32 %v1895_v6, %v1897_v8  ;;  %v1896_v39 = vmax.f32 %v17271_v52, %v1872_v35  ;;  %3248 = vmatpush1.bf16.msra.mxu0 %v17272_v18  ;;  %3311 = vmatpush1.bf16.msra.mxu1 %v17273_v31  ;;  %v1932_v54 = vadd.f32 %v13111_v36, %v1908_v55  ;;  %v11290_v6 = vld [vmem:[%s17126_s0 + $0x58] sm:$0xf] }
 0x1bd   :  { %17269 = vst [vmem:[#allocation15_spill] sm:$0xff] %v13183_v41  ;;  %v13198_v44 = vpack.c.bf16 %v1942_v61, %v1940_v19  ;;  %v1898_v45 = vmax.f32 %v17275_v56, %v1874_v12  ;;  %v13201_v0 = vpop.f32.mrf.mxu0  ;;  %v13203_v4 = vpop.f32.mrf.mxu1  ;;  %3113 = vmatprep.mubr.bf16.mxu0 %v17213_v25  ;;  %3176 = vmatprep.mubr.bf16.mxu1 %v17213_v25  ;;  %v1943_v42 = vmax.f32 %v1931_v7, 0.0 }
 0x1be   :  { %v1933_v47 = vadd.f32 %v13107_v60, %v1909_v16  ;;  %3249 = vmatprep.subr.bf16.mxu0 %v11286_v46  ;;  %3312 = vmatprep.subr.bf16.mxu1 %v11287_v48  ;;  %v1944_v13 = vmax.f32 %v1932_v54, 0.0  ;;  %v9159_v8 = vcombine.low %v11290_v6, %v11291_v50 }
 0x1bf   :  { %17274 = vst [vmem:[#allocation17_spill] sm:$0xff] %v13198_v44  ;;  %v1910_v32 = vmax.f32 %v1896_v39, %v1898_v45  ;;  %v1991_v23 = vpop.f32.mrf.mxu0  ;;  %v2054_v40 = vpop.f32.mrf.mxu1 }
 0x1c0   :  { %v1945_v34 = vmax.f32 %v1933_v47, 0.0  ;;  %3250 = vmatpush1.bf16.msra.mxu0 %v11288_v53  ;;  %3313 = vmatpush1.bf16.msra.mxu1 %v11289_v63 }
 0x1c1   :  { %v1934_v10 = vadd.f32 %v13111_v36, %v1910_v32  ;;  %v13222_v22 = vpop.f32.mrf.mxu0  ;;  %v13224_v17 = vpop.f32.mrf.mxu1 }
 0x1c2   :  { %v13226_v20 = vpack.c.bf16 %v1945_v34, %v1943_v42 }
 0x1c3   :  { %v1946_v28 = vmax.f32 %v1934_v10, 0.0  ;;  %v1997_v9 = vpop.f32.mrf.mxu0  ;;  %v2060_v59 = vpop.f32.mrf.mxu1  ;;  %9153 = vmatmul.mubr.msk.bf16.gmra.mxu0 %vm129_vm1, %v17277_v62  ;;  %9157 = vmatmul.mubr.msk.bf16.gmra.mxu1 %vm129_vm1, %v17277_v62 }
 0x1c4   :  { %17276 = vst [vmem:[#allocation25_spill] sm:$0xff] %v13226_v20  ;;  %3123 = vmatprep.mubr.bf16.mxu0 %v17213_v25  ;;  %3186 = vmatprep.mubr.bf16.mxu1 %v17213_v25 }
 0x1c5   :  { %v13234_v30 = vpack.c.bf16 %v1946_v28, %v1944_v13  ;;  %v1999_v38 = vpop.f32.mrf.mxu0  ;;  %v2062_v33 = vpop.f32.mrf.mxu1  ;;  %v11294_v13 = vld [vmem:[%s17126_s0 + $0x68] sm:$0xf] }
 0x1c7   :  { %17278 = vst [vmem:[#allocation4_spill] sm:$0xff] %v13234_v30  ;;  %v2001_v24 = vpop.f32.mrf.mxu0  ;;  %v2064_v51 = vpop.f32.mrf.mxu1 }
 0x1c9   :  { %v13236_v1 = vpop.f32.mrf.mxu0  ;;  %v13238_v11 = vpop.f32.mrf.mxu1 }
 0x1cb   :  { %v2007_v21 = vpop.f32.mrf.mxu0  ;;  %v2070_v14 = vpop.f32.mrf.mxu1  ;;  %9154 = vmatmul.mubr.msk.bf16.gmra.mxu0 %vm129_vm1, %v12801_v58  ;;  %9158 = vmatmul.mubr.msk.bf16.gmra.mxu1 %vm129_vm1, %v12801_v58 }
 0x1cc   :  { %3267 = vmatprep.mubr.bf16.mxu0 %v17213_v25  ;;  %3330 = vmatprep.mubr.bf16.mxu1 %v17213_v25 }
 0x1cd   :  { %v2009_v15 = vpop.f32.mrf.mxu0  ;;  %v2072_v37 = vpop.f32.mrf.mxu1 }
 0x1cf   :  { %v13246_v55 = vpop.f32.mrf.mxu0  ;;  %v13248_v5 = vpop.f32.mrf.mxu1 }
 0x1d1   :  { %v13256_v58 = vpop.f32.mrf.mxu0  ;;  %v13258_v35 = vpop.f32.mrf.mxu1 }
 0x1d2   :  { %17279 = vst [vmem:[#allocation7_spill] sm:$0xff] %v13256_v58  ;;  %17280 = vst [vmem:[#allocation8_spill] sm:$0xff] %v13258_v35 }
 0x1d3   :  { %v2113_v19 = vpop.f32.mrf.mxu0  ;;  %v2176_v61 = vpop.f32.mrf.mxu1  ;;  %9163 = vmatmul.mubr.msk.bf16.vlgmr.msra.gmra.mxu0 %vm129_vm1, %v9159_v8  ;;  %9167 = vmatmul.mubr.msk.bf16.vlgmr.msra.gmra.mxu1 %vm129_vm1, %v9159_v8 }
 0x1d4   :  { %v13263_v12 = vadd.f32 %v2113_v19, %v13186_v43  ;;  %v13266_v29 = vadd.f32 %v2176_v61, %v13188_v3  ;;  %3277 = vmatprep.mubr.bf16.mxu0 %v17213_v25  ;;  %3340 = vmatprep.mubr.bf16.mxu1 %v17213_v25  ;;  %v11292_v43 = vld [vmem:[%s17126_s0 + $0x60] sm:$0xf]  ;;  %v11293_v3 = vld [vmem:[%s17126_s0 + $0x64] sm:$0xf] }
 0x1d5   :  { %v2115_v7 = vpop.f32.mrf.mxu0  ;;  %v2178_v16 = vpop.f32.mrf.mxu1  ;;  %v9160_v56 = vcombine.low %v11292_v43, %v11293_v3  ;;  %v10366_v3 = vld [vmem:[%s17128_s3 + $0x2c4] ss:$16 sps:$4 sm:$0xff]  }
 0x1d6   :  { %v13271_v52 = vadd.f32 %v2115_v7, %v13201_v0  ;;  %v13274_v39 = vadd.f32 %v2178_v16, %v13203_v4  ;;  %v10358_v7 = vld [vmem:[%s17128_s3 + $0x2e0] ss:$16 sps:$4 sm:$0xff]  }
 0x1d7   :  { %v2117_v18 = vpop.f32.mrf.mxu0  ;;  %v2180_v31 = vpop.f32.mrf.mxu1 }
 0x1d8   :  { %v13282_v45 = vadd.f32 %v2117_v18, %v1991_v23  ;;  %v13284_v47 = vadd.f32 %v2180_v31, %v2054_v40  ;;  %v60_v23 = vld [vmem:[%s17126_s0 + $0x6c] sm:$0xf] }
 0x1d9   :  { %v13286_v0 = vpop.f32.mrf.mxu0  ;;  %v13288_v46 = vpop.f32.mrf.mxu1  ;;  %v9161_v28 = vcombine.low %v11294_v13, %v60_v23  ;;  %v10375_v13 = vld [vmem:[%s17128_s3 + $0x2ac] ss:$16 sps:$4 sm:$0xff]  }
 0x1db   :  { %v2123_v4 = vpop.f32.mrf.mxu0  ;;  %v2186_v48 = vpop.f32.mrf.mxu1  ;;  %9164 = vmatmul.mubr.msk.bf16.gmra.mxu0 %vm129_vm1, %v9160_v56  ;;  %9168 = vmatmul.mubr.msk.bf16.gmra.mxu1 %vm129_vm1, %v9160_v56  ;;  %v10369_v56 = vld [vmem:[%s17128_s3 + $0x2cc] ss:$16 sps:$4 sm:$0xff]  }
 0x1dc   :  { %v13292_v54 = vadd.f32 %v2123_v4, %v1997_v9  ;;  %v13294_v32 = vadd.f32 %v2186_v48, %v2060_v59  ;;  %3287 = vmatprep.mubr.bf16.mxu0 %v17213_v25  ;;  %3350 = vmatprep.mubr.bf16.mxu1 %v17213_v25 }
 0x1dd   :  { %v2125_v40 = vpop.f32.mrf.mxu0  ;;  %v2188_v42 = vpop.f32.mrf.mxu1 }
 0x1de   :  { %v13301_v34 = vadd.f32 %v2125_v40, %v1999_v38  ;;  %v13303_v53 = vadd.f32 %v2188_v42, %v2062_v33 }
 0x1df   :  { %v2127_v63 = vpop.f32.mrf.mxu0  ;;  %v2190_v10 = vpop.f32.mrf.mxu1 }
 0x1e0   :  { %v13308_v9 = vadd.f32 %v2127_v63, %v2001_v24  ;;  %v13310_v25 = vadd.f32 %v2190_v10, %v2064_v51  ;;  %v10360_v24 = vld [vmem:[%s17128_s3 + $0x2e4] ss:$16 sps:$4 sm:$0xff]  }
 0x1e1   :  { %v13312_v59 = vpop.f32.mrf.mxu0  ;;  %v13314_v62 = vpop.f32.mrf.mxu1  ;;  %3900 = vmatprep.subr.bf16.mxu0 %v10360_v24  ;;  %v10372_v10 = vld [vmem:[%s17128_s3 + $0x2a4] ss:$16 sps:$4 sm:$0xff]  }
 0x1e2   :  { %3901 = vmatpush1.bf16.msra.mxu0 %v10358_v7  ;;  %v10378_v7 = vld [vmem:[%s17128_s3 + $0x284] ss:$16 sps:$4 sm:$0xff]  }
 0x1e3   :  { %v2133_v6 = vpop.f32.mrf.mxu0  ;;  %v2196_v38 = vpop.f32.mrf.mxu1  ;;  %9165 = vmatmul.mubr.msk.bf16.gmra.mxu0 %vm129_vm1, %v9161_v28  ;;  %9169 = vmatmul.mubr.msk.bf16.gmra.mxu1 %vm129_vm1, %v9161_v28 }
 0x1e4   :  { %v13318_v33 = vadd.f32 %v2133_v6, %v2007_v21  ;;  %v13320_v50 = vadd.f32 %v2196_v38, %v2070_v14  ;;  %v10361_v21 = vld [vmem:[%s17128_s3 + $0x2e8] ss:$16 sps:$4 sm:$0xff]   ;;  %v10363_v14 = vld [vmem:[%s17128_s3 + $0x2ec] ss:$16 sps:$4 sm:$0xff]   ;;  %3902 = vmatprep.subr.bf16.mxu0 %v10366_v3 }
 0x1e5   :  { %v2135_v8 = vpop.f32.mrf.mxu0  ;;  %v2198_v19 = vpop.f32.mrf.mxu1  ;;  %3953 = vmatprep.subr.bf16.mxu1 %v10363_v14  ;;  %v10373_v6 = vld [vmem:[%s17128_s3 + $0x2a8] ss:$16 sps:$4 sm:$0xff]  }
 0x1e6   :  { %v13325_v51 = vadd.f32 %v2135_v8, %v2009_v15  ;;  %v13327_v61 = vadd.f32 %v2198_v19, %v2072_v37  ;;  %3954 = vmatpush1.bf16.msra.mxu1 %v10361_v21 }
 0x1e7   :  { %v2137_v16 = vpop.f32.mrf.mxu0  ;;  %v2200_v18 = vpop.f32.mrf.mxu1  ;;  %3955 = vmatprep.subr.bf16.mxu1 %v10369_v56 }
 0x1e8   :  { %v13339_v15 = vadd.f32 %v2137_v16, %v13246_v55  ;;  %v13342_v37 = vadd.f32 %v2200_v18, %v13248_v5  ;;  %v10364_v55 = vld [vmem:[%s17128_s3 + $0x2c0] ss:$16 sps:$4 sm:$0xff]   ;;  %v10367_v5 = vld [vmem:[%s17128_s3 + $0x2c8] ss:$16 sps:$4 sm:$0xff]   ;;  %v10381_v16 = vld [vmem:[%s17128_s3 + $0x28c] ss:$16 sps:$4 sm:$0xff]  }
 0x1e9   :  { %v13344_v31 = vpop.f32.mrf.mxu0  ;;  %v13346_v43 = vpop.f32.mrf.mxu1  ;;  %3903 = vmatpush1.bf16.msra.mxu0 %v10364_v55 }
 0x1ea   :  { %17281 = vst [vmem:[#allocation9_spill] sm:$0xff] %v13344_v31  ;;  %17282 = vst [vmem:[#allocation10_spill] sm:$0xff] %v13346_v43  ;;  %3956 = vmatpush1.bf16.msra.mxu1 %v10367_v5  ;;  %3904 = vmatprep.subr.bf16.mxu0 %v10372_v10  ;;  %v10384_v5 = vld [vmem:[%s17128_s3 + $0x264] ss:$16 sps:$4 sm:$0xff]  }
 0x1eb   :  { %v2239_v4 = vpop.f32.mrf.mxu0  ;;  %v2302_v48 = vpop.f32.mrf.mxu1  ;;  %3957 = vmatprep.subr.bf16.mxu1 %v10375_v13 }
 0x1ec   :  { %v13361_v23 = vadd.f32 %v2239_v4, %v13263_v12  ;;  %v13364_v40 = vadd.f32 %v2302_v48, %v13266_v29  ;;  %v10370_v29 = vld [vmem:[%s17128_s3 + $0x2a0] ss:$16 sps:$4 sm:$0xff]   ;;  %v10387_v4 = vld [vmem:[%s17128_s3 + $0x26c] ss:$16 sps:$4 sm:$0xff]  }
 0x1ed   :  { %v2241_v42 = vpop.f32.mrf.mxu0  ;;  %v2304_v63 = vpop.f32.mrf.mxu1  ;;  %3905 = vmatpush1.bf16.msra.mxu0 %v10370_v29 }
 0x1ee   :  { %v13373_v28 = vadd.f32 %v2241_v42, %v13271_v52  ;;  %v13376_v12 = vadd.f32 %v2304_v63, %v13274_v39  ;;  %3958 = vmatpush1.bf16.msra.mxu1 %v10373_v6  ;;  %3906 = vmatprep.subr.bf16.mxu0 %v10378_v7  ;;  %v10385_v42 = vld [vmem:[%s17128_s3 + $0x268] ss:$16 sps:$4 sm:$0xff]   ;;  %v10390_v6 = vld [vmem:[%s17128_s3 + $0x244] ss:$16 sps:$4 sm:$0xff]  }
 0x1ef   :  { %v2243_v38 = vpop.f32.mrf.mxu0  ;;  %v2306_v8 = vpop.f32.mrf.mxu1  ;;  %3959 = vmatprep.subr.bf16.mxu1 %v10381_v16 }
 0x1f0   :  { %v13385_v19 = vadd.f32 %v2243_v38, %v13282_v45  ;;  %v13388_v52 = vadd.f32 %v2306_v8, %v13284_v47  ;;  %v10376_v45 = vld [vmem:[%s17128_s3 + $0x280] ss:$16 sps:$4 sm:$0xff]   ;;  %v10379_v47 = vld [vmem:[%s17128_s3 + $0x288] ss:$16 sps:$4 sm:$0xff]   ;;  %v10393_v38 = vld [vmem:[%s17128_s3 + $0x24c] ss:$16 sps:$4 sm:$0xff]  }
 0x1f1   :  { %v13390_v39 = vpop.f32.mrf.mxu0  ;;  %v13392_v24 = vpop.f32.mrf.mxu1  ;;  %3907 = vmatpush1.bf16.msra.mxu0 %v10376_v45 }
 0x1f2   :  { %3960 = vmatpush1.bf16.msra.mxu1 %v10379_v47  ;;  %3908 = vmatprep.subr.bf16.mxu0 %v10384_v5  ;;  %v10397_v5 = vld [vmem:[%s17128_s3 + $0x228] ss:$16 sps:$4 sm:$0xff]  }
 0x1f3   :  { %v2249_v18 = vpop.f32.mrf.mxu0  ;;  %v2312_v21 = vpop.f32.mrf.mxu1  ;;  %3961 = vmatprep.subr.bf16.mxu1 %v10387_v4 }
 0x1f4   :  { %v13407_v14 = vadd.f32 %v2249_v18, %v13292_v54  ;;  %v13410_v3 = vadd.f32 %v2312_v21, %v13294_v32  ;;  %v10382_v32 = vld [vmem:[%s17128_s3 + $0x260] ss:$16 sps:$4 sm:$0xff]   ;;  %v10396_v21 = vld [vmem:[%s17128_s3 + $0x224] ss:$16 sps:$4 sm:$0xff]  }
 0x1f5   :  { %v2251_v56 = vpop.f32.mrf.mxu0  ;;  %v2314_v55 = vpop.f32.mrf.mxu1  ;;  %3909 = vmatpush1.bf16.msra.mxu0 %v10382_v32 }
 0x1f6   :  { %v13419_v48 = vadd.f32 %v2251_v56, %v13301_v34  ;;  %v13422_v54 = vadd.f32 %v2314_v55, %v13303_v53  ;;  %3962 = vmatpush1.bf16.msra.mxu1 %v10385_v42  ;;  %3910 = vmatprep.subr.bf16.mxu0 %v10390_v6  ;;  %v10399_v56 = vld [vmem:[%s17128_s3 + $0x22c] ss:$16 sps:$4 sm:$0xff]  }
 0x1f7   :  { %v2253_v63 = vpop.f32.mrf.mxu0  ;;  %v2316_v10 = vpop.f32.mrf.mxu1  ;;  %3963 = vmatprep.subr.bf16.mxu1 %v10393_v38  ;;  %v10405_v6 = vld [vmem:[%s17128_s3 + $0x20c] ss:$16 sps:$4 sm:$0xff]  }
 0x1f8   :  { %v13431_v13 = vadd.f32 %v2253_v63, %v13308_v9  ;;  %v13434_v34 = vadd.f32 %v2316_v10, %v13310_v25  ;;  %v10388_v9 = vld [vmem:[%s17128_s3 + $0x240] ss:$16 sps:$4 sm:$0xff]   ;;  %v10391_v25 = vld [vmem:[%s17128_s3 + $0x248] ss:$16 sps:$4 sm:$0xff]   ;;  %v10402_v10 = vld [vmem:[%s17128_s3 + $0x204] ss:$16 sps:$4 sm:$0xff]  }
 0x1f9   :  { %v13436_v53 = vpop.f32.mrf.mxu0  ;;  %v13438_v29 = vpop.f32.mrf.mxu1  ;;  %3911 = vmatpush1.bf16.msra.mxu0 %v10388_v9 }
 0x1fa   :  { %3964 = vmatpush1.bf16.msra.mxu1 %v10391_v25  ;;  %3912 = vmatprep.subr.bf16.mxu0 %v10396_v21  ;;  %v10411_v21 = vld [vmem:[%s17128_s3 + $0x3ec] ss:$16 sps:$4 sm:$0xff]  }
 0x1fb   :  { %v2259_v8 = vpop.f32.mrf.mxu0  ;;  %v2322_v7 = vpop.f32.mrf.mxu1  ;;  %3965 = vmatprep.subr.bf16.mxu1 %v10399_v56 }
 0x1fc   :  { %v13453_v16 = vadd.f32 %v2259_v8, %v13318_v33  ;;  %v13456_v45 = vadd.f32 %v2322_v7, %v13320_v50  ;;  %v10394_v50 = vld [vmem:[%s17128_s3 + $0x220] ss:$16 sps:$4 sm:$0xff]  }
 0x1fd   :  { %v2261_v47 = vpop.f32.mrf.mxu0  ;;  %v2324_v18 = vpop.f32.mrf.mxu1  ;;  %3913 = vmatpush1.bf16.msra.mxu0 %v10394_v50  ;;  %v10409_v50 = vld [vmem:[%s17128_s3 + $0x3e8] ss:$16 sps:$4 sm:$0xff]  }
 0x1fe   :  { %v13465_v55 = vadd.f32 %v2261_v47, %v13325_v51  ;;  %v13468_v33 = vadd.f32 %v2324_v18, %v13327_v61  ;;  %3966 = vmatpush1.bf16.msra.mxu1 %v10397_v5  ;;  %3914 = vmatprep.subr.bf16.mxu0 %v10402_v10  ;;  %v10408_v18 = vld [vmem:[%s17128_s3 + $0x3e4] ss:$16 sps:$4 sm:$0xff]  }
 0x1ff   :  { %v2263_v4 = vpop.f32.mrf.mxu0  ;;  %v2326_v32 = vpop.f32.mrf.mxu1  ;;  %3967 = vmatprep.subr.bf16.mxu1 %v10405_v6  ;;  %v10414_v6 = vld [vmem:[%s17128_s3 + $0x3c4] ss:$16 sps:$4 sm:$0xff]  }
 0x200   :  { %v13477_v42 = vadd.f32 %v2263_v4, %v13339_v15  ;;  %v13480_v51 = vadd.f32 %v2326_v32, %v13342_v37  ;;  %v10400_v15 = vld [vmem:[%s17128_s3 + $0x200] ss:$16 sps:$4 sm:$0xff]   ;;  %v10403_v37 = vld [vmem:[%s17128_s3 + $0x208] ss:$16 sps:$4 sm:$0xff]  }
 0x201   :  { %v13482_v61 = vpop.f32.mrf.mxu0  ;;  %v13484_v63 = vpop.f32.mrf.mxu1  ;;  %3915 = vmatpush1.bf16.msra.mxu0 %v10400_v15  ;;  %v10417_v15 = vld [vmem:[%s17128_s3 + $0x3cc] ss:$16 sps:$4 sm:$0xff]  }
 0x202   :  { %17283 = vst [vmem:[#allocation11_spill] sm:$0xff] %v13482_v61  ;;  %17284 = vst [vmem:[#allocation12_spill] sm:$0xff] %v13484_v63  ;;  %3968 = vmatpush1.bf16.msra.mxu1 %v10403_v37  ;;  %3916 = vmatprep.subr.bf16.mxu0 %v10408_v18 }
 0x203   :  { %v2389_v38 = vpop.f32.mrf.mxu0  ;;  %v2452_v9 = vpop.f32.mrf.mxu1  ;;  %3969 = vmatprep.subr.bf16.mxu1 %v10411_v21  ;;  %v10420_v21 = vld [vmem:[%s17128_s3 + $0x3a4] ss:$16 sps:$4 sm:$0xff]  }
 0x204   :  { %v13499_v25 = vadd.f32 %v2389_v38, %v13361_v23  ;;  %v13502_v8 = vadd.f32 %v2452_v9, %v13364_v40  ;;  %v10406_v40 = vld [vmem:[%s17128_s3 + $0x3e0] ss:$16 sps:$4 sm:$0xff]  }
 0x205   :  { %v2391_v7 = vpop.f32.mrf.mxu0  ;;  %v2454_v47 = vpop.f32.mrf.mxu1  ;;  %3917 = vmatpush2.bf16.msra.mxu0 %v10406_v40  ;;  %v10423_v40 = vld [vmem:[%s17128_s3 + $0x3ac] ss:$16 sps:$4 sm:$0xff]  }
 0x206   :  { %v13511_v56 = vadd.f32 %v2391_v7, %v13373_v28  ;;  %v13514_v23 = vadd.f32 %v2454_v47, %v13376_v12  ;;  %3970 = vmatpush2.bf16.msra.mxu1 %v10409_v50  ;;  %3918 = vmatprep.subr.bf16.mxu0 %v10414_v6 }
 0x207   :  { %v2393_v5 = vpop.f32.mrf.mxu0  ;;  %v2456_v4 = vpop.f32.mrf.mxu1  ;;  %3971 = vmatprep.subr.bf16.mxu1 %v10417_v15 }
 0x208   :  { %v13523_v32 = vadd.f32 %v2393_v5, %v13385_v19  ;;  %v13526_v28 = vadd.f32 %v2456_v4, %v13388_v52  ;;  %v10412_v19 = vld [vmem:[%s17128_s3 + $0x3c0] ss:$16 sps:$4 sm:$0xff]   ;;  %v10415_v52 = vld [vmem:[%s17128_s3 + $0x3c8] ss:$16 sps:$4 sm:$0xff]  }
 0x209   :  { %v13528_v12 = vpop.f32.mrf.mxu0  ;;  %v13530_v10 = vpop.f32.mrf.mxu1  ;;  %3919 = vmatpush2.bf16.msra.mxu0 %v10412_v19  ;;  %v10421_v5 = vld [vmem:[%s17128_s3 + $0x3a8] ss:$16 sps:$4 sm:$0xff]  }
 0x20a   :  { %3972 = vmatpush2.bf16.msra.mxu1 %v10415_v52  ;;  %3920 = vmatprep.subr.bf16.mxu0 %v10420_v21  ;;  %v10426_v52 = vld [vmem:[%s17128_s3 + $0x384] ss:$16 sps:$4 sm:$0xff]  }
 0x20b   :  { %v2399_v37 = vpop.f32.mrf.mxu0  ;;  %v2462_v38 = vpop.f32.mrf.mxu1  ;;  %3973 = vmatprep.subr.bf16.mxu1 %v10423_v40 }
 0x20c   :  { %v13545_v9 = vadd.f32 %v2399_v37, %v13407_v14  ;;  %v13548_v7 = vadd.f32 %v2462_v38, %v13410_v3  ;;  %v10418_v3 = vld [vmem:[%s17128_s3 + $0x3a0] ss:$16 sps:$4 sm:$0xff]   ;;  %v10429_v37 = vld [vmem:[%s17128_s3 + $0x38c] ss:$16 sps:$4 sm:$0xff]  }
 0x20d   :  { %v2401_v47 = vpop.f32.mrf.mxu0  ;;  %v2464_v18 = vpop.f32.mrf.mxu1  ;;  %3921 = vmatpush2.bf16.msra.mxu0 %v10418_v3 }
 0x20e   :  { %v13557_v50 = vadd.f32 %v2401_v47, %v13419_v48  ;;  %v13560_v14 = vadd.f32 %v2464_v18, %v13422_v54  ;;  %3974 = vmatpush2.bf16.msra.mxu1 %v10421_v5  ;;  %3922 = vmatprep.subr.bf16.mxu0 %v10426_v52  ;;  %v10432_v5 = vld [vmem:[%s17128_s3 + $0x364] ss:$16 sps:$4 sm:$0xff]   ;;  %v10433_v52 = vld [vmem:[%s17128_s3 + $0x368] ss:$16 sps:$4 sm:$0xff]  }
 0x20f   :  { %v2403_v4 = vpop.f32.mrf.mxu0  ;;  %v2466_v6 = vpop.f32.mrf.mxu1  ;;  %3975 = vmatprep.subr.bf16.mxu1 %v10429_v37 }
 0x210   :  { %v13569_v15 = vadd.f32 %v2403_v4, %v13431_v13  ;;  %v13572_v48 = vadd.f32 %v2466_v6, %v13434_v34  ;;  %v10424_v13 = vld [vmem:[%s17128_s3 + $0x380] ss:$16 sps:$4 sm:$0xff]   ;;  %v10427_v34 = vld [vmem:[%s17128_s3 + $0x388] ss:$16 sps:$4 sm:$0xff]   ;;  %v10435_v4 = vld [vmem:[%s17128_s3 + $0x36c] ss:$16 sps:$4 sm:$0xff]  }
 0x211   :  { %v13574_v54 = vpop.f32.mrf.mxu0  ;;  %v13576_v19 = vpop.f32.mrf.mxu1  ;;  %3923 = vmatpush2.bf16.msra.mxu0 %v10424_v13 }
 0x212   :  { %3976 = vmatpush2.bf16.msra.mxu1 %v10427_v34  ;;  %3924 = vmatprep.subr.bf16.mxu0 %v10432_v5 }
 0x213   :  { %v2409_v38 = vpop.f32.mrf.mxu0  ;;  %v2472_v47 = vpop.f32.mrf.mxu1  ;;  %3977 = vmatprep.subr.bf16.mxu1 %v10435_v4 }
 0x214   :  { %v13591_v18 = vadd.f32 %v2409_v38, %v13453_v16  ;;  %v13594_v21 = vadd.f32 %v2472_v47, %v13456_v45  ;;  %v10430_v45 = vld [vmem:[%s17128_s3 + $0x360] ss:$16 sps:$4 sm:$0xff]   ;;  %v10438_v47 = vld [vmem:[%s17128_s3 + $0x344] ss:$16 sps:$4 sm:$0xff]  }
 0x215   :  { %v2411_v40 = vpop.f32.mrf.mxu0  ;;  %v2474_v3 = vpop.f32.mrf.mxu1  ;;  %3925 = vmatpush2.bf16.msra.mxu0 %v10430_v45 }
 0x216   :  { %v13603_v6 = vadd.f32 %v2411_v40, %v13465_v55  ;;  %v13606_v16 = vadd.f32 %v2474_v3, %v13468_v33  ;;  %v10441_v40 = vld [vmem:[%s17128_s3 + $0x34c] ss:$16 sps:$4 sm:$0xff]   ;;  %3978 = vmatpush2.bf16.msra.mxu1 %v10433_v52  ;;  %3926 = vmatprep.subr.bf16.mxu0 %v10438_v47 }
 0x217   :  { %v2413_v37 = vpop.f32.mrf.mxu0  ;;  %v2476_v13 = vpop.f32.mrf.mxu1  ;;  %3979 = vmatprep.subr.bf16.mxu1 %v10441_v40  ;;  %v10445_v40 = vld [vmem:[%s17128_s3 + $0x328] ss:$16 sps:$4 sm:$0xff]  }
 0x218   :  { %v13615_v38 = vadd.f32 %v2413_v37, %v13477_v42  ;;  %v13618_v55 = vadd.f32 %v2476_v13, %v13480_v51  ;;  %v10436_v42 = vld [vmem:[%s17128_s3 + $0x340] ss:$16 sps:$4 sm:$0xff]   ;;  %v10439_v51 = vld [vmem:[%s17128_s3 + $0x348] ss:$16 sps:$4 sm:$0xff]   ;;  %v10444_v13 = vld [vmem:[%s17128_s3 + $0x324] ss:$16 sps:$4 sm:$0xff]  }
 0x219   :  { %v13620_v33 = vpop.f32.mrf.mxu0  ;;  %v13622_v34 = vpop.f32.mrf.mxu1  ;;  %3927 = vmatpush2.bf16.msra.mxu0 %v10436_v42 }
 0x21a   :  { %17285 = vst [vmem:[#allocation13_spill] sm:$0xff] %v13620_v33  ;;  %17286 = vst [vmem:[#allocation6_spill] sm:$0xff] %v13622_v34  ;;  %3980 = vmatpush2.bf16.msra.mxu1 %v10439_v51  ;;  %3928 = vmatprep.subr.bf16.mxu0 %v10444_v13 }
 0x21b   :  { %v2553_v3 = vpop.f32.mrf.mxu0  ;;  %v2616_v5 = vpop.f32.mrf.mxu1  ;;  %3981 = vmatprep.subr.bf16.mxu1 %v10447_v57  ;;  %v10448_v57 = vld [vmem:[%s17128_s3 + $0x300] ss:$16 sps:$4 sm:$0xff]  }
 0x21c   :  { %v13637_v4 = vadd.f32 %v2553_v3, %v13499_v25  ;;  %v13640_v45 = vadd.f32 %v2616_v5, %v13502_v8  ;;  %v10442_v8 = vld [vmem:[%s17128_s3 + $0x320] ss:$16 sps:$4 sm:$0xff]  }
 0x21d   :  { %v2555_v52 = vpop.f32.mrf.mxu0  ;;  %v2618_v37 = vpop.f32.mrf.mxu1  ;;  %3929 = vmatpush2.bf16.msra.mxu0 %v10442_v8 }
 0x21e   :  { %17287 = vst [vmem:[#allocation14_spill] sm:$0xff] %v13637_v4  ;;  %17288 = vst [vmem:[#allocation18_spill] sm:$0xff] %v13640_v45  ;;  %v13649_v47 = vadd.f32 %v2555_v52, %v13511_v56  ;;  %v13652_v25 = vadd.f32 %v2618_v37, %v13514_v23  ;;  %v10450_v52 = vld [vmem:[%s17128_s3 + $0x304] ss:$16 sps:$4 sm:$0xff]   ;;  %v10453_v37 = vld [vmem:[%s17128_s3 + $0x30c] ss:$16 sps:$4 sm:$0xff]   ;;  %3982 = vmatpush2.bf16.msra.mxu1 %v10445_v40 }
 0x21f   :  { %v2557_v42 = vpop.f32.mrf.mxu0  ;;  %v2620_v3 = vpop.f32.mrf.mxu1  ;;  %3930 = vmatprep.subr.bf16.mxu0 %v10450_v52  ;;  %3983 = vmatprep.subr.bf16.mxu1 %v10453_v37 }
 0x220   :  { %17289 = vst [vmem:[#allocation19_spill] sm:$0xff] %v13649_v47  ;;  %17290 = vst [vmem:[#allocation5_spill] sm:$0xff] %v13652_v25  ;;  %v13661_v5 = vadd.f32 %v2557_v42, %v13523_v32  ;;  %v13664_v56 = vadd.f32 %v2620_v3, %v13526_v28  ;;  %v10451_v32 = vld [vmem:[%s17128_s3 + $0x308] ss:$16 sps:$4 sm:$0xff]  }
 0x221   :  { %v13666_v23 = vpop.f32.mrf.mxu0  ;;  %v13668_v51 = vpop.f32.mrf.mxu1  ;;  %3931 = vmatpush2.bf16.msra.mxu0 %v10448_v57 }
 0x222   :  { %17291 = vst [vmem:[#allocation24_spill] sm:$0xff] %v13661_v5  ;;  %17292 = vst [vmem:[#allocation26_spill] sm:$0xff] %v13664_v56  ;;  %3984 = vmatpush2.bf16.msra.mxu1 %v10451_v32  ;;  %4326 = vmatprep.subr.bf16.mxu0 %v10456_v49 }
 0x223   :  { %v2563_v28 = vpop.f32.mrf.mxu0  ;;  %v2626_v13 = vpop.f32.mrf.mxu1  ;;  %4379 = vmatprep.subr.bf16.mxu1 %v10459_v27 }
 0x224   :  { %v13683_v8 = vadd.f32 %v2563_v28, %v13545_v9  ;;  %v13686_v42 = vadd.f32 %v2626_v13, %v13548_v7 }
 0x225   :  { %v2565_v40 = vpop.f32.mrf.mxu0  ;;  %v2628_v3 = vpop.f32.mrf.mxu1 }
 0x226   :  { %17293 = vst [vmem:[#allocation27_spill] sm:$0xff] %v13683_v8  ;;  %17294 = vst [vmem:[#allocation28_spill] sm:$0xff] %v13686_v42  ;;  %v13695_v52 = vadd.f32 %v2565_v40, %v13557_v50  ;;  %v13698_v9 = vadd.f32 %v2628_v3, %v13560_v14 }
 0x227   :  { %v2567_v7 = vpop.f32.mrf.mxu0  ;;  %v2630_v37 = vpop.f32.mrf.mxu1 }
 0x228   :  { %17295 = vst [vmem:[#allocation29_spill] sm:$0xff] %v13695_v52  ;;  %17296 = vst [vmem:[#allocation30_spill] sm:$0xff] %v13698_v9  ;;  %v13701_v57 = vadd.f32 %v2567_v7, %v13569_v15  ;;  %v13704_v28 = vadd.f32 %v2630_v37, %v13572_v48 }
 0x229   :  { %v13706_v13 = vpop.f32.mrf.mxu0  ;;  %v13708_v34 = vpop.f32.mrf.mxu1 }
 0x22a   :  { %17297 = vst [vmem:[#allocation31_spill] sm:$0xff] %v13701_v57  ;;  %17298 = vst [vmem:[#allocation32_spill] sm:$0xff] %v13704_v28 }
 0x22b   :  { %v2573_v50 = vpop.f32.mrf.mxu0  ;;  %v2636_v40 = vpop.f32.mrf.mxu1 }
 0x22c   :  { %v13711_v14 = vadd.f32 %v2573_v50, %v13591_v18  ;;  %v13714_v32 = vadd.f32 %v2636_v40, %v13594_v21 }
 0x22d   :  { %v2575_v49 = vpop.f32.mrf.mxu0  ;;  %v2638_v27 = vpop.f32.mrf.mxu1 }
 0x22e   :  { %17299 = vst [vmem:[#allocation33_spill] sm:$0xff] %v13711_v14  ;;  %17300 = vst [vmem:[#allocation34_spill] sm:$0xff] %v13714_v32  ;;  %v13717_v15 = vadd.f32 %v2575_v49, %v13603_v6  ;;  %v13720_v48 = vadd.f32 %v2638_v27, %v13606_v16 }
 0x22f   :  { %v2577_v3 = vpop.f32.mrf.mxu0  ;;  %v2640_v7 = vpop.f32.mrf.mxu1 }
 0x230   :  { %17301 = vst [vmem:[#allocation35_spill] sm:$0xff] %v13717_v15  ;;  %17302 = vst [vmem:[#allocation36_spill] sm:$0xff] %v13720_v48  ;;  %v13723_v37 = vadd.f32 %v2577_v3, %v13615_v38  ;;  %v13726_v33 = vadd.f32 %v2640_v7, %v13618_v55 }
 0x231   :  { %v13728_v18 = vpop.f32.mrf.mxu0  ;;  %v13730_v21 = vpop.f32.mrf.mxu1 }
 0x232   :  { %17303 = vst [vmem:[#allocation37_spill] sm:$0xff] %v13723_v37  ;;  %17304 = vst [vmem:[#allocation38_spill] sm:$0xff] %v13726_v33 }
 0x233   :  { %17305 = vst [vmem:[#allocation39_spill] sm:$0xff] %v13728_v18  ;;  %17306 = vst [vmem:[#allocation40_spill] sm:$0xff] %v13730_v21  ;;  %v2703_v50 = vpop.f32.mrf.mxu0  ;;  %v2766_v40 = vpop.f32.mrf.mxu1 }
 0x235   :  { %v2705_v63 = vpop.f32.mrf.mxu0  ;;  %v2768_v6 = vpop.f32.mrf.mxu1 }
 0x237   :  { %v2707_v49 = vpop.f32.mrf.mxu0  ;;  %v2770_v61 = vpop.f32.mrf.mxu1 }
 0x239   :  { %v13732_v16 = vpop.f32.mrf.mxu0  ;;  %v13734_v27 = vpop.f32.mrf.mxu1 }
 0x23b   :  { %v2713_v43 = vpop.f32.mrf.mxu0  ;;  %v2776_v38 = vpop.f32.mrf.mxu1 }
 0x23d   :  { %v2715_v3 = vpop.f32.mrf.mxu0  ;;  %v2778_v35 = vpop.f32.mrf.mxu1 }
 0x23f   :  { %v2717_v55 = vpop.f32.mrf.mxu0  ;;  %v2780_v7 = vpop.f32.mrf.mxu1 }
 0x241   :  { %v13736_v31 = vpop.f32.mrf.mxu0  ;;  %v13738_v18 = vpop.f32.mrf.mxu1 }
 0x243   :  { %v2723_v21 = vpop.f32.mrf.mxu0  ;;  %v2786_v58 = vpop.f32.mrf.mxu1 }
 0x245   :  { %v2725_v20 = vpop.f32.mrf.mxu0  ;;  %v2788_v30 = vpop.f32.mrf.mxu1 }
 0x247   :  { %v2727_v41 = vpop.f32.mrf.mxu0  ;;  %v2790_v44 = vpop.f32.mrf.mxu1 }
 0x249   :  { %v13740_v2 = vpop.f32.mrf.mxu0  ;;  %v13742_v26 = vpop.f32.mrf.mxu1 }
 0x24a   :  { %17307 = vst [vmem:[#allocation41_spill] sm:$0xff] %v13740_v2  ;;  %17308 = vst [vmem:[#allocation42_spill] sm:$0xff] %v13742_v26 }
 0x24b   :  { %v2829_v33 = vpop.f32.mrf.mxu0  ;;  %v2892_v37 = vpop.f32.mrf.mxu1 }
 0x24c   :  { %v13744_v48 = vadd.f32 %v2829_v33, %v2703_v50  ;;  %v13746_v15 = vadd.f32 %v2892_v37, %v2766_v40 }
 0x24d   :  { %v2831_v32 = vpop.f32.mrf.mxu0  ;;  %v2894_v14 = vpop.f32.mrf.mxu1 }
 0x24e   :  { %v13748_v28 = vadd.f32 %v2831_v32, %v2705_v63  ;;  %v13750_v57 = vadd.f32 %v2894_v14, %v2768_v6 }
 0x24f   :  { %v2833_v9 = vpop.f32.mrf.mxu0  ;;  %v2896_v52 = vpop.f32.mrf.mxu1 }
 0x250   :  { %v13752_v42 = vadd.f32 %v2833_v9, %v2707_v49  ;;  %v13754_v8 = vadd.f32 %v2896_v52, %v2770_v61 }
 0x251   :  { %v13756_v2 = vpop.f32.mrf.mxu0  ;;  %v13758_v26 = vpop.f32.mrf.mxu1 }
 0x253   :  { %v2839_v33 = vpop.f32.mrf.mxu0  ;;  %v2902_v50 = vpop.f32.mrf.mxu1 }
 0x254   :  { %v13760_v37 = vadd.f32 %v2839_v33, %v2713_v43  ;;  %v13762_v40 = vadd.f32 %v2902_v50, %v2776_v38 }
 0x255   :  { %v2841_v63 = vpop.f32.mrf.mxu0  ;;  %v2904_v32 = vpop.f32.mrf.mxu1 }
 0x256   :  { %17309 = vst [vmem:[#allocation43_spill] sm:$0xff] %v13760_v37  ;;  %17310 = vst [vmem:[#allocation44_spill] sm:$0xff] %v13762_v40  ;;  %v13764_v14 = vadd.f32 %v2841_v63, %v2715_v3  ;;  %v13766_v6 = vadd.f32 %v2904_v32, %v2778_v35 }
 0x257   :  { %v2843_v9 = vpop.f32.mrf.mxu0  ;;  %v2906_v49 = vpop.f32.mrf.mxu1 }
 0x258   :  { %17311 = vst [vmem:[#allocation45_spill] sm:$0xff] %v13764_v14  ;;  %17312 = vst [vmem:[#allocation46_spill] sm:$0xff] %v13766_v6  ;;  %v13768_v61 = vadd.f32 %v2843_v9, %v2717_v55  ;;  %v13770_v52 = vadd.f32 %v2906_v49, %v2780_v7 }
 0x259   :  { %v13772_v36 = vpop.f32.mrf.mxu0  ;;  %v13774_v56 = vpop.f32.mrf.mxu1 }
 0x25a   :  { %17313 = vst [vmem:[#allocation47_spill] sm:$0xff] %v13768_v61  ;;  %17314 = vst [vmem:[#allocation48_spill] sm:$0xff] %v13770_v52 }
 0x25b   :  { %v2849_v43 = vpop.f32.mrf.mxu0  ;;  %v2912_v33 = vpop.f32.mrf.mxu1 }
 0x25c   :  { %v2850_v38 = vadd.f32 %v2849_v43, %v2723_v21  ;;  %v2913_v50 = vadd.f32 %v2912_v33, %v2786_v58 }
 0x25d   :  { %v2851_v60 = vpop.f32.mrf.mxu0  ;;  %v2914_v5 = vpop.f32.mrf.mxu1 }
 0x25e   :  { %v2852_v3 = vadd.f32 %v2851_v60, %v2725_v20  ;;  %v2915_v63 = vadd.f32 %v2914_v5, %v2788_v30 }
 0x25f   :  { %v2853_v35 = vpop.f32.mrf.mxu0  ;;  %v2916_v32 = vpop.f32.mrf.mxu1 }
 0x260   :  { %v2854_v25 = vadd.f32 %v2853_v35, %v2727_v41  ;;  %v2917_v47 = vadd.f32 %v2916_v32, %v2790_v44 }
 0x261   :  { %v13776_v55 = vpop.f32.mrf.mxu0  ;;  %v13778_v7 = vpop.f32.mrf.mxu1 }
 0x262   :  { %17315 = vst [vmem:[#allocation49_spill] sm:$0xff] %v13776_v55  ;;  %17316 = vst [vmem:[#allocation50_spill] sm:$0xff] %v13778_v7 }
 0x263   :  { %v13780_v9 = vpop.f32.mrf.mxu0  ;;  %v13782_v49 = vpop.f32.mrf.mxu1 }
 0x265   :  { %v13784_v45 = vpop.f32.mrf.mxu0  ;;  %v13786_v21 = vpop.f32.mrf.mxu1 }
 0x267   :  { %v13788_v58 = vpop.f32.mrf.mxu0  ;;  %v13790_v60 = vpop.f32.mrf.mxu1 }
 0x269   :  { %v13792_v20 = vpop.f32.mrf.mxu0  ;;  %v13794_v41 = vpop.f32.mrf.mxu1 }
 0x26a   :  { %17317 = vst [vmem:[#allocation51_spill] sm:$0xff] %v13792_v20  ;;  %17318 = vst [vmem:[#allocation52_spill] sm:$0xff] %v13794_v41 }
 0x26b   :  { %v13796_v44 = vpop.f32.mrf.mxu0  ;;  %v13798_v30 = vpop.f32.mrf.mxu1 }
 0x26c   :  { %17319 = vst [vmem:[#allocation53_spill] sm:$0xff] %v13796_v44  ;;  %17320 = vst [vmem:[#allocation54_spill] sm:$0xff] %v13798_v30 }
 0x26d   :  { %v13800_v5 = vpop.f32.mrf.mxu0  ;;  %v13802_v43 = vpop.f32.mrf.mxu1 }
 0x26e   :  { %17321 = vst [vmem:[#allocation55_spill] sm:$0xff] %v13800_v5  ;;  %17322 = vst [vmem:[#allocation56_spill] sm:$0xff] %v13802_v43 }
 0x26f   :  { %v13804_v33 = vpop.f32.mrf.mxu0  ;;  %v13806_v35 = vpop.f32.mrf.mxu1 }
 0x270   :  { %17323 = vst [vmem:[#allocation57_spill] sm:$0xff] %v13804_v33  ;;  %17324 = vst [vmem:[#allocation58_spill] sm:$0xff] %v13806_v35 }
 0x271   :  { %v13808_v32 = vpop.f32.mrf.mxu0  ;;  %v13810_v7 = vpop.f32.mrf.mxu1 }
 0x272   :  { %17325 = vst [vmem:[#allocation59_spill] sm:$0xff] %v13808_v32  ;;  %17326 = vst [vmem:[#allocation60_spill] sm:$0xff] %v13810_v7 }
 0x273   :  { %v2975_v55 = vpop.f32.mrf.mxu0  ;;  %v3038_v4 = vpop.f32.mrf.mxu1 }
 0x274   :  { %v3063_v52 = vadd.f32 %v2975_v55, %v2850_v38  ;;  %v3065_v61 = vadd.f32 %v3038_v4, %v2913_v50  ;;  %v2183_v55 = vadd.f32 %v13288_v46, %v13224_v17 }
 0x275   :  { %v2977_v6 = vpop.f32.mrf.mxu0  ;;  %v3040_v14 = vpop.f32.mrf.mxu1 }
 0x276   :  { %v3064_v40 = vadd.f32 %v2977_v6, %v2852_v3  ;;  %v3066_v30 = vadd.f32 %v3040_v14, %v2915_v63  ;;  %v2120_v63 = vadd.f32 %v13286_v0, %v13222_v22 }
 0x277   :  { %v2979_v44 = vpop.f32.mrf.mxu0  ;;  %v3042_v5 = vpop.f32.mrf.mxu1 }
 0x278   :  { %v3067_v37 = vadd.f32 %v2979_v44, %v2854_v25  ;;  %v3069_v43 = vadd.f32 %v3042_v5, %v2917_v47 }
 0x279   :  { %v13812_v41 = vpop.f32.mrf.mxu0  ;;  %v13814_v33 = vpop.f32.mrf.mxu1 }
 0x27a   :  { %17327 = vst [vmem:[#allocation61_spill] sm:$0xff] %v13812_v41  ;;  %17328 = vst [vmem:[#allocation62_spill] sm:$0xff] %v13814_v33  ;;  %v2130_v33 = vadd.f32 %v13312_v59, %v13236_v1  ;;  %v2193_v41 = vadd.f32 %v13314_v62, %v13238_v11 }
 0x27b   :  { %v3105_v35 = vpop.f32.mrf.mxu0  ;;  %v3168_v32 = vpop.f32.mrf.mxu1 }
 0x27c   :  { %v2344_v17 = vadd.f32 %v13436_v53, %v2130_v33  ;;  %v2346_v0 = vadd.f32 %v13438_v29, %v2193_v41 }
 0x27d   :  { %v13816_v20 = vpop.f32.mrf.mxu0  ;;  %v13818_v7 = vpop.f32.mrf.mxu1 }
 0x27e   :  { %v2494_v11 = vadd.f32 %v13574_v54, %v2344_v17  ;;  %v2496_v62 = vadd.f32 %v13576_v19, %v2346_v0 }
 0x27f   :  { %v13820_v38 = vpop.f32.mrf.mxu0  ;;  %v13822_v4 = vpop.f32.mrf.mxu1 }
 0x280   :  { %v13874_v41 = vadd.f32 %v13708_v34, %v2496_v62  ;;  %v3047_v34 = vadd.f32 %v13780_v9, %v13744_v48  ;;  %v17345_v62 = vld [vmem:[#allocation48_spill] sm:$0xff] }
 0x281   :  { %v13824_v6 = vpop.f32.mrf.mxu0  ;;  %v13826_v14 = vpop.f32.mrf.mxu1 }
 0x282   :  { %v3197_v9 = vadd.f32 %v3105_v35, %v3047_v34 }
 0x283   :  { %v13828_v25 = vpop.f32.mrf.mxu0  ;;  %v13830_v47 = vpop.f32.mrf.mxu1 }
 0x284   :  { %17329 = vst [vmem:[#allocation63_spill] sm:$0xff] %v13830_v47 }
 0x285   :  { %v13832_v50 = vpop.f32.mrf.mxu0  ;;  %v13834_v3 = vpop.f32.mrf.mxu1 }
 0x286   :  { %17330 = vst [vmem:[#allocation64_spill] sm:$0xff] %v13832_v50  ;;  %17331 = vst [vmem:[#allocation65_spill] sm:$0xff] %v13834_v3  ;;  %v2336_v50 = vadd.f32 %v13390_v39, %v2120_v63  ;;  %v2338_v3 = vadd.f32 %v13392_v24, %v2183_v55 }
 0x287   :  { %v13840_v44 = vpop.f32.mrf.mxu0  ;;  %v13842_v5 = vpop.f32.mrf.mxu1 }
 0x288   :  { %17332 = vst [vmem:[#allocation66_spill] sm:$0xff] %v13842_v5  ;;  %v2486_v46 = vadd.f32 %v13528_v12, %v2336_v50  ;;  %v2488_v5 = vadd.f32 %v13530_v10, %v2338_v3  ;;  %v13871_v10 = vadd.f32 %v13706_v13, %v2494_v11  ;;  %v2909_v13 = vadd.f32 %v13774_v56, %v13738_v18 }
 0x289   :  { %v13850_v47 = vpop.f32.mrf.mxu0  ;;  %v13852_v22 = vpop.f32.mrf.mxu1  ;;  %v3053_v56 = vadd.f32 %v13790_v60, %v13754_v8  ;;  %v17341_v8 = vld [vmem:[#allocation46_spill] sm:$0xff]  ;;  %v17342_v60 = vld [vmem:[#allocation56_spill] sm:$0xff] }
 0x28a   :  { %v13865_v63 = vadd.f32 %v13666_v23, %v2486_v46  ;;  %v13868_v53 = vadd.f32 %v13668_v51, %v2488_v5  ;;  %v2899_v23 = vadd.f32 %v13758_v26, %v13734_v27  ;;  %v2846_v51 = vadd.f32 %v13772_v36, %v13736_v31  ;;  %v17334_v27 = vld [vmem:[#allocation52_spill] sm:$0xff] }
 0x28b   :  { %v3125_v1 = vpop.f32.mrf.mxu0  ;;  %v3188_v59 = vpop.f32.mrf.mxu1  ;;  %v3048_v26 = vadd.f32 %v13784_v45, %v13748_v28  ;;  %v3050_v36 = vadd.f32 %v13786_v21, %v13750_v57  ;;  %v3051_v31 = vadd.f32 %v13788_v58, %v13752_v42  ;;  %v17335_v45 = vld [vmem:[#allocation43_spill] sm:$0xff]  ;;  %v17336_v28 = vld [vmem:[#allocation53_spill] sm:$0xff]  ;;  %v17337_v57 = vld [vmem:[#allocation44_spill] sm:$0xff]  ;;  %v3058_v55 = vadd.f32 %v17342_v60, %v17341_v8 }
 0x28c   :  { %v13860_v39 = vadd.f32 %v3125_v1, %v3063_v52  ;;  %v13862_v24 = vadd.f32 %v3188_v59, %v3065_v61  ;;  %v2836_v61 = vadd.f32 %v13756_v2, %v13732_v16  ;;  %v17338_v21 = vld [vmem:[#allocation54_spill] sm:$0xff]  ;;  %v17339_v42 = vld [vmem:[#allocation45_spill] sm:$0xff]  ;;  %v17340_v58 = vld [vmem:[#allocation55_spill] sm:$0xff] }
 0x28d   :  { %v3127_v29 = vpop.f32.mrf.mxu0  ;;  %v3190_v12 = vpop.f32.mrf.mxu1  ;;  %v3057_v50 = vadd.f32 %v17338_v21, %v17337_v57  ;;  %v3056_v3 = vadd.f32 %v17340_v58, %v17339_v42  ;;  %v3198_v0 = vadd.f32 %v13816_v20, %v3048_v26  ;;  %v3200_v46 = vadd.f32 %v13818_v7, %v3050_v36  ;;  %v17343_v1 = vld [vmem:[#allocation47_spill] sm:$0xff]  ;;  %v17344_v59 = vld [vmem:[#allocation57_spill] sm:$0xff]  ;;  %v17350_v36 = vld [vmem:[#allocation60_spill] sm:$0xff] }
 0x28e   :  { %v13876_v54 = vadd.f32 %v3127_v29, %v3064_v40  ;;  %v13878_v19 = vadd.f32 %v3190_v12, %v3066_v30  ;;  %v3049_v40 = vadd.f32 %v13782_v49, %v13746_v15  ;;  %v17333_v15 = vld [vmem:[#allocation51_spill] sm:$0xff]  ;;  %v3059_v11 = vadd.f32 %v17344_v59, %v17343_v1  ;;  %v17346_v29 = vld [vmem:[#allocation58_spill] sm:$0xff]  ;;  %v17352_v42 = vld [vmem:[#allocation5_spill] sm:$0xff] }
 0x28f   :  { %v3129_v52 = vpop.f32.mrf.mxu0  ;;  %v3192_v33 = vpop.f32.mrf.mxu1  ;;  %v3052_v16 = vadd.f32 %v17333_v15, %v2836_v61  ;;  %v3061_v12 = vadd.f32 %v17346_v29, %v17345_v62  ;;  %v17347_v61 = vld [vmem:[#allocation59_spill] sm:$0xff]  ;;  %v17358_v29 = vld [vmem:[#allocation26_spill] sm:$0xff] }
 0x290   :  { %v13892_v30 = vadd.f32 %v3129_v52, %v3067_v37  ;;  %v13894_v2 = vadd.f32 %v3192_v33, %v3069_v43  ;;  %v3054_v37 = vadd.f32 %v17334_v27, %v2899_v23  ;;  %v3199_v49 = vadd.f32 %v3168_v32, %v3049_v40  ;;  %v17348_v40 = vld [vmem:[#allocation14_spill] sm:$0xff]  ;;  %v17357_v59 = vld [vmem:[#allocation23_spill] sm:$0xff] }
 0x291   :  { %v13904_v48 = vpop.f32.mrf.mxu0  ;;  %v13906_v18 = vpop.f32.mrf.mxu1  ;;  %v3055_v43 = vadd.f32 %v17336_v28, %v17335_v45  ;;  %v3060_v23 = vadd.f32 %v17347_v61, %v2846_v51  ;;  %v3201_v52 = vadd.f32 %v13820_v38, %v3051_v31  ;;  %v17349_v27 = vld [vmem:[#allocation18_spill] sm:$0xff]  ;;  %v3202_v45 = vadd.f32 %v13824_v6, %v3052_v16  ;;  %v17351_v38 = vld [vmem:[#allocation19_spill] sm:$0xff]  ;;  %v17355_v6 = vld [vmem:[#allocation65_spill] sm:$0xff] }
 0x292   :  { %v3204_v28 = vadd.f32 %v13826_v14, %v3054_v37  ;;  %v3208_v16 = vadd.f32 %v17355_v6, %v3058_v55  ;;  %v17356_v37 = vld [vmem:[#allocation24_spill] sm:$0xff]  ;;  %v3209_v1 = vadd.f32 %v13840_v44, %v3059_v11 }
 0x293   :  { %v3269_v5 = vpop.f32.mrf.mxu0  ;;  %v3332_v17 = vpop.f32.mrf.mxu1  ;;  %v3205_v60 = vadd.f32 %v13828_v25, %v3055_v43 }
 0x294   :  { %v3361_v35 = vadd.f32 %v3269_v5, %v3197_v9  ;;  %v3363_v32 = vadd.f32 %v3332_v17, %v3199_v49  ;;  %v3062_v9 = vadd.f32 %v17350_v36, %v2909_v13  ;;  %v3203_v49 = vadd.f32 %v13822_v4, %v3053_v56  ;;  %v17353_v5 = vld [vmem:[#allocation63_spill] sm:$0xff] }
 0x295   :  { %v3271_v33 = vpop.f32.mrf.mxu0  ;;  %v3334_v34 = vpop.f32.mrf.mxu1  ;;  %v3207_v17 = vadd.f32 %v17353_v5, %v3057_v50  ;;  %v17361_v36 = vld [vmem:[#allocation27_spill] sm:$0xff] }
 0x296   :  { %v3385_v15 = vmax.f32 %v17348_v40, %v3361_v35  ;;  %v3387_v20 = vmax.f32 %v17349_v27, %v3363_v32  ;;  %v3362_v26 = vadd.f32 %v3271_v33, %v3198_v0  ;;  %v3364_v7 = vadd.f32 %v3334_v34, %v3200_v46  ;;  %v17354_v0 = vld [vmem:[#allocation64_spill] sm:$0xff]  ;;  %v17360_v40 = vld [vmem:[#allocation2_spill] sm:$0xff] }
 0x297   :  { %v3273_v57 = vpop.f32.mrf.mxu0  ;;  %v3336_v51 = vpop.f32.mrf.mxu1  ;;  %v3206_v13 = vadd.f32 %v17354_v0, %v3056_v3  ;;  %v3210_v33 = vadd.f32 %v13850_v47, %v3060_v23 }
 0x298   :  { %v3409_v21 = vmax.f32 %v3385_v15, %v3387_v20  ;;  %v3386_v31 = vmax.f32 %v17351_v38, %v3362_v26  ;;  %v3388_v58 = vmax.f32 %v17352_v42, %v3364_v7  ;;  %v3365_v8 = vadd.f32 %v3273_v57, %v3201_v52  ;;  %v17359_v52 = vld [vmem:[#allocation66_spill] sm:$0xff]  ;;  %v17363_v38 = vld [vmem:[#allocation29_spill] sm:$0xff] }
 0x299   :  { %v3367_v46 = vadd.f32 %v3336_v51, %v3203_v49  ;;  %v3275_v4 = vpop.f32.mrf.mxu0  ;;  %v3338_v56 = vpop.f32.mrf.mxu1  ;;  %v3211_v3 = vadd.f32 %v17359_v52, %v3061_v12  ;;  %v3212_v7 = vadd.f32 %v13852_v22, %v3062_v9 }
 0x29a   :  { %v3410_v14 = vmax.f32 %v3386_v31, %v3388_v58  ;;  %v3389_v35 = vmax.f32 %v17356_v37, %v3365_v8  ;;  %v3366_v32 = vadd.f32 %v3275_v4, %v3202_v45  ;;  %v3421_v62 = vadd.f32 %v3409_v21, %v17357_v59 }
 0x29b   :  { %v3391_v61 = vmax.f32 %v17358_v29, %v3367_v46  ;;  %v3368_v25 = vadd.f32 %v3338_v56, %v3204_v28  ;;  %v3279_v43 = vpop.f32.mrf.mxu0  ;;  %v3342_v50 = vpop.f32.mrf.mxu1  ;;  %v17365_v46 = vld [vmem:[#allocation31_spill] sm:$0xff]  ;;  %v17366_v56 = vld [vmem:[#allocation32_spill] sm:$0xff] }
 0x29c   :  { %v3390_v34 = vmax.f32 %v13865_v63, %v3366_v32  ;;  %v3369_v55 = vadd.f32 %v3279_v43, %v3205_v60  ;;  %v3422_v15 = vadd.f32 %v3410_v14, %v17360_v40  ;;  %v3371_v44 = vadd.f32 %v3342_v50, %v3207_v17  ;;  %v17362_v63 = vld [vmem:[#allocation28_spill] sm:$0xff] }
 0x29d   :  { %v3411_v27 = vmax.f32 %v3389_v35, %v3391_v61  ;;  %v3392_v20 = vmax.f32 %v13868_v53, %v3368_v25  ;;  %v3281_v11 = vpop.f32.mrf.mxu0  ;;  %v3344_v26 = vpop.f32.mrf.mxu1  ;;  %v3433_v12 = vmax.f32 %v3421_v62, 0.0  ;;  %v17364_v53 = vld [vmem:[#allocation30_spill] sm:$0xff] }
 0x29e   :  { %v3393_v49 = vmax.f32 %v17361_v36, %v3369_v55  ;;  %v3370_v45 = vadd.f32 %v3281_v11, %v3206_v13  ;;  %v3372_v28 = vadd.f32 %v3344_v26, %v3208_v16  ;;  %v3395_v57 = vmax.f32 %v17362_v63, %v3371_v44  ;;  %v10457_v55 = vld [vmem:[%s17128_s3 + $0xe8] ss:$16 sps:$4 sm:$0xff]   ;;  %v17368_v11 = vld [vmem:[#allocation34_spill] sm:$0xff] }
 0x29f   :  { %v3423_v47 = vadd.f32 %v3411_v27, %v17357_v59  ;;  %v3412_v23 = vmax.f32 %v3390_v34, %v3392_v20  ;;  %v3283_v51 = vpop.f32.mrf.mxu0  ;;  %v3346_v21 = vpop.f32.mrf.mxu1  ;;  %v3434_v60 = vmax.f32 %v3422_v15, 0.0  ;;  %v10454_v34 = vld [vmem:[%s17128_s3 + $0xe0] ss:$16 sps:$4 sm:$0xff]   ;;  %v17367_v15 = vld [vmem:[#allocation33_spill] sm:$0xff] }
 0x2a0   :  { %v3394_v31 = vmax.f32 %v17363_v38, %v3370_v45  ;;  %v3396_v42 = vmax.f32 %v17364_v53, %v3372_v28  ;;  %v3373_v58 = vadd.f32 %v3283_v51, %v3209_v1  ;;  %v3375_v8 = vadd.f32 %v3346_v21, %v3211_v3  ;;  %v17369_v28 = vld [vmem:[#allocation35_spill] sm:$0xff]  ;;  %v10460_v21 = vld [vmem:[%s17128_s3 + $0xc0] ss:$16 sps:$4 sm:$0xff]   ;;  %v17371_v38 = vld [vmem:[#allocation37_spill] sm:$0xff] }
 0x2a1   :  { %v3435_v22 = vmax.f32 %v3423_v47, 0.0  ;;  %v3424_v9 = vadd.f32 %v3412_v23, %v17360_v40  ;;  %v3413_v5 = vmax.f32 %v3393_v49, %v3395_v57  ;;  %v3285_v17 = vpop.f32.mrf.mxu0  ;;  %v3348_v0 = vpop.f32.mrf.mxu1  ;;  %v17370_v57 = vld [vmem:[#allocation36_spill] sm:$0xff]  ;;  %v17372_v53 = vld [vmem:[#allocation38_spill] sm:$0xff] }
 0x2a2   :  { %v3414_v13 = vmax.f32 %v3394_v31, %v3396_v42  ;;  %v3397_v4 = vmax.f32 %v17365_v46, %v3373_v58  ;;  %v3399_v6 = vmax.f32 %v17366_v56, %v3375_v8  ;;  %v3374_v16 = vadd.f32 %v3285_v17, %v3210_v33  ;;  %v10468_v58 = vld [vmem:[%s17128_s3 + $0xa4] ss:$16 sps:$4 sm:$0xff]   ;;  %v10471_v8 = vld [vmem:[%s17128_s3 + $0xac] ss:$16 sps:$4 sm:$0xff]   ;;  %v10469_v46 = vld [vmem:[%s17128_s3 + $0xa8] ss:$16 sps:$4 sm:$0xff]  }
 0x2a3   :  { %v13956_v14 = vpack.c.bf16 %v3435_v22, %v3433_v12  ;;  %v3436_v37 = vmax.f32 %v3424_v9, 0.0  ;;  %v3425_v35 = vadd.f32 %v3413_v5, %v17357_v59  ;;  %v3376_v32 = vadd.f32 %v3348_v0, %v3212_v7  ;;  %v3289_v1 = vpop.f32.mrf.mxu0  ;;  %v3352_v62 = vpop.f32.mrf.mxu1  ;;  %v10474_v56 = vld [vmem:[%s17128_s3 + $0x84] ss:$16 sps:$4 sm:$0xff]  }
 0x2a4   :  { %v3415_v29 = vmax.f32 %v3397_v4, %v3399_v6  ;;  %v3398_v61 = vmax.f32 %v13871_v10, %v3374_v16  ;;  %v3377_v25 = vadd.f32 %v3289_v1, %v13860_v39  ;;  %v3379_v52 = vadd.f32 %v3352_v62, %v13862_v24  ;;  %v10462_v24 = vld [vmem:[%s17128_s3 + $0xc4] ss:$16 sps:$4 sm:$0xff]   ;;  %v10477_v6 = vld [vmem:[%s17128_s3 + $0x8c] ss:$16 sps:$4 sm:$0xff]  }
 0x2a5   :  { %v13961_v43 = vpack.c.bf16 %v3436_v37, %v3434_v60  ;;  %v3400_v50 = vmax.f32 %v13874_v41, %v3376_v32  ;;  %v3291_v3 = vpop.f32.mrf.mxu0  ;;  %v3354_v33 = vpop.f32.mrf.mxu1  ;;  %v3426_v10 = vadd.f32 %v3414_v13, %v17360_v40  ;;  %v3437_v20 = vmax.f32 %v3425_v35, 0.0  ;;  %v10466_v13 = vld [vmem:[%s17128_s3 + $0xa0] ss:$16 sps:$4 sm:$0xff]   ;;  %v10475_v35 = vld [vmem:[%s17128_s3 + $0x88] ss:$16 sps:$4 sm:$0xff]  }
 0x2a6   :  { %v3427_v39 = vadd.f32 %v3415_v29, %v17357_v59  ;;  %v3401_v27 = vmax.f32 %v17367_v15, %v3377_v25  ;;  %v3378_v41 = vadd.f32 %v3291_v3, %v13876_v54  ;;  %v3403_v26 = vmax.f32 %v17368_v11, %v3379_v52  ;;  %v10465_v54 = vld [vmem:[%s17128_s3 + $0xcc] ss:$16 sps:$4 sm:$0xff]   ;;  %v17373_v1 = vld [vmem:[#allocation16_spill] sm:$0xff]  ;;  %v10481_v25 = vld [vmem:[%s17128_s3 + $0x68] ss:$16 sps:$4 sm:$0xff]  }
 0x2a7   :  { %v3416_v44 = vmax.f32 %v3398_v61, %v3400_v50  ;;  %v3380_v7 = vadd.f32 %v3354_v33, %v13878_v19  ;;  %3932 = vmatprep.mubr.bf16.mxu0 %v13961_v43  ;;  %3985 = vmatprep.mubr.bf16.mxu1 %v13961_v43  ;;  %v3293_v36 = vpop.f32.mrf.mxu0  ;;  %v3356_v49 = vpop.f32.mrf.mxu1  ;;  %v3438_v60 = vmax.f32 %v3426_v10, 0.0  ;;  %v10480_v62 = vld [vmem:[%s17128_s3 + $0x64] ss:$16 sps:$4 sm:$0xff]   ;;  %v10483_v29 = vld [vmem:[%s17128_s3 + $0x6c] ss:$16 sps:$4 sm:$0xff]  }
 0x2a8   :  { %v3439_v45 = vmax.f32 %v3427_v39, 0.0  ;;  %v3402_v12 = vmax.f32 %v17369_v28, %v3378_v41  ;;  %v3381_v47 = vadd.f32 %v3293_v36, %v13892_v30  ;;  %v3383_v23 = vadd.f32 %v3356_v49, %v13894_v2  ;;  %3933 = vmatmul.mubr.bf16.vlgmr.msra.gmra.mxu0 %v13956_v14  ;;  %3986 = vmatmul.mubr.bf16.vlgmr.msra.gmra.mxu1 %v13956_v14  ;;  %v10463_v30 = vld [vmem:[%s17128_s3 + $0xc8] ss:$16 sps:$4 sm:$0xff]   ;;  %v10478_v61 = vld [vmem:[%s17128_s3 + $0x60] ss:$16 sps:$4 sm:$0xff]  }
 0x2a9   :  { %v3428_v19 = vadd.f32 %v3416_v44, %v17360_v40  ;;  %v3417_v63 = vmax.f32 %v3401_v27, %v3403_v26  ;;  %v3404_v51 = vmax.f32 %v17370_v57, %v3380_v7  ;;  %4327 = vmatpush1.bf16.msra.mxu0 %v10454_v34  ;;  %4380 = vmatpush1.bf16.msra.mxu1 %v10457_v55  ;;  %v10486_v50 = vld [vmem:[%s17128_s3 + $0x44] ss:$16 sps:$4 sm:$0xff]   ;;  %v10489_v52 = vld [vmem:[%s17128_s3 + $0x4c] ss:$16 sps:$4 sm:$0xff]   ;;  %v10484_v3 = vld [vmem:[%s17128_s3 + $0x40] ss:$16 sps:$4 sm:$0xff]  }
 0x2aa   :  { %v13998_v2 = vpack.c.bf16 %v3439_v45, %v3437_v20  ;;  %v3405_v31 = vmax.f32 %v17371_v38, %v3381_v47  ;;  %v3407_v42 = vmax.f32 %v17372_v53, %v3383_v23  ;;  %4328 = vmatprep.subr.bf16.mxu0 %v10462_v24  ;;  %4381 = vmatprep.subr.bf16.mxu1 %v10465_v54  ;;  %v10487_v33 = vld [vmem:[%s17128_s3 + $0x48] ss:$16 sps:$4 sm:$0xff]   ;;  %v10492_v34 = vld [vmem:[%s17128_s3 + $0x24] ss:$16 sps:$4 sm:$0xff]   ;;  %v10495_v55 = vld [vmem:[%s17128_s3 + $0x2c] ss:$16 sps:$4 sm:$0xff]  }
 0x2ab   :  { %v3440_v22 = vmax.f32 %v3428_v19, 0.0  ;;  %v14008_v9 = vmax.f32 %v3402_v12, %v3404_v51  ;;  %v3429_v5 = vadd.f32 %v3417_v63, %v17357_v59  ;;  %v10490_v10 = vld [vmem:[%s17128_s3 + $0x20] ss:$16 sps:$4 sm:$0xff]   ;;  %v10493_v39 = vld [vmem:[%s17128_s3 + $0x28] ss:$16 sps:$4 sm:$0xff]  }
 0x2ac   :  { %v3419_v17 = vmax.f32 %v3405_v31, %v3407_v42  ;;  %v10498_v15 = vld [vmem:[%s17128_s3 + $0x4] ss:$16 sps:$4 sm:$0xff]   ;;  %v10501_v27 = vld [vmem:[%s17128_s3 + $0xc] ss:$16 sps:$4 sm:$0xff]   ;;  %v10496_v41 = vld [vmem:[%s17128_s3] ss:$16 sps:$4 sm:$0xff]  }
 0x2ad   :  { %v14011_v0 = vpack.c.bf16 %v3440_v22, %v3438_v60  ;;  %4329 = vmatpush1.bf16.msra.mxu0 %v10460_v21  ;;  %4382 = vmatpush1.bf16.msra.mxu1 %v10463_v30  ;;  %v3441_v16 = vmax.f32 %v3429_v5, 0.0  ;;  %v10499_v24 = vld [vmem:[%s17128_s3 + $0x8] ss:$16 sps:$4 sm:$0xff]   ;;  %v10504_v20 = vld [vmem:[%s17128_s3 + $0x1e4] ss:$16 sps:$4 sm:$0xff]  }
 0x2ae   :  { %v3431_v4 = vadd.f32 %v3419_v17, %v17357_v59  ;;  %4330 = vmatprep.subr.bf16.mxu0 %v10468_v58  ;;  %4383 = vmatprep.subr.bf16.mxu1 %v10471_v8  ;;  %v10472_v59 = vld [vmem:[%s17128_s3 + $0x80] ss:$16 sps:$4 sm:$0xff]   ;;  %v10507_v44 = vld [vmem:[%s17128_s3 + $0x1ec] ss:$16 sps:$4 sm:$0xff]   ;;  %v10505_v26 = vld [vmem:[%s17128_s3 + $0x1e8] ss:$16 sps:$4 sm:$0xff]  }
 0x2af   :  { %3942 = vmatprep.mubr.bf16.mxu0 %v14011_v0  ;;  %3995 = vmatprep.mubr.bf16.mxu1 %v14011_v0  ;;  %v10502_v11 = vld [vmem:[%s17128_s3 + $0x1e0] ss:$16 sps:$4 sm:$0xff]   ;;  %v10510_v7 = vld [vmem:[%s17128_s3 + $0x1c4] ss:$16 sps:$4 sm:$0xff]   ;;  %v10513_v36 = vld [vmem:[%s17128_s3 + $0x1cc] ss:$16 sps:$4 sm:$0xff]  }
 0x2b0   :  { %v3443_v37 = vmax.f32 %v3431_v4, 0.0  ;;  %3943 = vmatmul.mubr.bf16.gmra.mxu0 %v13998_v2  ;;  %3996 = vmatmul.mubr.bf16.gmra.mxu1 %v13998_v2  ;;  %v10508_v49 = vld [vmem:[%s17128_s3 + $0x1c0] ss:$16 sps:$4 sm:$0xff]   ;;  %v10511_v54 = vld [vmem:[%s17128_s3 + $0x1c8] ss:$16 sps:$4 sm:$0xff]  }
 0x2b1   :  { %4331 = vmatpush1.bf16.msra.mxu0 %v10466_v13  ;;  %4384 = vmatpush1.bf16.msra.mxu1 %v10469_v46  ;;  %v10516_v45 = vld [vmem:[%s17128_s3 + $0x1a4] ss:$16 sps:$4 sm:$0xff]   ;;  %v10519_v28 = vld [vmem:[%s17128_s3 + $0x1ac] ss:$16 sps:$4 sm:$0xff]   ;;  %v10514_v12 = vld [vmem:[%s17128_s3 + $0x1a0] ss:$16 sps:$4 sm:$0xff]  }
 0x2b2   :  { %v14036_v32 = vpack.c.bf16 %v3443_v37, %v3441_v16  ;;  %4358 = vmatprep.mubr.bf16.mxu0 %v17373_v1  ;;  %4411 = vmatprep.mubr.bf16.mxu1 %v17373_v1  ;;  %v10517_v47 = vld [vmem:[%s17128_s3 + $0x1a8] ss:$16 sps:$4 sm:$0xff]   ;;  %v10522_v23 = vld [vmem:[%s17128_s3 + $0x184] ss:$16 sps:$4 sm:$0xff]   ;;  %v10525_v19 = vld [vmem:[%s17128_s3 + $0x18c] ss:$16 sps:$4 sm:$0xff]  }
 0x2b3   :  { %4332 = vmatprep.subr.bf16.mxu0 %v10474_v56  ;;  %4385 = vmatprep.subr.bf16.mxu1 %v10477_v6  ;;  %v10520_v63 = vld [vmem:[%s17128_s3 + $0x180] ss:$16 sps:$4 sm:$0xff]   ;;  %v10523_v57 = vld [vmem:[%s17128_s3 + $0x188] ss:$16 sps:$4 sm:$0xff]   ;;  %v10528_v51 = vld [vmem:[%s17128_s3 + $0x164] ss:$16 sps:$4 sm:$0xff]  }
 0x2b4   :  { %v10531_v21 = vld [vmem:[%s17128_s3 + $0x16c] ss:$16 sps:$4 sm:$0xff]   ;;  %v10526_v30 = vld [vmem:[%s17128_s3 + $0x160] ss:$16 sps:$4 sm:$0xff]   ;;  %v10529_v38 = vld [vmem:[%s17128_s3 + $0x168] ss:$16 sps:$4 sm:$0xff]  }
 0x2b5   :  { %4333 = vmatpush1.bf16.msra.mxu0 %v10472_v59  ;;  %4386 = vmatpush1.bf16.msra.mxu1 %v10475_v35  ;;  %v10534_v31 = vld [vmem:[%s17128_s3 + $0x144] ss:$16 sps:$4 sm:$0xff]   ;;  %v10537_v53 = vld [vmem:[%s17128_s3 + $0x14c] ss:$16 sps:$4 sm:$0xff]   ;;  %v10532_v42 = vld [vmem:[%s17128_s3 + $0x140] ss:$16 sps:$4 sm:$0xff]  }
 0x2b6   :  { %4334 = vmatprep.subr.bf16.mxu0 %v10480_v62  ;;  %4387 = vmatprep.subr.bf16.mxu1 %v10483_v29  ;;  %v10535_v58 = vld [vmem:[%s17128_s3 + $0x148] ss:$16 sps:$4 sm:$0xff]   ;;  %v10540_v8 = vld [vmem:[%s17128_s3 + $0x124] ss:$16 sps:$4 sm:$0xff]   ;;  %v10543_v60 = vld [vmem:[%s17128_s3 + $0x12c] ss:$16 sps:$4 sm:$0xff]  }
 0x2b7   :  { %v10538_v22 = vld [vmem:[%s17128_s3 + $0x120] ss:$16 sps:$4 sm:$0xff]   ;;  %v10541_v5 = vld [vmem:[%s17128_s3 + $0x128] ss:$16 sps:$4 sm:$0xff]   ;;  %v10546_v17 = vld [vmem:[%s17128_s3 + $0x104] ss:$16 sps:$4 sm:$0xff]  }
 0x2b8   :  { %v10549_v13 = vld [vmem:[%s17128_s3 + $0x10c] ss:$16 sps:$4 sm:$0xff]   ;;  %v10544_v46 = vld [vmem:[%s17128_s3 + $0x100] ss:$16 sps:$4 sm:$0xff]   ;;  %v10547_v4 = vld [vmem:[%s17128_s3 + $0x108] ss:$16 sps:$4 sm:$0xff]  }
 0x2b9   :  { %4335 = vmatpush1.bf16.msra.mxu0 %v10478_v61  ;;  %4388 = vmatpush1.bf16.msra.mxu1 %v10481_v25  ;;  %v10552_v56 = vld [vmem:[%s17128_s3 + $0x4e4] ss:$16 sps:$4 sm:$0xff]   ;;  %v10555_v6 = vld [vmem:[%s17128_s3 + $0x4ec] ss:$16 sps:$4 sm:$0xff]   ;;  %v10550_v16 = vld [vmem:[%s17128_s3 + $0x4e0] ss:$16 sps:$4 sm:$0xff]  }
 0x2ba   :  { %4336 = vmatprep.subr.bf16.mxu0 %v10486_v50  ;;  %4389 = vmatprep.subr.bf16.mxu1 %v10489_v52  ;;  %v10553_v37 = vld [vmem:[%s17128_s3 + $0x4e8] ss:$16 sps:$4 sm:$0xff]   ;;  %v10558_v59 = vld [vmem:[%s17128_s3 + $0x4c4] ss:$16 sps:$4 sm:$0xff]   ;;  %v10561_v35 = vld [vmem:[%s17128_s3 + $0x4cc] ss:$16 sps:$4 sm:$0xff]  }
 0x2bb   :  { %v17374_v62 = vld [vmem:[#allocation3_spill] sm:$0xff]  ;;  %v17375_v29 = vld [vmem:[#allocation17_spill] sm:$0xff]  ;;  %v10556_v61 = vld [vmem:[%s17128_s3 + $0x4c0] ss:$16 sps:$4 sm:$0xff]  }
 0x2bc   :  { %v10559_v25 = vld [vmem:[%s17128_s3 + $0x4c8] ss:$16 sps:$4 sm:$0xff]   ;;  %v10564_v50 = vld [vmem:[%s17128_s3 + $0x4a4] ss:$16 sps:$4 sm:$0xff]   ;;  %v10567_v52 = vld [vmem:[%s17128_s3 + $0x4ac] ss:$16 sps:$4 sm:$0xff]  }
 0x2bd   :  { %4337 = vmatpush1.bf16.msra.mxu0 %v10484_v3  ;;  %4390 = vmatpush1.bf16.msra.mxu1 %v10487_v33  ;;  %v4508_v3 = vrot.slane %v17375_v29, 4  ;;  %v10562_v33 = vld [vmem:[%s17128_s3 + $0x4a0] ss:$16 sps:$4 sm:$0xff]  }
 0x2be   :  { %4338 = vmatprep.subr.bf16.mxu0 %v10492_v34  ;;  %4391 = vmatprep.subr.bf16.mxu1 %v10495_v55  ;;  %v10565_v34 = vld [vmem:[%s17128_s3 + $0x4a8] ss:$16 sps:$4 sm:$0xff]   ;;  %v4507_v55 = vrot.slane %v17373_v1, 4  ;;  %v10568_v1 = vld [vmem:[%s17128_s3 + $0x480] ss:$16 sps:$4 sm:$0xff]  }
 0x2c1   :  { %4339 = vmatpush1.bf16.msra.mxu0 %v10490_v10  ;;  %4392 = vmatpush1.bf16.msra.mxu1 %v10493_v39  ;;  %v10570_v10 = vld [vmem:[%s17128_s3 + $0x484] ss:$16 sps:$4 sm:$0xff]   ;;  %v10573_v39 = vld [vmem:[%s17128_s3 + $0x48c] ss:$16 sps:$4 sm:$0xff]  }
 0x2c2   :  { %4340 = vmatprep.subr.bf16.mxu0 %v10498_v15  ;;  %4393 = vmatprep.subr.bf16.mxu1 %v10501_v27  ;;  %v17376_v15 = vld [vmem:[#allocation15_spill] sm:$0xff]  ;;  %v14237_v27 = vsel %vm4503_vm2, %v4507_v55, %v4508_v3 }
 0x2c3   :  { %v10645_v55 = vld [vmem:[%s17128_s3 + $0x50c] ss:$16 sps:$4 sm:$0xff]  }
 0x2c5   :  { %4341 = vmatpush1.bf16.msra.mxu0 %v10496_v41  ;;  %4394 = vmatpush1.bf16.msra.mxu1 %v10499_v24  ;;  %v10571_v41 = vld [vmem:[%s17128_s3 + $0x488] ss:$16 sps:$4 sm:$0xff]   ;;  %v10576_v24 = vld [vmem:[%s17128_s3 + $0x464] ss:$16 sps:$4 sm:$0xff]  }
 0x2c6   :  { %4342 = vmatprep.subr.bf16.mxu0 %v10504_v20  ;;  %4395 = vmatprep.subr.bf16.mxu1 %v10507_v44  ;;  %v10579_v20 = vld [vmem:[%s17128_s3 + $0x46c] ss:$16 sps:$4 sm:$0xff]   ;;  %v10574_v44 = vld [vmem:[%s17128_s3 + $0x460] ss:$16 sps:$4 sm:$0xff]  }
 0x2c9   :  { %4343 = vmatpush2.bf16.msra.mxu0 %v10502_v11  ;;  %4396 = vmatpush2.bf16.msra.mxu1 %v10505_v26  ;;  %v10577_v11 = vld [vmem:[%s17128_s3 + $0x468] ss:$16 sps:$4 sm:$0xff]   ;;  %v10582_v26 = vld [vmem:[%s17128_s3 + $0x444] ss:$16 sps:$4 sm:$0xff]  }
 0x2ca   :  { %4344 = vmatprep.subr.bf16.mxu0 %v10510_v7  ;;  %4397 = vmatprep.subr.bf16.mxu1 %v10513_v36  ;;  %v10585_v7 = vld [vmem:[%s17128_s3 + $0x44c] ss:$16 sps:$4 sm:$0xff]   ;;  %v10580_v36 = vld [vmem:[%s17128_s3 + $0x440] ss:$16 sps:$4 sm:$0xff]  }
 0x2cd   :  { %4345 = vmatpush2.bf16.msra.mxu0 %v10508_v49  ;;  %4398 = vmatpush2.bf16.msra.mxu1 %v10511_v54  ;;  %v10583_v49 = vld [vmem:[%s17128_s3 + $0x448] ss:$16 sps:$4 sm:$0xff]   ;;  %v10588_v54 = vld [vmem:[%s17128_s3 + $0x424] ss:$16 sps:$4 sm:$0xff]  }
 0x2ce   :  { %4346 = vmatprep.subr.bf16.mxu0 %v10516_v45  ;;  %4399 = vmatprep.subr.bf16.mxu1 %v10519_v28  ;;  %v10591_v45 = vld [vmem:[%s17128_s3 + $0x42c] ss:$16 sps:$4 sm:$0xff]   ;;  %v10586_v28 = vld [vmem:[%s17128_s3 + $0x420] ss:$16 sps:$4 sm:$0xff]  }
 0x2d1   :  { %4347 = vmatpush2.bf16.msra.mxu0 %v10514_v12  ;;  %4400 = vmatpush2.bf16.msra.mxu1 %v10517_v47  ;;  %v10589_v12 = vld [vmem:[%s17128_s3 + $0x428] ss:$16 sps:$4 sm:$0xff]   ;;  %v10594_v47 = vld [vmem:[%s17128_s3 + $0x404] ss:$16 sps:$4 sm:$0xff]  }
 0x2d2   :  { %4348 = vmatprep.subr.bf16.mxu0 %v10522_v23  ;;  %4401 = vmatprep.subr.bf16.mxu1 %v10525_v19  ;;  %v10597_v23 = vld [vmem:[%s17128_s3 + $0x40c] ss:$16 sps:$4 sm:$0xff]   ;;  %v10592_v19 = vld [vmem:[%s17128_s3 + $0x400] ss:$16 sps:$4 sm:$0xff]  }
 0x2d5   :  { %4349 = vmatpush2.bf16.msra.mxu0 %v10520_v63  ;;  %4402 = vmatpush2.bf16.msra.mxu1 %v10523_v57  ;;  %v10595_v63 = vld [vmem:[%s17128_s3 + $0x408] ss:$16 sps:$4 sm:$0xff]   ;;  %v10600_v57 = vld [vmem:[%s17128_s3 + $0x5e4] ss:$16 sps:$4 sm:$0xff]  }
 0x2d6   :  { %4350 = vmatprep.subr.bf16.mxu0 %v10528_v51  ;;  %4403 = vmatprep.subr.bf16.mxu1 %v10531_v21  ;;  %v10603_v51 = vld [vmem:[%s17128_s3 + $0x5ec] ss:$16 sps:$4 sm:$0xff]   ;;  %v10598_v21 = vld [vmem:[%s17128_s3 + $0x5e0] ss:$16 sps:$4 sm:$0xff]  }
 0x2d9   :  { %4351 = vmatpush2.bf16.msra.mxu0 %v10526_v30  ;;  %4404 = vmatpush2.bf16.msra.mxu1 %v10529_v38  ;;  %v10601_v30 = vld [vmem:[%s17128_s3 + $0x5e8] ss:$16 sps:$4 sm:$0xff]   ;;  %v10606_v38 = vld [vmem:[%s17128_s3 + $0x5c4] ss:$16 sps:$4 sm:$0xff]  }
 0x2da   :  { %4352 = vmatprep.subr.bf16.mxu0 %v10534_v31  ;;  %4405 = vmatprep.subr.bf16.mxu1 %v10537_v53  ;;  %v10609_v31 = vld [vmem:[%s17128_s3 + $0x5cc] ss:$16 sps:$4 sm:$0xff]   ;;  %v10604_v53 = vld [vmem:[%s17128_s3 + $0x5c0] ss:$16 sps:$4 sm:$0xff]  }
 0x2dd   :  { %4353 = vmatpush2.bf16.msra.mxu0 %v10532_v42  ;;  %4406 = vmatpush2.bf16.msra.mxu1 %v10535_v58  ;;  %v10607_v42 = vld [vmem:[%s17128_s3 + $0x5c8] ss:$16 sps:$4 sm:$0xff]   ;;  %v10612_v58 = vld [vmem:[%s17128_s3 + $0x5a4] ss:$16 sps:$4 sm:$0xff]  }
 0x2de   :  { %4354 = vmatprep.subr.bf16.mxu0 %v10540_v8  ;;  %4407 = vmatprep.subr.bf16.mxu1 %v10543_v60  ;;  %v10615_v8 = vld [vmem:[%s17128_s3 + $0x5ac] ss:$16 sps:$4 sm:$0xff]   ;;  %v10610_v60 = vld [vmem:[%s17128_s3 + $0x5a0] ss:$16 sps:$4 sm:$0xff]  }
 0x2e1   :  { %4355 = vmatpush2.bf16.msra.mxu0 %v10538_v22  ;;  %4408 = vmatpush2.bf16.msra.mxu1 %v10541_v5  ;;  %v10613_v22 = vld [vmem:[%s17128_s3 + $0x5a8] ss:$16 sps:$4 sm:$0xff]   ;;  %v10618_v5 = vld [vmem:[%s17128_s3 + $0x584] ss:$16 sps:$4 sm:$0xff]  }
 0x2e2   :  { %4356 = vmatprep.subr.bf16.mxu0 %v10546_v17  ;;  %4409 = vmatprep.subr.bf16.mxu1 %v10549_v13  ;;  %v10621_v17 = vld [vmem:[%s17128_s3 + $0x58c] ss:$16 sps:$4 sm:$0xff]   ;;  %v10616_v13 = vld [vmem:[%s17128_s3 + $0x580] ss:$16 sps:$4 sm:$0xff]  }
 0x2e5   :  { %4357 = vmatpush2.bf16.msra.mxu0 %v10544_v46  ;;  %4410 = vmatpush2.bf16.msra.mxu1 %v10547_v4  ;;  %v10619_v46 = vld [vmem:[%s17128_s3 + $0x588] ss:$16 sps:$4 sm:$0xff]   ;;  %v10624_v4 = vld [vmem:[%s17128_s3 + $0x564] ss:$16 sps:$4 sm:$0xff]  }
 0x2e6   :  { %4838 = vmatprep.subr.bf16.mxu0 %v10552_v56  ;;  %4891 = vmatprep.subr.bf16.mxu1 %v10555_v6  ;;  %v10627_v56 = vld [vmem:[%s17128_s3 + $0x56c] ss:$16 sps:$4 sm:$0xff]   ;;  %v10622_v6 = vld [vmem:[%s17128_s3 + $0x560] ss:$16 sps:$4 sm:$0xff]  }
 0x2e8   :  { %4359 = vmatmul.mubr.bf16.vlgmr.msra.gmra.mxu0 %v17374_v62  ;;  %4412 = vmatmul.mubr.bf16.vlgmr.msra.gmra.mxu1 %v17374_v62 }
 0x2e9   :  { %4368 = vmatprep.mubr.bf16.mxu0 %v17375_v29  ;;  %4421 = vmatprep.mubr.bf16.mxu1 %v17375_v29 }
 0x2ea   :  { %4839 = vmatpush1.bf16.msra.mxu0 %v10550_v16  ;;  %4892 = vmatpush1.bf16.msra.mxu1 %v10553_v37  ;;  %v10625_v16 = vld [vmem:[%s17128_s3 + $0x568] ss:$16 sps:$4 sm:$0xff]   ;;  %v10630_v37 = vld [vmem:[%s17128_s3 + $0x544] ss:$16 sps:$4 sm:$0xff]  }
 0x2eb   :  { %4840 = vmatprep.subr.bf16.mxu0 %v10558_v59  ;;  %4893 = vmatprep.subr.bf16.mxu1 %v10561_v35  ;;  %v10633_v59 = vld [vmem:[%s17128_s3 + $0x54c] ss:$16 sps:$4 sm:$0xff]   ;;  %v10628_v35 = vld [vmem:[%s17128_s3 + $0x540] ss:$16 sps:$4 sm:$0xff]  }
 0x2ee   :  { %4841 = vmatpush1.bf16.msra.mxu0 %v10556_v61  ;;  %4894 = vmatpush1.bf16.msra.mxu1 %v10559_v25  ;;  %v10631_v61 = vld [vmem:[%s17128_s3 + $0x548] ss:$16 sps:$4 sm:$0xff]   ;;  %v10636_v25 = vld [vmem:[%s17128_s3 + $0x524] ss:$16 sps:$4 sm:$0xff]  }
 0x2ef   :  { %4842 = vmatprep.subr.bf16.mxu0 %v10564_v50  ;;  %4895 = vmatprep.subr.bf16.mxu1 %v10567_v52  ;;  %v10639_v50 = vld [vmem:[%s17128_s3 + $0x52c] ss:$16 sps:$4 sm:$0xff]   ;;  %v10634_v52 = vld [vmem:[%s17128_s3 + $0x520] ss:$16 sps:$4 sm:$0xff]  }
 0x2f0   :  { %4369 = vmatmul.mubr.bf16.gmra.mxu0 %v17376_v15  ;;  %4422 = vmatmul.mubr.bf16.gmra.mxu1 %v17376_v15 }
 0x2f1   :  { %4870 = vmatprep.mubr.bf16.mxu0 %v14237_v27  ;;  %4923 = vmatprep.mubr.bf16.mxu1 %v14237_v27 }
 0x2f2   :  { %4843 = vmatpush1.bf16.msra.mxu0 %v10562_v33  ;;  %4896 = vmatpush1.bf16.msra.mxu1 %v10565_v34  ;;  %v10637_v33 = vld [vmem:[%s17128_s3 + $0x528] ss:$16 sps:$4 sm:$0xff]   ;;  %v10642_v34 = vld [vmem:[%s17128_s3 + $0x504] ss:$16 sps:$4 sm:$0xff]  }
 0x2f3   :  { %4844 = vmatprep.subr.bf16.mxu0 %v10570_v10  ;;  %4897 = vmatprep.subr.bf16.mxu1 %v10573_v39  ;;  %v10640_v10 = vld [vmem:[%s17128_s3 + $0x500] ss:$16 sps:$4 sm:$0xff]   ;;  %v10643_v39 = vld [vmem:[%s17128_s3 + $0x508] ss:$16 sps:$4 sm:$0xff]  }
 0x2f6   :  { %4845 = vmatpush1.bf16.msra.mxu0 %v10568_v1  ;;  %4898 = vmatpush1.bf16.msra.mxu1 %v10571_v41  ;;  %v10648_v1 = vld [vmem:[%s17128_s3 + $0x6e4] ss:$16 sps:$4 sm:$0xff]   ;;  %v10651_v41 = vld [vmem:[%s17128_s3 + $0x6ec] ss:$16 sps:$4 sm:$0xff]  }
 0x2f7   :  { %4846 = vmatprep.subr.bf16.mxu0 %v10576_v24  ;;  %4899 = vmatprep.subr.bf16.mxu1 %v10579_v20  ;;  %v4505_v24 = vrot.slane %v17376_v15, 4  ;;  %v17377_v20 = vld [vmem:[#allocation4_spill] sm:$0xff] }
 0x2fa   :  { %4847 = vmatpush1.bf16.msra.mxu0 %v10574_v44  ;;  %4900 = vmatpush1.bf16.msra.mxu1 %v10577_v11  ;;  %v4512_v44 = vrot.slane %v17377_v20, 4  ;;  %v4504_v11 = vrot.slane %v17374_v62, 4  ;;  %v10657_v62 = vld [vmem:[%s17128_s3 + $0x6cc] ss:$16 sps:$4 sm:$0xff]  }
 0x2fb   :  { %4848 = vmatprep.subr.bf16.mxu0 %v10582_v26  ;;  %4901 = vmatprep.subr.bf16.mxu1 %v10585_v7  ;;  %v10646_v26 = vld [vmem:[%s17128_s3 + $0x6e0] ss:$16 sps:$4 sm:$0xff]   ;;  %v10649_v7 = vld [vmem:[%s17128_s3 + $0x6e8] ss:$16 sps:$4 sm:$0xff]  }
 0x2fe   :  { %4849 = vmatpush1.bf16.msra.mxu0 %v10580_v36  ;;  %4902 = vmatpush1.bf16.msra.mxu1 %v10583_v49  ;;  %v14407_v36 = vsel %vm4503_vm2, %v4504_v11, %v4505_v24  ;;  %v10654_v49 = vld [vmem:[%s17128_s3 + $0x6c4] ss:$16 sps:$4 sm:$0xff]   ;;  %v17383_v11 = vld [vmem:[#allocation7_spill] sm:$0xff] }
 0x2ff   :  { %4850 = vmatprep.subr.bf16.mxu0 %v10588_v54  ;;  %4903 = vmatprep.subr.bf16.mxu1 %v10591_v45  ;;  %v14420_v54 = vsel %vm4503_vm2, %v4508_v3, %v4512_v44  ;;  %v10652_v45 = vld [vmem:[%s17128_s3 + $0x6c0] ss:$16 sps:$4 sm:$0xff]   ;;  %v10660_v3 = vld [vmem:[%s17128_s3 + $0x6a4] ss:$16 sps:$4 sm:$0xff]   ;;  %v10705_v44 = vld [vmem:[%s17128_s3 + $0x7cc] ss:$16 sps:$4 sm:$0xff]  }
 0x302   :  { %4851 = vmatpush1.bf16.msra.mxu0 %v10586_v28  ;;  %4904 = vmatpush1.bf16.msra.mxu1 %v10589_v12  ;;  %v10655_v28 = vld [vmem:[%s17128_s3 + $0x6c8] ss:$16 sps:$4 sm:$0xff]  }
 0x303   :  { %4852 = vmatprep.subr.bf16.mxu0 %v10594_v47  ;;  %4905 = vmatprep.subr.bf16.mxu1 %v10597_v23  ;;  %v17378_v12 = vld [vmem:[#allocation25_spill] sm:$0xff] }
 0x304   :  { %v4510_v47 = vrot.slane %v17378_v12, 4  ;;  %v10663_v23 = vld [vmem:[%s17128_s3 + $0x6ac] ss:$16 sps:$4 sm:$0xff]  }
 0x306   :  { %4853 = vmatpush1.bf16.msra.mxu0 %v10592_v19  ;;  %4906 = vmatpush1.bf16.msra.mxu1 %v10595_v63  ;;  %v5035_v19 = vrot.slane %v14011_v0, 4  ;;  %v10658_v63 = vld [vmem:[%s17128_s3 + $0x6a0] ss:$16 sps:$4 sm:$0xff]  }
 0x307   :  { %4854 = vmatprep.subr.bf16.mxu0 %v10600_v57  ;;  %4907 = vmatprep.subr.bf16.mxu1 %v10603_v51  ;;  %v10661_v57 = vld [vmem:[%s17128_s3 + $0x6a8] ss:$16 sps:$4 sm:$0xff]   ;;  %v5034_v51 = vrot.slane %v13961_v43, 4 }
 0x30a   :  { %4855 = vmatpush2.bf16.msra.mxu0 %v10598_v21  ;;  %4908 = vmatpush2.bf16.msra.mxu1 %v10601_v30  ;;  %v14446_v21 = vsel %vm4503_vm2, %v4505_v24, %v4510_v47  ;;  %v10666_v30 = vld [vmem:[%s17128_s3 + $0x684] ss:$16 sps:$4 sm:$0xff]  }
 0x30b   :  { %4856 = vmatprep.subr.bf16.mxu0 %v10606_v38  ;;  %4909 = vmatprep.subr.bf16.mxu1 %v10609_v31  ;;  %v10669_v38 = vld [vmem:[%s17128_s3 + $0x68c] ss:$16 sps:$4 sm:$0xff]   ;;  %v14459_v31 = vsel %vm4503_vm2, %v5034_v51, %v5035_v19  ;;  %v10702_v24 = vld [vmem:[%s17128_s3 + $0x7c4] ss:$16 sps:$4 sm:$0xff]   ;;  %v3295_v51 = vpop.f32.mrf.mxu0 }
 0x30e   :  { %4857 = vmatpush2.bf16.msra.mxu0 %v10604_v53  ;;  %4910 = vmatpush2.bf16.msra.mxu1 %v10607_v42  ;;  %v10664_v53 = vld [vmem:[%s17128_s3 + $0x680] ss:$16 sps:$4 sm:$0xff]   ;;  %v10667_v42 = vld [vmem:[%s17128_s3 + $0x688] ss:$16 sps:$4 sm:$0xff]  }
 0x30f   :  { %4858 = vmatprep.subr.bf16.mxu0 %v10612_v58  ;;  %4911 = vmatprep.subr.bf16.mxu1 %v10615_v8  ;;  %v10672_v58 = vld [vmem:[%s17128_s3 + $0x664] ss:$16 sps:$4 sm:$0xff]   ;;  %v10675_v8 = vld [vmem:[%s17128_s3 + $0x66c] ss:$16 sps:$4 sm:$0xff]  }
 0x312   :  { %4859 = vmatpush2.bf16.msra.mxu0 %v10610_v60  ;;  %4912 = vmatpush2.bf16.msra.mxu1 %v10613_v22  ;;  %v10670_v60 = vld [vmem:[%s17128_s3 + $0x660] ss:$16 sps:$4 sm:$0xff]   ;;  %v10673_v22 = vld [vmem:[%s17128_s3 + $0x668] ss:$16 sps:$4 sm:$0xff]  }
 0x313   :  { %4860 = vmatprep.subr.bf16.mxu0 %v10618_v5  ;;  %4913 = vmatprep.subr.bf16.mxu1 %v10621_v17  ;;  %v10678_v5 = vld [vmem:[%s17128_s3 + $0x644] ss:$16 sps:$4 sm:$0xff]   ;;  %v10681_v17 = vld [vmem:[%s17128_s3 + $0x64c] ss:$16 sps:$4 sm:$0xff]  }
 0x316   :  { %4861 = vmatpush2.bf16.msra.mxu0 %v10616_v13  ;;  %4914 = vmatpush2.bf16.msra.mxu1 %v10619_v46  ;;  %v10676_v13 = vld [vmem:[%s17128_s3 + $0x640] ss:$16 sps:$4 sm:$0xff]   ;;  %v10679_v46 = vld [vmem:[%s17128_s3 + $0x648] ss:$16 sps:$4 sm:$0xff]  }
 0x317   :  { %4862 = vmatprep.subr.bf16.mxu0 %v10624_v4  ;;  %4915 = vmatprep.subr.bf16.mxu1 %v10627_v56  ;;  %v10684_v4 = vld [vmem:[%s17128_s3 + $0x624] ss:$16 sps:$4 sm:$0xff]   ;;  %v10687_v56 = vld [vmem:[%s17128_s3 + $0x62c] ss:$16 sps:$4 sm:$0xff]  }
 0x31a   :  { %4863 = vmatpush2.bf16.msra.mxu0 %v10622_v6  ;;  %4916 = vmatpush2.bf16.msra.mxu1 %v10625_v16  ;;  %v10682_v6 = vld [vmem:[%s17128_s3 + $0x620] ss:$16 sps:$4 sm:$0xff]   ;;  %v10685_v16 = vld [vmem:[%s17128_s3 + $0x628] ss:$16 sps:$4 sm:$0xff]  }
 0x31b   :  { %4864 = vmatprep.subr.bf16.mxu0 %v10630_v37  ;;  %4917 = vmatprep.subr.bf16.mxu1 %v10633_v59  ;;  %v10690_v37 = vld [vmem:[%s17128_s3 + $0x604] ss:$16 sps:$4 sm:$0xff]   ;;  %v10693_v59 = vld [vmem:[%s17128_s3 + $0x60c] ss:$16 sps:$4 sm:$0xff]  }
 0x31e   :  { %4865 = vmatpush2.bf16.msra.mxu0 %v10628_v35  ;;  %4918 = vmatpush2.bf16.msra.mxu1 %v10631_v61  ;;  %v10688_v35 = vld [vmem:[%s17128_s3 + $0x600] ss:$16 sps:$4 sm:$0xff]   ;;  %v10691_v61 = vld [vmem:[%s17128_s3 + $0x608] ss:$16 sps:$4 sm:$0xff]  }
 0x31f   :  { %4866 = vmatprep.subr.bf16.mxu0 %v10636_v25  ;;  %4919 = vmatprep.subr.bf16.mxu1 %v10639_v50  ;;  %v10696_v25 = vld [vmem:[%s17128_s3 + $0x7e4] ss:$16 sps:$4 sm:$0xff]   ;;  %v10699_v50 = vld [vmem:[%s17128_s3 + $0x7ec] ss:$16 sps:$4 sm:$0xff]  }
 0x322   :  { %4867 = vmatpush2.bf16.msra.mxu0 %v10634_v52  ;;  %4920 = vmatpush2.bf16.msra.mxu1 %v10637_v33  ;;  %v10694_v52 = vld [vmem:[%s17128_s3 + $0x7e0] ss:$16 sps:$4 sm:$0xff]   ;;  %v10697_v33 = vld [vmem:[%s17128_s3 + $0x7e8] ss:$16 sps:$4 sm:$0xff]  }
 0x323   :  { %4868 = vmatprep.subr.bf16.mxu0 %v10642_v34  ;;  %4921 = vmatprep.subr.bf16.mxu1 %v10645_v55  ;;  %v17379_v34 = vld [vmem:[#allocation41_spill] sm:$0xff] }
 0x324   :  { %v17380_v55 = vld [vmem:[#allocation49_spill] sm:$0xff] }
 0x326   :  { %4869 = vmatpush2.bf16.msra.mxu0 %v10640_v10  ;;  %4922 = vmatpush2.bf16.msra.mxu1 %v10643_v39  ;;  %v2856_v10 = vadd.f32 %v17380_v55, %v17379_v34  ;;  %v17381_v39 = vld [vmem:[#allocation42_spill] sm:$0xff]  ;;  %v10715_v34 = vld [vmem:[%s17128_s3 + $0x788] ss:$16 sps:$4 sm:$0xff]  }
 0x327   :  { %5365 = vmatprep.subr.bf16.mxu0 %v10648_v1  ;;  %5418 = vmatprep.subr.bf16.mxu1 %v10651_v41  ;;  %v17382_v1 = vld [vmem:[#allocation50_spill] sm:$0xff] }
 0x328   :  { %v2919_v41 = vadd.f32 %v17382_v1, %v17381_v39  ;;  %v10720_v55 = vld [vmem:[%s17128_s3 + $0x764] ss:$16 sps:$4 sm:$0xff]   ;;  %v10718_v1 = vld [vmem:[%s17128_s3 + $0x760] ss:$16 sps:$4 sm:$0xff]  }
 0x329   :  { %4871 = vmatmul.mubr.bf16.vlgmr.msra.gmra.mxu0 %v14407_v36  ;;  %4924 = vmatmul.mubr.bf16.vlgmr.msra.gmra.mxu1 %v14407_v36 }
 0x32a   :  { %4880 = vmatprep.mubr.bf16.mxu0 %v14420_v54  ;;  %4933 = vmatprep.mubr.bf16.mxu1 %v14420_v54 }
 0x32b   :  { %5366 = vmatpush1.bf16.msra.mxu0 %v10646_v26  ;;  %5419 = vmatpush1.bf16.msra.mxu1 %v10649_v7  ;;  %v17384_v26 = vld [vmem:[#allocation9_spill] sm:$0xff] }
 0x32c   :  { %5367 = vmatprep.subr.bf16.mxu0 %v10654_v49  ;;  %5420 = vmatprep.subr.bf16.mxu1 %v10657_v62  ;;  %v2140_v7 = vadd.f32 %v17384_v26, %v17383_v11  ;;  %v17385_v49 = vld [vmem:[#allocation8_spill] sm:$0xff]  ;;  %v17386_v62 = vld [vmem:[#allocation10_spill] sm:$0xff] }
 0x32d   :  { %v10724_v26 = vld [vmem:[%s17128_s3 + $0x740] ss:$16 sps:$4 sm:$0xff]  }
 0x32f   :  { %5368 = vmatpush1.bf16.msra.mxu0 %v10652_v45  ;;  %5421 = vmatpush1.bf16.msra.mxu1 %v10655_v28  ;;  %v2203_v45 = vadd.f32 %v17386_v62, %v17385_v49  ;;  %v17387_v28 = vld [vmem:[#allocation61_spill] sm:$0xff]  ;;  %v3430_v49 = vadd.f32 %v14008_v9, %v17360_v40  ;;  %v10732_v62 = vld [vmem:[%s17128_s3 + $0x724] ss:$16 sps:$4 sm:$0xff]  }
 0x330   :  { %5369 = vmatprep.subr.bf16.mxu0 %v10660_v3  ;;  %5422 = vmatprep.subr.bf16.mxu1 %v10663_v23  ;;  %v3068_v47 = vadd.f32 %v17387_v28, %v2856_v10  ;;  %v17388_v3 = vld [vmem:[#allocation62_spill] sm:$0xff]  ;;  %v10723_v10 = vld [vmem:[%s17128_s3 + $0x76c] ss:$16 sps:$4 sm:$0xff]  }
 0x331   :  { %4881 = vmatmul.mubr.bf16.gmra.mxu0 %v14446_v21  ;;  %4934 = vmatmul.mubr.bf16.gmra.mxu1 %v14446_v21  ;;  %v3070_v23 = vadd.f32 %v17388_v3, %v2919_v41  ;;  %v10721_v41 = vld [vmem:[%s17128_s3 + $0x768] ss:$16 sps:$4 sm:$0xff]   ;;  %v3442_v9 = vmax.f32 %v3430_v49, 0.0  ;;  %v10738_v3 = vld [vmem:[%s17128_s3 + $0x704] ss:$16 sps:$4 sm:$0xff]  }
 0x332   :  { %5397 = vmatprep.mubr.bf16.mxu0 %v14459_v31  ;;  %5450 = vmatprep.mubr.bf16.mxu1 %v14459_v31  ;;  %v10787_v49 = vld [vmem:[%s17128_s3 + $0x808] ss:$16 sps:$4 sm:$0xff]  }
 0x333   :  { %5370 = vmatpush1.bf16.msra.mxu0 %v10658_v63  ;;  %5423 = vmatpush1.bf16.msra.mxu1 %v10661_v57  ;;  %v17389_v63 = vld [vmem:[#allocation11_spill] sm:$0xff] }
 0x334   :  { %5371 = vmatprep.subr.bf16.mxu0 %v10666_v30  ;;  %5424 = vmatprep.subr.bf16.mxu1 %v10669_v38  ;;  %v2352_v57 = vadd.f32 %v17389_v63, %v2140_v7  ;;  %v3358_v30 = vpop.f32.mrf.mxu1  ;;  %v10700_v38 = vld [vmem:[%s17128_s3 + $0x7c0] ss:$16 sps:$4 sm:$0xff]   ;;  %v10727_v7 = vld [vmem:[%s17128_s3 + $0x748] ss:$16 sps:$4 sm:$0xff]  }
 0x337   :  { %5372 = vmatpush1.bf16.msra.mxu0 %v10664_v53  ;;  %5425 = vmatpush1.bf16.msra.mxu1 %v10667_v42  ;;  %v10703_v53 = vld [vmem:[%s17128_s3 + $0x7c8] ss:$16 sps:$4 sm:$0xff]   ;;  %v17390_v42 = vld [vmem:[#allocation12_spill] sm:$0xff] }
 0x338   :  { %5373 = vmatprep.subr.bf16.mxu0 %v10672_v58  ;;  %5426 = vmatprep.subr.bf16.mxu1 %v10675_v8  ;;  %v2354_v58 = vadd.f32 %v17390_v42, %v2203_v45  ;;  %v3218_v8 = vadd.f32 %v13904_v48, %v3068_v47  ;;  %v10706_v48 = vld [vmem:[%s17128_s3 + $0x7a0] ss:$16 sps:$4 sm:$0xff]   ;;  %v10735_v45 = vld [vmem:[%s17128_s3 + $0x72c] ss:$16 sps:$4 sm:$0xff]  }
 0x339   :  { %v10730_v47 = vld [vmem:[%s17128_s3 + $0x720] ss:$16 sps:$4 sm:$0xff]  }
 0x33b   :  { %5374 = vmatpush1.bf16.msra.mxu0 %v10670_v60  ;;  %5427 = vmatpush1.bf16.msra.mxu1 %v10673_v22  ;;  %v3220_v60 = vadd.f32 %v13906_v18, %v3070_v23  ;;  %v10708_v22 = vld [vmem:[%s17128_s3 + $0x7a4] ss:$16 sps:$4 sm:$0xff]   ;;  %v10709_v18 = vld [vmem:[%s17128_s3 + $0x7a8] ss:$16 sps:$4 sm:$0xff]   ;;  %v10741_v23 = vld [vmem:[%s17128_s3 + $0x70c] ss:$16 sps:$4 sm:$0xff]  }
 0x33c   :  { %5375 = vmatprep.subr.bf16.mxu0 %v10678_v5  ;;  %5428 = vmatprep.subr.bf16.mxu1 %v10681_v17  ;;  %v10711_v5 = vld [vmem:[%s17128_s3 + $0x7ac] ss:$16 sps:$4 sm:$0xff]  }
 0x33d   :  { %v17391_v17 = vld [vmem:[#allocation13_spill] sm:$0xff] }
 0x33f   :  { %5376 = vmatpush1.bf16.msra.mxu0 %v10676_v13  ;;  %5429 = vmatpush1.bf16.msra.mxu1 %v10679_v46  ;;  %v2502_v13 = vadd.f32 %v17391_v17, %v2352_v57  ;;  %v17392_v46 = vld [vmem:[#allocation6_spill] sm:$0xff]  ;;  %v10753_v17 = vld [vmem:[%s17128_s3 + $0x8cc] ss:$16 sps:$4 sm:$0xff]  }
 0x340   :  { %5377 = vmatprep.subr.bf16.mxu0 %v10684_v4  ;;  %5430 = vmatprep.subr.bf16.mxu1 %v10687_v56  ;;  %v2504_v4 = vadd.f32 %v17392_v46, %v2354_v58  ;;  %v3382_v56 = vadd.f32 %v3295_v51, %v3218_v8  ;;  %v10736_v57 = vld [vmem:[%s17128_s3 + $0x700] ss:$16 sps:$4 sm:$0xff]   ;;  %v10739_v51 = vld [vmem:[%s17128_s3 + $0x708] ss:$16 sps:$4 sm:$0xff]   ;;  %v5031_v58 = vrot.slane %v13956_v14, 4 }
 0x341   :  { %v10742_v8 = vld [vmem:[%s17128_s3 + $0x8e0] ss:$16 sps:$4 sm:$0xff]  }
 0x342   :  { %v10748_v46 = vld [vmem:[%s17128_s3 + $0x8c0] ss:$16 sps:$4 sm:$0xff]  }
 0x343   :  { %5378 = vmatpush1.bf16.msra.mxu0 %v10682_v6  ;;  %5431 = vmatpush1.bf16.msra.mxu1 %v10685_v16  ;;  %v3384_v6 = vadd.f32 %v3358_v30, %v3220_v60  ;;  %v17393_v16 = vld [vmem:[#allocation39_spill] sm:$0xff]  ;;  %v10744_v30 = vld [vmem:[%s17128_s3 + $0x8e4] ss:$16 sps:$4 sm:$0xff]  }
 0x344   :  { %5379 = vmatprep.subr.bf16.mxu0 %v10690_v37  ;;  %5432 = vmatprep.subr.bf16.mxu1 %v10693_v59  ;;  %v2666_v37 = vadd.f32 %v17393_v16, %v2502_v13  ;;  %v17394_v59 = vld [vmem:[#allocation40_spill] sm:$0xff]  ;;  %v10745_v60 = vld [vmem:[%s17128_s3 + $0x8e8] ss:$16 sps:$4 sm:$0xff]  }
 0x347   :  { %5380 = vmatpush1.bf16.msra.mxu0 %v10688_v35  ;;  %5433 = vmatpush1.bf16.msra.mxu1 %v10691_v61  ;;  %v2668_v35 = vadd.f32 %v17394_v59, %v2504_v4  ;;  %v10714_v61 = vld [vmem:[%s17128_s3 + $0x784] ss:$16 sps:$4 sm:$0xff]   ;;  %v10751_v4 = vld [vmem:[%s17128_s3 + $0x8c8] ss:$16 sps:$4 sm:$0xff]   ;;  %v10765_v59 = vld [vmem:[%s17128_s3 + $0x88c] ss:$16 sps:$4 sm:$0xff]  }
 0x348   :  { %5381 = vmatprep.subr.bf16.mxu0 %v10696_v25  ;;  %5434 = vmatprep.subr.bf16.mxu1 %v10699_v50  ;;  %v10717_v25 = vld [vmem:[%s17128_s3 + $0x78c] ss:$16 sps:$4 sm:$0xff]   ;;  %v3406_v50 = vmax.f32 %v2666_v37, %v3382_v56  ;;  %v5037_v56 = vrot.slane %v14036_v32, 4  ;;  %v10762_v37 = vld [vmem:[%s17128_s3 + $0x884] ss:$16 sps:$4 sm:$0xff]  }
 0x34b   :  { %5382 = vmatpush2.bf16.msra.mxu0 %v10694_v52  ;;  %5435 = vmatpush2.bf16.msra.mxu1 %v10697_v33  ;;  %v3408_v52 = vmax.f32 %v2668_v35, %v3384_v6  ;;  %v10712_v33 = vld [vmem:[%s17128_s3 + $0x780] ss:$16 sps:$4 sm:$0xff]   ;;  %v10759_v6 = vld [vmem:[%s17128_s3 + $0x8ac] ss:$16 sps:$4 sm:$0xff]  }
 0x34c   :  { %5383 = vmatprep.subr.bf16.mxu0 %v10702_v24  ;;  %5436 = vmatprep.subr.bf16.mxu1 %v10705_v44  ;;  %v10726_v24 = vld [vmem:[%s17128_s3 + $0x744] ss:$16 sps:$4 sm:$0xff]   ;;  %v10729_v44 = vld [vmem:[%s17128_s3 + $0x74c] ss:$16 sps:$4 sm:$0xff]   ;;  %v10760_v35 = vld [vmem:[%s17128_s3 + $0x880] ss:$16 sps:$4 sm:$0xff]  }
 0x34d   :  { %v3420_v39 = vmax.f32 %v3406_v50, %v3408_v52  ;;  %v10771_v50 = vld [vmem:[%s17128_s3 + $0x86c] ss:$16 sps:$4 sm:$0xff]   ;;  %v10766_v52 = vld [vmem:[%s17128_s3 + $0x860] ss:$16 sps:$4 sm:$0xff]  }
 0x34f   :  { %5384 = vmatpush2.bf16.msra.mxu0 %v10700_v38  ;;  %5437 = vmatpush2.bf16.msra.mxu1 %v10703_v53  ;;  %v3432_v11 = vadd.f32 %v3420_v39, %v17360_v40  ;;  %v10733_v40 = vld [vmem:[%s17128_s3 + $0x728] ss:$16 sps:$4 sm:$0xff]   ;;  %v10747_v38 = vld [vmem:[%s17128_s3 + $0x8ec] ss:$16 sps:$4 sm:$0xff]   ;;  %v5032_v53 = vrot.slane %v13998_v2, 4 }
 0x350   :  { %5385 = vmatprep.subr.bf16.mxu0 %v10708_v22  ;;  %5438 = vmatprep.subr.bf16.mxu1 %v10711_v5  ;;  %v10750_v5 = vld [vmem:[%s17128_s3 + $0x8c4] ss:$16 sps:$4 sm:$0xff]   ;;  %v10775_v39 = vld [vmem:[%s17128_s3 + $0x848] ss:$16 sps:$4 sm:$0xff]  }
 0x351   :  { %v3444_v28 = vmax.f32 %v3432_v11, 0.0  ;;  %v14652_v22 = vsel %vm4503_vm2, %v5031_v58, %v5032_v53  ;;  %v14689_v16 = vsel %vm4503_vm2, %v5032_v53, %v5037_v56  ;;  %v10786_v11 = vld [vmem:[%s17128_s3 + $0x804] ss:$16 sps:$4 sm:$0xff]   ;;  %v10802_v58 = vld [vmem:[%s17128_s3 + $0x9a0] ss:$16 sps:$4 sm:$0xff]  }
 0x352   :  { %v10811_v56 = vld [vmem:[%s17128_s3 + $0x988] ss:$16 sps:$4 sm:$0xff]  }
 0x353   :  { %5386 = vmatpush2.bf16.msra.mxu0 %v10706_v48  ;;  %5439 = vmatpush2.bf16.msra.mxu1 %v10709_v18  ;;  %v14628_v63 = vpack.c.bf16 %v3444_v28, %v3442_v9  ;;  %v10754_v48 = vld [vmem:[%s17128_s3 + $0x8a0] ss:$16 sps:$4 sm:$0xff]   ;;  %v10757_v18 = vld [vmem:[%s17128_s3 + $0x8a8] ss:$16 sps:$4 sm:$0xff]   ;;  %v10801_v9 = vld [vmem:[%s17128_s3 + $0x9cc] ss:$16 sps:$4 sm:$0xff]  }
 0x354   :  { %5387 = vmatprep.subr.bf16.mxu0 %v10714_v61  ;;  %5440 = vmatprep.subr.bf16.mxu1 %v10717_v25  ;;  %v10763_v61 = vld [vmem:[%s17128_s3 + $0x888] ss:$16 sps:$4 sm:$0xff]   ;;  %v10768_v25 = vld [vmem:[%s17128_s3 + $0x864] ss:$16 sps:$4 sm:$0xff]   ;;  %v10790_v28 = vld [vmem:[%s17128_s3 + $0x9e0] ss:$16 sps:$4 sm:$0xff]  }
 0x355   :  { %v5039_v42 = vrot.slane %v14628_v63, 4 }
 0x357   :  { %5388 = vmatpush2.bf16.msra.mxu0 %v10712_v33  ;;  %5441 = vmatpush2.bf16.msra.mxu1 %v10715_v34  ;;  %v14665_v13 = vsel %vm4503_vm2, %v5035_v19, %v5039_v42  ;;  %v10756_v19 = vld [vmem:[%s17128_s3 + $0x8a4] ss:$16 sps:$4 sm:$0xff]   ;;  %v10769_v33 = vld [vmem:[%s17128_s3 + $0x868] ss:$16 sps:$4 sm:$0xff]  }
 0x358   :  { %5389 = vmatprep.subr.bf16.mxu0 %v10720_v55  ;;  %5442 = vmatprep.subr.bf16.mxu1 %v10723_v10  ;;  %v10774_v34 = vld [vmem:[%s17128_s3 + $0x844] ss:$16 sps:$4 sm:$0xff]   ;;  %v10777_v55 = vld [vmem:[%s17128_s3 + $0x84c] ss:$16 sps:$4 sm:$0xff]   ;;  %v10772_v10 = vld [vmem:[%s17128_s3 + $0x840] ss:$16 sps:$4 sm:$0xff]  }
 0x35b   :  { %5390 = vmatpush2.bf16.msra.mxu0 %v10718_v1  ;;  %5443 = vmatpush2.bf16.msra.mxu1 %v10721_v41  ;;  %v10780_v1 = vld [vmem:[%s17128_s3 + $0x824] ss:$16 sps:$4 sm:$0xff]   ;;  %v10783_v41 = vld [vmem:[%s17128_s3 + $0x82c] ss:$16 sps:$4 sm:$0xff]  }
 0x35c   :  { %5391 = vmatprep.subr.bf16.mxu0 %v10726_v24  ;;  %5444 = vmatprep.subr.bf16.mxu1 %v10729_v44  ;;  %v10778_v24 = vld [vmem:[%s17128_s3 + $0x820] ss:$16 sps:$4 sm:$0xff]   ;;  %v10781_v44 = vld [vmem:[%s17128_s3 + $0x828] ss:$16 sps:$4 sm:$0xff]  }
 0x35f   :  { %5392 = vmatpush2.bf16.msra.mxu0 %v10724_v26  ;;  %5445 = vmatpush2.bf16.msra.mxu1 %v10727_v7  ;;  %v10789_v26 = vld [vmem:[%s17128_s3 + $0x80c] ss:$16 sps:$4 sm:$0xff]   ;;  %v10784_v7 = vld [vmem:[%s17128_s3 + $0x800] ss:$16 sps:$4 sm:$0xff]  }
 0x360   :  { %5393 = vmatprep.subr.bf16.mxu0 %v10732_v62  ;;  %5446 = vmatprep.subr.bf16.mxu1 %v10735_v45  ;;  %v10792_v62 = vld [vmem:[%s17128_s3 + $0x9e4] ss:$16 sps:$4 sm:$0xff]   ;;  %v10795_v45 = vld [vmem:[%s17128_s3 + $0x9ec] ss:$16 sps:$4 sm:$0xff]  }
 0x363   :  { %5394 = vmatpush2.bf16.msra.mxu0 %v10730_v47  ;;  %5447 = vmatpush2.bf16.msra.mxu1 %v10733_v40  ;;  %v10793_v47 = vld [vmem:[%s17128_s3 + $0x9e8] ss:$16 sps:$4 sm:$0xff]   ;;  %v10798_v40 = vld [vmem:[%s17128_s3 + $0x9c4] ss:$16 sps:$4 sm:$0xff]  }
 0x364   :  { %5395 = vmatprep.subr.bf16.mxu0 %v10738_v3  ;;  %5448 = vmatprep.subr.bf16.mxu1 %v10741_v23 }
 0x367   :  { %5396 = vmatpush2.bf16.msra.mxu0 %v10736_v57  ;;  %5449 = vmatpush2.bf16.msra.mxu1 %v10739_v51  ;;  %v10796_v57 = vld [vmem:[%s17128_s3 + $0x9c0] ss:$16 sps:$4 sm:$0xff]   ;;  %v10799_v51 = vld [vmem:[%s17128_s3 + $0x9c8] ss:$16 sps:$4 sm:$0xff]  }
 0x368   :  { %5872 = vmatprep.subr.bf16.mxu0 %v10744_v30  ;;  %5925 = vmatprep.subr.bf16.mxu1 %v10747_v38  ;;  %v14773_v3 = vpop.f32.mrf.mxu0  ;;  %v14775_v23 = vpop.f32.mrf.mxu1  ;;  %v10804_v30 = vld [vmem:[%s17128_s3 + $0x9a4] ss:$16 sps:$4 sm:$0xff]   ;;  %v10807_v38 = vld [vmem:[%s17128_s3 + $0x9ac] ss:$16 sps:$4 sm:$0xff]  }
 0x36a   :  { %5398 = vmatmul.mubr.bf16.vlgmr.msra.gmra.mxu0 %v14652_v22  ;;  %5451 = vmatmul.mubr.bf16.vlgmr.msra.gmra.mxu1 %v14652_v22  ;;  %v14789_v53 = vpop.f32.mrf.mxu0  ;;  %v14791_v42 = vpop.f32.mrf.mxu1 }
 0x36b   :  { %5407 = vmatprep.mubr.bf16.mxu0 %v14665_v13  ;;  %5460 = vmatprep.mubr.bf16.mxu1 %v14665_v13 }
 0x36c   :  { %5873 = vmatpush1.bf16.msra.mxu0 %v10742_v8  ;;  %5926 = vmatpush1.bf16.msra.mxu1 %v10745_v60  ;;  %v10805_v8 = vld [vmem:[%s17128_s3 + $0x9a8] ss:$16 sps:$4 sm:$0xff]   ;;  %v10810_v60 = vld [vmem:[%s17128_s3 + $0x984] ss:$16 sps:$4 sm:$0xff]  }
 0x36d   :  { %5874 = vmatprep.subr.bf16.mxu0 %v10750_v5  ;;  %5927 = vmatprep.subr.bf16.mxu1 %v10753_v17  ;;  %v10813_v5 = vld [vmem:[%s17128_s3 + $0x98c] ss:$16 sps:$4 sm:$0xff]   ;;  %v14805_v17 = vpop.f32.mrf.mxu0 }
 0x370   :  { %5875 = vmatpush1.bf16.msra.mxu0 %v10748_v46  ;;  %5928 = vmatpush1.bf16.msra.mxu1 %v10751_v4  ;;  %v14807_v46 = vpop.f32.mrf.mxu1  ;;  %v10808_v4 = vld [vmem:[%s17128_s3 + $0x980] ss:$16 sps:$4 sm:$0xff]  }
 0x371   :  { %5876 = vmatprep.subr.bf16.mxu0 %v10756_v19  ;;  %5929 = vmatprep.subr.bf16.mxu1 %v10759_v6  ;;  %v10816_v19 = vld [vmem:[%s17128_s3 + $0x964] ss:$16 sps:$4 sm:$0xff]   ;;  %v10819_v6 = vld [vmem:[%s17128_s3 + $0x96c] ss:$16 sps:$4 sm:$0xff]  }
 0x372   :  { %5408 = vmatmul.mubr.bf16.gmra.mxu0 %v14689_v16  ;;  %5461 = vmatmul.mubr.bf16.gmra.mxu1 %v14689_v16 }
 0x373   :  { %5904 = vmatprep.mubr.bf16.mxu0 %v17375_v29  ;;  %5957 = vmatprep.mubr.bf16.mxu1 %v17375_v29 }
 0x374   :  { %5877 = vmatpush1.bf16.msra.mxu0 %v10754_v48  ;;  %5930 = vmatpush1.bf16.msra.mxu1 %v10757_v18  ;;  %v14821_v48 = vpop.f32.mrf.mxu0  ;;  %v14823_v18 = vpop.f32.mrf.mxu1 }
 0x375   :  { %5878 = vmatprep.subr.bf16.mxu0 %v10762_v37  ;;  %5931 = vmatprep.subr.bf16.mxu1 %v10765_v59  ;;  %v10814_v37 = vld [vmem:[%s17128_s3 + $0x960] ss:$16 sps:$4 sm:$0xff]   ;;  %v10817_v59 = vld [vmem:[%s17128_s3 + $0x968] ss:$16 sps:$4 sm:$0xff]  }
 0x378   :  { %5879 = vmatpush1.bf16.msra.mxu0 %v10760_v35  ;;  %5932 = vmatpush1.bf16.msra.mxu1 %v10763_v61  ;;  %v10822_v35 = vld [vmem:[%s17128_s3 + $0x944] ss:$16 sps:$4 sm:$0xff]   ;;  %v10825_v61 = vld [vmem:[%s17128_s3 + $0x94c] ss:$16 sps:$4 sm:$0xff]  }
 0x379   :  { %5880 = vmatprep.subr.bf16.mxu0 %v10768_v25  ;;  %5933 = vmatprep.subr.bf16.mxu1 %v10771_v50  ;;  %v14837_v25 = vpop.f32.mrf.mxu0  ;;  %v14839_v50 = vpop.f32.mrf.mxu1 }
 0x37c   :  { %5881 = vmatpush1.bf16.msra.mxu0 %v10766_v52  ;;  %5934 = vmatpush1.bf16.msra.mxu1 %v10769_v33  ;;  %v10820_v52 = vld [vmem:[%s17128_s3 + $0x940] ss:$16 sps:$4 sm:$0xff]   ;;  %v10823_v33 = vld [vmem:[%s17128_s3 + $0x948] ss:$16 sps:$4 sm:$0xff]  }
 0x37d   :  { %5882 = vmatprep.subr.bf16.mxu0 %v10774_v34  ;;  %5935 = vmatprep.subr.bf16.mxu1 %v10777_v55  ;;  %v10828_v34 = vld [vmem:[%s17128_s3 + $0x924] ss:$16 sps:$4 sm:$0xff]   ;;  %v10831_v55 = vld [vmem:[%s17128_s3 + $0x92c] ss:$16 sps:$4 sm:$0xff]  }
 0x380   :  { %5883 = vmatpush1.bf16.msra.mxu0 %v10772_v10  ;;  %5936 = vmatpush1.bf16.msra.mxu1 %v10775_v39  ;;  %v14853_v10 = vpop.f32.mrf.mxu0  ;;  %v14855_v39 = vpop.f32.mrf.mxu1 }
 0x381   :  { %5884 = vmatprep.subr.bf16.mxu0 %v10780_v1  ;;  %5937 = vmatprep.subr.bf16.mxu1 %v10783_v41  ;;  %v10826_v1 = vld [vmem:[%s17128_s3 + $0x920] ss:$16 sps:$4 sm:$0xff]   ;;  %v10829_v41 = vld [vmem:[%s17128_s3 + $0x928] ss:$16 sps:$4 sm:$0xff]  }
 0x384   :  { %5885 = vmatpush1.bf16.msra.mxu0 %v10778_v24  ;;  %5938 = vmatpush1.bf16.msra.mxu1 %v10781_v44  ;;  %v10834_v24 = vld [vmem:[%s17128_s3 + $0x904] ss:$16 sps:$4 sm:$0xff]   ;;  %v10837_v44 = vld [vmem:[%s17128_s3 + $0x90c] ss:$16 sps:$4 sm:$0xff]  }
 0x385   :  { %5886 = vmatprep.subr.bf16.mxu0 %v10786_v11  ;;  %5939 = vmatprep.subr.bf16.mxu1 %v10789_v26  ;;  %v14869_v11 = vpop.f32.mrf.mxu0  ;;  %v14871_v26 = vpop.f32.mrf.mxu1 }
 0x388   :  { %5887 = vmatpush1.bf16.msra.mxu0 %v10784_v7  ;;  %5940 = vmatpush1.bf16.msra.mxu1 %v10787_v49  ;;  %v14876_v7 = vld [vmem:[%s17128_s3 + $0x900] ss:$16 sps:$4 sm:$0xff]   ;;  %v14881_v49 = vld [vmem:[%s17128_s3 + $0x908] ss:$16 sps:$4 sm:$0xff]  }
 0x389   :  { %5888 = vmatprep.subr.bf16.mxu0 %v10792_v62  ;;  %5941 = vmatprep.subr.bf16.mxu1 %v10795_v45  ;;  %v14883_v62 = vpop.f32.mrf.mxu0  ;;  %v14885_v45 = vpop.f32.mrf.mxu1 }
 0x38c   :  { %5889 = vmatpush2.bf16.msra.mxu0 %v10790_v28  ;;  %5942 = vmatpush2.bf16.msra.mxu1 %v10793_v47 }
 0x38d   :  { %5890 = vmatprep.subr.bf16.mxu0 %v10798_v40  ;;  %5943 = vmatprep.subr.bf16.mxu1 %v10801_v9 }
 0x390   :  { %5891 = vmatpush2.bf16.msra.mxu0 %v10796_v57  ;;  %5944 = vmatpush2.bf16.msra.mxu1 %v10799_v51  ;;  %v11295_v57 = vld [vmem:[%s17128_s3 + $0x2e4] ss:$16 sps:$4 sm:$0xff]   ;;  %v11296_v51 = vld [vmem:[%s17128_s3 + $0x2ec] ss:$16 sps:$4 sm:$0xff]  }
 0x391   :  { %5892 = vmatprep.subr.bf16.mxu0 %v10804_v30  ;;  %5945 = vmatprep.subr.bf16.mxu1 %v10807_v38 }
 0x394   :  { %5893 = vmatpush2.bf16.msra.mxu0 %v10802_v58  ;;  %5946 = vmatpush2.bf16.msra.mxu1 %v10805_v8 }
 0x395   :  { %5894 = vmatprep.subr.bf16.mxu0 %v10810_v60  ;;  %5947 = vmatprep.subr.bf16.mxu1 %v10813_v5  ;;  %v11297_v60 = vld [vmem:[%s17128_s3 + $0x2e0] ss:$16 sps:$4 sm:$0xff]   ;;  %v11298_v5 = vld [vmem:[%s17128_s3 + $0x2e8] ss:$16 sps:$4 sm:$0xff]  }
 0x398   :  { %5895 = vmatpush2.bf16.msra.mxu0 %v10808_v4  ;;  %5948 = vmatpush2.bf16.msra.mxu1 %v10811_v56  ;;  %v11299_v4 = vld [vmem:[%s17128_s3 + $0x2c4] ss:$16 sps:$4 sm:$0xff]   ;;  %v11300_v56 = vld [vmem:[%s17128_s3 + $0x2cc] ss:$16 sps:$4 sm:$0xff]  }
 0x399   :  { %5896 = vmatprep.subr.bf16.mxu0 %v10816_v19  ;;  %5949 = vmatprep.subr.bf16.mxu1 %v10819_v6 }
 0x39c   :  { %5897 = vmatpush2.bf16.msra.mxu0 %v10814_v37  ;;  %5950 = vmatpush2.bf16.msra.mxu1 %v10817_v59 }
 0x39d   :  { %5898 = vmatprep.subr.bf16.mxu0 %v10822_v35  ;;  %5951 = vmatprep.subr.bf16.mxu1 %v10825_v61  ;;  %v11301_v35 = vld [vmem:[%s17128_s3 + $0x2c0] ss:$16 sps:$4 sm:$0xff]   ;;  %v11302_v61 = vld [vmem:[%s17128_s3 + $0x2c8] ss:$16 sps:$4 sm:$0xff]  }
 0x3a0   :  { %5899 = vmatpush2.bf16.msra.mxu0 %v10820_v52  ;;  %5952 = vmatpush2.bf16.msra.mxu1 %v10823_v33  ;;  %v11304_v33 = vld [vmem:[%s17128_s3 + $0x2ac] ss:$16 sps:$4 sm:$0xff]  }
 0x3a1   :  { %5900 = vmatprep.subr.bf16.mxu0 %v10828_v34  ;;  %5953 = vmatprep.subr.bf16.mxu1 %v10831_v55 }
 0x3a4   :  { %5901 = vmatpush2.bf16.msra.mxu0 %v10826_v1  ;;  %5954 = vmatpush2.bf16.msra.mxu1 %v10829_v41 }
 0x3a5   :  { %5902 = vmatprep.subr.bf16.mxu0 %v10834_v24  ;;  %5955 = vmatprep.subr.bf16.mxu1 %v10837_v44  ;;  %v11305_v24 = vld [vmem:[%s17128_s3 + $0x2a0] ss:$16 sps:$4 sm:$0xff]   ;;  %v11306_v44 = vld [vmem:[%s17128_s3 + $0x2a8] ss:$16 sps:$4 sm:$0xff]  }
 0x3a8   :  { %5903 = vmatpush2.bf16.msra.mxu0 %v14876_v7  ;;  %5956 = vmatpush2.bf16.msra.mxu1 %v14881_v49  ;;  %v4360_v28 = vpop.f32.mrf.mxu0  ;;  %v4413_v47 = vpop.f32.mrf.mxu1 }
 0x3a9   :  { %v14890_v40 = vadd.f32 %v4360_v28, %v14773_v3  ;;  %v14893_v9 = vadd.f32 %v4413_v47, %v14775_v23  ;;  %5994 = vmatprep.subr.bf16.mxu0 %v11295_v57  ;;  %6047 = vmatprep.subr.bf16.mxu1 %v11296_v51  ;;  %v11308_v28 = vld [vmem:[%s17128_s3 + $0x28c] ss:$16 sps:$4 sm:$0xff]  }
 0x3aa   :  { %v4362_v30 = vpop.f32.mrf.mxu0  ;;  %v4415_v38 = vpop.f32.mrf.mxu1 }
 0x3ab   :  { %5905 = vmatmul.mubr.bf16.vlgmr.msra.gmra.mxu0 %v17376_v15  ;;  %5958 = vmatmul.mubr.bf16.vlgmr.msra.gmra.mxu1 %v17376_v15  ;;  %v14904_v3 = vadd.f32 %v4362_v30, %v14789_v53  ;;  %v14907_v23 = vadd.f32 %v4415_v38, %v14791_v42  ;;  %v11310_v30 = vld [vmem:[%s17128_s3 + $0x288] ss:$16 sps:$4 sm:$0xff]   ;;  %v11311_v38 = vld [vmem:[%s17128_s3 + $0x264] ss:$16 sps:$4 sm:$0xff]  }
 0x3ac   :  { %5914 = vmatprep.mubr.bf16.mxu0 %v17377_v20  ;;  %5967 = vmatprep.mubr.bf16.mxu1 %v17377_v20  ;;  %v4364_v58 = vpop.f32.mrf.mxu0  ;;  %v4417_v8 = vpop.f32.mrf.mxu1 }
 0x3ad   :  { %5995 = vmatpush1.bf16.msra.mxu0 %v11297_v60  ;;  %6048 = vmatpush1.bf16.msra.mxu1 %v11298_v5  ;;  %v14918_v53 = vadd.f32 %v4364_v58, %v14805_v17  ;;  %v14921_v42 = vadd.f32 %v4417_v8, %v14807_v46  ;;  %v11314_v58 = vld [vmem:[%s17128_s3 + $0x268] ss:$16 sps:$4 sm:$0xff]   ;;  %v11315_v8 = vld [vmem:[%s17128_s3 + $0x244] ss:$16 sps:$4 sm:$0xff]   ;;  %v11316_v60 = vld [vmem:[%s17128_s3 + $0x24c] ss:$16 sps:$4 sm:$0xff]  }
 0x3ae   :  { %5996 = vmatprep.subr.bf16.mxu0 %v11299_v4  ;;  %6049 = vmatprep.subr.bf16.mxu1 %v11300_v56  ;;  %v4366_v19 = vpop.f32.mrf.mxu0  ;;  %v4419_v6 = vpop.f32.mrf.mxu1  ;;  %v11317_v5 = vld [vmem:[%s17128_s3 + $0x240] ss:$16 sps:$4 sm:$0xff]   ;;  %v11318_v4 = vld [vmem:[%s17128_s3 + $0x248] ss:$16 sps:$4 sm:$0xff]   ;;  %v11319_v56 = vld [vmem:[%s17128_s3 + $0x224] ss:$16 sps:$4 sm:$0xff]  }
 0x3af   :  { %v14930_v37 = vadd.f32 %v4366_v19, %v14821_v48  ;;  %v14933_v17 = vadd.f32 %v4419_v6, %v14823_v18  ;;  %v11303_v18 = vld [vmem:[%s17128_s3 + $0x2a4] ss:$16 sps:$4 sm:$0xff]   ;;  %v11320_v19 = vld [vmem:[%s17128_s3 + $0x22c] ss:$16 sps:$4 sm:$0xff]   ;;  %v11321_v6 = vld [vmem:[%s17128_s3 + $0x220] ss:$16 sps:$4 sm:$0xff]  }
 0x3b0   :  { %v4370_v46 = vpop.f32.mrf.mxu0  ;;  %v4423_v59 = vpop.f32.mrf.mxu1 }
 0x3b1   :  { %5997 = vmatpush1.bf16.msra.mxu0 %v11301_v35  ;;  %6050 = vmatpush1.bf16.msra.mxu1 %v11302_v61  ;;  %v14942_v52 = vadd.f32 %v4370_v46, %v14837_v25  ;;  %v14945_v48 = vadd.f32 %v4423_v59, %v14839_v50  ;;  %v11322_v46 = vld [vmem:[%s17128_s3 + $0x228] ss:$16 sps:$4 sm:$0xff]   ;;  %v11323_v59 = vld [vmem:[%s17128_s3 + $0x204] ss:$16 sps:$4 sm:$0xff]   ;;  %v11324_v35 = vld [vmem:[%s17128_s3 + $0x20c] ss:$16 sps:$4 sm:$0xff]  }
 0x3b2   :  { %5998 = vmatprep.subr.bf16.mxu0 %v11303_v18  ;;  %6051 = vmatprep.subr.bf16.mxu1 %v11304_v33  ;;  %v4372_v34 = vpop.f32.mrf.mxu0  ;;  %v4425_v55 = vpop.f32.mrf.mxu1  ;;  %v11325_v61 = vld [vmem:[%s17128_s3 + $0x200] ss:$16 sps:$4 sm:$0xff]   ;;  %v11326_v18 = vld [vmem:[%s17128_s3 + $0x208] ss:$16 sps:$4 sm:$0xff]   ;;  %v11327_v33 = vld [vmem:[%s17128_s3 + $0x3e4] ss:$16 sps:$4 sm:$0xff]  }
 0x3b3   :  { %5915 = vmatmul.mubr.bf16.gmra.mxu0 %v17378_v12  ;;  %5968 = vmatmul.mubr.bf16.gmra.mxu1 %v17378_v12  ;;  %v14956_v25 = vadd.f32 %v4372_v34, %v14853_v10  ;;  %v14959_v50 = vadd.f32 %v4425_v55, %v14855_v39  ;;  %v11328_v34 = vld [vmem:[%s17128_s3 + $0x3ec] ss:$16 sps:$4 sm:$0xff]   ;;  %v11329_v55 = vld [vmem:[%s17128_s3 + $0x3e0] ss:$16 sps:$4 sm:$0xff]  }
 0x3b4   :  { %6026 = vmatprep.mubr.bf16.mxu0 %v14237_v27  ;;  %6079 = vmatprep.mubr.bf16.mxu1 %v14237_v27  ;;  %v4374_v1 = vpop.f32.mrf.mxu0  ;;  %v4427_v41 = vpop.f32.mrf.mxu1  ;;  %v11307_v27 = vld [vmem:[%s17128_s3 + $0x284] ss:$16 sps:$4 sm:$0xff]  }
 0x3b5   :  { %5999 = vmatpush1.bf16.msra.mxu0 %v11305_v24  ;;  %6052 = vmatpush1.bf16.msra.mxu1 %v11306_v44  ;;  %v14970_v10 = vadd.f32 %v4374_v1, %v14869_v11  ;;  %v14973_v39 = vadd.f32 %v4427_v41, %v14871_v26  ;;  %v11309_v26 = vld [vmem:[%s17128_s3 + $0x280] ss:$16 sps:$4 sm:$0xff]   ;;  %v11330_v1 = vld [vmem:[%s17128_s3 + $0x3e8] ss:$16 sps:$4 sm:$0xff]   ;;  %v11331_v41 = vld [vmem:[%s17128_s3 + $0x3c4] ss:$16 sps:$4 sm:$0xff]  }
 0x3b6   :  { %6000 = vmatprep.subr.bf16.mxu0 %v11307_v27  ;;  %6053 = vmatprep.subr.bf16.mxu1 %v11308_v28  ;;  %v4376_v47 = vpop.f32.mrf.mxu0  ;;  %v4429_v57 = vpop.f32.mrf.mxu1  ;;  %v11332_v24 = vld [vmem:[%s17128_s3 + $0x3cc] ss:$16 sps:$4 sm:$0xff]   ;;  %v11333_v44 = vld [vmem:[%s17128_s3 + $0x3c0] ss:$16 sps:$4 sm:$0xff]   ;;  %v11334_v27 = vld [vmem:[%s17128_s3 + $0x3c8] ss:$16 sps:$4 sm:$0xff]  }
 0x3b7   :  { %v14982_v51 = vadd.f32 %v4376_v47, %v14883_v62  ;;  %v14985_v11 = vadd.f32 %v4429_v57, %v14885_v45  ;;  %v11312_v62 = vld [vmem:[%s17128_s3 + $0x26c] ss:$16 sps:$4 sm:$0xff]   ;;  %v11313_v45 = vld [vmem:[%s17128_s3 + $0x260] ss:$16 sps:$4 sm:$0xff]   ;;  %v11335_v28 = vld [vmem:[%s17128_s3 + $0x3a4] ss:$16 sps:$4 sm:$0xff]  }
 0x3b8   :  { %v11336_v47 = vld [vmem:[%s17128_s3 + $0x3ac] ss:$16 sps:$4 sm:$0xff]   ;;  %v11337_v57 = vld [vmem:[%s17128_s3 + $0x3a0] ss:$16 sps:$4 sm:$0xff]  }
 0x3b9   :  { %6001 = vmatpush1.bf16.msra.mxu0 %v11309_v26  ;;  %6054 = vmatpush1.bf16.msra.mxu1 %v11310_v30  ;;  %v11338_v26 = vld [vmem:[%s17128_s3 + $0x3a8] ss:$16 sps:$4 sm:$0xff]   ;;  %v11339_v30 = vld [vmem:[%s17128_s3 + $0x384] ss:$16 sps:$4 sm:$0xff]  }
 0x3ba   :  { %6002 = vmatprep.subr.bf16.mxu0 %v11311_v38  ;;  %6055 = vmatprep.subr.bf16.mxu1 %v11312_v62  ;;  %v11340_v38 = vld [vmem:[%s17128_s3 + $0x38c] ss:$16 sps:$4 sm:$0xff]   ;;  %v11341_v62 = vld [vmem:[%s17128_s3 + $0x380] ss:$16 sps:$4 sm:$0xff]  }
 0x3bd   :  { %6003 = vmatpush1.bf16.msra.mxu0 %v11313_v45  ;;  %6056 = vmatpush1.bf16.msra.mxu1 %v11314_v58  ;;  %v11342_v45 = vld [vmem:[%s17128_s3 + $0x388] ss:$16 sps:$4 sm:$0xff]   ;;  %v11343_v58 = vld [vmem:[%s17128_s3 + $0x364] ss:$16 sps:$4 sm:$0xff]  }
 0x3be   :  { %6004 = vmatprep.subr.bf16.mxu0 %v11315_v8  ;;  %6057 = vmatprep.subr.bf16.mxu1 %v11316_v60  ;;  %v11344_v8 = vld [vmem:[%s17128_s3 + $0x36c] ss:$16 sps:$4 sm:$0xff]   ;;  %v11345_v60 = vld [vmem:[%s17128_s3 + $0x360] ss:$16 sps:$4 sm:$0xff]  }
 0x3c1   :  { %6005 = vmatpush1.bf16.msra.mxu0 %v11317_v5  ;;  %6058 = vmatpush1.bf16.msra.mxu1 %v11318_v4  ;;  %v11346_v5 = vld [vmem:[%s17128_s3 + $0x368] ss:$16 sps:$4 sm:$0xff]   ;;  %v11347_v4 = vld [vmem:[%s17128_s3 + $0x344] ss:$16 sps:$4 sm:$0xff]  }
 0x3c2   :  { %6006 = vmatprep.subr.bf16.mxu0 %v11319_v56  ;;  %6059 = vmatprep.subr.bf16.mxu1 %v11320_v19  ;;  %v11348_v56 = vld [vmem:[%s17128_s3 + $0x34c] ss:$16 sps:$4 sm:$0xff]   ;;  %v11349_v19 = vld [vmem:[%s17128_s3 + $0x340] ss:$16 sps:$4 sm:$0xff]  }
 0x3c5   :  { %6007 = vmatpush1.bf16.msra.mxu0 %v11321_v6  ;;  %6060 = vmatpush1.bf16.msra.mxu1 %v11322_v46  ;;  %v11350_v6 = vld [vmem:[%s17128_s3 + $0x348] ss:$16 sps:$4 sm:$0xff]   ;;  %v11351_v46 = vld [vmem:[%s17128_s3 + $0x324] ss:$16 sps:$4 sm:$0xff]  }
 0x3c6   :  { %6008 = vmatprep.subr.bf16.mxu0 %v11323_v59  ;;  %6061 = vmatprep.subr.bf16.mxu1 %v11324_v35  ;;  %v11352_v59 = vld [vmem:[%s17128_s3 + $0x32c] ss:$16 sps:$4 sm:$0xff]   ;;  %v11353_v35 = vld [vmem:[%s17128_s3 + $0x320] ss:$16 sps:$4 sm:$0xff]  }
 0x3c9   :  { %6009 = vmatpush1.bf16.msra.mxu0 %v11325_v61  ;;  %6062 = vmatpush1.bf16.msra.mxu1 %v11326_v18  ;;  %v11354_v61 = vld [vmem:[%s17128_s3 + $0x328] ss:$16 sps:$4 sm:$0xff]   ;;  %v11355_v18 = vld [vmem:[%s17128_s3 + $0x304] ss:$16 sps:$4 sm:$0xff]  }
 0x3ca   :  { %6010 = vmatprep.subr.bf16.mxu0 %v11327_v33  ;;  %6063 = vmatprep.subr.bf16.mxu1 %v11328_v34  ;;  %v11356_v33 = vld [vmem:[%s17128_s3 + $0x30c] ss:$16 sps:$4 sm:$0xff]   ;;  %v11357_v34 = vld [vmem:[%s17128_s3 + $0x300] ss:$16 sps:$4 sm:$0xff]  }
 0x3cd   :  { %6011 = vmatpush2.bf16.msra.mxu0 %v11329_v55  ;;  %6064 = vmatpush2.bf16.msra.mxu1 %v11330_v1  ;;  %v11358_v55 = vld [vmem:[%s17128_s3 + $0x308] ss:$16 sps:$4 sm:$0xff]  }
 0x3ce   :  { %6012 = vmatprep.subr.bf16.mxu0 %v11331_v41  ;;  %6065 = vmatprep.subr.bf16.mxu1 %v11332_v24 }
 0x3d1   :  { %6013 = vmatpush2.bf16.msra.mxu0 %v11333_v44  ;;  %6066 = vmatpush2.bf16.msra.mxu1 %v11334_v27  ;;  %v11359_v27 = vld [vmem:[%s17128_s3 + $0xe4] ss:$16 sps:$4 sm:$0xff]  }
 0x3d2   :  { %6014 = vmatprep.subr.bf16.mxu0 %v11335_v28  ;;  %6067 = vmatprep.subr.bf16.mxu1 %v11336_v47  ;;  %v11360_v28 = vld [vmem:[%s17128_s3 + $0xec] ss:$16 sps:$4 sm:$0xff]  }
 0x3d5   :  { %6015 = vmatpush2.bf16.msra.mxu0 %v11337_v57  ;;  %6068 = vmatpush2.bf16.msra.mxu1 %v11338_v26 }
 0x3d6   :  { %6016 = vmatprep.subr.bf16.mxu0 %v11339_v30  ;;  %6069 = vmatprep.subr.bf16.mxu1 %v11340_v38  ;;  %v11361_v38 = vld [vmem:[%s17128_s3 + $0xe0] ss:$16 sps:$4 sm:$0xff]  }
 0x3d9   :  { %6017 = vmatpush2.bf16.msra.mxu0 %v11341_v62  ;;  %6070 = vmatpush2.bf16.msra.mxu1 %v11342_v45  ;;  %v11364_v62 = vld [vmem:[%s17128_s3 + $0xcc] ss:$16 sps:$4 sm:$0xff]  }
 0x3da   :  { %6018 = vmatprep.subr.bf16.mxu0 %v11343_v58  ;;  %6071 = vmatprep.subr.bf16.mxu1 %v11344_v8 }
 0x3dd   :  { %6019 = vmatpush2.bf16.msra.mxu0 %v11345_v60  ;;  %6072 = vmatpush2.bf16.msra.mxu1 %v11346_v5  ;;  %v11365_v5 = vld [vmem:[%s17128_s3 + $0xc0] ss:$16 sps:$4 sm:$0xff]  }
 0x3de   :  { %6020 = vmatprep.subr.bf16.mxu0 %v11347_v4  ;;  %6073 = vmatprep.subr.bf16.mxu1 %v11348_v56  ;;  %v11366_v4 = vld [vmem:[%s17128_s3 + $0xc8] ss:$16 sps:$4 sm:$0xff]  }
 0x3e1   :  { %6021 = vmatpush2.bf16.msra.mxu0 %v11349_v19  ;;  %6074 = vmatpush2.bf16.msra.mxu1 %v11350_v6  ;;  %v11368_v19 = vld [vmem:[%s17128_s3 + $0xac] ss:$16 sps:$4 sm:$0xff]  }
 0x3e2   :  { %6022 = vmatprep.subr.bf16.mxu0 %v11351_v46  ;;  %6075 = vmatprep.subr.bf16.mxu1 %v11352_v59 }
 0x3e5   :  { %6023 = vmatpush2.bf16.msra.mxu0 %v11353_v35  ;;  %6076 = vmatpush2.bf16.msra.mxu1 %v11354_v61  ;;  %v11369_v61 = vld [vmem:[%s17128_s3 + $0xa0] ss:$16 sps:$4 sm:$0xff]  }
 0x3e6   :  { %6024 = vmatprep.subr.bf16.mxu0 %v11355_v18  ;;  %6077 = vmatprep.subr.bf16.mxu1 %v11356_v33  ;;  %v11372_v18 = vld [vmem:[%s17128_s3 + $0x8c] ss:$16 sps:$4 sm:$0xff]  }
 0x3e9   :  { %6025 = vmatpush2.bf16.msra.mxu0 %v11357_v34  ;;  %6078 = vmatpush2.bf16.msra.mxu1 %v11358_v55  ;;  %v4872_v1 = vpop.f32.mrf.mxu0  ;;  %v4925_v41 = vpop.f32.mrf.mxu1 }
 0x3ea   :  { %v15138_v24 = vadd.f32 %v4872_v1, %v14890_v40  ;;  %v15141_v44 = vadd.f32 %v4925_v41, %v14893_v9  ;;  %6100 = vmatprep.subr.bf16.mxu0 %v11359_v27  ;;  %6153 = vmatprep.subr.bf16.mxu1 %v11360_v28  ;;  %v11374_v1 = vld [vmem:[%s17128_s3 + $0x88] ss:$16 sps:$4 sm:$0xff]   ;;  %v11375_v41 = vld [vmem:[%s17128_s3 + $0x64] ss:$16 sps:$4 sm:$0xff]  }
 0x3eb   :  { %v4874_v47 = vpop.f32.mrf.mxu0  ;;  %v4927_v57 = vpop.f32.mrf.mxu1  ;;  %v11378_v27 = vld [vmem:[%s17128_s3 + $0x68] ss:$16 sps:$4 sm:$0xff]   ;;  %v11379_v28 = vld [vmem:[%s17128_s3 + $0x44] ss:$16 sps:$4 sm:$0xff]  }
 0x3ec   :  { %6027 = vmatmul.mubr.bf16.vlgmr.msra.gmra.mxu0 %v14407_v36  ;;  %6080 = vmatmul.mubr.bf16.vlgmr.msra.gmra.mxu1 %v14407_v36  ;;  %v15152_v40 = vadd.f32 %v4874_v47, %v14904_v3  ;;  %v15155_v9 = vadd.f32 %v4927_v57, %v14907_v23  ;;  %v11362_v36 = vld [vmem:[%s17128_s3 + $0xe8] ss:$16 sps:$4 sm:$0xff]   ;;  %v11380_v47 = vld [vmem:[%s17128_s3 + $0x4c] ss:$16 sps:$4 sm:$0xff]   ;;  %v11381_v57 = vld [vmem:[%s17128_s3 + $0x40] ss:$16 sps:$4 sm:$0xff]  }
 0x3ed   :  { %6036 = vmatprep.mubr.bf16.mxu0 %v14420_v54  ;;  %6089 = vmatprep.mubr.bf16.mxu1 %v14420_v54  ;;  %v4876_v26 = vpop.f32.mrf.mxu0  ;;  %v4929_v30 = vpop.f32.mrf.mxu1  ;;  %v11363_v54 = vld [vmem:[%s17128_s3 + $0xc4] ss:$16 sps:$4 sm:$0xff]  }
 0x3ee   :  { %6101 = vmatpush1.bf16.msra.mxu0 %v11361_v38  ;;  %6154 = vmatpush1.bf16.msra.mxu1 %v11362_v36  ;;  %v15166_v3 = vadd.f32 %v4876_v26, %v14918_v53  ;;  %v15169_v23 = vadd.f32 %v4929_v30, %v14921_v42  ;;  %v11382_v26 = vld [vmem:[%s17128_s3 + $0x48] ss:$16 sps:$4 sm:$0xff]   ;;  %v11383_v30 = vld [vmem:[%s17128_s3 + $0x24] ss:$16 sps:$4 sm:$0xff]   ;;  %v11384_v38 = vld [vmem:[%s17128_s3 + $0x2c] ss:$16 sps:$4 sm:$0xff]  }
 0x3ef   :  { %6102 = vmatprep.subr.bf16.mxu0 %v11363_v54  ;;  %6155 = vmatprep.subr.bf16.mxu1 %v11364_v62  ;;  %v4878_v45 = vpop.f32.mrf.mxu0  ;;  %v4931_v58 = vpop.f32.mrf.mxu1  ;;  %v11385_v36 = vld [vmem:[%s17128_s3 + $0x20] ss:$16 sps:$4 sm:$0xff]   ;;  %v11386_v54 = vld [vmem:[%s17128_s3 + $0x28] ss:$16 sps:$4 sm:$0xff]   ;;  %v11387_v62 = vld [vmem:[%s17128_s3 + $0x4] ss:$16 sps:$4 sm:$0xff]  }
 0x3f0   :  { %v15178_v8 = vadd.f32 %v4878_v45, %v14930_v37  ;;  %v15181_v53 = vadd.f32 %v4931_v58, %v14933_v17  ;;  %v11367_v17 = vld [vmem:[%s17128_s3 + $0xa4] ss:$16 sps:$4 sm:$0xff]   ;;  %v11388_v45 = vld [vmem:[%s17128_s3 + $0xc] ss:$16 sps:$4 sm:$0xff]   ;;  %v11389_v58 = vld [vmem:[%s17128_s3] ss:$16 sps:$4 sm:$0xff]  }
 0x3f1   :  { %v4882_v42 = vpop.f32.mrf.mxu0  ;;  %v4935_v60 = vpop.f32.mrf.mxu1 }
 0x3f2   :  { %6103 = vmatpush1.bf16.msra.mxu0 %v11365_v5  ;;  %6156 = vmatpush1.bf16.msra.mxu1 %v11366_v4  ;;  %v15190_v56 = vadd.f32 %v4882_v42, %v14942_v52  ;;  %v15193_v37 = vadd.f32 %v4935_v60, %v14945_v48  ;;  %v11390_v42 = vld [vmem:[%s17128_s3 + $0x8] ss:$16 sps:$4 sm:$0xff]   ;;  %v11391_v60 = vld [vmem:[%s17128_s3 + $0x1e4] ss:$16 sps:$4 sm:$0xff]   ;;  %v11392_v5 = vld [vmem:[%s17128_s3 + $0x1ec] ss:$16 sps:$4 sm:$0xff]  }
 0x3f3   :  { %6104 = vmatprep.subr.bf16.mxu0 %v11367_v17  ;;  %6157 = vmatprep.subr.bf16.mxu1 %v11368_v19  ;;  %v4884_v6 = vpop.f32.mrf.mxu0  ;;  %v4937_v46 = vpop.f32.mrf.mxu1  ;;  %v11393_v4 = vld [vmem:[%s17128_s3 + $0x1e0] ss:$16 sps:$4 sm:$0xff]   ;;  %v11394_v17 = vld [vmem:[%s17128_s3 + $0x1e8] ss:$16 sps:$4 sm:$0xff]   ;;  %v11395_v19 = vld [vmem:[%s17128_s3 + $0x1c4] ss:$16 sps:$4 sm:$0xff]  }
 0x3f4   :  { %6037 = vmatmul.mubr.bf16.gmra.mxu0 %v14446_v21  ;;  %6090 = vmatmul.mubr.bf16.gmra.mxu1 %v14446_v21  ;;  %v15204_v52 = vadd.f32 %v4884_v6, %v14956_v25  ;;  %v15207_v48 = vadd.f32 %v4937_v46, %v14959_v50  ;;  %v11370_v21 = vld [vmem:[%s17128_s3 + $0xa8] ss:$16 sps:$4 sm:$0xff]   ;;  %v11396_v6 = vld [vmem:[%s17128_s3 + $0x1cc] ss:$16 sps:$4 sm:$0xff]   ;;  %v11397_v46 = vld [vmem:[%s17128_s3 + $0x1c0] ss:$16 sps:$4 sm:$0xff]  }
 0x3f5   :  { %6132 = vmatprep.mubr.bf16.mxu0 %v13961_v43  ;;  %6185 = vmatprep.mubr.bf16.mxu1 %v13961_v43  ;;  %v4886_v59 = vpop.f32.mrf.mxu0  ;;  %v4939_v35 = vpop.f32.mrf.mxu1  ;;  %v11371_v43 = vld [vmem:[%s17128_s3 + $0x84] ss:$16 sps:$4 sm:$0xff]  }
 0x3f6   :  { %6105 = vmatpush1.bf16.msra.mxu0 %v11369_v61  ;;  %6158 = vmatpush1.bf16.msra.mxu1 %v11370_v21  ;;  %v15218_v25 = vadd.f32 %v4886_v59, %v14970_v10  ;;  %v15221_v50 = vadd.f32 %v4939_v35, %v14973_v39  ;;  %v11373_v39 = vld [vmem:[%s17128_s3 + $0x80] ss:$16 sps:$4 sm:$0xff]   ;;  %v11398_v59 = vld [vmem:[%s17128_s3 + $0x1c8] ss:$16 sps:$4 sm:$0xff]   ;;  %v11399_v35 = vld [vmem:[%s17128_s3 + $0x1a4] ss:$16 sps:$4 sm:$0xff]  }
 0x3f7   :  { %6106 = vmatprep.subr.bf16.mxu0 %v11371_v43  ;;  %6159 = vmatprep.subr.bf16.mxu1 %v11372_v18  ;;  %v4888_v33 = vpop.f32.mrf.mxu0  ;;  %v4941_v34 = vpop.f32.mrf.mxu1  ;;  %v11400_v61 = vld [vmem:[%s17128_s3 + $0x1ac] ss:$16 sps:$4 sm:$0xff]   ;;  %v11401_v21 = vld [vmem:[%s17128_s3 + $0x1a0] ss:$16 sps:$4 sm:$0xff]   ;;  %v11402_v43 = vld [vmem:[%s17128_s3 + $0x1a8] ss:$16 sps:$4 sm:$0xff]  }
 0x3f8   :  { %v15230_v55 = vadd.f32 %v4888_v33, %v14982_v51  ;;  %v15233_v10 = vadd.f32 %v4941_v34, %v14985_v11  ;;  %v11376_v51 = vld [vmem:[%s17128_s3 + $0x6c] ss:$16 sps:$4 sm:$0xff]   ;;  %v11377_v11 = vld [vmem:[%s17128_s3 + $0x60] ss:$16 sps:$4 sm:$0xff]   ;;  %v11403_v18 = vld [vmem:[%s17128_s3 + $0x184] ss:$16 sps:$4 sm:$0xff]  }
 0x3f9   :  { %v11404_v33 = vld [vmem:[%s17128_s3 + $0x18c] ss:$16 sps:$4 sm:$0xff]   ;;  %v11405_v34 = vld [vmem:[%s17128_s3 + $0x180] ss:$16 sps:$4 sm:$0xff]  }
 0x3fa   :  { %6107 = vmatpush1.bf16.msra.mxu0 %v11373_v39  ;;  %6160 = vmatpush1.bf16.msra.mxu1 %v11374_v1  ;;  %v11406_v39 = vld [vmem:[%s17128_s3 + $0x188] ss:$16 sps:$4 sm:$0xff]   ;;  %v11407_v1 = vld [vmem:[%s17128_s3 + $0x164] ss:$16 sps:$4 sm:$0xff]  }
 0x3fb   :  { %6108 = vmatprep.subr.bf16.mxu0 %v11375_v41  ;;  %6161 = vmatprep.subr.bf16.mxu1 %v11376_v51  ;;  %v11408_v41 = vld [vmem:[%s17128_s3 + $0x16c] ss:$16 sps:$4 sm:$0xff]   ;;  %v11409_v51 = vld [vmem:[%s17128_s3 + $0x160] ss:$16 sps:$4 sm:$0xff]  }
 0x3fe   :  { %6109 = vmatpush1.bf16.msra.mxu0 %v11377_v11  ;;  %6162 = vmatpush1.bf16.msra.mxu1 %v11378_v27  ;;  %v11410_v11 = vld [vmem:[%s17128_s3 + $0x168] ss:$16 sps:$4 sm:$0xff]   ;;  %v11411_v27 = vld [vmem:[%s17128_s3 + $0x144] ss:$16 sps:$4 sm:$0xff]  }
 0x3ff   :  { %6110 = vmatprep.subr.bf16.mxu0 %v11379_v28  ;;  %6163 = vmatprep.subr.bf16.mxu1 %v11380_v47  ;;  %v11412_v28 = vld [vmem:[%s17128_s3 + $0x14c] ss:$16 sps:$4 sm:$0xff]   ;;  %v11413_v47 = vld [vmem:[%s17128_s3 + $0x140] ss:$16 sps:$4 sm:$0xff]  }
 0x402   :  { %6111 = vmatpush1.bf16.msra.mxu0 %v11381_v57  ;;  %6164 = vmatpush1.bf16.msra.mxu1 %v11382_v26  ;;  %v11414_v57 = vld [vmem:[%s17128_s3 + $0x148] ss:$16 sps:$4 sm:$0xff]   ;;  %v11415_v26 = vld [vmem:[%s17128_s3 + $0x124] ss:$16 sps:$4 sm:$0xff]  }
 0x403   :  { %6112 = vmatprep.subr.bf16.mxu0 %v11383_v30  ;;  %6165 = vmatprep.subr.bf16.mxu1 %v11384_v38  ;;  %v11416_v30 = vld [vmem:[%s17128_s3 + $0x12c] ss:$16 sps:$4 sm:$0xff]   ;;  %v11417_v38 = vld [vmem:[%s17128_s3 + $0x120] ss:$16 sps:$4 sm:$0xff]  }
 0x406   :  { %6113 = vmatpush1.bf16.msra.mxu0 %v11385_v36  ;;  %6166 = vmatpush1.bf16.msra.mxu1 %v11386_v54  ;;  %v11418_v36 = vld [vmem:[%s17128_s3 + $0x128] ss:$16 sps:$4 sm:$0xff]   ;;  %v11419_v54 = vld [vmem:[%s17128_s3 + $0x104] ss:$16 sps:$4 sm:$0xff]  }
 0x407   :  { %6114 = vmatprep.subr.bf16.mxu0 %v11387_v62  ;;  %6167 = vmatprep.subr.bf16.mxu1 %v11388_v45  ;;  %v11420_v62 = vld [vmem:[%s17128_s3 + $0x10c] ss:$16 sps:$4 sm:$0xff]   ;;  %v11421_v45 = vld [vmem:[%s17128_s3 + $0x100] ss:$16 sps:$4 sm:$0xff]  }
 0x40a   :  { %6115 = vmatpush1.bf16.msra.mxu0 %v11389_v58  ;;  %6168 = vmatpush1.bf16.msra.mxu1 %v11390_v42  ;;  %v11422_v58 = vld [vmem:[%s17128_s3 + $0x108] ss:$16 sps:$4 sm:$0xff]  }
 0x40b   :  { %6116 = vmatprep.subr.bf16.mxu0 %v11391_v60  ;;  %6169 = vmatprep.subr.bf16.mxu1 %v11392_v5 }
 0x40e   :  { %6117 = vmatpush2.bf16.msra.mxu0 %v11393_v4  ;;  %6170 = vmatpush2.bf16.msra.mxu1 %v11394_v17  ;;  %v11423_v17 = vld [vmem:[%s17128_s3 + $0x4e4] ss:$16 sps:$4 sm:$0xff]  }
 0x40f   :  { %6118 = vmatprep.subr.bf16.mxu0 %v11395_v19  ;;  %6171 = vmatprep.subr.bf16.mxu1 %v11396_v6  ;;  %v11424_v19 = vld [vmem:[%s17128_s3 + $0x4ec] ss:$16 sps:$4 sm:$0xff]  }
 0x412   :  { %6119 = vmatpush2.bf16.msra.mxu0 %v11397_v46  ;;  %6172 = vmatpush2.bf16.msra.mxu1 %v11398_v59 }
 0x413   :  { %6120 = vmatprep.subr.bf16.mxu0 %v11399_v35  ;;  %6173 = vmatprep.subr.bf16.mxu1 %v11400_v61  ;;  %v11425_v61 = vld [vmem:[%s17128_s3 + $0x4e0] ss:$16 sps:$4 sm:$0xff]  }
 0x416   :  { %6121 = vmatpush2.bf16.msra.mxu0 %v11401_v21  ;;  %6174 = vmatpush2.bf16.msra.mxu1 %v11402_v43  ;;  %v11427_v21 = vld [vmem:[%s17128_s3 + $0x4c4] ss:$16 sps:$4 sm:$0xff]   ;;  %v11428_v43 = vld [vmem:[%s17128_s3 + $0x4cc] ss:$16 sps:$4 sm:$0xff]  }
 0x417   :  { %6122 = vmatprep.subr.bf16.mxu0 %v11403_v18  ;;  %6175 = vmatprep.subr.bf16.mxu1 %v11404_v33 }
 0x41a   :  { %6123 = vmatpush2.bf16.msra.mxu0 %v11405_v34  ;;  %6176 = vmatpush2.bf16.msra.mxu1 %v11406_v39 }
 0x41b   :  { %6124 = vmatprep.subr.bf16.mxu0 %v11407_v1  ;;  %6177 = vmatprep.subr.bf16.mxu1 %v11408_v41  ;;  %v11429_v1 = vld [vmem:[%s17128_s3 + $0x4c0] ss:$16 sps:$4 sm:$0xff]   ;;  %v11430_v41 = vld [vmem:[%s17128_s3 + $0x4c8] ss:$16 sps:$4 sm:$0xff]  }
 0x41e   :  { %6125 = vmatpush2.bf16.msra.mxu0 %v11409_v51  ;;  %6178 = vmatpush2.bf16.msra.mxu1 %v11410_v11  ;;  %v11432_v11 = vld [vmem:[%s17128_s3 + $0x4ac] ss:$16 sps:$4 sm:$0xff]  }
 0x41f   :  { %6126 = vmatprep.subr.bf16.mxu0 %v11411_v27  ;;  %6179 = vmatprep.subr.bf16.mxu1 %v11412_v28 }
 0x422   :  { %6127 = vmatpush2.bf16.msra.mxu0 %v11413_v47  ;;  %6180 = vmatpush2.bf16.msra.mxu1 %v11414_v57 }
 0x423   :  { %6128 = vmatprep.subr.bf16.mxu0 %v11415_v26  ;;  %6181 = vmatprep.subr.bf16.mxu1 %v11416_v30  ;;  %v11433_v26 = vld [vmem:[%s17128_s3 + $0x4a0] ss:$16 sps:$4 sm:$0xff]   ;;  %v11434_v30 = vld [vmem:[%s17128_s3 + $0x4a8] ss:$16 sps:$4 sm:$0xff]  }
 0x426   :  { %6129 = vmatpush2.bf16.msra.mxu0 %v11417_v38  ;;  %6182 = vmatpush2.bf16.msra.mxu1 %v11418_v36  ;;  %v11436_v38 = vld [vmem:[%s17128_s3 + $0x48c] ss:$16 sps:$4 sm:$0xff]  }
 0x427   :  { %6130 = vmatprep.subr.bf16.mxu0 %v11419_v54  ;;  %6183 = vmatprep.subr.bf16.mxu1 %v11420_v62 }
 0x42a   :  { %6131 = vmatpush2.bf16.msra.mxu0 %v11421_v45  ;;  %6184 = vmatpush2.bf16.msra.mxu1 %v11422_v58  ;;  %v5399_v42 = vpop.f32.mrf.mxu0  ;;  %v5452_v60 = vpop.f32.mrf.mxu1  ;;  %v11438_v45 = vld [vmem:[%s17128_s3 + $0x488] ss:$16 sps:$4 sm:$0xff]   ;;  %v11439_v58 = vld [vmem:[%s17128_s3 + $0x464] ss:$16 sps:$4 sm:$0xff]  }
 0x42b   :  { %v15386_v5 = vadd.f32 %v5399_v42, %v15138_v24  ;;  %v15389_v4 = vadd.f32 %v5452_v60, %v15141_v44  ;;  %6206 = vmatprep.subr.bf16.mxu0 %v11423_v17  ;;  %6259 = vmatprep.subr.bf16.mxu1 %v11424_v19  ;;  %v11442_v42 = vld [vmem:[%s17128_s3 + $0x468] ss:$16 sps:$4 sm:$0xff]   ;;  %v11443_v60 = vld [vmem:[%s17128_s3 + $0x444] ss:$16 sps:$4 sm:$0xff]   ;;  %v11444_v17 = vld [vmem:[%s17128_s3 + $0x44c] ss:$16 sps:$4 sm:$0xff]  }
 0x42c   :  { %v5401_v6 = vpop.f32.mrf.mxu0  ;;  %v5454_v46 = vpop.f32.mrf.mxu1  ;;  %v11445_v19 = vld [vmem:[%s17128_s3 + $0x440] ss:$16 sps:$4 sm:$0xff]  }
 0x42d   :  { %6133 = vmatmul.mubr.bf16.vlgmr.msra.gmra.mxu0 %v13956_v14  ;;  %6186 = vmatmul.mubr.bf16.vlgmr.msra.gmra.mxu1 %v13956_v14  ;;  %v15400_v24 = vadd.f32 %v5401_v6, %v15152_v40  ;;  %v15403_v44 = vadd.f32 %v5454_v46, %v15155_v9  ;;  %v11426_v14 = vld [vmem:[%s17128_s3 + $0x4e8] ss:$16 sps:$4 sm:$0xff]   ;;  %v11447_v46 = vld [vmem:[%s17128_s3 + $0x424] ss:$16 sps:$4 sm:$0xff]  }
 0x42e   :  { %6142 = vmatprep.mubr.bf16.mxu0 %v14011_v0  ;;  %6195 = vmatprep.mubr.bf16.mxu1 %v14011_v0  ;;  %v5403_v59 = vpop.f32.mrf.mxu0  ;;  %v5456_v35 = vpop.f32.mrf.mxu1  ;;  %v11446_v6 = vld [vmem:[%s17128_s3 + $0x448] ss:$16 sps:$4 sm:$0xff]  }
 0x42f   :  { %6207 = vmatpush1.bf16.msra.mxu0 %v11425_v61  ;;  %6260 = vmatpush1.bf16.msra.mxu1 %v11426_v14  ;;  %v15414_v40 = vadd.f32 %v5403_v59, %v15166_v3  ;;  %v15417_v9 = vadd.f32 %v5456_v35, %v15169_v23  ;;  %v11448_v59 = vld [vmem:[%s17128_s3 + $0x42c] ss:$16 sps:$4 sm:$0xff]   ;;  %v11449_v35 = vld [vmem:[%s17128_s3 + $0x420] ss:$16 sps:$4 sm:$0xff]   ;;  %v11450_v61 = vld [vmem:[%s17128_s3 + $0x428] ss:$16 sps:$4 sm:$0xff]  }
 0x430   :  { %6208 = vmatprep.subr.bf16.mxu0 %v11427_v21  ;;  %6261 = vmatprep.subr.bf16.mxu1 %v11428_v43  ;;  %v5405_v18 = vpop.f32.mrf.mxu0  ;;  %v5458_v33 = vpop.f32.mrf.mxu1  ;;  %v11451_v14 = vld [vmem:[%s17128_s3 + $0x404] ss:$16 sps:$4 sm:$0xff]   ;;  %v11452_v21 = vld [vmem:[%s17128_s3 + $0x40c] ss:$16 sps:$4 sm:$0xff]   ;;  %v11453_v43 = vld [vmem:[%s17128_s3 + $0x400] ss:$16 sps:$4 sm:$0xff]  }
 0x431   :  { %v15426_v34 = vadd.f32 %v5405_v18, %v15178_v8  ;;  %v15429_v3 = vadd.f32 %v5458_v33, %v15181_v53  ;;  %v11431_v53 = vld [vmem:[%s17128_s3 + $0x4a4] ss:$16 sps:$4 sm:$0xff]   ;;  %v11454_v18 = vld [vmem:[%s17128_s3 + $0x408] ss:$16 sps:$4 sm:$0xff]  }
 0x432   :  { %v5409_v23 = vpop.f32.mrf.mxu0  ;;  %v5462_v39 = vpop.f32.mrf.mxu1  ;;  %v11455_v33 = vld [vmem:[%s17128_s3 + $0x5e4] ss:$16 sps:$4 sm:$0xff]  }
 0x433   :  { %6209 = vmatpush1.bf16.msra.mxu0 %v11429_v1  ;;  %6262 = vmatpush1.bf16.msra.mxu1 %v11430_v41  ;;  %v15438_v51 = vadd.f32 %v5409_v23, %v15190_v56  ;;  %v15441_v8 = vadd.f32 %v5462_v39, %v15193_v37  ;;  %v11456_v23 = vld [vmem:[%s17128_s3 + $0x5ec] ss:$16 sps:$4 sm:$0xff]   ;;  %v11457_v39 = vld [vmem:[%s17128_s3 + $0x5e0] ss:$16 sps:$4 sm:$0xff]   ;;  %v11458_v1 = vld [vmem:[%s17128_s3 + $0x5e8] ss:$16 sps:$4 sm:$0xff]  }
 0x434   :  { %6210 = vmatprep.subr.bf16.mxu0 %v11431_v53  ;;  %6263 = vmatprep.subr.bf16.mxu1 %v11432_v11  ;;  %v5411_v27 = vpop.f32.mrf.mxu0  ;;  %v5464_v28 = vpop.f32.mrf.mxu1  ;;  %v11459_v41 = vld [vmem:[%s17128_s3 + $0x5c4] ss:$16 sps:$4 sm:$0xff]   ;;  %v11460_v53 = vld [vmem:[%s17128_s3 + $0x5cc] ss:$16 sps:$4 sm:$0xff]   ;;  %v11461_v11 = vld [vmem:[%s17128_s3 + $0x5c0] ss:$16 sps:$4 sm:$0xff]  }
 0x435   :  { %6143 = vmatmul.mubr.bf16.gmra.mxu0 %v13998_v2  ;;  %6196 = vmatmul.mubr.bf16.gmra.mxu1 %v13998_v2  ;;  %v15452_v56 = vadd.f32 %v5411_v27, %v15204_v52  ;;  %v15455_v37 = vadd.f32 %v5464_v28, %v15207_v48  ;;  %v11462_v27 = vld [vmem:[%s17128_s3 + $0x5c8] ss:$16 sps:$4 sm:$0xff]   ;;  %v11463_v28 = vld [vmem:[%s17128_s3 + $0x5a4] ss:$16 sps:$4 sm:$0xff]  }
 0x436   :  { %6238 = vmatprep.mubr.bf16.mxu0 %v14459_v31  ;;  %6291 = vmatprep.mubr.bf16.mxu1 %v14459_v31  ;;  %v5413_v47 = vpop.f32.mrf.mxu0  ;;  %v5466_v57 = vpop.f32.mrf.mxu1  ;;  %v11435_v31 = vld [vmem:[%s17128_s3 + $0x484] ss:$16 sps:$4 sm:$0xff]  }
 0x437   :  { %6211 = vmatpush1.bf16.msra.mxu0 %v11433_v26  ;;  %6264 = vmatpush1.bf16.msra.mxu1 %v11434_v30  ;;  %v15466_v52 = vadd.f32 %v5413_v47, %v15218_v25  ;;  %v15469_v48 = vadd.f32 %v5466_v57, %v15221_v50  ;;  %v11437_v50 = vld [vmem:[%s17128_s3 + $0x480] ss:$16 sps:$4 sm:$0xff]   ;;  %v11464_v47 = vld [vmem:[%s17128_s3 + $0x5ac] ss:$16 sps:$4 sm:$0xff]   ;;  %v11466_v26 = vld [vmem:[%s17128_s3 + $0x5a8] ss:$16 sps:$4 sm:$0xff]  }
 0x438   :  { %6212 = vmatprep.subr.bf16.mxu0 %v11435_v31  ;;  %6265 = vmatprep.subr.bf16.mxu1 %v11436_v38  ;;  %v5415_v36 = vpop.f32.mrf.mxu0  ;;  %v5468_v54 = vpop.f32.mrf.mxu1  ;;  %v11465_v57 = vld [vmem:[%s17128_s3 + $0x5a0] ss:$16 sps:$4 sm:$0xff]   ;;  %v11467_v30 = vld [vmem:[%s17128_s3 + $0x584] ss:$16 sps:$4 sm:$0xff]   ;;  %v11468_v31 = vld [vmem:[%s17128_s3 + $0x58c] ss:$16 sps:$4 sm:$0xff]  }
 0x439   :  { %v15478_v62 = vadd.f32 %v5415_v36, %v15230_v55  ;;  %v15481_v25 = vadd.f32 %v5468_v54, %v15233_v10  ;;  %v11440_v55 = vld [vmem:[%s17128_s3 + $0x46c] ss:$16 sps:$4 sm:$0xff]   ;;  %v11441_v10 = vld [vmem:[%s17128_s3 + $0x460] ss:$16 sps:$4 sm:$0xff]   ;;  %v11470_v36 = vld [vmem:[%s17128_s3 + $0x588] ss:$16 sps:$4 sm:$0xff]  }
 0x43a   :  { %v11469_v38 = vld [vmem:[%s17128_s3 + $0x580] ss:$16 sps:$4 sm:$0xff]   ;;  %v11471_v54 = vld [vmem:[%s17128_s3 + $0x564] ss:$16 sps:$4 sm:$0xff]  }
 0x43b   :  { %6213 = vmatpush1.bf16.msra.mxu0 %v11437_v50  ;;  %6266 = vmatpush1.bf16.msra.mxu1 %v11438_v45  ;;  %v11472_v50 = vld [vmem:[%s17128_s3 + $0x56c] ss:$16 sps:$4 sm:$0xff]   ;;  %v11473_v45 = vld [vmem:[%s17128_s3 + $0x560] ss:$16 sps:$4 sm:$0xff]  }
 0x43c   :  { %6214 = vmatprep.subr.bf16.mxu0 %v11439_v58  ;;  %6267 = vmatprep.subr.bf16.mxu1 %v11440_v55  ;;  %v11474_v58 = vld [vmem:[%s17128_s3 + $0x568] ss:$16 sps:$4 sm:$0xff]   ;;  %v11475_v55 = vld [vmem:[%s17128_s3 + $0x544] ss:$16 sps:$4 sm:$0xff]  }
 0x43f   :  { %6215 = vmatpush1.bf16.msra.mxu0 %v11441_v10  ;;  %6268 = vmatpush1.bf16.msra.mxu1 %v11442_v42  ;;  %v11476_v10 = vld [vmem:[%s17128_s3 + $0x54c] ss:$16 sps:$4 sm:$0xff]   ;;  %v11477_v42 = vld [vmem:[%s17128_s3 + $0x540] ss:$16 sps:$4 sm:$0xff]  }
 0x440   :  { %6216 = vmatprep.subr.bf16.mxu0 %v11443_v60  ;;  %6269 = vmatprep.subr.bf16.mxu1 %v11444_v17  ;;  %v11478_v60 = vld [vmem:[%s17128_s3 + $0x548] ss:$16 sps:$4 sm:$0xff]   ;;  %v11479_v17 = vld [vmem:[%s17128_s3 + $0x524] ss:$16 sps:$4 sm:$0xff]  }
 0x443   :  { %6217 = vmatpush1.bf16.msra.mxu0 %v11445_v19  ;;  %6270 = vmatpush1.bf16.msra.mxu1 %v11446_v6  ;;  %v11480_v19 = vld [vmem:[%s17128_s3 + $0x52c] ss:$16 sps:$4 sm:$0xff]   ;;  %v11481_v6 = vld [vmem:[%s17128_s3 + $0x520] ss:$16 sps:$4 sm:$0xff]  }
 0x444   :  { %6218 = vmatprep.subr.bf16.mxu0 %v11447_v46  ;;  %6271 = vmatprep.subr.bf16.mxu1 %v11448_v59  ;;  %v11482_v46 = vld [vmem:[%s17128_s3 + $0x528] ss:$16 sps:$4 sm:$0xff]   ;;  %v11483_v59 = vld [vmem:[%s17128_s3 + $0x504] ss:$16 sps:$4 sm:$0xff]  }
 0x447   :  { %6219 = vmatpush1.bf16.msra.mxu0 %v11449_v35  ;;  %6272 = vmatpush1.bf16.msra.mxu1 %v11450_v61  ;;  %v11484_v35 = vld [vmem:[%s17128_s3 + $0x50c] ss:$16 sps:$4 sm:$0xff]   ;;  %v11485_v61 = vld [vmem:[%s17128_s3 + $0x500] ss:$16 sps:$4 sm:$0xff]  }
 0x448   :  { %6220 = vmatprep.subr.bf16.mxu0 %v11451_v14  ;;  %6273 = vmatprep.subr.bf16.mxu1 %v11452_v21  ;;  %v11486_v14 = vld [vmem:[%s17128_s3 + $0x508] ss:$16 sps:$4 sm:$0xff]  }
 0x44b   :  { %6221 = vmatpush1.bf16.msra.mxu0 %v11453_v43  ;;  %6274 = vmatpush1.bf16.msra.mxu1 %v11454_v18 }
 0x44c   :  { %6222 = vmatprep.subr.bf16.mxu0 %v11455_v33  ;;  %6275 = vmatprep.subr.bf16.mxu1 %v11456_v23  ;;  %v11487_v23 = vld [vmem:[%s17128_s3 + $0x6e4] ss:$16 sps:$4 sm:$0xff]  }
 0x44f   :  { %6223 = vmatpush2.bf16.msra.mxu0 %v11457_v39  ;;  %6276 = vmatpush2.bf16.msra.mxu1 %v11458_v1  ;;  %v11488_v39 = vld [vmem:[%s17128_s3 + $0x6ec] ss:$16 sps:$4 sm:$0xff]  }
 0x450   :  { %6224 = vmatprep.subr.bf16.mxu0 %v11459_v41  ;;  %6277 = vmatprep.subr.bf16.mxu1 %v11460_v53 }
 0x453   :  { %6225 = vmatpush2.bf16.msra.mxu0 %v11461_v11  ;;  %6278 = vmatpush2.bf16.msra.mxu1 %v11462_v27  ;;  %v11489_v27 = vld [vmem:[%s17128_s3 + $0x6e0] ss:$16 sps:$4 sm:$0xff]  }
 0x454   :  { %6226 = vmatprep.subr.bf16.mxu0 %v11463_v28  ;;  %6279 = vmatprep.subr.bf16.mxu1 %v11464_v47  ;;  %v11492_v28 = vld [vmem:[%s17128_s3 + $0x6cc] ss:$16 sps:$4 sm:$0xff]  }
 0x457   :  { %6227 = vmatpush2.bf16.msra.mxu0 %v11465_v57  ;;  %6280 = vmatpush2.bf16.msra.mxu1 %v11466_v26 }
 0x458   :  { %6228 = vmatprep.subr.bf16.mxu0 %v11467_v30  ;;  %6281 = vmatprep.subr.bf16.mxu1 %v11468_v31  ;;  %v11493_v31 = vld [vmem:[%s17128_s3 + $0x6c0] ss:$16 sps:$4 sm:$0xff]  }
 0x45b   :  { %6229 = vmatpush2.bf16.msra.mxu0 %v11469_v38  ;;  %6282 = vmatpush2.bf16.msra.mxu1 %v11470_v36  ;;  %v11494_v38 = vld [vmem:[%s17128_s3 + $0x6c8] ss:$16 sps:$4 sm:$0xff]  }
 0x45c   :  { %6230 = vmatprep.subr.bf16.mxu0 %v11471_v54  ;;  %6283 = vmatprep.subr.bf16.mxu1 %v11472_v50  ;;  %v11496_v54 = vld [vmem:[%s17128_s3 + $0x6ac] ss:$16 sps:$4 sm:$0xff]  }
 0x45f   :  { %6231 = vmatpush2.bf16.msra.mxu0 %v11473_v45  ;;  %6284 = vmatpush2.bf16.msra.mxu1 %v11474_v58 }
 0x460   :  { %6232 = vmatprep.subr.bf16.mxu0 %v11475_v55  ;;  %6285 = vmatprep.subr.bf16.mxu1 %v11476_v10  ;;  %v11497_v10 = vld [vmem:[%s17128_s3 + $0x6a0] ss:$16 sps:$4 sm:$0xff]  }
 0x463   :  { %6233 = vmatpush2.bf16.msra.mxu0 %v11477_v42  ;;  %6286 = vmatpush2.bf16.msra.mxu1 %v11478_v60  ;;  %v11500_v42 = vld [vmem:[%s17128_s3 + $0x68c] ss:$16 sps:$4 sm:$0xff]  }
 0x464   :  { %6234 = vmatprep.subr.bf16.mxu0 %v11479_v17  ;;  %6287 = vmatprep.subr.bf16.mxu1 %v11480_v19 }
 0x467   :  { %6235 = vmatpush2.bf16.msra.mxu0 %v11481_v6  ;;  %6288 = vmatpush2.bf16.msra.mxu1 %v11482_v46  ;;  %v11502_v6 = vld [vmem:[%s17128_s3 + $0x688] ss:$16 sps:$4 sm:$0xff]   ;;  %v11503_v46 = vld [vmem:[%s17128_s3 + $0x664] ss:$16 sps:$4 sm:$0xff]  }
 0x468   :  { %6236 = vmatprep.subr.bf16.mxu0 %v11483_v59  ;;  %6289 = vmatprep.subr.bf16.mxu1 %v11484_v35  ;;  %v11506_v59 = vld [vmem:[%s17128_s3 + $0x668] ss:$16 sps:$4 sm:$0xff]   ;;  %v11507_v35 = vld [vmem:[%s17128_s3 + $0x644] ss:$16 sps:$4 sm:$0xff]  }
 0x46b   :  { %6237 = vmatpush2.bf16.msra.mxu0 %v11485_v61  ;;  %6290 = vmatpush2.bf16.msra.mxu1 %v11486_v14  ;;  %v5906_v21 = vpop.f32.mrf.mxu0  ;;  %v5959_v43 = vpop.f32.mrf.mxu1  ;;  %v11508_v61 = vld [vmem:[%s17128_s3 + $0x64c] ss:$16 sps:$4 sm:$0xff]   ;;  %v11509_v14 = vld [vmem:[%s17128_s3 + $0x640] ss:$16 sps:$4 sm:$0xff]  }
 0x46c   :  { %v15634_v18 = vadd.f32 %v5906_v21, %v15386_v5  ;;  %v15637_v33 = vadd.f32 %v5959_v43, %v15389_v4  ;;  %6328 = vmatprep.subr.bf16.mxu0 %v11487_v23  ;;  %6381 = vmatprep.subr.bf16.mxu1 %v11488_v39  ;;  %v11510_v21 = vld [vmem:[%s17128_s3 + $0x648] ss:$16 sps:$4 sm:$0xff]   ;;  %v11511_v43 = vld [vmem:[%s17128_s3 + $0x624] ss:$16 sps:$4 sm:$0xff]   ;;  %v11512_v23 = vld [vmem:[%s17128_s3 + $0x62c] ss:$16 sps:$4 sm:$0xff]  }
 0x46d   :  { %v5908_v1 = vpop.f32.mrf.mxu0  ;;  %v5961_v41 = vpop.f32.mrf.mxu1  ;;  %v11513_v39 = vld [vmem:[%s17128_s3 + $0x620] ss:$16 sps:$4 sm:$0xff]  }
 0x46e   :  { %6239 = vmatmul.mubr.bf16.vlgmr.msra.gmra.mxu0 %v14652_v22  ;;  %6292 = vmatmul.mubr.bf16.vlgmr.msra.gmra.mxu1 %v14652_v22  ;;  %v15648_v5 = vadd.f32 %v5908_v1, %v15400_v24  ;;  %v15651_v4 = vadd.f32 %v5961_v41, %v15403_v44  ;;  %v11490_v22 = vld [vmem:[%s17128_s3 + $0x6e8] ss:$16 sps:$4 sm:$0xff]   ;;  %v11515_v41 = vld [vmem:[%s17128_s3 + $0x604] ss:$16 sps:$4 sm:$0xff]  }
 0x46f   :  { %6248 = vmatprep.mubr.bf16.mxu0 %v14665_v13  ;;  %6301 = vmatprep.mubr.bf16.mxu1 %v14665_v13  ;;  %v5910_v53 = vpop.f32.mrf.mxu0  ;;  %v5963_v11 = vpop.f32.mrf.mxu1  ;;  %v11491_v13 = vld [vmem:[%s17128_s3 + $0x6c4] ss:$16 sps:$4 sm:$0xff]   ;;  %v11514_v1 = vld [vmem:[%s17128_s3 + $0x628] ss:$16 sps:$4 sm:$0xff]  }
 0x470   :  { %6329 = vmatpush1.bf16.msra.mxu0 %v11489_v27  ;;  %6382 = vmatpush1.bf16.msra.mxu1 %v11490_v22  ;;  %v15662_v24 = vadd.f32 %v5910_v53, %v15414_v40  ;;  %v15665_v44 = vadd.f32 %v5963_v11, %v15417_v9  ;;  %v11516_v53 = vld [vmem:[%s17128_s3 + $0x60c] ss:$16 sps:$4 sm:$0xff]   ;;  %v11517_v11 = vld [vmem:[%s17128_s3 + $0x600] ss:$16 sps:$4 sm:$0xff]   ;;  %v11518_v27 = vld [vmem:[%s17128_s3 + $0x608] ss:$16 sps:$4 sm:$0xff]  }
 0x471   :  { %6330 = vmatprep.subr.bf16.mxu0 %v11491_v13  ;;  %6383 = vmatprep.subr.bf16.mxu1 %v11492_v28  ;;  %v5912_v47 = vpop.f32.mrf.mxu0  ;;  %v5965_v57 = vpop.f32.mrf.mxu1  ;;  %v11519_v22 = vld [vmem:[%s17128_s3 + $0x7e4] ss:$16 sps:$4 sm:$0xff]   ;;  %v11520_v13 = vld [vmem:[%s17128_s3 + $0x7ec] ss:$16 sps:$4 sm:$0xff]   ;;  %v11521_v28 = vld [vmem:[%s17128_s3 + $0x7e0] ss:$16 sps:$4 sm:$0xff]  }
 0x472   :  { %v15674_v26 = vadd.f32 %v5912_v47, %v15426_v34  ;;  %v15677_v40 = vadd.f32 %v5965_v57, %v15429_v3  ;;  %v11495_v3 = vld [vmem:[%s17128_s3 + $0x6a4] ss:$16 sps:$4 sm:$0xff]   ;;  %v11522_v47 = vld [vmem:[%s17128_s3 + $0x7e8] ss:$16 sps:$4 sm:$0xff]  }
 0x473   :  { %v5916_v9 = vpop.f32.mrf.mxu0  ;;  %v5969_v30 = vpop.f32.mrf.mxu1  ;;  %v11523_v57 = vld [vmem:[%s17128_s3 + $0x7c4] ss:$16 sps:$4 sm:$0xff]  }
 0x474   :  { %6331 = vmatpush1.bf16.msra.mxu0 %v11493_v31  ;;  %6384 = vmatpush1.bf16.msra.mxu1 %v11494_v38  ;;  %v15686_v36 = vadd.f32 %v5916_v9, %v15438_v51  ;;  %v15689_v34 = vadd.f32 %v5969_v30, %v15441_v8  ;;  %v11524_v9 = vld [vmem:[%s17128_s3 + $0x7cc] ss:$16 sps:$4 sm:$0xff]   ;;  %v11525_v30 = vld [vmem:[%s17128_s3 + $0x7c0] ss:$16 sps:$4 sm:$0xff]   ;;  %v11526_v31 = vld [vmem:[%s17128_s3 + $0x7c8] ss:$16 sps:$4 sm:$0xff]  }
 0x475   :  { %6332 = vmatprep.subr.bf16.mxu0 %v11495_v3  ;;  %6385 = vmatprep.subr.bf16.mxu1 %v11496_v54  ;;  %v5918_v50 = vpop.f32.mrf.mxu0  ;;  %v5971_v45 = vpop.f32.mrf.mxu1  ;;  %v11527_v38 = vld [vmem:[%s17128_s3 + $0x7a4] ss:$16 sps:$4 sm:$0xff]   ;;  %v11528_v3 = vld [vmem:[%s17128_s3 + $0x7ac] ss:$16 sps:$4 sm:$0xff]   ;;  %v11529_v54 = vld [vmem:[%s17128_s3 + $0x7a0] ss:$16 sps:$4 sm:$0xff]  }
 0x476   :  { %17395 = vst [vmem:[#allocation51_spill] sm:$0xff] %v15689_v34  ;;  %6249 = vmatmul.mubr.bf16.gmra.mxu0 %v14689_v16  ;;  %6302 = vmatmul.mubr.bf16.gmra.mxu1 %v14689_v16  ;;  %v15700_v51 = vadd.f32 %v5918_v50, %v15452_v56  ;;  %v15703_v8 = vadd.f32 %v5971_v45, %v15455_v37  ;;  %v11498_v16 = vld [vmem:[%s17128_s3 + $0x6a8] ss:$16 sps:$4 sm:$0xff]   ;;  %v11531_v45 = vld [vmem:[%s17128_s3 + $0x784] ss:$16 sps:$4 sm:$0xff]  }
 0x477   :  { %6360 = vmatprep.mubr.bf16.mxu0 %v17375_v29  ;;  %6413 = vmatprep.mubr.bf16.mxu1 %v17375_v29  ;;  %v5920_v58 = vpop.f32.mrf.mxu0  ;;  %v5973_v55 = vpop.f32.mrf.mxu1  ;;  %v11499_v29 = vld [vmem:[%s17128_s3 + $0x684] ss:$16 sps:$4 sm:$0xff]   ;;  %v11530_v50 = vld [vmem:[%s17128_s3 + $0x7a8] ss:$16 sps:$4 sm:$0xff]  }
 0x478   :  { %17396 = vst [vmem:[#allocation52_spill] sm:$0xff] %v15700_v51  ;;  %17397 = vst [vmem:[#allocation43_spill] sm:$0xff] %v15703_v8  ;;  %6333 = vmatpush1.bf16.msra.mxu0 %v11497_v10  ;;  %6386 = vmatpush1.bf16.msra.mxu1 %v11498_v16  ;;  %v15714_v56 = vadd.f32 %v5920_v58, %v15466_v52  ;;  %v15717_v37 = vadd.f32 %v5973_v55, %v15469_v48  ;;  %v11501_v48 = vld [vmem:[%s17128_s3 + $0x680] ss:$16 sps:$4 sm:$0xff]   ;;  %v11532_v58 = vld [vmem:[%s17128_s3 + $0x78c] ss:$16 sps:$4 sm:$0xff]  }
 0x479   :  { %6334 = vmatprep.subr.bf16.mxu0 %v11499_v29  ;;  %6387 = vmatprep.subr.bf16.mxu1 %v11500_v42  ;;  %v5922_v60 = vpop.f32.mrf.mxu0  ;;  %v5975_v17 = vpop.f32.mrf.mxu1  ;;  %v11533_v55 = vld [vmem:[%s17128_s3 + $0x780] ss:$16 sps:$4 sm:$0xff]   ;;  %v11534_v10 = vld [vmem:[%s17128_s3 + $0x788] ss:$16 sps:$4 sm:$0xff]   ;;  %v11535_v16 = vld [vmem:[%s17128_s3 + $0x764] ss:$16 sps:$4 sm:$0xff]  }
 0x47a   :  { %17398 = vst [vmem:[#allocation53_spill] sm:$0xff] %v15714_v56  ;;  %17399 = vst [vmem:[#allocation44_spill] sm:$0xff] %v15717_v37  ;;  %v15726_v19 = vadd.f32 %v5922_v60, %v15478_v62  ;;  %v15729_v52 = vadd.f32 %v5975_v17, %v15481_v25  ;;  %v11504_v62 = vld [vmem:[%s17128_s3 + $0x66c] ss:$16 sps:$4 sm:$0xff]   ;;  %v11505_v25 = vld [vmem:[%s17128_s3 + $0x660] ss:$16 sps:$4 sm:$0xff]  }
 0x47b   :  { %v11536_v29 = vld [vmem:[%s17128_s3 + $0x76c] ss:$16 sps:$4 sm:$0xff]   ;;  %v11537_v42 = vld [vmem:[%s17128_s3 + $0x760] ss:$16 sps:$4 sm:$0xff]   ;;  %v11538_v60 = vld [vmem:[%s17128_s3 + $0x768] ss:$16 sps:$4 sm:$0xff]  }
 0x47c   :  { %17400 = vst [vmem:[#allocation54_spill] sm:$0xff] %v15726_v19  ;;  %17401 = vst [vmem:[#allocation45_spill] sm:$0xff] %v15729_v52  ;;  %6335 = vmatpush1.bf16.msra.mxu0 %v11501_v48  ;;  %6388 = vmatpush1.bf16.msra.mxu1 %v11502_v6  ;;  %v11539_v17 = vld [vmem:[%s17128_s3 + $0x744] ss:$16 sps:$4 sm:$0xff]   ;;  %v11540_v48 = vld [vmem:[%s17128_s3 + $0x74c] ss:$16 sps:$4 sm:$0xff]  }
 0x47d   :  { %6336 = vmatprep.subr.bf16.mxu0 %v11503_v46  ;;  %6389 = vmatprep.subr.bf16.mxu1 %v11504_v62  ;;  %v11541_v6 = vld [vmem:[%s17128_s3 + $0x740] ss:$16 sps:$4 sm:$0xff]   ;;  %v11542_v46 = vld [vmem:[%s17128_s3 + $0x748] ss:$16 sps:$4 sm:$0xff]   ;;  %v11543_v62 = vld [vmem:[%s17128_s3 + $0x724] ss:$16 sps:$4 sm:$0xff]  }
 0x480   :  { %6337 = vmatpush1.bf16.msra.mxu0 %v11505_v25  ;;  %6390 = vmatpush1.bf16.msra.mxu1 %v11506_v59  ;;  %v11544_v25 = vld [vmem:[%s17128_s3 + $0x72c] ss:$16 sps:$4 sm:$0xff]   ;;  %v11545_v59 = vld [vmem:[%s17128_s3 + $0x720] ss:$16 sps:$4 sm:$0xff]  }
 0x481   :  { %6338 = vmatprep.subr.bf16.mxu0 %v11507_v35  ;;  %6391 = vmatprep.subr.bf16.mxu1 %v11508_v61  ;;  %v11546_v35 = vld [vmem:[%s17128_s3 + $0x728] ss:$16 sps:$4 sm:$0xff]   ;;  %v11547_v61 = vld [vmem:[%s17128_s3 + $0x704] ss:$16 sps:$4 sm:$0xff]  }
 0x484   :  { %6339 = vmatpush1.bf16.msra.mxu0 %v11509_v14  ;;  %6392 = vmatpush1.bf16.msra.mxu1 %v11510_v21  ;;  %v11548_v14 = vld [vmem:[%s17128_s3 + $0x70c] ss:$16 sps:$4 sm:$0xff]   ;;  %v11549_v21 = vld [vmem:[%s17128_s3 + $0x700] ss:$16 sps:$4 sm:$0xff]  }
 0x485   :  { %6340 = vmatprep.subr.bf16.mxu0 %v11511_v43  ;;  %6393 = vmatprep.subr.bf16.mxu1 %v11512_v23  ;;  %v11550_v43 = vld [vmem:[%s17128_s3 + $0x708] ss:$16 sps:$4 sm:$0xff]   ;;  %v11551_v23 = vld [vmem:[%s17128_s3 + $0x8e4] ss:$16 sps:$4 sm:$0xff]  }
 0x488   :  { %6341 = vmatpush1.bf16.msra.mxu0 %v11513_v39  ;;  %6394 = vmatpush1.bf16.msra.mxu1 %v11514_v1  ;;  %v11552_v39 = vld [vmem:[%s17128_s3 + $0x8ec] ss:$16 sps:$4 sm:$0xff]   ;;  %v11553_v1 = vld [vmem:[%s17128_s3 + $0x8e0] ss:$16 sps:$4 sm:$0xff]  }
 0x489   :  { %6342 = vmatprep.subr.bf16.mxu0 %v11515_v41  ;;  %6395 = vmatprep.subr.bf16.mxu1 %v11516_v53  ;;  %v11554_v41 = vld [vmem:[%s17128_s3 + $0x8e8] ss:$16 sps:$4 sm:$0xff]   ;;  %v11555_v53 = vld [vmem:[%s17128_s3 + $0x8c4] ss:$16 sps:$4 sm:$0xff]  }
 0x48c   :  { %6343 = vmatpush1.bf16.msra.mxu0 %v11517_v11  ;;  %6396 = vmatpush1.bf16.msra.mxu1 %v11518_v27  ;;  %v11558_v11 = vld [vmem:[%s17128_s3 + $0x8c8] ss:$16 sps:$4 sm:$0xff]   ;;  %v11559_v27 = vld [vmem:[%s17128_s3 + $0x8a4] ss:$16 sps:$4 sm:$0xff]  }
 0x48d   :  { %6344 = vmatprep.subr.bf16.mxu0 %v11519_v22  ;;  %6397 = vmatprep.subr.bf16.mxu1 %v11520_v13  ;;  %v11560_v22 = vld [vmem:[%s17128_s3 + $0x8ac] ss:$16 sps:$4 sm:$0xff]   ;;  %v11561_v13 = vld [vmem:[%s17128_s3 + $0x8a0] ss:$16 sps:$4 sm:$0xff]  }
 0x490   :  { %6345 = vmatpush2.bf16.msra.mxu0 %v11521_v28  ;;  %6398 = vmatpush2.bf16.msra.mxu1 %v11522_v47  ;;  %v11562_v28 = vld [vmem:[%s17128_s3 + $0x8a8] ss:$16 sps:$4 sm:$0xff]   ;;  %v11563_v47 = vld [vmem:[%s17128_s3 + $0x884] ss:$16 sps:$4 sm:$0xff]  }
 0x491   :  { %6346 = vmatprep.subr.bf16.mxu0 %v11523_v57  ;;  %6399 = vmatprep.subr.bf16.mxu1 %v11524_v9  ;;  %v11566_v57 = vld [vmem:[%s17128_s3 + $0x888] ss:$16 sps:$4 sm:$0xff]   ;;  %v11567_v9 = vld [vmem:[%s17128_s3 + $0x864] ss:$16 sps:$4 sm:$0xff]  }
 0x494   :  { %6347 = vmatpush2.bf16.msra.mxu0 %v11525_v30  ;;  %6400 = vmatpush2.bf16.msra.mxu1 %v11526_v31  ;;  %v11568_v30 = vld [vmem:[%s17128_s3 + $0x86c] ss:$16 sps:$4 sm:$0xff]   ;;  %v11569_v31 = vld [vmem:[%s17128_s3 + $0x860] ss:$16 sps:$4 sm:$0xff]  }
 0x495   :  { %6348 = vmatprep.subr.bf16.mxu0 %v11527_v38  ;;  %6401 = vmatprep.subr.bf16.mxu1 %v11528_v3  ;;  %v11570_v38 = vld [vmem:[%s17128_s3 + $0x868] ss:$16 sps:$4 sm:$0xff]   ;;  %v11571_v3 = vld [vmem:[%s17128_s3 + $0x844] ss:$16 sps:$4 sm:$0xff]  }
 0x498   :  { %6349 = vmatpush2.bf16.msra.mxu0 %v11529_v54  ;;  %6402 = vmatpush2.bf16.msra.mxu1 %v11530_v50  ;;  %v11572_v54 = vld [vmem:[%s17128_s3 + $0x84c] ss:$16 sps:$4 sm:$0xff]   ;;  %v11573_v50 = vld [vmem:[%s17128_s3 + $0x840] ss:$16 sps:$4 sm:$0xff]  }
 0x499   :  { %6350 = vmatprep.subr.bf16.mxu0 %v11531_v45  ;;  %6403 = vmatprep.subr.bf16.mxu1 %v11532_v58  ;;  %v11574_v45 = vld [vmem:[%s17128_s3 + $0x848] ss:$16 sps:$4 sm:$0xff]   ;;  %v11575_v58 = vld [vmem:[%s17128_s3 + $0x824] ss:$16 sps:$4 sm:$0xff]  }
 0x49c   :  { %6351 = vmatpush2.bf16.msra.mxu0 %v11533_v55  ;;  %6404 = vmatpush2.bf16.msra.mxu1 %v11534_v10  ;;  %v11576_v55 = vld [vmem:[%s17128_s3 + $0x82c] ss:$16 sps:$4 sm:$0xff]   ;;  %v11577_v10 = vld [vmem:[%s17128_s3 + $0x820] ss:$16 sps:$4 sm:$0xff]  }
 0x49d   :  { %6352 = vmatprep.subr.bf16.mxu0 %v11535_v16  ;;  %6405 = vmatprep.subr.bf16.mxu1 %v11536_v29  ;;  %v11578_v16 = vld [vmem:[%s17128_s3 + $0x828] ss:$16 sps:$4 sm:$0xff]   ;;  %v11579_v29 = vld [vmem:[%s17128_s3 + $0x804] ss:$16 sps:$4 sm:$0xff]  }
 0x4a0   :  { %6353 = vmatpush2.bf16.msra.mxu0 %v11537_v42  ;;  %6406 = vmatpush2.bf16.msra.mxu1 %v11538_v60  ;;  %v11580_v42 = vld [vmem:[%s17128_s3 + $0x80c] ss:$16 sps:$4 sm:$0xff]   ;;  %v11581_v60 = vld [vmem:[%s17128_s3 + $0x800] ss:$16 sps:$4 sm:$0xff]  }
 0x4a1   :  { %6354 = vmatprep.subr.bf16.mxu0 %v11539_v17  ;;  %6407 = vmatprep.subr.bf16.mxu1 %v11540_v48  ;;  %v11582_v17 = vld [vmem:[%s17128_s3 + $0x808] ss:$16 sps:$4 sm:$0xff]   ;;  %v11583_v48 = vld [vmem:[%s17128_s3 + $0x9e4] ss:$16 sps:$4 sm:$0xff]  }
 0x4a4   :  { %6355 = vmatpush2.bf16.msra.mxu0 %v11541_v6  ;;  %6408 = vmatpush2.bf16.msra.mxu1 %v11542_v46  ;;  %v11584_v6 = vld [vmem:[%s17128_s3 + $0x9ec] ss:$16 sps:$4 sm:$0xff]  }
 0x4a5   :  { %6356 = vmatprep.subr.bf16.mxu0 %v11543_v62  ;;  %6409 = vmatprep.subr.bf16.mxu1 %v11544_v25  ;;  %v11585_v25 = vld [vmem:[%s17128_s3 + $0x9e0] ss:$16 sps:$4 sm:$0xff]  }
 0x4a8   :  { %6357 = vmatpush2.bf16.msra.mxu0 %v11545_v59  ;;  %6410 = vmatpush2.bf16.msra.mxu1 %v11546_v35  ;;  %v11586_v59 = vld [vmem:[%s17128_s3 + $0x9e8] ss:$16 sps:$4 sm:$0xff]   ;;  %v11587_v35 = vld [vmem:[%s17128_s3 + $0x9c4] ss:$16 sps:$4 sm:$0xff]  }
 0x4a9   :  { %6358 = vmatprep.subr.bf16.mxu0 %v11547_v61  ;;  %6411 = vmatprep.subr.bf16.mxu1 %v11548_v14  ;;  %v11588_v61 = vld [vmem:[%s17128_s3 + $0x9cc] ss:$16 sps:$4 sm:$0xff]  }
 0x4ac   :  { %6359 = vmatpush2.bf16.msra.mxu0 %v11549_v21  ;;  %6412 = vmatpush2.bf16.msra.mxu1 %v11550_v43  ;;  %v15991_v46 = vpop.f32.mrf.mxu0  ;;  %v15993_v62 = vpop.f32.mrf.mxu1  ;;  %v11589_v43 = vld [vmem:[%s17128_s3 + $0x9c0] ss:$16 sps:$4 sm:$0xff]  }
 0x4ad   :  { %6450 = vmatprep.subr.bf16.mxu0 %v11551_v23  ;;  %6503 = vmatprep.subr.bf16.mxu1 %v11552_v39  ;;  %v11590_v23 = vld [vmem:[%s17128_s3 + $0x9c8] ss:$16 sps:$4 sm:$0xff]   ;;  %v11591_v39 = vld [vmem:[%s17128_s3 + $0x9a4] ss:$16 sps:$4 sm:$0xff]  }
 0x4ae   :  { %v16007_v14 = vpop.f32.mrf.mxu0  ;;  %v16009_v21 = vpop.f32.mrf.mxu1 }
 0x4af   :  { %6361 = vmatmul.mubr.bf16.vlgmr.msra.gmra.mxu0 %v17376_v15  ;;  %6414 = vmatmul.mubr.bf16.vlgmr.msra.gmra.mxu1 %v17376_v15  ;;  %v11556_v15 = vld [vmem:[%s17128_s3 + $0x8cc] ss:$16 sps:$4 sm:$0xff]  }
 0x4b0   :  { %6370 = vmatprep.mubr.bf16.mxu0 %v17377_v20  ;;  %6423 = vmatprep.mubr.bf16.mxu1 %v17377_v20  ;;  %v11557_v20 = vld [vmem:[%s17128_s3 + $0x8c0] ss:$16 sps:$4 sm:$0xff]  }
 0x4b1   :  { %6451 = vmatpush1.bf16.msra.mxu0 %v11553_v1  ;;  %6504 = vmatpush1.bf16.msra.mxu1 %v11554_v41  ;;  %v11592_v1 = vld [vmem:[%s17128_s3 + $0x9ac] ss:$16 sps:$4 sm:$0xff]   ;;  %v16023_v41 = vpop.f32.mrf.mxu0 }
 0x4b2   :  { %6452 = vmatprep.subr.bf16.mxu0 %v11555_v53  ;;  %6505 = vmatprep.subr.bf16.mxu1 %v11556_v15  ;;  %v16025_v53 = vpop.f32.mrf.mxu1  ;;  %v11593_v15 = vld [vmem:[%s17128_s3 + $0x9a0] ss:$16 sps:$4 sm:$0xff]  }
 0x4b5   :  { %6453 = vmatpush1.bf16.msra.mxu0 %v11557_v20  ;;  %6506 = vmatpush1.bf16.msra.mxu1 %v11558_v11  ;;  %v11594_v20 = vld [vmem:[%s17128_s3 + $0x9a8] ss:$16 sps:$4 sm:$0xff]   ;;  %v11595_v11 = vld [vmem:[%s17128_s3 + $0x984] ss:$16 sps:$4 sm:$0xff]  }
 0x4b6   :  { %6454 = vmatprep.subr.bf16.mxu0 %v11559_v27  ;;  %6507 = vmatprep.subr.bf16.mxu1 %v11560_v22  ;;  %v11596_v27 = vld [vmem:[%s17128_s3 + $0x98c] ss:$16 sps:$4 sm:$0xff]   ;;  %v16039_v22 = vpop.f32.mrf.mxu0 }
 0x4b7   :  { %6371 = vmatmul.mubr.bf16.gmra.mxu0 %v17378_v12  ;;  %6424 = vmatmul.mubr.bf16.gmra.mxu1 %v17378_v12  ;;  %v11564_v12 = vld [vmem:[%s17128_s3 + $0x88c] ss:$16 sps:$4 sm:$0xff]  }
 0x4b8   :  { %6482 = vmatprep.mubr.bf16.mxu0 %v14011_v0  ;;  %6535 = vmatprep.mubr.bf16.mxu1 %v14011_v0  ;;  %v11565_v0 = vld [vmem:[%s17128_s3 + $0x880] ss:$16 sps:$4 sm:$0xff]  }
 0x4b9   :  { %6455 = vmatpush1.bf16.msra.mxu0 %v11561_v13  ;;  %6508 = vmatpush1.bf16.msra.mxu1 %v11562_v28  ;;  %v16041_v13 = vpop.f32.mrf.mxu1  ;;  %v11597_v28 = vld [vmem:[%s17128_s3 + $0x980] ss:$16 sps:$4 sm:$0xff]  }
 0x4ba   :  { %6456 = vmatprep.subr.bf16.mxu0 %v11563_v47  ;;  %6509 = vmatprep.subr.bf16.mxu1 %v11564_v12  ;;  %v11598_v47 = vld [vmem:[%s17128_s3 + $0x988] ss:$16 sps:$4 sm:$0xff]   ;;  %v11599_v12 = vld [vmem:[%s17128_s3 + $0x964] ss:$16 sps:$4 sm:$0xff]  }
 0x4bd   :  { %6457 = vmatpush1.bf16.msra.mxu0 %v11565_v0  ;;  %6510 = vmatpush1.bf16.msra.mxu1 %v11566_v57  ;;  %v11600_v0 = vld [vmem:[%s17128_s3 + $0x96c] ss:$16 sps:$4 sm:$0xff]   ;;  %v6038_v57 = vpop.f32.mrf.mxu0 }
 0x4be   :  { %6458 = vmatprep.subr.bf16.mxu0 %v11567_v9  ;;  %6511 = vmatprep.subr.bf16.mxu1 %v11568_v30  ;;  %v6091_v9 = vpop.f32.mrf.mxu1  ;;  %v11601_v30 = vld [vmem:[%s17128_s3 + $0x960] ss:$16 sps:$4 sm:$0xff]  }
 0x4c1   :  { %6459 = vmatpush1.bf16.msra.mxu0 %v11569_v31  ;;  %6512 = vmatpush1.bf16.msra.mxu1 %v11570_v38  ;;  %v11602_v31 = vld [vmem:[%s17128_s3 + $0x968] ss:$16 sps:$4 sm:$0xff]   ;;  %v11603_v38 = vld [vmem:[%s17128_s3 + $0x944] ss:$16 sps:$4 sm:$0xff]  }
 0x4c2   :  { %6460 = vmatprep.subr.bf16.mxu0 %v11571_v3  ;;  %6513 = vmatprep.subr.bf16.mxu1 %v11572_v54  ;;  %v11604_v3 = vld [vmem:[%s17128_s3 + $0x94c] ss:$16 sps:$4 sm:$0xff]   ;;  %v6040_v54 = vpop.f32.mrf.mxu0 }
 0x4c5   :  { %6461 = vmatpush1.bf16.msra.mxu0 %v11573_v50  ;;  %6514 = vmatpush1.bf16.msra.mxu1 %v11574_v45  ;;  %v6093_v50 = vpop.f32.mrf.mxu1  ;;  %v11605_v45 = vld [vmem:[%s17128_s3 + $0x940] ss:$16 sps:$4 sm:$0xff]  }
 0x4c6   :  { %6462 = vmatprep.subr.bf16.mxu0 %v11575_v58  ;;  %6515 = vmatprep.subr.bf16.mxu1 %v11576_v55  ;;  %v11606_v58 = vld [vmem:[%s17128_s3 + $0x948] ss:$16 sps:$4 sm:$0xff]   ;;  %v11607_v55 = vld [vmem:[%s17128_s3 + $0x924] ss:$16 sps:$4 sm:$0xff]  }
 0x4c9   :  { %6463 = vmatpush1.bf16.msra.mxu0 %v11577_v10  ;;  %6516 = vmatpush1.bf16.msra.mxu1 %v11578_v16  ;;  %v11608_v10 = vld [vmem:[%s17128_s3 + $0x92c] ss:$16 sps:$4 sm:$0xff]   ;;  %v6042_v16 = vpop.f32.mrf.mxu0 }
 0x4ca   :  { %6464 = vmatprep.subr.bf16.mxu0 %v11579_v29  ;;  %6517 = vmatprep.subr.bf16.mxu1 %v11580_v42  ;;  %v6095_v29 = vpop.f32.mrf.mxu1  ;;  %v11609_v42 = vld [vmem:[%s17128_s3 + $0x920] ss:$16 sps:$4 sm:$0xff]  }
 0x4cd   :  { %6465 = vmatpush1.bf16.msra.mxu0 %v11581_v60  ;;  %6518 = vmatpush1.bf16.msra.mxu1 %v11582_v17  ;;  %v11610_v60 = vld [vmem:[%s17128_s3 + $0x928] ss:$16 sps:$4 sm:$0xff]   ;;  %v11611_v17 = vld [vmem:[%s17128_s3 + $0x904] ss:$16 sps:$4 sm:$0xff]  }
 0x4ce   :  { %6466 = vmatprep.subr.bf16.mxu0 %v11583_v48  ;;  %6519 = vmatprep.subr.bf16.mxu1 %v11584_v6  ;;  %v11612_v48 = vld [vmem:[%s17128_s3 + $0x90c] ss:$16 sps:$4 sm:$0xff]   ;;  %v6044_v6 = vpop.f32.mrf.mxu0 }
 0x4d1   :  { %6467 = vmatpush2.bf16.msra.mxu0 %v11585_v25  ;;  %6520 = vmatpush2.bf16.msra.mxu1 %v11586_v59  ;;  %v6097_v25 = vpop.f32.mrf.mxu1 }
 0x4d2   :  { %6468 = vmatprep.subr.bf16.mxu0 %v11587_v35  ;;  %6521 = vmatprep.subr.bf16.mxu1 %v11588_v61 }
 0x4d5   :  { %6469 = vmatpush2.bf16.msra.mxu0 %v11589_v43  ;;  %6522 = vmatpush2.bf16.msra.mxu1 %v11590_v23 }
 0x4d6   :  { %6470 = vmatprep.subr.bf16.mxu0 %v11591_v39  ;;  %6523 = vmatprep.subr.bf16.mxu1 %v11592_v1 }
 0x4d9   :  { %6471 = vmatpush2.bf16.msra.mxu0 %v11593_v15  ;;  %6524 = vmatpush2.bf16.msra.mxu1 %v11594_v20 }
 0x4da   :  { %6472 = vmatprep.subr.bf16.mxu0 %v11595_v11  ;;  %6525 = vmatprep.subr.bf16.mxu1 %v11596_v27 }
 0x4dd   :  { %6473 = vmatpush2.bf16.msra.mxu0 %v11597_v28  ;;  %6526 = vmatpush2.bf16.msra.mxu1 %v11598_v47 }
 0x4de   :  { %6474 = vmatprep.subr.bf16.mxu0 %v11599_v12  ;;  %6527 = vmatprep.subr.bf16.mxu1 %v11600_v0 }
 0x4e1   :  { %6475 = vmatpush2.bf16.msra.mxu0 %v11601_v30  ;;  %6528 = vmatpush2.bf16.msra.mxu1 %v11602_v31 }
 0x4e2   :  { %6476 = vmatprep.subr.bf16.mxu0 %v11603_v38  ;;  %6529 = vmatprep.subr.bf16.mxu1 %v11604_v3  ;;  %v10840_v3 = vld [vmem:[%s17129_s5 + $0x2e4] ss:$16 sps:$4 sm:$0xff]  }
 0x4e5   :  { %6477 = vmatpush2.bf16.msra.mxu0 %v11605_v45  ;;  %6530 = vmatpush2.bf16.msra.mxu1 %v11606_v58  ;;  %v10844_v45 = vld [vmem:[%s17129_s5 + $0x2c0] ss:$16 sps:$4 sm:$0xff]   ;;  %v10846_v58 = vld [vmem:[%s17129_s5 + $0x2c4] ss:$16 sps:$4 sm:$0xff]  }
 0x4e6   :  { %6478 = vmatprep.subr.bf16.mxu0 %v11607_v55  ;;  %6531 = vmatprep.subr.bf16.mxu1 %v11608_v10  ;;  %v10847_v55 = vld [vmem:[%s17129_s5 + $0x2c8] ss:$16 sps:$4 sm:$0xff]   ;;  %v10849_v10 = vld [vmem:[%s17129_s5 + $0x2cc] ss:$16 sps:$4 sm:$0xff]  }
 0x4e9   :  { %6479 = vmatpush2.bf16.msra.mxu0 %v11609_v42  ;;  %6532 = vmatpush2.bf16.msra.mxu1 %v11610_v60  ;;  %v10855_v42 = vld [vmem:[%s17129_s5 + $0x2ac] ss:$16 sps:$4 sm:$0xff]   ;;  %v10853_v60 = vld [vmem:[%s17129_s5 + $0x2a8] ss:$16 sps:$4 sm:$0xff]  }
 0x4ea   :  { %6480 = vmatprep.subr.bf16.mxu0 %v11611_v17  ;;  %6533 = vmatprep.subr.bf16.mxu1 %v11612_v48  ;;  %v10858_v17 = vld [vmem:[%s17129_s5 + $0x284] ss:$16 sps:$4 sm:$0xff]   ;;  %v10861_v48 = vld [vmem:[%s17129_s5 + $0x28c] ss:$16 sps:$4 sm:$0xff]  }
 0x4ed   :  { %6481 = vmatpush2.bf16.msra.mxu0 %v14876_v7  ;;  %6534 = vmatpush2.bf16.msra.mxu1 %v14881_v49  ;;  %v16093_v59 = vpop.f32.mrf.mxu0  ;;  %v16095_v35 = vpop.f32.mrf.mxu1 }
 0x4ee   :  { %7083 = vmatprep.subr.bf16.mxu0 %v10840_v3  ;;  %v10879_v3 = vld [vmem:[%s17129_s5 + $0x22c] ss:$16 sps:$4 sm:$0xff]  }
 0x4ef   :  { %v16097_v61 = vpop.f32.mrf.mxu0  ;;  %v16099_v43 = vpop.f32.mrf.mxu1 }
 0x4f0   :  { %6483 = vmatmul.mubr.bf16.vlgmr.msra.gmra.mxu0 %v13998_v2  ;;  %6536 = vmatmul.mubr.bf16.vlgmr.msra.gmra.mxu1 %v13998_v2 }
 0x4f1   :  { %6492 = vmatprep.mubr.bf16.mxu0 %v14628_v63  ;;  %6545 = vmatprep.mubr.bf16.mxu1 %v14628_v63  ;;  %v16105_v23 = vpop.f32.mrf.mxu0  ;;  %v16107_v7 = vpop.f32.mrf.mxu1 }
 0x4f3   :  { %v16109_v49 = vpop.f32.mrf.mxu0  ;;  %v16111_v39 = vpop.f32.mrf.mxu1 }
 0x4f5   :  { %v6144_v1 = vpop.f32.mrf.mxu0  ;;  %v6197_v15 = vpop.f32.mrf.mxu1 }
 0x4f6   :  { %v16113_v20 = vadd.f32 %v6144_v1, %v6038_v57  ;;  %v16115_v11 = vadd.f32 %v6197_v15, %v6091_v9  ;;  %v10864_v1 = vld [vmem:[%s17129_s5 + $0x264] ss:$16 sps:$4 sm:$0xff]   ;;  %v10867_v15 = vld [vmem:[%s17129_s5 + $0x26c] ss:$16 sps:$4 sm:$0xff]  }
 0x4f7   :  { %v6146_v27 = vpop.f32.mrf.mxu0  ;;  %v6199_v2 = vpop.f32.mrf.mxu1 }
 0x4f8   :  { %6493 = vmatmul.mubr.bf16.gmra.mxu0 %v14036_v32  ;;  %6546 = vmatmul.mubr.bf16.gmra.mxu1 %v14036_v32  ;;  %v16119_v63 = vadd.f32 %v6146_v27, %v6040_v54  ;;  %v16121_v28 = vadd.f32 %v6199_v2, %v6093_v50  ;;  %v10838_v32 = vld [vmem:[%s17129_s5 + $0x2e0] ss:$16 sps:$4 sm:$0xff]   ;;  %v10841_v54 = vld [vmem:[%s17129_s5 + $0x2e8] ss:$16 sps:$4 sm:$0xff]   ;;  %v10843_v50 = vld [vmem:[%s17129_s5 + $0x2ec] ss:$16 sps:$4 sm:$0xff]  }
 0x4f9   :  { %v6148_v47 = vpop.f32.mrf.mxu0  ;;  %v6201_v12 = vpop.f32.mrf.mxu1  ;;  %7124 = vmatprep.subr.bf16.mxu1 %v10843_v50  ;;  %7084 = vmatpush1.bf16.msra.mxu0 %v10838_v32  ;;  %v10862_v27 = vld [vmem:[%s17129_s5 + $0x260] ss:$16 sps:$4 sm:$0xff]   ;;  %v10865_v2 = vld [vmem:[%s17129_s5 + $0x268] ss:$16 sps:$4 sm:$0xff]   ;;  %v10876_v32 = vld [vmem:[%s17129_s5 + $0x224] ss:$16 sps:$4 sm:$0xff]  }
 0x4fa   :  { %v16123_v0 = vadd.f32 %v6148_v47, %v6042_v16  ;;  %v16125_v30 = vadd.f32 %v6201_v12, %v6095_v29  ;;  %7125 = vmatpush1.bf16.msra.mxu1 %v10841_v54  ;;  %7085 = vmatprep.subr.bf16.mxu0 %v10846_v58  ;;  %v10852_v16 = vld [vmem:[%s17129_s5 + $0x2a4] ss:$16 sps:$4 sm:$0xff]   ;;  %v10850_v29 = vld [vmem:[%s17129_s5 + $0x2a0] ss:$16 sps:$4 sm:$0xff]   ;;  %v10873_v12 = vld [vmem:[%s17129_s5 + $0x24c] ss:$16 sps:$4 sm:$0xff]  }
 0x4fb   :  { %v6150_v57 = vpop.f32.mrf.mxu0  ;;  %v6203_v31 = vpop.f32.mrf.mxu1  ;;  %7126 = vmatprep.subr.bf16.mxu1 %v10849_v10  ;;  %v10870_v47 = vld [vmem:[%s17129_s5 + $0x244] ss:$16 sps:$4 sm:$0xff]   ;;  %v10874_v54 = vld [vmem:[%s17129_s5 + $0x220] ss:$16 sps:$4 sm:$0xff]   ;;  %v10877_v50 = vld [vmem:[%s17129_s5 + $0x228] ss:$16 sps:$4 sm:$0xff]  }
 0x4fc   :  { %v16127_v9 = vadd.f32 %v6150_v57, %v6044_v6  ;;  %v16129_v38 = vadd.f32 %v6203_v31, %v6097_v25  ;;  %v10856_v6 = vld [vmem:[%s17129_s5 + $0x280] ss:$16 sps:$4 sm:$0xff]   ;;  %v10859_v25 = vld [vmem:[%s17129_s5 + $0x288] ss:$16 sps:$4 sm:$0xff]   ;;  %v10885_v58 = vld [vmem:[%s17129_s5 + $0x20c] ss:$16 sps:$4 sm:$0xff]  }
 0x4fd   :  { %7086 = vmatpush1.bf16.msra.mxu0 %v10844_v45  ;;  %v10868_v57 = vld [vmem:[%s17129_s5 + $0x240] ss:$16 sps:$4 sm:$0xff]   ;;  %v10871_v31 = vld [vmem:[%s17129_s5 + $0x248] ss:$16 sps:$4 sm:$0xff]   ;;  %v10882_v45 = vld [vmem:[%s17129_s5 + $0x204] ss:$16 sps:$4 sm:$0xff]  }
 0x4fe   :  { %7127 = vmatpush1.bf16.msra.mxu1 %v10847_v55  ;;  %7087 = vmatprep.subr.bf16.mxu0 %v10852_v16  ;;  %v10880_v55 = vld [vmem:[%s17129_s5 + $0x200] ss:$16 sps:$4 sm:$0xff]   ;;  %v10883_v10 = vld [vmem:[%s17129_s5 + $0x208] ss:$16 sps:$4 sm:$0xff]   ;;  %v10888_v16 = vld [vmem:[%s17129_s5 + $0x3e4] ss:$16 sps:$4 sm:$0xff]  }
 0x4ff   :  { %7128 = vmatprep.subr.bf16.mxu1 %v10855_v42  ;;  %v10886_v42 = vld [vmem:[%s17129_s5 + $0x3e0] ss:$16 sps:$4 sm:$0xff]  }
 0x501   :  { %7088 = vmatpush1.bf16.msra.mxu0 %v10850_v29  ;;  %v10891_v29 = vld [vmem:[%s17129_s5 + $0x3ec] ss:$16 sps:$4 sm:$0xff]  }
 0x502   :  { %7129 = vmatpush1.bf16.msra.mxu1 %v10853_v60  ;;  %7089 = vmatprep.subr.bf16.mxu0 %v10858_v17  ;;  %v10889_v60 = vld [vmem:[%s17129_s5 + $0x3e8] ss:$16 sps:$4 sm:$0xff]   ;;  %v10894_v17 = vld [vmem:[%s17129_s5 + $0x3c4] ss:$16 sps:$4 sm:$0xff]  }
 0x503   :  { %7130 = vmatprep.subr.bf16.mxu1 %v10861_v48  ;;  %v10897_v48 = vld [vmem:[%s17129_s5 + $0x3cc] ss:$16 sps:$4 sm:$0xff]  }
 0x505   :  { %7090 = vmatpush1.bf16.msra.mxu0 %v10856_v6  ;;  %v10892_v6 = vld [vmem:[%s17129_s5 + $0x3c0] ss:$16 sps:$4 sm:$0xff]  }
 0x506   :  { %7131 = vmatpush1.bf16.msra.mxu1 %v10859_v25  ;;  %7091 = vmatprep.subr.bf16.mxu0 %v10864_v1  ;;  %v10895_v25 = vld [vmem:[%s17129_s5 + $0x3c8] ss:$16 sps:$4 sm:$0xff]   ;;  %v10900_v1 = vld [vmem:[%s17129_s5 + $0x3a4] ss:$16 sps:$4 sm:$0xff]  }
 0x507   :  { %7132 = vmatprep.subr.bf16.mxu1 %v10867_v15  ;;  %v10903_v15 = vld [vmem:[%s17129_s5 + $0x3ac] ss:$16 sps:$4 sm:$0xff]  }
 0x509   :  { %7092 = vmatpush1.bf16.msra.mxu0 %v10862_v27  ;;  %v10898_v27 = vld [vmem:[%s17129_s5 + $0x3a0] ss:$16 sps:$4 sm:$0xff]  }
 0x50a   :  { %7133 = vmatpush1.bf16.msra.mxu1 %v10865_v2  ;;  %7093 = vmatprep.subr.bf16.mxu0 %v10870_v47  ;;  %v10901_v2 = vld [vmem:[%s17129_s5 + $0x3a8] ss:$16 sps:$4 sm:$0xff]  }
 0x50b   :  { %7134 = vmatprep.subr.bf16.mxu1 %v10873_v12 }
 0x50d   :  { %7094 = vmatpush1.bf16.msra.mxu0 %v10868_v57  ;;  %v10906_v57 = vld [vmem:[%s17129_s5 + $0x384] ss:$16 sps:$4 sm:$0xff]  }
 0x50e   :  { %7135 = vmatpush1.bf16.msra.mxu1 %v10871_v31  ;;  %7095 = vmatprep.subr.bf16.mxu0 %v10876_v32  ;;  %v10909_v31 = vld [vmem:[%s17129_s5 + $0x38c] ss:$16 sps:$4 sm:$0xff]  }
 0x50f   :  { %7136 = vmatprep.subr.bf16.mxu1 %v10879_v3 }
 0x511   :  { %7096 = vmatpush1.bf16.msra.mxu0 %v10874_v54  ;;  %v10904_v54 = vld [vmem:[%s17129_s5 + $0x380] ss:$16 sps:$4 sm:$0xff]  }
 0x512   :  { %7137 = vmatpush1.bf16.msra.mxu1 %v10877_v50  ;;  %7097 = vmatprep.subr.bf16.mxu0 %v10882_v45  ;;  %v10907_v50 = vld [vmem:[%s17129_s5 + $0x388] ss:$16 sps:$4 sm:$0xff]  }
 0x513   :  { %7138 = vmatprep.subr.bf16.mxu1 %v10885_v58 }
 0x515   :  { %7098 = vmatpush1.bf16.msra.mxu0 %v10880_v55 }
 0x516   :  { %7139 = vmatpush1.bf16.msra.mxu1 %v10883_v10  ;;  %7099 = vmatprep.subr.bf16.mxu0 %v10888_v16  ;;  %v10912_v16 = vld [vmem:[%s17129_s5 + $0x364] ss:$16 sps:$4 sm:$0xff]  }
 0x517   :  { %7140 = vmatprep.subr.bf16.mxu1 %v10891_v29  ;;  %v10915_v29 = vld [vmem:[%s17129_s5 + $0x36c] ss:$16 sps:$4 sm:$0xff]  }
 0x519   :  { %7100 = vmatpush2.bf16.msra.mxu0 %v10886_v42  ;;  %v10910_v42 = vld [vmem:[%s17129_s5 + $0x360] ss:$16 sps:$4 sm:$0xff]  }
 0x51a   :  { %7141 = vmatpush2.bf16.msra.mxu1 %v10889_v60  ;;  %7101 = vmatprep.subr.bf16.mxu0 %v10894_v17  ;;  %v10913_v60 = vld [vmem:[%s17129_s5 + $0x368] ss:$16 sps:$4 sm:$0xff]  }
 0x51b   :  { %7142 = vmatprep.subr.bf16.mxu1 %v10897_v48 }
 0x51d   :  { %7102 = vmatpush2.bf16.msra.mxu0 %v10892_v6 }
 0x51e   :  { %7143 = vmatpush2.bf16.msra.mxu1 %v10895_v25  ;;  %7103 = vmatprep.subr.bf16.mxu0 %v10900_v1 }
 0x51f   :  { %7144 = vmatprep.subr.bf16.mxu1 %v10903_v15 }
 0x521   :  { %7104 = vmatpush2.bf16.msra.mxu0 %v10898_v27  ;;  %v10918_v27 = vld [vmem:[%s17129_s5 + $0x344] ss:$16 sps:$4 sm:$0xff]  }
 0x522   :  { %7145 = vmatpush2.bf16.msra.mxu1 %v10901_v2  ;;  %7105 = vmatprep.subr.bf16.mxu0 %v10906_v57  ;;  %v10921_v2 = vld [vmem:[%s17129_s5 + $0x34c] ss:$16 sps:$4 sm:$0xff]  }
 0x523   :  { %7146 = vmatprep.subr.bf16.mxu1 %v10909_v31 }
 0x525   :  { %7106 = vmatpush2.bf16.msra.mxu0 %v10904_v54 }
 0x526   :  { %7147 = vmatpush2.bf16.msra.mxu1 %v10907_v50  ;;  %7107 = vmatprep.subr.bf16.mxu0 %v10912_v16 }
 0x527   :  { %7148 = vmatprep.subr.bf16.mxu1 %v10915_v29 }
 0x529   :  { %7108 = vmatpush2.bf16.msra.mxu0 %v10910_v42  ;;  %v10924_v42 = vld [vmem:[%s17129_s5 + $0x324] ss:$16 sps:$4 sm:$0xff]  }
 0x52a   :  { %7149 = vmatpush2.bf16.msra.mxu1 %v10913_v60  ;;  %7109 = vmatprep.subr.bf16.mxu0 %v10918_v27  ;;  %v10927_v60 = vld [vmem:[%s17129_s5 + $0x32c] ss:$16 sps:$4 sm:$0xff]   ;;  %v10936_v27 = vld [vmem:[%s17129_s5 + $0xe4] ss:$16 sps:$4 sm:$0xff]  }
 0x52b   :  { %7150 = vmatprep.subr.bf16.mxu1 %v10921_v2  ;;  %v10939_v2 = vld [vmem:[%s17129_s5 + $0xec] ss:$16 sps:$4 sm:$0xff]  }
 0x52e   :  { %v16263_v47 = vpop.f32.mrf.mxu0  ;;  %v16265_v12 = vpop.f32.mrf.mxu1 }
 0x530   :  { %v16273_v32 = vpop.f32.mrf.mxu0  ;;  %v16275_v3 = vpop.f32.mrf.mxu1 }
 0x532   :  { %v16283_v45 = vpop.f32.mrf.mxu0  ;;  %v16285_v58 = vpop.f32.mrf.mxu1 }
 0x534   :  { %v16287_v55 = vpop.f32.mrf.mxu0  ;;  %v16289_v10 = vpop.f32.mrf.mxu1 }
 0x536   :  { %v6250_v17 = vpop.f32.mrf.mxu0  ;;  %v6303_v48 = vpop.f32.mrf.mxu1 }
 0x537   :  { %v6320_v6 = vadd.f32 %v6250_v17, %v16113_v20  ;;  %v6322_v25 = vadd.f32 %v6303_v48, %v16115_v11  ;;  %v10916_v20 = vld [vmem:[%s17129_s5 + $0x340] ss:$16 sps:$4 sm:$0xff]   ;;  %v10919_v11 = vld [vmem:[%s17129_s5 + $0x348] ss:$16 sps:$4 sm:$0xff]  }
 0x538   :  { %v6252_v1 = vpop.f32.mrf.mxu0  ;;  %v6305_v15 = vpop.f32.mrf.mxu1  ;;  %7110 = vmatpush2.bf16.msra.mxu0 %v10916_v20  ;;  %7151 = vmatpush2.bf16.msra.mxu1 %v10919_v11 }
 0x539   :  { %v6321_v57 = vadd.f32 %v6252_v1, %v16119_v63  ;;  %v6323_v31 = vadd.f32 %v6305_v15, %v16121_v28  ;;  %7111 = vmatprep.subr.bf16.mxu0 %v10924_v42  ;;  %7152 = vmatprep.subr.bf16.mxu1 %v10927_v60  ;;  %v10930_v1 = vld [vmem:[%s17129_s5 + $0x304] ss:$16 sps:$4 sm:$0xff]   ;;  %v10931_v15 = vld [vmem:[%s17129_s5 + $0x308] ss:$16 sps:$4 sm:$0xff]  }
 0x53a   :  { %v6254_v54 = vpop.f32.mrf.mxu0  ;;  %v6307_v50 = vpop.f32.mrf.mxu1 }
 0x53b   :  { %v6324_v16 = vadd.f32 %v6254_v54, %v16123_v0  ;;  %v6326_v29 = vadd.f32 %v6307_v50, %v16125_v30  ;;  %v10922_v0 = vld [vmem:[%s17129_s5 + $0x320] ss:$16 sps:$4 sm:$0xff]   ;;  %v10925_v30 = vld [vmem:[%s17129_s5 + $0x328] ss:$16 sps:$4 sm:$0xff]  }
 0x53c   :  { %v6256_v63 = vpop.f32.mrf.mxu0  ;;  %v6309_v28 = vpop.f32.mrf.mxu1  ;;  %7112 = vmatpush2.bf16.msra.mxu0 %v10922_v0  ;;  %7153 = vmatpush2.bf16.msra.mxu1 %v10925_v30 }
 0x53d   :  { %v6325_v17 = vadd.f32 %v6256_v63, %v16127_v9  ;;  %v6327_v48 = vadd.f32 %v6309_v28, %v16129_v38  ;;  %v10933_v9 = vld [vmem:[%s17129_s5 + $0x30c] ss:$16 sps:$4 sm:$0xff]   ;;  %v10928_v38 = vld [vmem:[%s17129_s5 + $0x300] ss:$16 sps:$4 sm:$0xff]   ;;  %7113 = vmatprep.subr.bf16.mxu0 %v10930_v1 }
 0x53e   :  { %7154 = vmatprep.subr.bf16.mxu1 %v10933_v9 }
 0x540   :  { %7114 = vmatpush2.bf16.msra.mxu0 %v10928_v38  ;;  %7155 = vmatpush2.bf16.msra.mxu1 %v10931_v15 }
 0x541   :  { %7485 = vmatprep.subr.bf16.mxu0 %v10936_v27  ;;  %7526 = vmatprep.subr.bf16.mxu1 %v10939_v2 }
 0x56f   :  { %v6362_v20 = vpop.f32.mrf.mxu0  ;;  %v6415_v11 = vpop.f32.mrf.mxu1 }
 0x571   :  { %v6364_v54 = vpop.f32.mrf.mxu0  ;;  %v6417_v50 = vpop.f32.mrf.mxu1 }
 0x573   :  { %v6366_v63 = vpop.f32.mrf.mxu0  ;;  %v6419_v28 = vpop.f32.mrf.mxu1 }
 0x575   :  { %v6368_v42 = vpop.f32.mrf.mxu0  ;;  %v6421_v60 = vpop.f32.mrf.mxu1 }
 0x577   :  { %v6372_v0 = vpop.f32.mrf.mxu0  ;;  %v6425_v30 = vpop.f32.mrf.mxu1 }
 0x578   :  { %v16353_v1 = vadd.f32 %v6372_v0, %v6320_v6  ;;  %v16355_v9 = vadd.f32 %v6425_v30, %v6322_v25  ;;  %v6135_v25 = vadd.f32 %v16093_v59, %v15991_v46  ;;  %v17402_v30 = vld [vmem:[#allocation21_spill] sm:$0xff] }
 0x579   :  { %v6374_v38 = vpop.f32.mrf.mxu0  ;;  %v6427_v15 = vpop.f32.mrf.mxu1 }
 0x57a   :  { %v16357_v52 = vadd.f32 %v6374_v38, %v6321_v57  ;;  %v16359_v27 = vadd.f32 %v6427_v15, %v6323_v31  ;;  %v6188_v57 = vadd.f32 %v16095_v35, %v15993_v62  ;;  %v6137_v31 = vadd.f32 %v16097_v61, %v16007_v14 }
 0x57b   :  { %v6376_v2 = vpop.f32.mrf.mxu0  ;;  %v6429_v19 = vpop.f32.mrf.mxu1  ;;  %v6192_v62 = vadd.f32 %v16107_v7, %v16025_v53  ;;  %v6141_v14 = vadd.f32 %v16109_v49, %v16039_v22 }
 0x57c   :  { %v16361_v37 = vadd.f32 %v6376_v2, %v6324_v16  ;;  %v16363_v56 = vadd.f32 %v6429_v19, %v6326_v29  ;;  %v6190_v16 = vadd.f32 %v16099_v43, %v16009_v21  ;;  %v6312_v19 = vadd.f32 %v16263_v47, %v6135_v25 }
 0x57d   :  { %v6378_v8 = vpop.f32.mrf.mxu0  ;;  %v6431_v51 = vpop.f32.mrf.mxu1  ;;  %v6314_v29 = vadd.f32 %v16265_v12, %v6188_v57  ;;  %v6318_v53 = vadd.f32 %v16285_v58, %v6192_v62  ;;  %v6317_v7 = vadd.f32 %v16287_v55, %v6141_v14 }
 0x57e   :  { %v16365_v34 = vadd.f32 %v6378_v8, %v6325_v17  ;;  %v16367_v6 = vadd.f32 %v6431_v51, %v6327_v48  ;;  %v6139_v51 = vadd.f32 %v16105_v23, %v16023_v41  ;;  %v6313_v8 = vadd.f32 %v16273_v32, %v6137_v31  ;;  %v6596_v23 = vld [vmem:[%s17130_s4] sm:$0x3] }
 0x57f   :  { %v6315_v46 = vadd.f32 %v16275_v3, %v6190_v16  ;;  %v6434_v59 = vadd.f32 %v6362_v20, %v6312_v19  ;;  %v6436_v17 = vadd.f32 %v6415_v11, %v6314_v29  ;;  %v6194_v32 = vadd.f32 %v16111_v39, %v16041_v13 }
 0x580   :  { %v6316_v21 = vadd.f32 %v16283_v45, %v6139_v51  ;;  %v6435_v43 = vadd.f32 %v6364_v54, %v6313_v8  ;;  %v6439_v0 = vadd.f32 %v6368_v42, %v6317_v7  ;;  %v6601_v38 = vrot.slane %v6596_v23, %v17402_v30 }
 0x581   :  { %v6437_v47 = vadd.f32 %v6417_v50, %v6315_v46  ;;  %v6319_v54 = vadd.f32 %v16289_v10, %v6194_v32  ;;  %v6440_v50 = vadd.f32 %v6419_v28, %v6318_v53 }
 0x582   :  { %v6438_v22 = vadd.f32 %v6366_v63, %v6316_v21 }
 0x583   :  { %v6441_v2 = vadd.f32 %v6421_v60, %v6319_v54 }
 0x5b0   :  { %v6484_v35 = vpop.f32.mrf.mxu0  ;;  %v6537_v61 = vpop.f32.mrf.mxu1 }
 0x5b1   :  { %v6556_v12 = vadd.f32 %v6484_v35, %v6434_v59  ;;  %v6558_v41 = vadd.f32 %v6537_v61, %v6436_v17 }
 0x5b2   :  { %v6486_v49 = vpop.f32.mrf.mxu0  ;;  %v6539_v3 = vpop.f32.mrf.mxu1 }
 0x5b3   :  { %v6572_v45 = vmax.f32 %v15634_v18, %v6556_v12  ;;  %v6574_v48 = vmax.f32 %v15637_v33, %v6558_v41  ;;  %v6557_v20 = vadd.f32 %v6486_v49, %v6435_v43  ;;  %v6559_v11 = vadd.f32 %v6539_v3, %v6437_v47  ;;  %v17403_v18 = vld [vmem:[#allocation22_spill] sm:$0xff]  ;;  %v17404_v43 = vld [vmem:[#allocation51_spill] sm:$0xff]  ;;  %v17405_v41 = vld [vmem:[#allocation52_spill] sm:$0xff] }
 0x5b4   :  { %v6488_v13 = vpop.f32.mrf.mxu0  ;;  %v6541_v39 = vpop.f32.mrf.mxu1  ;;  %v16402_v25 = vrot.slane %v6596_v23, %v17403_v18 }
 0x5b5   :  { %v6588_v58 = vmax.f32 %v6572_v45, %v6574_v48  ;;  %v6573_v55 = vmax.f32 %v15648_v5, %v6557_v20  ;;  %v6575_v63 = vmax.f32 %v15651_v4, %v6559_v11  ;;  %v6560_v15 = vadd.f32 %v6488_v13, %v6438_v22  ;;  %v17407_v45 = vld [vmem:[#allocation53_spill] sm:$0xff]  ;;  %v17408_v20 = vld [vmem:[#allocation44_spill] sm:$0xff] }
 0x5b6   :  { %v6562_v33 = vadd.f32 %v6541_v39, %v6440_v50  ;;  %v6490_v57 = vpop.f32.mrf.mxu0  ;;  %v6543_v31 = vpop.f32.mrf.mxu1  ;;  %v17409_v39 = vld [vmem:[#allocation54_spill] sm:$0xff] }
 0x5b7   :  { %v6589_v10 = vmax.f32 %v6573_v55, %v6575_v63  ;;  %v6576_v28 = vmax.f32 %v15662_v24, %v6560_v15  ;;  %v6561_v42 = vadd.f32 %v6490_v57, %v6439_v0  ;;  %v6608_v16 = vadd.f32 %v6601_v38, %v6588_v58  ;;  %v17410_v63 = vld [vmem:[#allocation45_spill] sm:$0xff] }
 0x5b8   :  { %v6578_v19 = vmax.f32 %v15665_v44, %v6562_v33  ;;  %v6563_v29 = vadd.f32 %v6543_v31, %v6441_v2  ;;  %v6494_v51 = vpop.f32.mrf.mxu0  ;;  %v6547_v5 = vpop.f32.mrf.mxu1 }
 0x5b9   :  { %v6577_v4 = vmax.f32 %v15674_v26, %v6561_v42  ;;  %v6564_v60 = vadd.f32 %v6494_v51, %v16353_v1  ;;  %v6609_v8 = vadd.f32 %v16402_v25, %v6589_v10  ;;  %v6566_v17 = vadd.f32 %v6547_v5, %v16355_v9  ;;  %v10937_v10 = vld [vmem:[%s17129_s5 + $0xe8] ss:$16 sps:$4 sm:$0xff]   ;;  %v10940_v51 = vld [vmem:[%s17129_s5 + $0xc0] ss:$16 sps:$4 sm:$0xff]  }
 0x5ba   :  { %v6590_v46 = vmax.f32 %v6576_v28, %v6578_v19  ;;  %v6579_v59 = vmax.f32 %v15677_v40, %v6563_v29  ;;  %v6496_v62 = vpop.f32.mrf.mxu0  ;;  %v6549_v24 = vpop.f32.mrf.mxu1  ;;  %v6616_v35 = vmax.f32 %v6608_v16, 0.0  ;;  %v17406_v40 = vld [vmem:[#allocation43_spill] sm:$0xff] }
 0x5bb   :  { %v6580_v14 = vmax.f32 %v15686_v36, %v6564_v60  ;;  %v6565_v44 = vadd.f32 %v6496_v62, %v16357_v52  ;;  %v6567_v21 = vadd.f32 %v6549_v24, %v16359_v27  ;;  %v6582_v1 = vmax.f32 %v17404_v43, %v6566_v17  ;;  %v10945_v16 = vld [vmem:[%s17129_s5 + $0xcc] ss:$16 sps:$4 sm:$0xff]   ;;  %v10943_v5 = vld [vmem:[%s17129_s5 + $0xc8] ss:$16 sps:$4 sm:$0xff]   ;;  %v10954_v62 = vld [vmem:[%s17129_s5 + $0x84] ss:$16 sps:$4 sm:$0xff]  }
 0x5bc   :  { %v6610_v61 = vadd.f32 %v6601_v38, %v6590_v46  ;;  %v6591_v26 = vmax.f32 %v6577_v4, %v6579_v59  ;;  %v6498_v47 = vpop.f32.mrf.mxu0  ;;  %v6551_v12 = vpop.f32.mrf.mxu1  ;;  %v6617_v36 = vmax.f32 %v6609_v8, 0.0  ;;  %v10951_v8 = vld [vmem:[%s17129_s5 + $0xac] ss:$16 sps:$4 sm:$0xff]   ;;  %v10946_v59 = vld [vmem:[%s17129_s5 + $0xa0] ss:$16 sps:$4 sm:$0xff]  }
 0x5bd   :  { %v6581_v23 = vmax.f32 %v17405_v41, %v6565_v44  ;;  %v6583_v32 = vmax.f32 %v17406_v40, %v6567_v21  ;;  %v6568_v9 = vadd.f32 %v6498_v47, %v16361_v37  ;;  %v6570_v53 = vadd.f32 %v6551_v12, %v16363_v56  ;;  %v10949_v17 = vld [vmem:[%s17129_s5 + $0xa8] ss:$16 sps:$4 sm:$0xff]   ;;  %v10957_v24 = vld [vmem:[%s17129_s5 + $0x8c] ss:$16 sps:$4 sm:$0xff]   ;;  %v10960_v21 = vld [vmem:[%s17129_s5 + $0x64] ss:$16 sps:$4 sm:$0xff]  }
 0x5be   :  { %v6618_v7 = vmax.f32 %v6610_v61, 0.0  ;;  %v6611_v52 = vadd.f32 %v16402_v25, %v6591_v26  ;;  %v6592_v27 = vmax.f32 %v6580_v14, %v6582_v1  ;;  %v6500_v22 = vpop.f32.mrf.mxu0  ;;  %v6553_v49 = vpop.f32.mrf.mxu1  ;;  %v10952_v14 = vld [vmem:[%s17129_s5 + $0x80] ss:$16 sps:$4 sm:$0xff]   ;;  %v10955_v44 = vld [vmem:[%s17129_s5 + $0x88] ss:$16 sps:$4 sm:$0xff]  }
 0x5bf   :  { %v6593_v3 = vmax.f32 %v6581_v23, %v6583_v32  ;;  %v6584_v48 = vmax.f32 %v17407_v45, %v6568_v9  ;;  %v6586_v11 = vmax.f32 %v17408_v20, %v6570_v53  ;;  %v6569_v54 = vadd.f32 %v6500_v22, %v16365_v34  ;;  %v10934_v34 = vld [vmem:[%s17129_s5 + $0xe0] ss:$16 sps:$4 sm:$0xff]   ;;  %v10961_v26 = vld [vmem:[%s17129_s5 + $0x68] ss:$16 sps:$4 sm:$0xff]   ;;  %v10966_v43 = vld [vmem:[%s17129_s5 + $0x44] ss:$16 sps:$4 sm:$0xff]  }
 0x5c0   :  { %v16423_v50 = vpack.c.bf16 %v6618_v7, %v6616_v35  ;;  %v6619_v0 = vmax.f32 %v6611_v52, 0.0  ;;  %v6612_v37 = vadd.f32 %v6601_v38, %v6592_v27  ;;  %v6571_v56 = vadd.f32 %v6553_v49, %v16367_v6  ;;  %v10963_v35 = vld [vmem:[%s17129_s5 + $0x6c] ss:$16 sps:$4 sm:$0xff]   ;;  %v10958_v61 = vld [vmem:[%s17129_s5 + $0x60] ss:$16 sps:$4 sm:$0xff]  }
 0x5c1   :  { %v6594_v13 = vmax.f32 %v6584_v48, %v6586_v11  ;;  %v6585_v58 = vmax.f32 %v17409_v39, %v6569_v54  ;;  %v6613_v55 = vadd.f32 %v16402_v25, %v6593_v3  ;;  %v10969_v1 = vld [vmem:[%s17129_s5 + $0x4c] ss:$16 sps:$4 sm:$0xff]   ;;  %v10964_v47 = vld [vmem:[%s17129_s5 + $0x40] ss:$16 sps:$4 sm:$0xff]   ;;  %v10967_v12 = vld [vmem:[%s17129_s5 + $0x48] ss:$16 sps:$4 sm:$0xff]  }
 0x5c2   :  { %v6587_v15 = vmax.f32 %v17410_v63, %v6571_v56  ;;  %v6625_v2 = vpack.c.bf16 %v6619_v0, %v6617_v36  ;;  %v6759_v6 = vrot.slane %v16423_v50, 4  ;;  %v6620_v28 = vmax.f32 %v6612_v37, 0.0  ;;  %v10972_v41 = vld [vmem:[%s17129_s5 + $0x24] ss:$16 sps:$4 sm:$0xff]   ;;  %v10975_v23 = vld [vmem:[%s17129_s5 + $0x2c] ss:$16 sps:$4 sm:$0xff]  }
 0x5c3   :  { %v6614_v33 = vadd.f32 %v6601_v38, %v6594_v13  ;;  %v10942_v38 = vld [vmem:[%s17129_s5 + $0xc4] ss:$16 sps:$4 sm:$0xff]   ;;  %v6621_v4 = vmax.f32 %v6613_v55, 0.0  ;;  %v10970_v40 = vld [vmem:[%s17129_s5 + $0x20] ss:$16 sps:$4 sm:$0xff]  }
 0x5c4   :  { %v6595_v57 = vmax.f32 %v6585_v58, %v6587_v15  ;;  %v6760_v31 = vrot.slane %v6625_v2, 4  ;;  %v10973_v32 = vld [vmem:[%s17129_s5 + $0x28] ss:$16 sps:$4 sm:$0xff]   ;;  %v10978_v9 = vld [vmem:[%s17129_s5 + $0x4] ss:$16 sps:$4 sm:$0xff]  }
 0x5c5   :  { %v6622_v42 = vmax.f32 %v6614_v33, 0.0  ;;  %v10981_v53 = vld [vmem:[%s17129_s5 + $0xc] ss:$16 sps:$4 sm:$0xff]   ;;  %v10976_v36 = vld [vmem:[%s17129_s5] ss:$16 sps:$4 sm:$0xff]  }
 0x5c6   :  { %7115 = vmatprep.mubr.bf16.mxu0 %v6760_v31  ;;  %7156 = vmatprep.mubr.bf16.mxu1 %v6760_v31  ;;  %v6615_v19 = vadd.f32 %v16402_v25, %v6595_v57  ;;  %v10948_v25 = vld [vmem:[%s17129_s5 + $0xa4] ss:$16 sps:$4 sm:$0xff]   ;;  %v10979_v7 = vld [vmem:[%s17129_s5 + $0x8] ss:$16 sps:$4 sm:$0xff]   ;;  %v10987_v27 = vld [vmem:[%s17129_s5 + $0x1ec] ss:$16 sps:$4 sm:$0xff]  }
 0x5c7   :  { %v16443_v29 = vpack.c.bf16 %v6622_v42, %v6620_v28  ;;  %7116 = vmatmul.mubr.bf16.vlgmr.msra.gmra.mxu0 %v6759_v6  ;;  %7157 = vmatmul.mubr.bf16.vlgmr.msra.gmra.mxu1 %v6759_v6  ;;  %v10984_v52 = vld [vmem:[%s17129_s5 + $0x1e4] ss:$16 sps:$4 sm:$0xff]   ;;  %v10982_v22 = vld [vmem:[%s17129_s5 + $0x1e0] ss:$16 sps:$4 sm:$0xff]   ;;  %v10985_v49 = vld [vmem:[%s17129_s5 + $0x1e8] ss:$16 sps:$4 sm:$0xff]  }
 0x5c8   :  { %7486 = vmatpush1.bf16.msra.mxu0 %v10934_v34  ;;  %7527 = vmatpush1.bf16.msra.mxu1 %v10937_v10  ;;  %v6623_v60 = vmax.f32 %v6615_v19, 0.0  ;;  %v10990_v3 = vld [vmem:[%s17129_s5 + $0x1c4] ss:$16 sps:$4 sm:$0xff]   ;;  %v10993_v45 = vld [vmem:[%s17129_s5 + $0x1cc] ss:$16 sps:$4 sm:$0xff]  }
 0x5c9   :  { %7517 = vmatprep.mubr.bf16.mxu0 %v6625_v2  ;;  %7558 = vmatprep.mubr.bf16.mxu1 %v6625_v2  ;;  %v10988_v48 = vld [vmem:[%s17129_s5 + $0x1c0] ss:$16 sps:$4 sm:$0xff]   ;;  %v10991_v20 = vld [vmem:[%s17129_s5 + $0x1c8] ss:$16 sps:$4 sm:$0xff]   ;;  %v10996_v11 = vld [vmem:[%s17129_s5 + $0x1a4] ss:$16 sps:$4 sm:$0xff]  }
 0x5ca   :  { %7487 = vmatprep.subr.bf16.mxu0 %v10942_v38  ;;  %7528 = vmatprep.subr.bf16.mxu1 %v10945_v16  ;;  %v16457_v46 = vpack.c.bf16 %v6623_v60, %v6621_v4  ;;  %v10999_v54 = vld [vmem:[%s17129_s5 + $0x1ac] ss:$16 sps:$4 sm:$0xff]   ;;  %v10994_v0 = vld [vmem:[%s17129_s5 + $0x1a0] ss:$16 sps:$4 sm:$0xff]   ;;  %v10997_v37 = vld [vmem:[%s17129_s5 + $0x1a8] ss:$16 sps:$4 sm:$0xff]  }
 0x5cb   :  { %v11002_v56 = vld [vmem:[%s17129_s5 + $0x184] ss:$16 sps:$4 sm:$0xff]   ;;  %v11005_v13 = vld [vmem:[%s17129_s5 + $0x18c] ss:$16 sps:$4 sm:$0xff]   ;;  %v11000_v39 = vld [vmem:[%s17129_s5 + $0x180] ss:$16 sps:$4 sm:$0xff]  }
 0x5cc   :  { %7488 = vmatpush1.bf16.msra.mxu0 %v10940_v51  ;;  %7529 = vmatpush1.bf16.msra.mxu1 %v10943_v5  ;;  %v11003_v58 = vld [vmem:[%s17129_s5 + $0x188] ss:$16 sps:$4 sm:$0xff]   ;;  %v11008_v55 = vld [vmem:[%s17129_s5 + $0x164] ss:$16 sps:$4 sm:$0xff]   ;;  %v11011_v63 = vld [vmem:[%s17129_s5 + $0x16c] ss:$16 sps:$4 sm:$0xff]  }
 0x5cd   :  { %7489 = vmatprep.subr.bf16.mxu0 %v10948_v25  ;;  %7530 = vmatprep.subr.bf16.mxu1 %v10951_v8  ;;  %v11006_v15 = vld [vmem:[%s17129_s5 + $0x160] ss:$16 sps:$4 sm:$0xff]   ;;  %v11009_v2 = vld [vmem:[%s17129_s5 + $0x168] ss:$16 sps:$4 sm:$0xff]   ;;  %v11014_v33 = vld [vmem:[%s17129_s5 + $0x144] ss:$16 sps:$4 sm:$0xff]  }
 0x5ce   :  { %v11017_v57 = vld [vmem:[%s17129_s5 + $0x14c] ss:$16 sps:$4 sm:$0xff]   ;;  %v11012_v31 = vld [vmem:[%s17129_s5 + $0x140] ss:$16 sps:$4 sm:$0xff]   ;;  %v11015_v34 = vld [vmem:[%s17129_s5 + $0x148] ss:$16 sps:$4 sm:$0xff]  }
 0x5cf   :  { %v11020_v10 = vld [vmem:[%s17129_s5 + $0x124] ss:$16 sps:$4 sm:$0xff]   ;;  %v11023_v6 = vld [vmem:[%s17129_s5 + $0x12c] ss:$16 sps:$4 sm:$0xff]   ;;  %v11018_v28 = vld [vmem:[%s17129_s5 + $0x120] ss:$16 sps:$4 sm:$0xff]  }
 0x5d0   :  { %7490 = vmatpush1.bf16.msra.mxu0 %v10946_v59  ;;  %7531 = vmatpush1.bf16.msra.mxu1 %v10949_v17  ;;  %v11021_v42 = vld [vmem:[%s17129_s5 + $0x128] ss:$16 sps:$4 sm:$0xff]   ;;  %v11026_v38 = vld [vmem:[%s17129_s5 + $0x104] ss:$16 sps:$4 sm:$0xff]   ;;  %v11029_v16 = vld [vmem:[%s17129_s5 + $0x10c] ss:$16 sps:$4 sm:$0xff]  }
 0x5d1   :  { %7491 = vmatprep.subr.bf16.mxu0 %v10954_v62  ;;  %7532 = vmatprep.subr.bf16.mxu1 %v10957_v24  ;;  %v11024_v19 = vld [vmem:[%s17129_s5 + $0x100] ss:$16 sps:$4 sm:$0xff]   ;;  %v11027_v51 = vld [vmem:[%s17129_s5 + $0x108] ss:$16 sps:$4 sm:$0xff]   ;;  %v11032_v5 = vld [vmem:[%s17129_s5 + $0x4e4] ss:$16 sps:$4 sm:$0xff]  }
 0x5d2   :  { %v11035_v4 = vld [vmem:[%s17129_s5 + $0x4ec] ss:$16 sps:$4 sm:$0xff]   ;;  %v11030_v60 = vld [vmem:[%s17129_s5 + $0x4e0] ss:$16 sps:$4 sm:$0xff]   ;;  %v11033_v25 = vld [vmem:[%s17129_s5 + $0x4e8] ss:$16 sps:$4 sm:$0xff]  }
 0x5d3   :  { %v11038_v8 = vld [vmem:[%s17129_s5 + $0x4c4] ss:$16 sps:$4 sm:$0xff]   ;;  %v11041_v59 = vld [vmem:[%s17129_s5 + $0x4cc] ss:$16 sps:$4 sm:$0xff]   ;;  %v11036_v17 = vld [vmem:[%s17129_s5 + $0x4c0] ss:$16 sps:$4 sm:$0xff]  }
 0x5d4   :  { %7492 = vmatpush1.bf16.msra.mxu0 %v10952_v14  ;;  %7533 = vmatpush1.bf16.msra.mxu1 %v10955_v44  ;;  %v11039_v62 = vld [vmem:[%s17129_s5 + $0x4c8] ss:$16 sps:$4 sm:$0xff]   ;;  %v11044_v24 = vld [vmem:[%s17129_s5 + $0x4a4] ss:$16 sps:$4 sm:$0xff]   ;;  %v11042_v14 = vld [vmem:[%s17129_s5 + $0x4a0] ss:$16 sps:$4 sm:$0xff]  }
 0x5d5   :  { %7493 = vmatprep.subr.bf16.mxu0 %v10960_v21  ;;  %7534 = vmatprep.subr.bf16.mxu1 %v10963_v35  ;;  %v11045_v44 = vld [vmem:[%s17129_s5 + $0x4a8] ss:$16 sps:$4 sm:$0xff]   ;;  %v11050_v21 = vld [vmem:[%s17129_s5 + $0x484] ss:$16 sps:$4 sm:$0xff]   ;;  %v11053_v35 = vld [vmem:[%s17129_s5 + $0x48c] ss:$16 sps:$4 sm:$0xff]  }
 0x5d8   :  { %7494 = vmatpush1.bf16.msra.mxu0 %v10958_v61  ;;  %7535 = vmatpush1.bf16.msra.mxu1 %v10961_v26  ;;  %v11048_v61 = vld [vmem:[%s17129_s5 + $0x480] ss:$16 sps:$4 sm:$0xff]   ;;  %v11051_v26 = vld [vmem:[%s17129_s5 + $0x488] ss:$16 sps:$4 sm:$0xff]  }
 0x5d9   :  { %7495 = vmatprep.subr.bf16.mxu0 %v10966_v43  ;;  %7536 = vmatprep.subr.bf16.mxu1 %v10969_v1  ;;  %v11056_v43 = vld [vmem:[%s17129_s5 + $0x464] ss:$16 sps:$4 sm:$0xff]   ;;  %v11059_v1 = vld [vmem:[%s17129_s5 + $0x46c] ss:$16 sps:$4 sm:$0xff]  }
 0x5dc   :  { %7496 = vmatpush1.bf16.msra.mxu0 %v10964_v47  ;;  %7537 = vmatpush1.bf16.msra.mxu1 %v10967_v12  ;;  %v11054_v47 = vld [vmem:[%s17129_s5 + $0x460] ss:$16 sps:$4 sm:$0xff]   ;;  %v11057_v12 = vld [vmem:[%s17129_s5 + $0x468] ss:$16 sps:$4 sm:$0xff]  }
 0x5dd   :  { %7497 = vmatprep.subr.bf16.mxu0 %v10972_v41  ;;  %7538 = vmatprep.subr.bf16.mxu1 %v10975_v23  ;;  %v11062_v41 = vld [vmem:[%s17129_s5 + $0x444] ss:$16 sps:$4 sm:$0xff]   ;;  %v11065_v23 = vld [vmem:[%s17129_s5 + $0x44c] ss:$16 sps:$4 sm:$0xff]  }
 0x5e0   :  { %7498 = vmatpush1.bf16.msra.mxu0 %v10970_v40  ;;  %7539 = vmatpush1.bf16.msra.mxu1 %v10973_v32  ;;  %v11060_v40 = vld [vmem:[%s17129_s5 + $0x440] ss:$16 sps:$4 sm:$0xff]   ;;  %v11063_v32 = vld [vmem:[%s17129_s5 + $0x448] ss:$16 sps:$4 sm:$0xff]  }
 0x5e1   :  { %7499 = vmatprep.subr.bf16.mxu0 %v10978_v9  ;;  %7540 = vmatprep.subr.bf16.mxu1 %v10981_v53  ;;  %v11068_v9 = vld [vmem:[%s17129_s5 + $0x424] ss:$16 sps:$4 sm:$0xff]   ;;  %v11071_v53 = vld [vmem:[%s17129_s5 + $0x42c] ss:$16 sps:$4 sm:$0xff]  }
 0x5e4   :  { %7500 = vmatpush1.bf16.msra.mxu0 %v10976_v36  ;;  %7541 = vmatpush1.bf16.msra.mxu1 %v10979_v7  ;;  %v11066_v36 = vld [vmem:[%s17129_s5 + $0x420] ss:$16 sps:$4 sm:$0xff]   ;;  %v11069_v7 = vld [vmem:[%s17129_s5 + $0x428] ss:$16 sps:$4 sm:$0xff]  }
 0x5e5   :  { %7501 = vmatprep.subr.bf16.mxu0 %v10984_v52  ;;  %7542 = vmatprep.subr.bf16.mxu1 %v10987_v27  ;;  %v11074_v52 = vld [vmem:[%s17129_s5 + $0x404] ss:$16 sps:$4 sm:$0xff]   ;;  %v11077_v27 = vld [vmem:[%s17129_s5 + $0x40c] ss:$16 sps:$4 sm:$0xff]  }
 0x5e8   :  { %7502 = vmatpush2.bf16.msra.mxu0 %v10982_v22  ;;  %7543 = vmatpush2.bf16.msra.mxu1 %v10985_v49  ;;  %v11072_v22 = vld [vmem:[%s17129_s5 + $0x400] ss:$16 sps:$4 sm:$0xff]   ;;  %v11075_v49 = vld [vmem:[%s17129_s5 + $0x408] ss:$16 sps:$4 sm:$0xff]  }
 0x5e9   :  { %7503 = vmatprep.subr.bf16.mxu0 %v10990_v3  ;;  %7544 = vmatprep.subr.bf16.mxu1 %v10993_v45  ;;  %v11080_v3 = vld [vmem:[%s17129_s5 + $0x5e4] ss:$16 sps:$4 sm:$0xff]   ;;  %v11083_v45 = vld [vmem:[%s17129_s5 + $0x5ec] ss:$16 sps:$4 sm:$0xff]  }
 0x5ec   :  { %7504 = vmatpush2.bf16.msra.mxu0 %v10988_v48  ;;  %7545 = vmatpush2.bf16.msra.mxu1 %v10991_v20  ;;  %v11078_v48 = vld [vmem:[%s17129_s5 + $0x5e0] ss:$16 sps:$4 sm:$0xff]   ;;  %v11081_v20 = vld [vmem:[%s17129_s5 + $0x5e8] ss:$16 sps:$4 sm:$0xff]  }
 0x5ed   :  { %7505 = vmatprep.subr.bf16.mxu0 %v10996_v11  ;;  %7546 = vmatprep.subr.bf16.mxu1 %v10999_v54  ;;  %v11086_v11 = vld [vmem:[%s17129_s5 + $0x5c4] ss:$16 sps:$4 sm:$0xff]   ;;  %v11089_v54 = vld [vmem:[%s17129_s5 + $0x5cc] ss:$16 sps:$4 sm:$0xff]  }
 0x5f0   :  { %7506 = vmatpush2.bf16.msra.mxu0 %v10994_v0  ;;  %7547 = vmatpush2.bf16.msra.mxu1 %v10997_v37  ;;  %v11084_v0 = vld [vmem:[%s17129_s5 + $0x5c0] ss:$16 sps:$4 sm:$0xff]   ;;  %v11087_v37 = vld [vmem:[%s17129_s5 + $0x5c8] ss:$16 sps:$4 sm:$0xff]  }
 0x5f1   :  { %7507 = vmatprep.subr.bf16.mxu0 %v11002_v56  ;;  %7548 = vmatprep.subr.bf16.mxu1 %v11005_v13  ;;  %v11092_v56 = vld [vmem:[%s17129_s5 + $0x5a4] ss:$16 sps:$4 sm:$0xff]   ;;  %v11095_v13 = vld [vmem:[%s17129_s5 + $0x5ac] ss:$16 sps:$4 sm:$0xff]  }
 0x5f4   :  { %7508 = vmatpush2.bf16.msra.mxu0 %v11000_v39  ;;  %7549 = vmatpush2.bf16.msra.mxu1 %v11003_v58  ;;  %v11090_v39 = vld [vmem:[%s17129_s5 + $0x5a0] ss:$16 sps:$4 sm:$0xff]   ;;  %v11093_v58 = vld [vmem:[%s17129_s5 + $0x5a8] ss:$16 sps:$4 sm:$0xff]  }
 0x5f5   :  { %7509 = vmatprep.subr.bf16.mxu0 %v11008_v55  ;;  %7550 = vmatprep.subr.bf16.mxu1 %v11011_v63  ;;  %v11098_v55 = vld [vmem:[%s17129_s5 + $0x584] ss:$16 sps:$4 sm:$0xff]   ;;  %v11101_v63 = vld [vmem:[%s17129_s5 + $0x58c] ss:$16 sps:$4 sm:$0xff]  }
 0x5f8   :  { %7510 = vmatpush2.bf16.msra.mxu0 %v11006_v15  ;;  %7551 = vmatpush2.bf16.msra.mxu1 %v11009_v2  ;;  %v11096_v15 = vld [vmem:[%s17129_s5 + $0x580] ss:$16 sps:$4 sm:$0xff]   ;;  %v11099_v2 = vld [vmem:[%s17129_s5 + $0x588] ss:$16 sps:$4 sm:$0xff]  }
 0x5f9   :  { %7511 = vmatprep.subr.bf16.mxu0 %v11014_v33  ;;  %7552 = vmatprep.subr.bf16.mxu1 %v11017_v57  ;;  %v11104_v33 = vld [vmem:[%s17129_s5 + $0x564] ss:$16 sps:$4 sm:$0xff]   ;;  %v11107_v57 = vld [vmem:[%s17129_s5 + $0x56c] ss:$16 sps:$4 sm:$0xff]  }
 0x5fc   :  { %7512 = vmatpush2.bf16.msra.mxu0 %v11012_v31  ;;  %7553 = vmatpush2.bf16.msra.mxu1 %v11015_v34  ;;  %v11102_v31 = vld [vmem:[%s17129_s5 + $0x560] ss:$16 sps:$4 sm:$0xff]   ;;  %v11105_v34 = vld [vmem:[%s17129_s5 + $0x568] ss:$16 sps:$4 sm:$0xff]  }
 0x5fd   :  { %7513 = vmatprep.subr.bf16.mxu0 %v11020_v10  ;;  %7554 = vmatprep.subr.bf16.mxu1 %v11023_v6  ;;  %v11110_v10 = vld [vmem:[%s17129_s5 + $0x544] ss:$16 sps:$4 sm:$0xff]   ;;  %v11113_v6 = vld [vmem:[%s17129_s5 + $0x54c] ss:$16 sps:$4 sm:$0xff]  }
 0x600   :  { %7514 = vmatpush2.bf16.msra.mxu0 %v11018_v28  ;;  %7555 = vmatpush2.bf16.msra.mxu1 %v11021_v42  ;;  %v11108_v28 = vld [vmem:[%s17129_s5 + $0x540] ss:$16 sps:$4 sm:$0xff]   ;;  %v11111_v42 = vld [vmem:[%s17129_s5 + $0x548] ss:$16 sps:$4 sm:$0xff]  }
 0x601   :  { %7515 = vmatprep.subr.bf16.mxu0 %v11026_v38  ;;  %7556 = vmatprep.subr.bf16.mxu1 %v11029_v16  ;;  %v11116_v38 = vld [vmem:[%s17129_s5 + $0x524] ss:$16 sps:$4 sm:$0xff]   ;;  %v11119_v16 = vld [vmem:[%s17129_s5 + $0x52c] ss:$16 sps:$4 sm:$0xff]  }
 0x604   :  { %7516 = vmatpush2.bf16.msra.mxu0 %v11024_v19  ;;  %7557 = vmatpush2.bf16.msra.mxu1 %v11027_v51  ;;  %v11114_v19 = vld [vmem:[%s17129_s5 + $0x520] ss:$16 sps:$4 sm:$0xff]   ;;  %v11117_v51 = vld [vmem:[%s17129_s5 + $0x528] ss:$16 sps:$4 sm:$0xff]  }
 0x605   :  { %7952 = vmatprep.subr.bf16.mxu0 %v11032_v5  ;;  %7993 = vmatprep.subr.bf16.mxu1 %v11035_v4  ;;  %v11122_v5 = vld [vmem:[%s17129_s5 + $0x504] ss:$16 sps:$4 sm:$0xff]   ;;  %v11125_v4 = vld [vmem:[%s17129_s5 + $0x50c] ss:$16 sps:$4 sm:$0xff]  }
 0x607   :  { %7518 = vmatmul.mubr.bf16.vlgmr.msra.gmra.mxu0 %v16423_v50  ;;  %7559 = vmatmul.mubr.bf16.vlgmr.msra.gmra.mxu1 %v16423_v50  ;;  %v11047_v50 = vld [vmem:[%s17129_s5 + $0x4ac] ss:$16 sps:$4 sm:$0xff]  }
 0x608   :  { %7953 = vmatpush1.bf16.msra.mxu0 %v11030_v60  ;;  %7984 = vmatprep.mubr.bf16.mxu0 %v16457_v46  ;;  %v11120_v60 = vld [vmem:[%s17129_s5 + $0x500] ss:$16 sps:$4 sm:$0xff]  }
 0x609   :  { %7994 = vmatpush1.bf16.msra.mxu1 %v11033_v25  ;;  %8025 = vmatprep.mubr.bf16.mxu1 %v16457_v46  ;;  %v11123_v25 = vld [vmem:[%s17129_s5 + $0x508] ss:$16 sps:$4 sm:$0xff]  }
 0x60a   :  { %7954 = vmatprep.subr.bf16.mxu0 %v11038_v8  ;;  %7995 = vmatprep.subr.bf16.mxu1 %v11041_v59  ;;  %v11128_v8 = vld [vmem:[%s17129_s5 + $0x6e4] ss:$16 sps:$4 sm:$0xff]   ;;  %v11131_v59 = vld [vmem:[%s17129_s5 + $0x6ec] ss:$16 sps:$4 sm:$0xff]  }
 0x60c   :  { %7955 = vmatpush1.bf16.msra.mxu0 %v11036_v17  ;;  %v11126_v17 = vld [vmem:[%s17129_s5 + $0x6e0] ss:$16 sps:$4 sm:$0xff]  }
 0x60d   :  { %7996 = vmatpush1.bf16.msra.mxu1 %v11039_v62  ;;  %7956 = vmatprep.subr.bf16.mxu0 %v11044_v24  ;;  %v11129_v62 = vld [vmem:[%s17129_s5 + $0x6e8] ss:$16 sps:$4 sm:$0xff]   ;;  %v11134_v24 = vld [vmem:[%s17129_s5 + $0x6c4] ss:$16 sps:$4 sm:$0xff]  }
 0x60e   :  { %7997 = vmatprep.subr.bf16.mxu1 %v11047_v50  ;;  %v8106_v50 = vrot.slane %v16457_v46, 4  ;;  %v11140_v46 = vld [vmem:[%s17129_s5 + $0x6a4] ss:$16 sps:$4 sm:$0xff]  }
 0x610   :  { %7957 = vmatpush1.bf16.msra.mxu0 %v11042_v14  ;;  %v11137_v14 = vld [vmem:[%s17129_s5 + $0x6cc] ss:$16 sps:$4 sm:$0xff]  }
 0x611   :  { %7998 = vmatpush1.bf16.msra.mxu1 %v11045_v44  ;;  %7958 = vmatprep.subr.bf16.mxu0 %v11050_v21  ;;  %v11132_v44 = vld [vmem:[%s17129_s5 + $0x6c0] ss:$16 sps:$4 sm:$0xff]   ;;  %v11135_v21 = vld [vmem:[%s17129_s5 + $0x6c8] ss:$16 sps:$4 sm:$0xff]  }
 0x612   :  { %7999 = vmatprep.subr.bf16.mxu1 %v11053_v35  ;;  %v11143_v35 = vld [vmem:[%s17129_s5 + $0x6ac] ss:$16 sps:$4 sm:$0xff]  }
 0x614   :  { %7959 = vmatpush1.bf16.msra.mxu0 %v11048_v61  ;;  %v11138_v61 = vld [vmem:[%s17129_s5 + $0x6a0] ss:$16 sps:$4 sm:$0xff]  }
 0x615   :  { %8000 = vmatpush1.bf16.msra.mxu1 %v11051_v26  ;;  %7960 = vmatprep.subr.bf16.mxu0 %v11056_v43  ;;  %v11141_v26 = vld [vmem:[%s17129_s5 + $0x6a8] ss:$16 sps:$4 sm:$0xff]   ;;  %v11146_v43 = vld [vmem:[%s17129_s5 + $0x684] ss:$16 sps:$4 sm:$0xff]  }
 0x616   :  { %8001 = vmatprep.subr.bf16.mxu1 %v11059_v1  ;;  %v11149_v1 = vld [vmem:[%s17129_s5 + $0x68c] ss:$16 sps:$4 sm:$0xff]  }
 0x618   :  { %7961 = vmatpush1.bf16.msra.mxu0 %v11054_v47  ;;  %v11144_v47 = vld [vmem:[%s17129_s5 + $0x680] ss:$16 sps:$4 sm:$0xff]  }
 0x619   :  { %8002 = vmatpush1.bf16.msra.mxu1 %v11057_v12  ;;  %7962 = vmatprep.subr.bf16.mxu0 %v11062_v41  ;;  %v11147_v12 = vld [vmem:[%s17129_s5 + $0x688] ss:$16 sps:$4 sm:$0xff]   ;;  %v11152_v41 = vld [vmem:[%s17129_s5 + $0x664] ss:$16 sps:$4 sm:$0xff]  }
 0x61a   :  { %8003 = vmatprep.subr.bf16.mxu1 %v11065_v23  ;;  %v11155_v23 = vld [vmem:[%s17129_s5 + $0x66c] ss:$16 sps:$4 sm:$0xff]  }
 0x61c   :  { %7963 = vmatpush1.bf16.msra.mxu0 %v11060_v40  ;;  %v11150_v40 = vld [vmem:[%s17129_s5 + $0x660] ss:$16 sps:$4 sm:$0xff]  }
 0x61d   :  { %8004 = vmatpush1.bf16.msra.mxu1 %v11063_v32  ;;  %7964 = vmatprep.subr.bf16.mxu0 %v11068_v9  ;;  %v11153_v32 = vld [vmem:[%s17129_s5 + $0x668] ss:$16 sps:$4 sm:$0xff]   ;;  %v11158_v9 = vld [vmem:[%s17129_s5 + $0x644] ss:$16 sps:$4 sm:$0xff]  }
 0x61e   :  { %8005 = vmatprep.subr.bf16.mxu1 %v11071_v53  ;;  %v11161_v53 = vld [vmem:[%s17129_s5 + $0x64c] ss:$16 sps:$4 sm:$0xff]  }
 0x620   :  { %7965 = vmatpush1.bf16.msra.mxu0 %v11066_v36  ;;  %v11156_v36 = vld [vmem:[%s17129_s5 + $0x640] ss:$16 sps:$4 sm:$0xff]  }
 0x621   :  { %8006 = vmatpush1.bf16.msra.mxu1 %v11069_v7  ;;  %7966 = vmatprep.subr.bf16.mxu0 %v11074_v52  ;;  %v11159_v7 = vld [vmem:[%s17129_s5 + $0x648] ss:$16 sps:$4 sm:$0xff]   ;;  %v11164_v52 = vld [vmem:[%s17129_s5 + $0x624] ss:$16 sps:$4 sm:$0xff]  }
 0x622   :  { %8007 = vmatprep.subr.bf16.mxu1 %v11077_v27  ;;  %v11167_v27 = vld [vmem:[%s17129_s5 + $0x62c] ss:$16 sps:$4 sm:$0xff]  }
 0x624   :  { %7967 = vmatpush1.bf16.msra.mxu0 %v11072_v22  ;;  %v11162_v22 = vld [vmem:[%s17129_s5 + $0x620] ss:$16 sps:$4 sm:$0xff]  }
 0x625   :  { %8008 = vmatpush1.bf16.msra.mxu1 %v11075_v49  ;;  %7968 = vmatprep.subr.bf16.mxu0 %v11080_v3  ;;  %v11165_v49 = vld [vmem:[%s17129_s5 + $0x628] ss:$16 sps:$4 sm:$0xff]   ;;  %v11170_v3 = vld [vmem:[%s17129_s5 + $0x604] ss:$16 sps:$4 sm:$0xff]  }
 0x626   :  { %8009 = vmatprep.subr.bf16.mxu1 %v11083_v45  ;;  %v11173_v45 = vld [vmem:[%s17129_s5 + $0x60c] ss:$16 sps:$4 sm:$0xff]  }
 0x628   :  { %7969 = vmatpush2.bf16.msra.mxu0 %v11078_v48  ;;  %v11168_v48 = vld [vmem:[%s17129_s5 + $0x600] ss:$16 sps:$4 sm:$0xff]  }
 0x629   :  { %8010 = vmatpush2.bf16.msra.mxu1 %v11081_v20  ;;  %7970 = vmatprep.subr.bf16.mxu0 %v11086_v11  ;;  %v11171_v20 = vld [vmem:[%s17129_s5 + $0x608] ss:$16 sps:$4 sm:$0xff]   ;;  %v11176_v11 = vld [vmem:[%s17129_s5 + $0x7e4] ss:$16 sps:$4 sm:$0xff]  }
 0x62a   :  { %8011 = vmatprep.subr.bf16.mxu1 %v11089_v54  ;;  %v11179_v54 = vld [vmem:[%s17129_s5 + $0x7ec] ss:$16 sps:$4 sm:$0xff]  }
 0x62c   :  { %7971 = vmatpush2.bf16.msra.mxu0 %v11084_v0  ;;  %v11174_v0 = vld [vmem:[%s17129_s5 + $0x7e0] ss:$16 sps:$4 sm:$0xff]  }
 0x62d   :  { %8012 = vmatpush2.bf16.msra.mxu1 %v11087_v37  ;;  %7972 = vmatprep.subr.bf16.mxu0 %v11092_v56  ;;  %v11177_v37 = vld [vmem:[%s17129_s5 + $0x7e8] ss:$16 sps:$4 sm:$0xff]   ;;  %v11182_v56 = vld [vmem:[%s17129_s5 + $0x7c4] ss:$16 sps:$4 sm:$0xff]  }
 0x62e   :  { %8013 = vmatprep.subr.bf16.mxu1 %v11095_v13  ;;  %v11185_v13 = vld [vmem:[%s17129_s5 + $0x7cc] ss:$16 sps:$4 sm:$0xff]  }
 0x630   :  { %7973 = vmatpush2.bf16.msra.mxu0 %v11090_v39  ;;  %v11180_v39 = vld [vmem:[%s17129_s5 + $0x7c0] ss:$16 sps:$4 sm:$0xff]  }
 0x631   :  { %8014 = vmatpush2.bf16.msra.mxu1 %v11093_v58  ;;  %7974 = vmatprep.subr.bf16.mxu0 %v11098_v55  ;;  %v11183_v58 = vld [vmem:[%s17129_s5 + $0x7c8] ss:$16 sps:$4 sm:$0xff]   ;;  %v11188_v55 = vld [vmem:[%s17129_s5 + $0x7a4] ss:$16 sps:$4 sm:$0xff]  }
 0x632   :  { %8015 = vmatprep.subr.bf16.mxu1 %v11101_v63  ;;  %v11191_v63 = vld [vmem:[%s17129_s5 + $0x7ac] ss:$16 sps:$4 sm:$0xff]  }
 0x634   :  { %7975 = vmatpush2.bf16.msra.mxu0 %v11096_v15  ;;  %v11186_v15 = vld [vmem:[%s17129_s5 + $0x7a0] ss:$16 sps:$4 sm:$0xff]  }
 0x635   :  { %8016 = vmatpush2.bf16.msra.mxu1 %v11099_v2  ;;  %7976 = vmatprep.subr.bf16.mxu0 %v11104_v33  ;;  %v11189_v2 = vld [vmem:[%s17129_s5 + $0x7a8] ss:$16 sps:$4 sm:$0xff]   ;;  %v11194_v33 = vld [vmem:[%s17129_s5 + $0x784] ss:$16 sps:$4 sm:$0xff]  }
 0x636   :  { %8017 = vmatprep.subr.bf16.mxu1 %v11107_v57  ;;  %v11197_v57 = vld [vmem:[%s17129_s5 + $0x78c] ss:$16 sps:$4 sm:$0xff]  }
 0x638   :  { %7977 = vmatpush2.bf16.msra.mxu0 %v11102_v31  ;;  %v11192_v31 = vld [vmem:[%s17129_s5 + $0x780] ss:$16 sps:$4 sm:$0xff]  }
 0x639   :  { %8018 = vmatpush2.bf16.msra.mxu1 %v11105_v34  ;;  %7978 = vmatprep.subr.bf16.mxu0 %v11110_v10  ;;  %v11195_v34 = vld [vmem:[%s17129_s5 + $0x788] ss:$16 sps:$4 sm:$0xff]   ;;  %v11200_v10 = vld [vmem:[%s17129_s5 + $0x764] ss:$16 sps:$4 sm:$0xff]  }
 0x63a   :  { %8019 = vmatprep.subr.bf16.mxu1 %v11113_v6  ;;  %v11203_v6 = vld [vmem:[%s17129_s5 + $0x76c] ss:$16 sps:$4 sm:$0xff]  }
 0x63c   :  { %7979 = vmatpush2.bf16.msra.mxu0 %v11108_v28  ;;  %v11198_v28 = vld [vmem:[%s17129_s5 + $0x760] ss:$16 sps:$4 sm:$0xff]  }
 0x63d   :  { %8020 = vmatpush2.bf16.msra.mxu1 %v11111_v42  ;;  %7980 = vmatprep.subr.bf16.mxu0 %v11116_v38  ;;  %v11201_v42 = vld [vmem:[%s17129_s5 + $0x768] ss:$16 sps:$4 sm:$0xff]   ;;  %v11206_v38 = vld [vmem:[%s17129_s5 + $0x744] ss:$16 sps:$4 sm:$0xff]  }
 0x63e   :  { %8021 = vmatprep.subr.bf16.mxu1 %v11119_v16  ;;  %v11209_v16 = vld [vmem:[%s17129_s5 + $0x74c] ss:$16 sps:$4 sm:$0xff]  }
 0x640   :  { %7981 = vmatpush2.bf16.msra.mxu0 %v11114_v19  ;;  %v11204_v19 = vld [vmem:[%s17129_s5 + $0x740] ss:$16 sps:$4 sm:$0xff]  }
 0x641   :  { %8022 = vmatpush2.bf16.msra.mxu1 %v11117_v51  ;;  %7982 = vmatprep.subr.bf16.mxu0 %v11122_v5  ;;  %v11207_v51 = vld [vmem:[%s17129_s5 + $0x748] ss:$16 sps:$4 sm:$0xff]   ;;  %v11212_v5 = vld [vmem:[%s17129_s5 + $0x724] ss:$16 sps:$4 sm:$0xff]  }
 0x642   :  { %8023 = vmatprep.subr.bf16.mxu1 %v11125_v4  ;;  %v11215_v4 = vld [vmem:[%s17129_s5 + $0x72c] ss:$16 sps:$4 sm:$0xff]  }
 0x644   :  { %7983 = vmatpush2.bf16.msra.mxu0 %v11120_v60  ;;  %v11210_v60 = vld [vmem:[%s17129_s5 + $0x720] ss:$16 sps:$4 sm:$0xff]  }
 0x645   :  { %8024 = vmatpush2.bf16.msra.mxu1 %v11123_v25  ;;  %8429 = vmatprep.subr.bf16.mxu0 %v11128_v8  ;;  %v11213_v25 = vld [vmem:[%s17129_s5 + $0x728] ss:$16 sps:$4 sm:$0xff]   ;;  %v11218_v8 = vld [vmem:[%s17129_s5 + $0x704] ss:$16 sps:$4 sm:$0xff]  }
 0x646   :  { %8470 = vmatprep.subr.bf16.mxu1 %v11131_v59  ;;  %v11221_v59 = vld [vmem:[%s17129_s5 + $0x70c] ss:$16 sps:$4 sm:$0xff]  }
 0x647   :  { %7985 = vmatmul.mubr.bf16.vlgmr.msra.gmra.mxu0 %v16443_v29 }
 0x648   :  { %8026 = vmatmul.mubr.bf16.vlgmr.msra.gmra.mxu1 %v16443_v29  ;;  %8430 = vmatpush1.bf16.msra.mxu0 %v11126_v17  ;;  %v11216_v17 = vld [vmem:[%s17129_s5 + $0x700] ss:$16 sps:$4 sm:$0xff]  }
 0x649   :  { %8461 = vmatprep.mubr.bf16.mxu0 %v8106_v50  ;;  %8471 = vmatpush1.bf16.msra.mxu1 %v11129_v62  ;;  %v11219_v62 = vld [vmem:[%s17129_s5 + $0x708] ss:$16 sps:$4 sm:$0xff]  }
 0x64a   :  { %8502 = vmatprep.mubr.bf16.mxu1 %v8106_v50  ;;  %8431 = vmatprep.subr.bf16.mxu0 %v11134_v24  ;;  %v8105_v24 = vrot.slane %v16443_v29, 4  ;;  %v11224_v29 = vld [vmem:[%s17131_s7 + $0x38] sm:$0xff]  }
 0x64b   :  { %8472 = vmatprep.subr.bf16.mxu1 %v11137_v14 }
 0x64c   :  { %8432 = vmatpush1.bf16.msra.mxu0 %v11132_v44 }
 0x64d   :  { %8473 = vmatpush1.bf16.msra.mxu1 %v11135_v21  ;;  %8433 = vmatprep.subr.bf16.mxu0 %v11140_v46 }
 0x64e   :  { %8474 = vmatprep.subr.bf16.mxu1 %v11143_v35 }
 0x650   :  { %8434 = vmatpush1.bf16.msra.mxu0 %v11138_v61 }
 0x651   :  { %8475 = vmatpush1.bf16.msra.mxu1 %v11141_v26  ;;  %8435 = vmatprep.subr.bf16.mxu0 %v11146_v43  ;;  %v11222_v43 = vld [vmem:[%s17131_s7 + $0x78] sm:$0xff]  }
 0x652   :  { %8476 = vmatprep.subr.bf16.mxu1 %v11149_v1  ;;  %v11223_v1 = vld [vmem:[%s17131_s7 + $0xf8] ss:$0 sps:$4 sm:$0x33]  }
 0x654   :  { %8436 = vmatpush1.bf16.msra.mxu0 %v11144_v47  ;;  %v11225_v47 = vld [vmem:[%s17131_s7 + $0xb8] sm:$0xff]  }
 0x655   :  { %8477 = vmatpush1.bf16.msra.mxu1 %v11147_v12  ;;  %8437 = vmatprep.subr.bf16.mxu0 %v11152_v41  ;;  %v11226_v12 = vld [vmem:[%s17131_s7 + $0x70] sm:$0xff]  }
 0x656   :  { %8478 = vmatprep.subr.bf16.mxu1 %v11155_v23  ;;  %v11227_v41 = vld [vmem:[%s17131_s7 + $0xf0] sm:$0xff]  }
 0x657   :  { %v11228_v23 = vld [vmem:[%s17131_s7 + $0x30] sm:$0xff]  }
 0x658   :  { %8438 = vmatpush1.bf16.msra.mxu0 %v11150_v40  ;;  %v11229_v40 = vld [vmem:[%s17131_s7 + $0xb0] sm:$0xff]  }
 0x659   :  { %8479 = vmatpush1.bf16.msra.mxu1 %v11153_v32  ;;  %8439 = vmatprep.subr.bf16.mxu0 %v11158_v9  ;;  %v11230_v32 = vld [vmem:[%s17131_s7 + $0x68] sm:$0xff]  }
 0x65a   :  { %8480 = vmatprep.subr.bf16.mxu1 %v11161_v53  ;;  %v11231_v9 = vld [vmem:[%s17131_s7 + $0xe8] sm:$0xff]  }
 0x65b   :  { %v11232_v53 = vld [vmem:[%s17131_s7 + $0x28] sm:$0xff]  }
 0x65c   :  { %8440 = vmatpush1.bf16.msra.mxu0 %v11156_v36  ;;  %v11233_v36 = vld [vmem:[%s17131_s7 + $0xa8] sm:$0xff]  }
 0x65d   :  { %8481 = vmatpush1.bf16.msra.mxu1 %v11159_v7  ;;  %8441 = vmatprep.subr.bf16.mxu0 %v11164_v52  ;;  %v11234_v7 = vld [vmem:[%s17131_s7 + $0x60] sm:$0xff]  }
 0x65e   :  { %8482 = vmatprep.subr.bf16.mxu1 %v11167_v27  ;;  %v11235_v52 = vld [vmem:[%s17131_s7 + $0xe0] sm:$0xff]  }
 0x65f   :  { %v11236_v27 = vld [vmem:[%s17131_s7 + $0x20] sm:$0xff]  }
 0x660   :  { %8442 = vmatpush1.bf16.msra.mxu0 %v11162_v22  ;;  %v11237_v22 = vld [vmem:[%s17131_s7 + $0xa0] sm:$0xff]  }
 0x661   :  { %8483 = vmatpush1.bf16.msra.mxu1 %v11165_v49  ;;  %8443 = vmatprep.subr.bf16.mxu0 %v11170_v3  ;;  %v11238_v49 = vld [vmem:[%s17131_s7 + $0x58] sm:$0xff]  }
 0x662   :  { %8484 = vmatprep.subr.bf16.mxu1 %v11173_v45  ;;  %v11239_v3 = vld [vmem:[%s17131_s7 + $0xd8] sm:$0xff]  }
 0x663   :  { %v11240_v45 = vld [vmem:[%s17131_s7 + $0x18] sm:$0xff]  }
 0x664   :  { %8444 = vmatpush1.bf16.msra.mxu0 %v11168_v48  ;;  %v11241_v48 = vld [vmem:[%s17131_s7 + $0x98] sm:$0xff]  }
 0x665   :  { %8485 = vmatpush1.bf16.msra.mxu1 %v11171_v20  ;;  %8445 = vmatprep.subr.bf16.mxu0 %v11176_v11 }
 0x666   :  { %8486 = vmatprep.subr.bf16.mxu1 %v11179_v54  ;;  %v11242_v54 = vld [vmem:[%s17131_s7 + $0x50] sm:$0xff]  }
 0x668   :  { %8446 = vmatpush2.bf16.msra.mxu0 %v11174_v0  ;;  %v11243_v0 = vld [vmem:[%s17131_s7 + $0xd0] sm:$0xff]  }
 0x669   :  { %8487 = vmatpush2.bf16.msra.mxu1 %v11177_v37  ;;  %8447 = vmatprep.subr.bf16.mxu0 %v11182_v56 }
 0x66a   :  { %8488 = vmatprep.subr.bf16.mxu1 %v11185_v13  ;;  %v11244_v13 = vld [vmem:[%s17131_s7 + $0x10] sm:$0xff]  }
 0x66c   :  { %8448 = vmatpush2.bf16.msra.mxu0 %v11180_v39  ;;  %v11245_v39 = vld [vmem:[%s17131_s7 + $0x90] sm:$0xff]  }
 0x66d   :  { %8489 = vmatpush2.bf16.msra.mxu1 %v11183_v58  ;;  %8449 = vmatprep.subr.bf16.mxu0 %v11188_v55 }
 0x66e   :  { %8490 = vmatprep.subr.bf16.mxu1 %v11191_v63 }
 0x670   :  { %8450 = vmatpush2.bf16.msra.mxu0 %v11186_v15 }
 0x671   :  { %8491 = vmatpush2.bf16.msra.mxu1 %v11189_v2  ;;  %8451 = vmatprep.subr.bf16.mxu0 %v11194_v33 }
 0x672   :  { %8492 = vmatprep.subr.bf16.mxu1 %v11197_v57  ;;  %v11246_v57 = vld [vmem:[%s17131_s7 + $0x48] sm:$0xff]  }
 0x674   :  { %8452 = vmatpush2.bf16.msra.mxu0 %v11192_v31  ;;  %v11247_v31 = vld [vmem:[%s17131_s7 + $0xc8] sm:$0xff]  }
 0x675   :  { %8493 = vmatpush2.bf16.msra.mxu1 %v11195_v34  ;;  %8453 = vmatprep.subr.bf16.mxu0 %v11200_v10  ;;  %v11248_v34 = vld [vmem:[%s17131_s7 + $0x8] sm:$0xff]  }
 0x676   :  { %8494 = vmatprep.subr.bf16.mxu1 %v11203_v6  ;;  %v11249_v10 = vld [vmem:[%s17131_s7 + $0x88] sm:$0xff]  }
 0x678   :  { %8454 = vmatpush2.bf16.msra.mxu0 %v11198_v28 }
 0x679   :  { %8495 = vmatpush2.bf16.msra.mxu1 %v11201_v42  ;;  %8455 = vmatprep.subr.bf16.mxu0 %v11206_v38  ;;  %v11250_v42 = vld [vmem:[%s17131_s7 + $0x40] sm:$0xff]  }
 0x67a   :  { %8496 = vmatprep.subr.bf16.mxu1 %v11209_v16  ;;  %v11251_v38 = vld [vmem:[%s17131_s7 + $0xc0] sm:$0xff]  }
 0x67b   :  { %v11252_v16 = vld [vmem:[%s17131_s7] sm:$0xff]  }
 0x67c   :  { %8456 = vmatpush2.bf16.msra.mxu0 %v11204_v19  ;;  %v11253_v19 = vld [vmem:[%s17131_s7 + $0x80] sm:$0xff]  }
 0x67d   :  { %8497 = vmatpush2.bf16.msra.mxu1 %v11207_v51  ;;  %8457 = vmatprep.subr.bf16.mxu0 %v11212_v5 }
 0x67e   :  { %8498 = vmatprep.subr.bf16.mxu1 %v11215_v4 }
 0x680   :  { %8458 = vmatpush2.bf16.msra.mxu0 %v11210_v60 }
 0x681   :  { %8499 = vmatpush2.bf16.msra.mxu1 %v11213_v25  ;;  %8459 = vmatprep.subr.bf16.mxu0 %v11218_v8 }
 0x682   :  { %8500 = vmatprep.subr.bf16.mxu1 %v11221_v59 }
 0x684   :  { %8460 = vmatpush2.bf16.msra.mxu0 %v11216_v17 }
 0x685   :  { %8501 = vmatpush2.bf16.msra.mxu1 %v11219_v62  ;;  %10228 = vmatprep.subr.bf16.mxu0 %v11222_v43 }
 0x686   :  { %10272 = vmatprep.subr.msk.bf16.mxu1 %vm8812_vm3, %v11223_v1 }
 0x687   :  { %8462 = vmatmul.mubr.bf16.vlgmr.msra.gmra.mxu0 %v8105_v24  ;;  %v7117_v50 = vpop.f32.mrf.mxu0  ;;  %v7158_v14 = vpop.f32.mrf.mxu1 }
 0x688   :  { %8503 = vmatmul.mubr.bf16.vlgmr.msra.gmra.mxu1 %v8105_v24  ;;  %10229 = vmatpush3.bf16.msra.mxu0 %v11224_v29 }
 0x689   :  { %v7119_v44 = vpop.f32.mrf.mxu0  ;;  %v7160_v21 = vpop.f32.mrf.mxu1  ;;  %10251 = vmatpush3.bf16.msra.mxu1 %v11225_v47  ;;  %10230 = vmatprep.subr.bf16.mxu0 %v11226_v12 }
 0x68a   :  { %10252 = vmatprep.subr.bf16.mxu1 %v11227_v41 }
 0x68b   :  { %v7121_v46 = vpop.f32.mrf.mxu0  ;;  %v7162_v35 = vpop.f32.mrf.mxu1 }
 0x68c   :  { %10231 = vmatpush3.bf16.msra.mxu0 %v11228_v23 }
 0x68d   :  { %v7122_v61 = vpop.f32.mrf.mxu0  ;;  %v7163_v26 = vpop.f32.mrf.mxu1  ;;  %10253 = vmatpush3.bf16.msra.mxu1 %v11229_v40  ;;  %10232 = vmatprep.subr.bf16.mxu0 %v11230_v32 }
 0x68e   :  { %10254 = vmatprep.subr.bf16.mxu1 %v11231_v9 }
 0x690   :  { %10233 = vmatpush3.bf16.msra.mxu0 %v11232_v53 }
 0x691   :  { %10255 = vmatpush3.bf16.msra.mxu1 %v11233_v36  ;;  %10234 = vmatprep.subr.bf16.mxu0 %v11234_v7 }
 0x692   :  { %10256 = vmatprep.subr.bf16.mxu1 %v11235_v52 }
 0x694   :  { %10235 = vmatpush3.bf16.msra.mxu0 %v11236_v27 }
 0x695   :  { %10257 = vmatpush3.bf16.msra.mxu1 %v11237_v22  ;;  %10236 = vmatprep.subr.bf16.mxu0 %v11238_v49 }
 0x696   :  { %10258 = vmatprep.subr.bf16.mxu1 %v11239_v3 }
 0x698   :  { %10237 = vmatpush3.bf16.msra.mxu0 %v11240_v45 }
 0x699   :  { %10259 = vmatpush3.bf16.msra.mxu1 %v11241_v48  ;;  %10238 = vmatprep.subr.bf16.mxu0 %v11242_v54 }
 0x69a   :  { %10260 = vmatprep.subr.bf16.mxu1 %v11243_v0 }
 0x69c   :  { %10239 = vmatpush3.bf16.msra.mxu0 %v11244_v13  ;;  %v10194_v13 = vld [vmem:[%s17133_s8] ss:$0 sm:$0xff] }
 0x69d   :  { %10261 = vmatpush3.bf16.msra.mxu1 %v11245_v39  ;;  %10240 = vmatprep.subr.bf16.mxu0 %v11246_v57 }
 0x69e   :  { %10262 = vmatprep.subr.bf16.mxu1 %v11247_v31 }
 0x6a0   :  { %10241 = vmatpush3.bf16.msra.mxu0 %v11248_v34 }
 0x6a1   :  { %10263 = vmatpush3.bf16.msra.mxu1 %v11249_v10  ;;  %10242 = vmatprep.subr.bf16.mxu0 %v11250_v42 }
 0x6a2   :  { %10264 = vmatprep.subr.bf16.mxu1 %v11251_v38 }
 0x6a4   :  { %10243 = vmatpush3.bf16.msra.mxu0 %v11252_v16 }
 0x6a5   :  { %10265 = vmatpush3.bf16.msra.mxu1 %v11253_v19 }
 0x6c7   :  { %v7519_v20 = vpop.f32.mrf.mxu0  ;;  %v7560_v11 = vpop.f32.mrf.mxu1 }
 0x6c8   :  { %v7520_v37 = vadd.f32 %v7519_v20, %v7117_v50  ;;  %v7561_v56 = vadd.f32 %v7560_v11, %v7158_v14  ;;  %v8515_v50 = vld [vmem:[%s17132_s6] sm:$0xf]  ;;  %v17411_v14 = vld [vmem:[#allocation20_spill] sm:$0xff] }
 0x6c9   :  { %v7521_v58 = vpop.f32.mrf.mxu0  ;;  %v7562_v55 = vpop.f32.mrf.mxu1  ;;  %v8520_v46 = vrot.slane %v8515_v50, %v17402_v30  ;;  %v8524_v29 = vrot.slane %v8515_v50, %v17403_v18 }
 0x6ca   :  { %v7522_v63 = vadd.f32 %v7521_v58, %v7119_v44  ;;  %v7563_v15 = vadd.f32 %v7562_v55, %v7160_v21  ;;  %v8527_v44 = vsub.s32 2, %v17411_v14  ;;  %v8531_v21 = vsub.s32 3, %v17411_v14 }
 0x6cb   :  { %v7523_v2 = vpop.f32.mrf.mxu0  ;;  %v7564_v33 = vpop.f32.mrf.mxu1 }
 0x6cc   :  { %v8528_v61 = vrot.slane %v8515_v50, %v8527_v44  ;;  %v8532_v23 = vrot.slane %v8515_v50, %v8531_v21 }
 0x6cd   :  { %v7524_v6 = vpop.f32.mrf.mxu0  ;;  %v7565_v28 = vpop.f32.mrf.mxu1 }
 0x707   :  { %v7986_v51 = vpop.f32.mrf.mxu0 }
 0x708   :  { %v8034_v5 = vadd.f32 %v7986_v51, %v7520_v37  ;;  %v8027_v4 = vpop.f32.mrf.mxu1 }
 0x709   :  { %v8036_v60 = vadd.f32 %v8027_v4, %v7561_v56  ;;  %v7988_v25 = vpop.f32.mrf.mxu0 }
 0x70a   :  { %v8029_v8 = vpop.f32.mrf.mxu1  ;;  %v8035_v26 = vadd.f32 %v7988_v25, %v7522_v63 }
 0x70b   :  { %v7990_v59 = vpop.f32.mrf.mxu0  ;;  %v8037_v47 = vadd.f32 %v8029_v8, %v7563_v15 }
 0x70c   :  { %v8031_v17 = vpop.f32.mrf.mxu1 }
 0x70d   :  { %v7991_v62 = vpop.f32.mrf.mxu0 }
 0x70e   :  { %v8032_v24 = vpop.f32.mrf.mxu1 }
 0x747   :  { %v8463_v35 = vpop.f32.mrf.mxu0 }
 0x748   :  { %v8511_v43 = vadd.f32 %v8463_v35, %v8034_v5  ;;  %v8504_v1 = vpop.f32.mrf.mxu1 }
 0x749   :  { %v8513_v12 = vadd.f32 %v8504_v1, %v8036_v60  ;;  %v8465_v41 = vpop.f32.mrf.mxu0 }
 0x74a   :  { %v8537_v40 = vadd.f32 %v8520_v46, %v8511_v43  ;;  %v8512_v32 = vadd.f32 %v8465_v41, %v8035_v26  ;;  %v8506_v9 = vpop.f32.mrf.mxu1 }
 0x74b   :  { %v8539_v53 = vadd.f32 %v8528_v61, %v8513_v12  ;;  %v8514_v36 = vadd.f32 %v8506_v9, %v8037_v47  ;;  %v8467_v7 = vpop.f32.mrf.mxu0 }
 0x74c   :  { %v8538_v52 = vadd.f32 %v8524_v29, %v8512_v32  ;;  %v8508_v27 = vpop.f32.mrf.mxu1  ;;  %v8541_v30 = vmax.f32 %v8537_v40, 0.0 }
 0x74d   :  { %v8540_v22 = vadd.f32 %v8532_v23, %v8514_v36  ;;  %v8468_v49 = vpop.f32.mrf.mxu0  ;;  %v8543_v3 = vmax.f32 %v8539_v53, 0.0 }
 0x74e   :  { %v8542_v45 = vmax.f32 %v8538_v52, 0.0  ;;  %v8509_v48 = vpop.f32.mrf.mxu1  ;;  %v8545_v11 = vpack.c.bf16 %v8541_v30, %v8541_v30 }
 0x74f   :  { %v8544_v20 = vmax.f32 %v8540_v22, 0.0  ;;  %v8547_v0 = vpack.c.bf16 %v8543_v3, %v8543_v3 }
 0x750   :  { %v8546_v18 = vpack.c.bf16 %v8542_v45, %v8542_v45 }
 0x751   :  { %v8548_v54 = vpack.c.bf16 %v8544_v20, %v8544_v20 }
 0x752   :  { %8848 = vmatprep.mubr.bf16.mxu0 %v8546_v18 }
 0x753   :  { %10227 = vmatprep.mubr.msk.bf16.mxu1 %vm8808_vm4, %v8548_v54  ;;  %8849 = vmatmul.mubr.bf16.vlgmr.msra.gmra.mxu0 %v8545_v11 }
 0x754   :  { %8889 = vmatmul.mubr.bf16.vlgmr.msra.gmra.mxu1 %v8547_v0 }
 0x813   :  { %v10244_v37 = vpop.f32.mrf.mxu0 }
 0x814   :  { %v10266_v56 = vpop.f32.mrf.mxu1 }
 0x815   :  { %v10245_v39 = vpop.f32.mrf.mxu0 }
 0x816   :  { %v10246_v58 = vadd.f32 %v10245_v39, %v10244_v37  ;;  %v10267_v55 = vpop.f32.mrf.mxu1 }
 0x817   :  { %v10247_v63 = vpop.f32.mrf.mxu0  ;;  %v10268_v2 = vadd.f32 %v10267_v55, %v10266_v56 }
 0x818   :  { %v8851_v15 = vadd.f32 %v10246_v58, %v10194_v13  ;;  %v10269_v33 = vpop.f32.mrf.mxu1 }
 0x819   :  { %v10248_v57 = vpop.f32.mrf.mxu0 }
 0x81a   :  { %v10270_v31 = vpop.f32.mrf.mxu1  ;;  %v8891_v34 = vadd.f32 %v10268_v2, %v8851_v15 }
 0x81c   :  { %v8897_v10 = vsel %vm8896_vm5, %v8891_v34, -inf }
 0x81d   :  { %8898 = vmax.xlane.f32.xlu0 %v8897_v10 }
 0x8a6   :  { %v8899_v6 = vpop.xlane.xlu0 %8898 }
 0x8a7   :  { %v8900_v28 = vsub.f32 %v8891_v34, %v8899_v6 }
 0x8a9   :  { %v8901_v42 = vmul.f32 1.442695, %v8900_v28 }
 0x8ab   :  { %11254 = vpow2.f32 %v8901_v42 }
 0x8b8   :  { %v11255_v38 = vpop.eup %11254 }
 0x8b9   :  { %v8903_v16 = vsel %vm8896_vm5, %v11255_v38, 0.0 }
 0x8ba   :  { %8904 = vadd.xlane.f32.xlu0 %v8903_v16 }
 0x943   :  { %v8905_v19 = vpop.xlane.xlu0 %8904 }
 0x944   :  { %11256 = vlog2.f32 %v8905_v19 }
 0x951   :  { %v11257_v51 = vpop.eup %11256 }
 0x952   :  { %v8907_v5 = vmul.f32 0.6931472, %v11257_v51 }
 0x954   :  { %v8908_v4 = vsub.f32 %v8900_v28, %v8907_v5 }
 0x956   :  { %8909 = vst.msk [vmem:[%s17134_s9] sm:$0xff] %vm8896_vm5, %v8908_v4 }

</bundles_post_ra>
